<compile_context>
chip_gen: v5e
topology: v5e:2x2
jax: 0.10.0
libtpu: 0.0.40
codegen_flags: <defaults>
</compile_context>

<pallas_src>
import inspect

import jax
import jax.numpy as jnp
from jax import lax
from jax.experimental import pallas as pl
from jax.experimental.pallas import tpu as pltpu


INPUT_DIM = 768
HIDDEN_DIMS = [512, 256, 128]
BN_EPS = 1e-5

try:
    _HAS_PIPELINE_MODE = hasattr(pl, "Buffered") and (
        "pipeline_mode" in inspect.signature(pl.BlockSpec).parameters)
except Exception:  # pragma: no cover - very old/new jax
    _HAS_PIPELINE_MODE = False


def _device_kind():
    try:
        return jax.devices()[0].device_kind.lower()
    except Exception:
        return ""


def _round_up(n, m):
    return ((n + m - 1) // m) * m


def _choose_batch_tile(B, batch_tile, is_v7x):
    """Rows per grid step.  Block shapes stay legal: either a multiple of 8
    (partial tail clipped by Pallas) or exactly B (block == full array dim)."""
    bt_cap = max(256, _round_up(batch_tile, 256))  # MXU-friendly (also /128 for v5e)
    if B <= bt_cap:
        if is_v7x and B > 512:
            # Split into exactly 2 grid steps so both v7x TensorCores get work.
            return min(_round_up(pl.cdiv(B, 2), 8), B)
        # v5e/v6e: single TC -> keep one tile (no extra step overhead / DMA round).
        return B
    bt = bt_cap
    if is_v7x:
        nt = pl.cdiv(B, bt)
        if nt % 2 == 1:
            # One-shot attempt at an even grid so neither core idles on the tail.
            bt2 = _round_up(pl.cdiv(B, nt + 1), 256)
            if 256 <= bt2 < B and pl.cdiv(B, bt2) % 2 == 0:
                bt = bt2
    return bt


def _mlp_kernel(x_ref,
                w1_ref, s1_ref, b1_ref,
                w2_ref, s2_ref, b2_ref,
                w3_ref, s3_ref, b3_ref,
                w4_ref, b4_ref,
                out_ref):
    # Per-tile bf16 cast of the streamed f32 input (rides in VPU slack).
    x = x_ref[...].astype(jnp.bfloat16)
    # Layer 1: bf16 matmul (f32 accumulate) + folded BN scale/bias + ReLU.
    # Dropout is identity in eval mode.
    h = jnp.dot(x, w1_ref[...], preferred_element_type=jnp.float32)
    h = jnp.maximum(h * s1_ref[...] + b1_ref[...], 0.0)
    # Layer 2
    h = jnp.dot(h.astype(jnp.bfloat16), w2_ref[...],
                preferred_element_type=jnp.float32)
    h = jnp.maximum(h * s2_ref[...] + b2_ref[...], 0.0)
    # Layer 3
    h = jnp.dot(h.astype(jnp.bfloat16), w3_ref[...],
                preferred_element_type=jnp.float32)
    h = jnp.maximum(h * s3_ref[...] + b3_ref[...], 0.0)
    # Final Linear (out_features = 1): contract the feature axis of h against
    # the (1, d3) weight row.  Result is (1, batch_tile): batch lands on the
    # lane axis, so the store is a full unmasked lane-dense vst instead of a
    # masked (batch_tile, 1) column store.
    logits = lax.dot_general(
        w4_ref[...], h.astype(jnp.bfloat16),
        dimension_numbers=(((1,), (1,)), ((), ())),
        preferred_element_type=jnp.float32)              # (1, batch_tile)
    out_ref[...] = logits + b4_ref[...]


def embedding_classifier_forward(x, params, *, batch_tile=1024):
    """x: (B, INPUT_DIM) float32 -> (B, 1) float32 (eval-mode forward)."""
    B, D = x.shape
    assert D == INPUT_DIM
    d1, d2, d3 = HIDDEN_DIMS
    (w1, s1, b1, w2, s2, b2, w3, s3, b3, w4, b4) = params

    kind = _device_kind()
    is_v7x = ("v7" in kind) or ("tpu7" in kind)
    is_v6 = ("v6" in kind) or ("tpu6" in kind)

    bt = _choose_batch_tile(B, batch_tile, is_v7x)
    num_tiles = pl.cdiv(B, bt)

    # bf16 weights for the MXU (tiny, one-time cast; x stays f32 in HBM and is
    # cast per tile inside the kernel -- no wrapper-side pre-pass over x).
    w1b, w2b, w3b, w4b = (w.astype(jnp.bfloat16) for w in (w1, w2, w3, w4))

    has_pm = _HAS_PIPELINE_MODE

    def fixed(shape):
        # Constant block index -> stays VMEM-resident across grid steps (no
        # re-DMA); single buffer since the block never changes.
        if has_pm:
            return pl.BlockSpec(shape, lambda i: (0, 0),
                                pipeline_mode=pl.Buffered(1))
        return pl.BlockSpec(shape, lambda i: (0, 0))

    if has_pm and is_v6:
        # f32 x stream can be the critical resource on v6e -> deeper buffering.
        x_spec = pl.BlockSpec((bt, D), lambda i: (i, 0),
                              pipeline_mode=pl.Buffered(3))
    else:
        x_spec = pl.BlockSpec((bt, D), lambda i: (i, 0))

    out = pl.pallas_call(
        _mlp_kernel,
        out_shape=jax.ShapeDtypeStruct((num_tiles, 1, bt), jnp.float32),
        grid_spec=pltpu.PrefetchScalarGridSpec(
            num_scalar_prefetch=0,
            grid=(num_tiles,),
            in_specs=[
                x_spec,                                            # x (f32)
                fixed((D, d1)), fixed((1, d1)), fixed((1, d1)),    # layer 1
                fixed((d1, d2)), fixed((1, d2)), fixed((1, d2)),   # layer 2
                fixed((d2, d3)), fixed((1, d3)), fixed((1, d3)),   # layer 3
                fixed((1, d3)), fixed((1, 1)),                     # final linear
            ],
            out_specs=pl.BlockSpec((None, 1, bt), lambda i: (i, 0, 0)),
        ),
        compiler_params=pltpu.CompilerParams(
            dimension_semantics=("parallel",),
            vmem_limit_bytes=48 * 1024 * 1024),
    )(x, w1b, s1, b1, w2b, s2, b2, w3b, s3, b3, w4b, b4)

    # Lane-dense (num_tiles, 1, bt) slab -> (B, 1); ragged-tail garbage rows
    # (from the clipped last block) are dropped by the slice.
    return out.reshape(-1)[:B].reshape(B, 1)


def init_params(key):
    """Deterministic init. Returns folded (scale, bias) per BN'd layer."""
    dims = [INPUT_DIM] + HIDDEN_DIMS
    params = []
    for i in range(len(dims) - 1):
        fan_in, fan_out = dims[i], dims[i + 1]
        key, kw, kb, kg, kbe, km, kv = jax.random.split(key, 7)
        bound = 1.0 / jnp.sqrt(fan_in)
        w = jax.random.uniform(kw, (fan_in, fan_out), jnp.float32, -bound, bound)
        b_lin = jax.random.uniform(kb, (fan_out,), jnp.float32, -bound, bound)
        # BatchNorm1d params / running stats (non-trivial but deterministic)
        gamma = 1.0 + 0.1 * jax.random.normal(kg, (fan_out,), jnp.float32)
        beta = 0.1 * jax.random.normal(kbe, (fan_out,), jnp.float32)
        r_mean = 0.1 * jax.random.normal(km, (fan_out,), jnp.float32)
        r_var = 1.0 + 0.1 * jax.random.uniform(kv, (fan_out,), jnp.float32)
        # Fold Linear bias + BN into scale / bias applied after x @ W:
        #   gamma*(xW + b_lin - mean)/sqrt(var+eps) + beta
        scale = gamma / jnp.sqrt(r_var + BN_EPS)
        bias = (b_lin - r_mean) * scale + beta
        params += [w, scale.reshape(1, -1), bias.reshape(1, -1)]
    # Final Linear hidden_dims[-1] -> 1, stored as a (1, d3) row.
    key, kw, kb = jax.random.split(key, 3)
    d3 = HIDDEN_DIMS[-1]
    bound = 1.0 / jnp.sqrt(d3)
    w4 = jax.random.uniform(kw, (1, d3), jnp.float32, -bound, bound)
    b4 = jax.random.uniform(kb, (1, 1), jnp.float32, -bound, bound)
    params += [w4, b4]
    return tuple(params)


def reference_forward(x, params, *, matmul_dtype=jnp.float32):
    """Pure-JAX reference.  matmul_dtype=bf16 mirrors the kernel's MXU inputs."""
    (w1, s1, b1, w2, s2, b2, w3, s3, b3, w4, b4) = params
    c = lambda a: a.astype(matmul_dtype)
    h = jnp.maximum(
        jnp.dot(c(x), c(w1), preferred_element_type=jnp.float32) * s1 + b1, 0.0)
    h = jnp.maximum(
        jnp.dot(c(h), c(w2), preferred_element_type=jnp.float32) * s2 + b2, 0.0)
    h = jnp.maximum(
        jnp.dot(c(h), c(w3), preferred_element_type=jnp.float32) * s3 + b3, 0.0)
    return jnp.dot(c(h), c(w4).T, preferred_element_type=jnp.float32) + b4


if __name__ == "__main__":
    key = jax.random.PRNGKey(0)
    k_params, k_x = jax.random.split(key)
    params = init_params(k_params)

    B = 300  # small batch; not a multiple of 256
    x = jax.random.normal(k_x, (B, INPUT_DIM), jnp.float32)

    # Default tiling (whole batch fits in one tile here).
    out = jax.block_until_ready(embedding_classifier_forward(x, params))
    assert out.shape == (B, 1)

    # Small tile -> multi-step grid with a ragged last block (exercises the
    # Pallas boundary-clipping path that replaced the wrapper-side jnp.pad).
    out_tiled = jax.block_until_ready(
        embedding_classifier_forward(x, params, batch_tile=256))
    assert out_tiled.shape == (B, 1)

    # Matched reference: same bf16 matmul operands, f32 accumulation.
    ref_bf16 = reference_forward(x, params, matmul_dtype=jnp.bfloat16)
    assert jnp.allclose(out, ref_bf16, atol=2e-3, rtol=2e-3), \
        "mismatch vs bf16-matched reference (default tile)"
    assert jnp.allclose(out_tiled, ref_bf16, atol=2e-3, rtol=2e-3), \
        "mismatch vs bf16-matched reference (small tile / ragged tail)"

    # Loose check against full-f32 module semantics (bf16 matmul rounding).
    ref_f32 = reference_forward(x, params, matmul_dtype=jnp.float32)
    assert jnp.allclose(out, ref_f32, atol=1e-1, rtol=1e-1), \
        "mismatch vs f32 reference"

    print("KERNEL_OK")
</pallas_src>

<mosaic_0001>
module attributes {stable_mosaic.version = 11 : i64} {
  func.func @_mlp_kernel(%arg0: i32, %arg1: memref<300x768xf32, #tpu.memory_space<vmem>>, %arg2: memref<768x512xbf16, #tpu.memory_space<vmem>>, %arg3: memref<1x512xf32, #tpu.memory_space<vmem>>, %arg4: memref<1x512xf32, #tpu.memory_space<vmem>>, %arg5: memref<512x256xbf16, #tpu.memory_space<vmem>>, %arg6: memref<1x256xf32, #tpu.memory_space<vmem>>, %arg7: memref<1x256xf32, #tpu.memory_space<vmem>>, %arg8: memref<256x128xbf16, #tpu.memory_space<vmem>>, %arg9: memref<1x128xf32, #tpu.memory_space<vmem>>, %arg10: memref<1x128xf32, #tpu.memory_space<vmem>>, %arg11: memref<1x128xbf16, #tpu.memory_space<vmem>>, %arg12: memref<1x1xf32, #tpu.memory_space<vmem>>, %arg13: memref<1x1x300xf32, #tpu.memory_space<vmem>>) attributes {dimension_semantics = [#tpu.dimension_semantics<parallel>], iteration_bounds = array<i64: 1>, scalar_prefetch = 0 : i64, scratch_operands = 0 : i64, tpu.core_type = #tpu.core_type<tc>, window_params = [{transform_indices = @transform_0, window_bounds = array<i64: 300, 768>}, {pipeline_mode = #tpu.pipeline_mode<synchronous>, transform_indices = @transform_1, window_bounds = array<i64: 768, 512>}, {pipeline_mode = #tpu.pipeline_mode<synchronous>, transform_indices = @transform_2, window_bounds = array<i64: 1, 512>}, {pipeline_mode = #tpu.pipeline_mode<synchronous>, transform_indices = @transform_3, window_bounds = array<i64: 1, 512>}, {pipeline_mode = #tpu.pipeline_mode<synchronous>, transform_indices = @transform_4, window_bounds = array<i64: 512, 256>}, {pipeline_mode = #tpu.pipeline_mode<synchronous>, transform_indices = @transform_5, window_bounds = array<i64: 1, 256>}, {pipeline_mode = #tpu.pipeline_mode<synchronous>, transform_indices = @transform_6, window_bounds = array<i64: 1, 256>}, {pipeline_mode = #tpu.pipeline_mode<synchronous>, transform_indices = @transform_7, window_bounds = array<i64: 256, 128>}, {pipeline_mode = #tpu.pipeline_mode<synchronous>, transform_indices = @transform_8, window_bounds = array<i64: 1, 128>}, {pipeline_mode = #tpu.pipeline_mode<synchronous>, transform_indices = @transform_9, window_bounds = array<i64: 1, 128>}, {pipeline_mode = #tpu.pipeline_mode<synchronous>, transform_indices = @transform_10, window_bounds = array<i64: 1, 128>}, {pipeline_mode = #tpu.pipeline_mode<synchronous>, transform_indices = @transform_11, window_bounds = array<i64: 1, 1>}, {transform_indices = @transform_12, window_bounds = array<i64: 1, 1, 300>}]} {
    %c0 = arith.constant 0 : index
    %c0_0 = arith.constant 0 : index
    %0 = vector.load %arg1[%c0, %c0_0] : memref<300x768xf32, #tpu.memory_space<vmem>>, vector<300x768xf32>
    %1 = arith.truncf %0 : vector<300x768xf32> to vector<300x768xbf16>
    %c0_1 = arith.constant 0 : index
    %c0_2 = arith.constant 0 : index
    %2 = vector.load %arg2[%c0_1, %c0_2] : memref<768x512xbf16, #tpu.memory_space<vmem>>, vector<768x512xbf16>
    %cst = arith.constant dense<0.000000e+00> : vector<300x512xf32>
    %3 = tpu.matmul %1, %2, %cst {dimension_numbers = #tpu.dot_dimension_numbers<[1], [0], [0], [1], [0, 0, 1, 1], [], []>} : vector<300x768xbf16>, vector<768x512xbf16>, vector<300x512xf32> -> vector<300x512xf32>
    %c0_3 = arith.constant 0 : index
    %c0_4 = arith.constant 0 : index
    %4 = vector.load %arg3[%c0_3, %c0_4] : memref<1x512xf32, #tpu.memory_space<vmem>>, vector<1x512xf32>
    %5 = vector.broadcast %4 : vector<1x512xf32> to vector<300x512xf32>
    %6 = arith.mulf %3, %5 : vector<300x512xf32>
    %c0_5 = arith.constant 0 : index
    %c0_6 = arith.constant 0 : index
    %7 = vector.load %arg4[%c0_5, %c0_6] : memref<1x512xf32, #tpu.memory_space<vmem>>, vector<1x512xf32>
    %8 = vector.broadcast %7 : vector<1x512xf32> to vector<300x512xf32>
    %9 = arith.addf %6, %8 : vector<300x512xf32>
    %cst_7 = arith.constant 0.000000e+00 : f32
    %10 = vector.broadcast %cst_7 : f32 to vector<300x512xf32>
    %11 = arith.maximumf %9, %10 : vector<300x512xf32>
    %12 = arith.truncf %11 : vector<300x512xf32> to vector<300x512xbf16>
    %c0_8 = arith.constant 0 : index
    %c0_9 = arith.constant 0 : index
    %13 = vector.load %arg5[%c0_8, %c0_9] : memref<512x256xbf16, #tpu.memory_space<vmem>>, vector<512x256xbf16>
    %cst_10 = arith.constant dense<0.000000e+00> : vector<300x256xf32>
    %14 = tpu.matmul %12, %13, %cst_10 {dimension_numbers = #tpu.dot_dimension_numbers<[1], [0], [0], [1], [0, 0, 1, 1], [], []>} : vector<300x512xbf16>, vector<512x256xbf16>, vector<300x256xf32> -> vector<300x256xf32>
    %c0_11 = arith.constant 0 : index
    %c0_12 = arith.constant 0 : index
    %15 = vector.load %arg6[%c0_11, %c0_12] : memref<1x256xf32, #tpu.memory_space<vmem>>, vector<1x256xf32>
    %16 = vector.broadcast %15 : vector<1x256xf32> to vector<300x256xf32>
    %17 = arith.mulf %14, %16 : vector<300x256xf32>
    %c0_13 = arith.constant 0 : index
    %c0_14 = arith.constant 0 : index
    %18 = vector.load %arg7[%c0_13, %c0_14] : memref<1x256xf32, #tpu.memory_space<vmem>>, vector<1x256xf32>
    %19 = vector.broadcast %18 : vector<1x256xf32> to vector<300x256xf32>
    %20 = arith.addf %17, %19 : vector<300x256xf32>
    %cst_15 = arith.constant 0.000000e+00 : f32
    %21 = vector.broadcast %cst_15 : f32 to vector<300x256xf32>
    %22 = arith.maximumf %20, %21 : vector<300x256xf32>
    %23 = arith.truncf %22 : vector<300x256xf32> to vector<300x256xbf16>
    %c0_16 = arith.constant 0 : index
    %c0_17 = arith.constant 0 : index
    %24 = vector.load %arg8[%c0_16, %c0_17] : memref<256x128xbf16, #tpu.memory_space<vmem>>, vector<256x128xbf16>
    %cst_18 = arith.constant dense<0.000000e+00> : vector<300x128xf32>
    %25 = tpu.matmul %23, %24, %cst_18 {dimension_numbers = #tpu.dot_dimension_numbers<[1], [0], [0], [1], [0, 0, 1, 1], [], []>} : vector<300x256xbf16>, vector<256x128xbf16>, vector<300x128xf32> -> vector<300x128xf32>
    %c0_19 = arith.constant 0 : index
    %c0_20 = arith.constant 0 : index
    %26 = vector.load %arg9[%c0_19, %c0_20] : memref<1x128xf32, #tpu.memory_space<vmem>>, vector<1x128xf32>
    %27 = vector.broadcast %26 : vector<1x128xf32> to vector<300x128xf32>
    %28 = arith.mulf %25, %27 : vector<300x128xf32>
    %c0_21 = arith.constant 0 : index
    %c0_22 = arith.constant 0 : index
    %29 = vector.load %arg10[%c0_21, %c0_22] : memref<1x128xf32, #tpu.memory_space<vmem>>, vector<1x128xf32>
    %30 = vector.broadcast %29 : vector<1x128xf32> to vector<300x128xf32>
    %31 = arith.addf %28, %30 : vector<300x128xf32>
    %cst_23 = arith.constant 0.000000e+00 : f32
    %32 = vector.broadcast %cst_23 : f32 to vector<300x128xf32>
    %33 = arith.maximumf %31, %32 : vector<300x128xf32>
    %c0_24 = arith.constant 0 : index
    %c0_25 = arith.constant 0 : index
    %34 = vector.load %arg11[%c0_24, %c0_25] : memref<1x128xbf16, #tpu.memory_space<vmem>>, vector<1x128xbf16>
    %35 = arith.truncf %33 : vector<300x128xf32> to vector<300x128xbf16>
    %cst_26 = arith.constant dense<0.000000e+00> : vector<1x300xf32>
    %36 = tpu.matmul %34, %35, %cst_26 {dimension_numbers = #tpu.dot_dimension_numbers<[1], [1], [0], [0], [0, 0, 1, 0], [], []>} : vector<1x128xbf16>, vector<300x128xbf16>, vector<1x300xf32> -> vector<1x300xf32>
    %c0_27 = arith.constant 0 : index
    %c0_28 = arith.constant 0 : index
    %37 = vector.load %arg12[%c0_27, %c0_28] : memref<1x1xf32, #tpu.memory_space<vmem>>, vector<1x1xf32>
    %38 = vector.broadcast %37 : vector<1x1xf32> to vector<1x300xf32>
    %39 = arith.addf %36, %38 : vector<1x300xf32>
    %c0_29 = arith.constant 0 : index
    %c0_30 = arith.constant 0 : index
    %c0_31 = arith.constant 0 : index
    %40 = vector.load %arg13[%c0_29, %c0_30, %c0_31] : memref<1x1x300xf32, #tpu.memory_space<vmem>>, vector<1x1x300xf32>
    %41 = vector.shape_cast %40 : vector<1x1x300xf32> to vector<1x300xf32>
    %42 = vector.shape_cast %39 : vector<1x300xf32> to vector<1x1x300xf32>
    tpu.vector_store %arg13[%c0_29, %c0_30, %c0_31], %42 {strides = array<i32>} : memref<1x1x300xf32, #tpu.memory_space<vmem>>, vector<1x1x300xf32>,
    return
  }
  func.func @transform_0(%arg0: i32) -> (i32, i32) {
    %c0_i32 = arith.constant 0 : i32
    %c0_i32_0 = arith.constant 0 : i32
    return %arg0, %c0_i32 : i32, i32
  }
  func.func @transform_1(%arg0: i32) -> (i32, i32) {
    %c0_i32 = arith.constant 0 : i32
    %c0_i32_0 = arith.constant 0 : i32
    %c0_i32_1 = arith.constant 0 : i32
    return %c0_i32, %c0_i32_0 : i32, i32
  }
  func.func @transform_2(%arg0: i32) -> (i32, i32) {
    %c0_i32 = arith.constant 0 : i32
    %c0_i32_0 = arith.constant 0 : i32
    %c0_i32_1 = arith.constant 0 : i32
    return %c0_i32, %c0_i32_0 : i32, i32
  }
  func.func @transform_3(%arg0: i32) -> (i32, i32) {
    %c0_i32 = arith.constant 0 : i32
    %c0_i32_0 = arith.constant 0 : i32
    %c0_i32_1 = arith.constant 0 : i32
    return %c0_i32, %c0_i32_0 : i32, i32
  }
  func.func @transform_4(%arg0: i32) -> (i32, i32) {
    %c0_i32 = arith.constant 0 : i32
    %c0_i32_0 = arith.constant 0 : i32
    %c0_i32_1 = arith.constant 0 : i32
    return %c0_i32, %c0_i32_0 : i32, i32
  }
  func.func @transform_5(%arg0: i32) -> (i32, i32) {
    %c0_i32 = arith.constant 0 : i32
    %c0_i32_0 = arith.constant 0 : i32
    %c0_i32_1 = arith.constant 0 : i32
    return %c0_i32, %c0_i32_0 : i32, i32
  }
  func.func @transform_6(%arg0: i32) -> (i32, i32) {
    %c0_i32 = arith.constant 0 : i32
    %c0_i32_0 = arith.constant 0 : i32
    %c0_i32_1 = arith.constant 0 : i32
    return %c0_i32, %c0_i32_0 : i32, i32
  }
  func.func @transform_7(%arg0: i32) -> (i32, i32) {
    %c0_i32 = arith.constant 0 : i32
    %c0_i32_0 = arith.constant 0 : i32
    %c0_i32_1 = arith.constant 0 : i32
    return %c0_i32, %c0_i32_0 : i32, i32
  }
  func.func @transform_8(%arg0: i32) -> (i32, i32) {
    %c0_i32 = arith.constant 0 : i32
    %c0_i32_0 = arith.constant 0 : i32
    %c0_i32_1 = arith.constant 0 : i32
    return %c0_i32, %c0_i32_0 : i32, i32
  }
  func.func @transform_9(%arg0: i32) -> (i32, i32) {
    %c0_i32 = arith.constant 0 : i32
    %c0_i32_0 = arith.constant 0 : i32
    %c0_i32_1 = arith.constant 0 : i32
    return %c0_i32, %c0_i32_0 : i32, i32
  }
  func.func @transform_10(%arg0: i32) -> (i32, i32) {
    %c0_i32 = arith.constant 0 : i32
    %c0_i32_0 = arith.constant 0 : i32
    %c0_i32_1 = arith.constant 0 : i32
    return %c0_i32, %c0_i32_0 : i32, i32
  }
  func.func @transform_11(%arg0: i32) -> (i32, i32) {
    %c0_i32 = arith.constant 0 : i32
    %c0_i32_0 = arith.constant 0 : i32
    %c0_i32_1 = arith.constant 0 : i32
    return %c0_i32, %c0_i32_0 : i32, i32
  }
  func.func @transform_12(%arg0: i32) -> (i32, i32, i32) {
    %c0_i32 = arith.constant 0 : i32
    %c0_i32_0 = arith.constant 0 : i32
    %c0_i32_1 = arith.constant 0 : i32
    return %arg0, %c0_i32, %c0_i32_0 : i32, i32, i32
  }
}

</mosaic_0001>

<bundles_post_ra>
// kernel: tpu_custom_call.1
= control target key start
LH: loop header
LB: loop body
LE: loop exit
PB: predicated region body
PF: predicated region fallthrough
CT: control target
= control target key end

     0   :  { %s11167_s0 = inlined_call_operand.hbm [shape: f32[300,768], index: 0, kind: input, shape index: {}]   ;;  %s11168_s1 = inlined_call_operand.hbm [shape: bf16[768,512], index: 1, kind: input, shape index: {}]   ;;  %s11169_s2 = inlined_call_operand.hbm [shape: f32[1,512], index: 2, kind: input, shape index: {}]   ;;  %s11170_s3 = inlined_call_operand.vmem [shape: f32[1,512], index: 3, kind: input, shape index: {}]   ;;  %s11171_s4 = inlined_call_operand.hbm [shape: bf16[512,256], index: 4, kind: input, shape index: {}]   ;;  %s11172_s5 = inlined_call_operand.vmem [shape: f32[1,256], index: 5, kind: input, shape index: {}]   ;;  %s11173_s6 = inlined_call_operand.hbm [shape: f32[1,256], index: 6, kind: input, shape index: {}]   ;;  %s11174_s7 = inlined_call_operand.hbm [shape: bf16[256,128], index: 7, kind: input, shape index: {}]   ;;  %s11175_s8 = inlined_call_operand.vmem [shape: f32[1,128], index: 8, kind: input, shape index: {}]   ;;  %s11176_s9 = inlined_call_operand.vmem [shape: f32[1,128], index: 9, kind: input, shape index: {}]   ;;  %s11177_s10 = inlined_call_operand.vmem [shape: bf16[1,128], index: 10, kind: input, shape index: {}]   ;;  %s11178_s11 = inlined_call_operand.<no memory space> [shape: f32[1,1], index: 11, kind: input, shape index: {}]   ;;  %s11179_s12 = inlined_call_operand.hbm [shape: f32[1,1,300], index: 12, kind: output, shape index: {}]  }
   0x1   :  { %v17_v0 = vstv %s11178_s11 }
   0x2   :  { %18 = vst [vmem:[#allocation2] sm:$0x1] %v17_v0 }
   0x3   :  { %19 = vsyncpa [#allocation4], 0 }
   0x4   :  { %20 = vsyncpa [#allocation7], 0 }
   0x5   :  { %21 = vsyncpa [#allocation10], 0 }
   0x6   :  { %22 = vsyncpa [#allocation13], 0  ;;  %s41_s25 = sshll.u32 %s11168_s1, 4  ;;  %s42_s25 = int_to_ptr.hbm [resolvable:$true] %s41_s25 }
   0x7   :  { %23 = vsyncpa [#allocation5], 0  ;;  %s8311_s26 = smov [#allocation6]   ;;  %s67_s30 = sshll.u32 %s11171_s4, 4  ;;  %s68_s30 = int_to_ptr.hbm [resolvable:$true] %s67_s30 }
   0x8   :  { %s43_s27 = sshll.u32 %s8311_s26, 4  ;;  %s8312_s13 = smov 256   ;;  %s44_s27 = int_to_ptr.vmem [resolvable:$true] %s43_s27 }
   0x9   :  { %s8313_s11 = smov 16   ;;  %s8314_s14 = smov [#allocation9]  }
   0xa   :  { %49 = dma.hbm_to_vmem [thread:$0]  %s42_s25, 24576, %s44_s27, [#allocation7], %s8312_s13, %s8312_s13, %s8313_s11  }
   0xb   :  { %s69_s15 = sshll.u32 %s8314_s14, 4  ;;  %s8315_s16 = smov 128   ;;  %s70_s15 = int_to_ptr.vmem [resolvable:$true] %s69_s15 }
   0xc   :  { %s8316_s17 = smov 8   ;;  %s28_s19 = sshll.u32 %s11167_s0, 4  ;;  %s29_s19 = int_to_ptr.hbm [resolvable:$true] %s28_s19 }
   0xd   :  { %75 = dma.hbm_to_vmem [thread:$0]  %s68_s30, 8192, %s70_s15, [#allocation10], %s8315_s16, %s8315_s16, %s8316_s17  }
   0xe   :  { %s8317_s20 = smov [#allocation3]   ;;  %s55_s23 = sshll.u32 %s11169_s2, 4  ;;  %s56_s23 = int_to_ptr.hbm [resolvable:$true] %s55_s23 }
   0xf   :  { %s30_s21 = sshll.u32 %s8317_s20, 4  ;;  %s8318_s24 = smov 768   ;;  %s31_s21 = int_to_ptr.vmem [resolvable:$true] %s30_s21 }
  0x10   :  { %s8319_s25 = smov 48   ;;  %s8320_s26 = smov [#allocation8]  }
  0x11   :  { %36 = dma.hbm_to_vmem [thread:$0]  %s29_s19, 29184, %s31_s21, [#allocation4], %s8318_s24, %s8318_s24, %s8319_s25  }
  0x12   :  { %s57_s27 = sshll.u32 %s8320_s26, 4  ;;  %s83_s30 = sshll.u32 %s11173_s6, 4  ;;  %s58_s27 = int_to_ptr.vmem [resolvable:$true] %s57_s27  ;;  %s84_s30 = int_to_ptr.hbm [resolvable:$true] %s83_s30 }
  0x13   :  { %60 = dma.hbm_to_vmem [thread:$0]  %s56_s23, 64, %s58_s27, [#allocation7]  }
  0x14   :  { %s93_s11 = sshll.u32 %s11174_s7, 4  ;;  %s8321_s14 = smov [#allocation11]   ;;  %s94_s11 = int_to_ptr.hbm [resolvable:$true] %s93_s11 }
  0x15   :  { %s85_s15 = sshll.u32 %s8321_s14, 4  ;;  %s8322_s2 = smov [#allocation12]   ;;  %s86_s15 = int_to_ptr.vmem [resolvable:$true] %s85_s15 }
  0x16   :  { %88 = dma.hbm_to_vmem [thread:$0]  %s84_s30, 32, %s86_s15, [#allocation10]  }
  0x17   :  { %s95_s16 = sshll.u32 %s8322_s2, 4  ;;  %s8323_s17 = smov 64   ;;  %s96_s16 = int_to_ptr.vmem [resolvable:$true] %s95_s16 }
  0x18   :  { %s8324_s1 = smov 4  }
  0x19   :  { %101 = dma.hbm_to_vmem [thread:$0]  %s94_s11, 2048, %s96_s16, [#allocation13], %s8323_s17, %s8323_s17, %s8324_s1  }
  0x1a   :  { %8301 = dma.done.wait [#allocation4], 29184  }
  0x1b   :  { %8302 = vsyncadd [#allocation4], 4294938112 }
  0x1c   :  { %8303 = dma.done.wait [#allocation7], 24640  }
  0x1d   :  { %8304 = vsyncadd [#allocation7], 4294942656 }
  0x1e   :  { %8305 = dma.done.wait [#allocation10], 8224  }
  0x1f   :  { %8306 = vsyncadd [#allocation10], 4294959072 }
  0x20   :  { %8307 = dma.done.wait [#allocation13], 2048  }
  0x21   :  { %8308 = vsyncadd [#allocation13], 4294965248  ;;  %v6844_v1 = vld [vmem:[#allocation6 + $0xe0] sm:$0xf]  ;;  %v7848_v2 = vld [vmem:[#allocation6 + $0xec] sm:$0xf0] }
  0x22   :  { %v6972_v3 = vld [vmem:[#allocation6 + $0x1e0] sm:$0xf]  ;;  %v6845_v4 = vor.u32 %v7848_v2, %v6844_v1  ;;  %v7880_v5 = vld [vmem:[#allocation6 + $0x1ec] sm:$0xf0]  ;;  %v136_v52 = vld [vmem:[#allocation3 + $0x8] sm:$0xff]  ;;  %vm6700_vm0 = vcmask 1040384  }
  0x23   :  { %v6828_v6 = vld [vmem:[#allocation6 + $0xc0] sm:$0xf]  ;;  %v7844_v7 = vld [vmem:[#allocation6 + $0xcc] sm:$0xf0]  ;;  %v6973_v8 = vor.u32 %v7880_v5, %v6972_v3  ;;  %v142_v54 = vld [vmem:[#allocation3 + $0x38] sm:$0xff]  ;;  %s6717_s13 = sshll.u32 %s11179_s12, 4  ;;  %s6718_s13 = int_to_ptr.hbm [resolvable:$true] %s6717_s13 }
  0x24   :  { %v6956_v9 = vld [vmem:[#allocation6 + $0x1c0] sm:$0xf]  ;;  %v7876_v10 = vld [vmem:[#allocation6 + $0x1cc] sm:$0xf0]  ;;  %1629 = vmatpush.bf16.msra.mxu0 %v6845_v4  ;;  %8090 = vmatpush.bf16.msra.mxu3 %v6845_v4  ;;  %v6829_v11 = vor.u32 %v7844_v7, %v6828_v6  ;;  %v268_v55 = vld [vmem:[#allocation3 + $0x428] sm:$0xff]  ;;  %v8417_v59 = vpack.c.bf16 %v142_v54, %v136_v52  ;;  %vm6702_vm1 = vcmask 1041408  }
  0x25   :  { %1733 = vmatpush.bf16.msra.mxu1 %v6973_v8  ;;  %8098 = vmatpush.bf16.msra.mxu2 %v6973_v8  ;;  %v6957_v12 = vor.u32 %v7876_v10, %v6956_v9  ;;  %v6812_v13 = vld [vmem:[#allocation6 + $0xa0] sm:$0xf]  ;;  %v7840_v14 = vld [vmem:[#allocation6 + $0xac] sm:$0xf0]  ;;  %v274_v56 = vld [vmem:[#allocation3 + $0x458] sm:$0xff] }
  0x26   :  { %v6940_v15 = vld [vmem:[#allocation6 + $0x1a0] sm:$0xf]  ;;  %v7872_v16 = vld [vmem:[#allocation6 + $0x1ac] sm:$0xf0]  ;;  %v6813_v17 = vor.u32 %v7840_v14, %v6812_v13  ;;  %11493 = vst [vmem:[#allocation22_spill] sm:$0xff] %v8417_v59  ;;  %v8419_v60 = vpack.c.bf16 %v274_v56, %v268_v55  ;;  %v148_v1 = vld [vmem:[#allocation3 + $0x68] sm:$0xff] }
  0x27   :  { %v6941_v18 = vor.u32 %v7872_v16, %v6940_v15  ;;  %v6796_v19 = vld [vmem:[#allocation6 + $0x80] sm:$0xf]  ;;  %v7836_v20 = vld [vmem:[#allocation6 + $0x8c] sm:$0xf0]  ;;  %v154_v2 = vld [vmem:[#allocation3 + $0x98] sm:$0xff] }
  0x28   :  { %1630 = vmatpush.bf16.msra.mxu0 %v6829_v11  ;;  %8091 = vmatpush.bf16.msra.mxu3 %v6829_v11  ;;  %v6924_v21 = vld [vmem:[#allocation6 + $0x180] sm:$0xf]  ;;  %v7868_v22 = vld [vmem:[#allocation6 + $0x18c] sm:$0xf0]  ;;  %v6797_v23 = vor.u32 %v7836_v20, %v6796_v19  ;;  %11494 = vst [vmem:[#allocation23_spill] sm:$0xff] %v8419_v60  ;;  %v280_v3 = vld [vmem:[#allocation3 + $0x488] sm:$0xff]  ;;  %v8429_v7 = vpack.c.bf16 %v154_v2, %v148_v1 }
  0x29   :  { %1734 = vmatpush.bf16.msra.mxu1 %v6957_v12  ;;  %8099 = vmatpush.bf16.msra.mxu2 %v6957_v12  ;;  %v6925_v24 = vor.u32 %v7868_v22, %v6924_v21  ;;  %v6780_v25 = vld [vmem:[#allocation6 + $0x60] sm:$0xf]  ;;  %v7832_v26 = vld [vmem:[#allocation6 + $0x6c] sm:$0xf0]  ;;  %v286_v4 = vld [vmem:[#allocation3 + $0x4b8] sm:$0xff] }
  0x2a   :  { %v6908_v27 = vld [vmem:[#allocation6 + $0x160] sm:$0xf]  ;;  %v7864_v28 = vld [vmem:[#allocation6 + $0x16c] sm:$0xf0]  ;;  %v6781_v29 = vor.u32 %v7832_v26, %v6780_v25  ;;  %11497 = vst [vmem:[#allocation26_spill] sm:$0xff] %v8429_v7  ;;  %v8431_v8 = vpack.c.bf16 %v286_v4, %v280_v3  ;;  %v160_v13 = vld [vmem:[#allocation3 + $0xc8] sm:$0xff] }
  0x2b   :  { %v6909_v30 = vor.u32 %v7864_v28, %v6908_v27  ;;  %v6764_v31 = vld [vmem:[#allocation6 + $0x40] sm:$0xf]  ;;  %v7828_v32 = vld [vmem:[#allocation6 + $0x4c] sm:$0xf0]  ;;  %v166_v14 = vld [vmem:[#allocation3 + $0xf8] sm:$0xff] }
  0x2c   :  { %1631 = vmatpush.bf16.msra.mxu0 %v6813_v17  ;;  %8092 = vmatpush.bf16.msra.mxu3 %v6813_v17  ;;  %v6892_v33 = vld [vmem:[#allocation6 + $0x140] sm:$0xf]  ;;  %v7860_v34 = vld [vmem:[#allocation6 + $0x14c] sm:$0xf0]  ;;  %v6765_v35 = vor.u32 %v7828_v32, %v6764_v31  ;;  %11498 = vst [vmem:[#allocation27_spill] sm:$0xff] %v8431_v8  ;;  %v292_v15 = vld [vmem:[#allocation3 + $0x4e8] sm:$0xff]  ;;  %v8441_v19 = vpack.c.bf16 %v166_v14, %v160_v13 }
  0x2d   :  { %1735 = vmatpush.bf16.msra.mxu1 %v6941_v18  ;;  %8100 = vmatpush.bf16.msra.mxu2 %v6941_v18  ;;  %v6893_v36 = vor.u32 %v7860_v34, %v6892_v33  ;;  %v6748_v37 = vld [vmem:[#allocation6 + $0x20] sm:$0xf]  ;;  %v7824_v38 = vld [vmem:[#allocation6 + $0x2c] sm:$0xf0]  ;;  %v298_v16 = vld [vmem:[#allocation3 + $0x518] sm:$0xff] }
  0x2e   :  { %v6876_v39 = vld [vmem:[#allocation6 + $0x120] sm:$0xf]  ;;  %v7856_v40 = vld [vmem:[#allocation6 + $0x12c] sm:$0xf0]  ;;  %v6749_v41 = vor.u32 %v7824_v38, %v6748_v37  ;;  %11501 = vst [vmem:[#allocation30_spill] sm:$0xff] %v8441_v19  ;;  %v8443_v20 = vpack.c.bf16 %v298_v16, %v292_v15  ;;  %v172_v25 = vld [vmem:[#allocation3 + $0x128] sm:$0xff] }
  0x2f   :  { %v6877_v42 = vor.u32 %v7856_v40, %v6876_v39  ;;  %v6732_v43 = vld [vmem:[#allocation6] sm:$0xf]  ;;  %v7820_v44 = vld [vmem:[#allocation6 + $0xc] sm:$0xf0]  ;;  %v178_v26 = vld [vmem:[#allocation3 + $0x158] sm:$0xff] }
  0x30   :  { %1632 = vmatpush.bf16.msra.mxu0 %v6797_v23  ;;  %8093 = vmatpush.bf16.msra.mxu3 %v6797_v23  ;;  %v6860_v45 = vld [vmem:[#allocation6 + $0x100] sm:$0xf]  ;;  %v7852_v46 = vld [vmem:[#allocation6 + $0x10c] sm:$0xf0]  ;;  %v6733_v49 = vor.u32 %v7820_v44, %v6732_v43  ;;  %11502 = vst [vmem:[#allocation31_spill] sm:$0xff] %v8443_v20  ;;  %v304_v27 = vld [vmem:[#allocation3 + $0x548] sm:$0xff]  ;;  %v8453_v31 = vpack.c.bf16 %v178_v26, %v172_v25 }
  0x31   :  { %1736 = vmatpush.bf16.msra.mxu1 %v6925_v24  ;;  %8101 = vmatpush.bf16.msra.mxu2 %v6925_v24  ;;  %v135_v47 = vld [vmem:[#allocation3] sm:$0xff]  ;;  %v141_v48 = vld [vmem:[#allocation3 + $0x30] sm:$0xff]  ;;  %v6861_v53 = vor.u32 %v7852_v46, %v6860_v45  ;;  %v310_v28 = vld [vmem:[#allocation3 + $0x578] sm:$0xff] }
  0x32   :  { %v267_v50 = vld [vmem:[#allocation3 + $0x420] sm:$0xff]  ;;  %v273_v51 = vld [vmem:[#allocation3 + $0x450] sm:$0xff]  ;;  %v8413_v57 = vpack.c.bf16 %v141_v48, %v135_v47  ;;  %11505 = vst [vmem:[#allocation34_spill] sm:$0xff] %v8453_v31  ;;  %v8455_v32 = vpack.c.bf16 %v310_v28, %v304_v27  ;;  %v184_v37 = vld [vmem:[#allocation3 + $0x188] sm:$0xff] }
  0x33   :  { %v8415_v58 = vpack.c.bf16 %v273_v51, %v267_v50  ;;  %v147_v61 = vld [vmem:[#allocation3 + $0x60] sm:$0xff]  ;;  %v153_v62 = vld [vmem:[#allocation3 + $0x90] sm:$0xff]  ;;  %v190_v38 = vld [vmem:[#allocation3 + $0x1b8] sm:$0xff] }
  0x34   :  { %1633 = vmatpush.bf16.msra.mxu0 %v6781_v29  ;;  %8094 = vmatpush.bf16.msra.mxu3 %v6781_v29  ;;  %11491 = vst [vmem:[#allocation20_spill] sm:$0xff] %v8413_v57  ;;  %v279_v63 = vld [vmem:[#allocation3 + $0x480] sm:$0xff]  ;;  %v285_v0 = vld [vmem:[#allocation3 + $0x4b0] sm:$0xff]  ;;  %v8425_v5 = vpack.c.bf16 %v153_v62, %v147_v61  ;;  %v316_v39 = vld [vmem:[#allocation3 + $0x5a8] sm:$0xff]  ;;  %v8465_v43 = vpack.c.bf16 %v190_v38, %v184_v37 }
  0x35   :  { %1737 = vmatpush.bf16.msra.mxu1 %v6909_v30  ;;  %8102 = vmatpush.bf16.msra.mxu2 %v6909_v30  ;;  %11492 = vst [vmem:[#allocation21_spill] sm:$0xff] %v8415_v58  ;;  %v8427_v6 = vpack.c.bf16 %v285_v0, %v279_v63  ;;  %v159_v9 = vld [vmem:[#allocation3 + $0xc0] sm:$0xff]  ;;  %v165_v10 = vld [vmem:[#allocation3 + $0xf0] sm:$0xff]  ;;  %v322_v40 = vld [vmem:[#allocation3 + $0x5d8] sm:$0xff] }
  0x36   :  { %11495 = vst [vmem:[#allocation24_spill] sm:$0xff] %v8425_v5  ;;  %v291_v11 = vld [vmem:[#allocation3 + $0x4e0] sm:$0xff]  ;;  %v297_v12 = vld [vmem:[#allocation3 + $0x510] sm:$0xff]  ;;  %v8437_v17 = vpack.c.bf16 %v165_v10, %v159_v9  ;;  %v8467_v44 = vpack.c.bf16 %v322_v40, %v316_v39  ;;  %v196_v13 = vld [vmem:[#allocation3 + $0x1e8] sm:$0xff] }
  0x37   :  { %11496 = vst [vmem:[#allocation25_spill] sm:$0xff] %v8427_v6  ;;  %v8439_v18 = vpack.c.bf16 %v297_v12, %v291_v11  ;;  %v171_v21 = vld [vmem:[#allocation3 + $0x120] sm:$0xff]  ;;  %v177_v22 = vld [vmem:[#allocation3 + $0x150] sm:$0xff]  ;;  %v202_v14 = vld [vmem:[#allocation3 + $0x218] sm:$0xff] }
  0x38   :  { %1634 = vmatpush.bf16.msra.mxu0 %v6765_v35  ;;  %8095 = vmatpush.bf16.msra.mxu3 %v6765_v35  ;;  %11499 = vst [vmem:[#allocation28_spill] sm:$0xff] %v8437_v17  ;;  %v303_v23 = vld [vmem:[#allocation3 + $0x540] sm:$0xff]  ;;  %v309_v24 = vld [vmem:[#allocation3 + $0x570] sm:$0xff]  ;;  %v8449_v29 = vpack.c.bf16 %v177_v22, %v171_v21  ;;  %v328_v15 = vld [vmem:[#allocation3 + $0x608] sm:$0xff]  ;;  %v8477_v26 = vpack.c.bf16 %v202_v14, %v196_v13 }
  0x39   :  { %1738 = vmatpush.bf16.msra.mxu1 %v6893_v36  ;;  %8103 = vmatpush.bf16.msra.mxu2 %v6893_v36  ;;  %11500 = vst [vmem:[#allocation29_spill] sm:$0xff] %v8439_v18  ;;  %v8451_v30 = vpack.c.bf16 %v309_v24, %v303_v23  ;;  %v183_v33 = vld [vmem:[#allocation3 + $0x180] sm:$0xff]  ;;  %v189_v34 = vld [vmem:[#allocation3 + $0x1b0] sm:$0xff]  ;;  %v334_v16 = vld [vmem:[#allocation3 + $0x638] sm:$0xff] }
  0x3a   :  { %11503 = vst [vmem:[#allocation32_spill] sm:$0xff] %v8449_v29  ;;  %v315_v35 = vld [vmem:[#allocation3 + $0x5a0] sm:$0xff]  ;;  %v321_v36 = vld [vmem:[#allocation3 + $0x5d0] sm:$0xff]  ;;  %v8479_v27 = vpack.c.bf16 %v334_v16, %v328_v15 }
  0x3b   :  { %11504 = vst [vmem:[#allocation33_spill] sm:$0xff] %v8451_v30  ;;  %v7100_v45 = vld [vmem:[#allocation6 + $0x2e0] sm:$0xf]  ;;  %v7912_v46 = vld [vmem:[#allocation6 + $0x2ec] sm:$0xf0] }
  0x3c   :  { %1635 = vmatpush.bf16.msra.mxu0 %v6749_v41  ;;  %8096 = vmatpush.bf16.msra.mxu3 %v6749_v41  ;;  %11506 = vst [vmem:[#allocation35_spill] sm:$0xff] %v8455_v32  ;;  %v8461_v41 = vpack.c.bf16 %v189_v34, %v183_v33  ;;  %v7228_v47 = vld [vmem:[#allocation6 + $0x3e0] sm:$0xf]  ;;  %v7101_v48 = vor.u32 %v7912_v46, %v7100_v45  ;;  %v7908_v51 = vld [vmem:[#allocation6 + $0x2cc] sm:$0xf0] }
  0x3d   :  { %1739 = vmatpush.bf16.msra.mxu1 %v6877_v42  ;;  %8104 = vmatpush.bf16.msra.mxu2 %v6877_v42  ;;  %v8463_v42 = vpack.c.bf16 %v321_v36, %v315_v35  ;;  %11509 = vst [vmem:[#allocation38_spill] sm:$0xff] %v8465_v43  ;;  %v7084_v50 = vld [vmem:[#allocation6 + $0x2c0] sm:$0xf]  ;;  %v7940_v54 = vld [vmem:[#allocation6 + $0x3cc] sm:$0xf0] }
  0x3e   :  { %11507 = vst [vmem:[#allocation36_spill] sm:$0xff] %v8461_v41  ;;  %v7085_v55 = vor.u32 %v7908_v51, %v7084_v50  ;;  %v7068_v61 = vld [vmem:[#allocation6 + $0x2a0] sm:$0xf]  ;;  %v7904_v62 = vld [vmem:[#allocation6 + $0x2ac] sm:$0xf0] }
  0x3f   :  { %11508 = vst [vmem:[#allocation37_spill] sm:$0xff] %v8463_v42  ;;  %v7196_v63 = vld [vmem:[#allocation6 + $0x3a0] sm:$0xf]  ;;  %v7936_v0 = vld [vmem:[#allocation6 + $0x3ac] sm:$0xf0]  ;;  %v7069_v2 = vor.u32 %v7904_v62, %v7068_v61  ;;  %v208_v62 = vld [vmem:[#allocation3 + $0x248] sm:$0xff] }
  0x40   :  { %1636 = vmatpush.bf16.msra.mxu0 %v6733_v49  ;;  %8097 = vmatpush.bf16.msra.mxu3 %v6733_v49  ;;  %11510 = vst [vmem:[#allocation39_spill] sm:$0xff] %v8467_v44  ;;  %v7944_v49 = vld [vmem:[#allocation6 + $0x3ec] sm:$0xf0]  ;;  %v195_v1 = vld [vmem:[#allocation3 + $0x1e0] sm:$0xff]  ;;  %v7197_v4 = vor.u32 %v7936_v0, %v7196_v63  ;;  %v214_v63 = vld [vmem:[#allocation3 + $0x278] sm:$0xff] }
  0x41   :  { %1740 = vmatpush.bf16.msra.mxu1 %v6861_v53  ;;  %8105 = vmatpush.bf16.msra.mxu2 %v6861_v53  ;;  %v7229_v52 = vor.u32 %v7944_v49, %v7228_v47  ;;  %v7212_v53 = vld [vmem:[#allocation6 + $0x3c0] sm:$0xf]  ;;  %v201_v3 = vld [vmem:[#allocation3 + $0x210] sm:$0xff]  ;;  %11513 = vst [vmem:[#allocation42_spill] sm:$0xff] %v8477_v26  ;;  %v340_v0 = vld [vmem:[#allocation3 + $0x668] sm:$0xff]  ;;  %v8489_v14 = vpack.c.bf16 %v214_v63, %v208_v62 }
  0x42   :  { %v7213_v56 = vor.u32 %v7940_v54, %v7212_v53  ;;  %v7052_v9 = vld [vmem:[#allocation6 + $0x280] sm:$0xf]  ;;  %v7900_v10 = vld [vmem:[#allocation6 + $0x28c] sm:$0xf0]  ;;  %v8473_v24 = vpack.c.bf16 %v201_v3, %v195_v1  ;;  %11514 = vst [vmem:[#allocation43_spill] sm:$0xff] %v8479_v27  ;;  %v346_v1 = vld [vmem:[#allocation3 + $0x698] sm:$0xff] }
  0x43   :  { %1637 = vmatmul.bf16.vlgmr.msra.gmra.mxu0 %v8413_v57  ;;  %1692 = vmatmul.bf16.vlgmr.msra.gmra.mxu3 %v8415_v58  ;;  %v327_v11 = vld [vmem:[#allocation3 + $0x600] sm:$0xff]  ;;  %v333_v12 = vld [vmem:[#allocation3 + $0x630] sm:$0xff]  ;;  %v7053_v21 = vor.u32 %v7900_v10, %v7052_v9  ;;  %11517 = vst [vmem:[#allocation46_spill] sm:$0xff] %v8489_v14  ;;  %v8491_v15 = vpack.c.bf16 %v346_v1, %v340_v0 }
  0x44   :  { %1741 = vmatmul.bf16.vlgmr.msra.gmra.mxu1 %v8417_v59  ;;  %1796 = vmatmul.bf16.vlgmr.msra.gmra.mxu2 %v8419_v60  ;;  %v7180_v22 = vld [vmem:[#allocation6 + $0x380] sm:$0xf]  ;;  %v7932_v23 = vld [vmem:[#allocation6 + $0x38c] sm:$0xf0]  ;;  %11511 = vst [vmem:[#allocation40_spill] sm:$0xff] %v8473_v24  ;;  %v8475_v25 = vpack.c.bf16 %v333_v12, %v327_v11  ;;  %v164_v60 = vld [vmem:[#allocation3 + $0xe8] sm:$0xff] }
  0x45   :  { %1837 = vmatpush.bf16.msrb.mxu2 %v7101_v48  ;;  %1941 = vmatpush.bf16.msrb.mxu3 %v7229_v52  ;;  %v7181_v28 = vor.u32 %v7932_v23, %v7180_v22  ;;  %v7036_v33 = vld [vmem:[#allocation6 + $0x260] sm:$0xf]  ;;  %v7896_v34 = vld [vmem:[#allocation6 + $0x26c] sm:$0xf0]  ;;  %11518 = vst [vmem:[#allocation47_spill] sm:$0xff] %v8491_v15 }
  0x46   :  { %11512 = vst [vmem:[#allocation41_spill] sm:$0xff] %v8475_v25  ;;  %v7164_v35 = vld [vmem:[#allocation6 + $0x360] sm:$0xf]  ;;  %v7037_v36 = vor.u32 %v7896_v34, %v7036_v33  ;;  %v7928_v37 = vld [vmem:[#allocation6 + $0x36c] sm:$0xf0]  ;;  %v220_v33 = vld [vmem:[#allocation3 + $0x2a8] sm:$0xff] }
  0x47   :  { %v7020_v38 = vld [vmem:[#allocation6 + $0x240] sm:$0xf]  ;;  %v7892_v39 = vld [vmem:[#allocation6 + $0x24c] sm:$0xf0]  ;;  %v7165_v40 = vor.u32 %v7928_v37, %v7164_v35  ;;  %v226_v34 = vld [vmem:[#allocation3 + $0x2d8] sm:$0xff] }
  0x48   :  { %v7021_v45 = vor.u32 %v7892_v39, %v7020_v38  ;;  %v7148_v46 = vld [vmem:[#allocation6 + $0x340] sm:$0xf]  ;;  %v7924_v47 = vld [vmem:[#allocation6 + $0x34c] sm:$0xf0]  ;;  %v352_v35 = vld [vmem:[#allocation3 + $0x6c8] sm:$0xff]  ;;  %v8501_v39 = vpack.c.bf16 %v226_v34, %v220_v33 }
  0x49   :  { %1838 = vmatpush.bf16.msrb.mxu2 %v7085_v55  ;;  %1942 = vmatpush.bf16.msrb.mxu3 %v7213_v56  ;;  %v7004_v48 = vld [vmem:[#allocation6 + $0x220] sm:$0xf]  ;;  %v7888_v49 = vld [vmem:[#allocation6 + $0x22c] sm:$0xf0]  ;;  %v7149_v50 = vor.u32 %v7924_v47, %v7148_v46 }
  0x4a   :  { %v7005_v51 = vor.u32 %v7888_v49, %v7004_v48  ;;  %v7132_v52 = vld [vmem:[#allocation6 + $0x320] sm:$0xf]  ;;  %v7920_v53 = vld [vmem:[#allocation6 + $0x32c] sm:$0xf0]  ;;  %11521 = vst [vmem:[#allocation50_spill] sm:$0xff] %v8501_v39 }
  0x4b   :  { %v207_v54 = vld [vmem:[#allocation3 + $0x240] sm:$0xff]  ;;  %v213_v55 = vld [vmem:[#allocation3 + $0x270] sm:$0xff] }
  0x4c   :  { %v339_v56 = vld [vmem:[#allocation3 + $0x660] sm:$0xff]  ;;  %v345_v61 = vld [vmem:[#allocation3 + $0x690] sm:$0xff]  ;;  %v8485_v10 = vpack.c.bf16 %v213_v55, %v207_v54 }
  0x4d   :  { %1839 = vmatpush.bf16.msrb.mxu2 %v7069_v2  ;;  %1943 = vmatpush.bf16.msrb.mxu3 %v7197_v4  ;;  %v7133_v2 = vor.u32 %v7920_v53, %v7132_v52  ;;  %v6988_v3 = vld [vmem:[#allocation6 + $0x200] sm:$0xf]  ;;  %v7884_v4 = vld [vmem:[#allocation6 + $0x20c] sm:$0xf0]  ;;  %v8487_v11 = vpack.c.bf16 %v345_v61, %v339_v56 }
  0x4e   :  { %v7116_v9 = vld [vmem:[#allocation6 + $0x300] sm:$0xf]  ;;  %11515 = vst [vmem:[#allocation44_spill] sm:$0xff] %v8485_v10  ;;  %v6989_v12 = vor.u32 %v7884_v4, %v6988_v3  ;;  %v7916_v13 = vld [vmem:[#allocation6 + $0x30c] sm:$0xf0]  ;;  %v232_v4 = vld [vmem:[#allocation3 + $0x308] sm:$0xff] }
  0x4f   :  { %11516 = vst [vmem:[#allocation45_spill] sm:$0xff] %v8487_v11  ;;  %v7117_v16 = vor.u32 %v7916_v13, %v7116_v9  ;;  %v225_v22 = vld [vmem:[#allocation3 + $0x2d0] sm:$0xff]  ;;  %v351_v23 = vld [vmem:[#allocation3 + $0x6c0] sm:$0xff]  ;;  %v138_v9 = vld [vmem:[#allocation3 + $0x18] sm:$0xff] }
  0x50   :  { %v7976_v46 = vld [vmem:[#allocation6 + $0x4ec] sm:$0xf0]  ;;  %v7484_v47 = vld [vmem:[#allocation6 + $0x5e0] sm:$0xf] }
  0x51   :  { %1840 = vmatpush.bf16.msrb.mxu2 %v7053_v21  ;;  %1944 = vmatpush.bf16.msrb.mxu3 %v7181_v28  ;;  %v219_v21 = vld [vmem:[#allocation3 + $0x2a0] sm:$0xff]  ;;  %v357_v28 = vld [vmem:[#allocation3 + $0x6f0] sm:$0xf] }
  0x52   :  { %v8497_v37 = vpack.c.bf16 %v225_v22, %v219_v21  ;;  %v8499_v38 = vpack.c.bf16 %v357_v28, %v351_v23  ;;  %v8008_v48 = vld [vmem:[#allocation6 + $0x5ec] sm:$0xf0]  ;;  %v7468_v53 = vld [vmem:[#allocation6 + $0x5c0] sm:$0xf] }
  0x53   :  { %1642 = vmatmul.bf16.gmra.mxu0 %v8425_v5  ;;  %1697 = vmatmul.bf16.gmra.mxu3 %v8427_v6  ;;  %v7972_v52 = vld [vmem:[#allocation6 + $0x4cc] sm:$0xf0]  ;;  %v7324_v61 = vld [vmem:[#allocation6 + $0x4a0] sm:$0xf] }
  0x54   :  { %1746 = vmatmul.bf16.gmra.mxu1 %v8429_v7  ;;  %1801 = vmatmul.bf16.gmra.mxu2 %v8431_v8  ;;  %11519 = vst [vmem:[#allocation48_spill] sm:$0xff] %v8497_v37  ;;  %v8004_v55 = vld [vmem:[#allocation6 + $0x5cc] sm:$0xf0]  ;;  %v7452_v63 = vld [vmem:[#allocation6 + $0x5a0] sm:$0xf] }
  0x55   :  { %1841 = vmatpush.bf16.msrb.mxu2 %v7037_v36  ;;  %1945 = vmatpush.bf16.msrb.mxu3 %v7165_v40  ;;  %v358_v36 = vld [vmem:[#allocation3 + $0x6f8] sm:$0xf]  ;;  %11520 = vst [vmem:[#allocation49_spill] sm:$0xff] %v8499_v38  ;;  %v7469_v56 = vor.u32 %v8004_v55, %v7468_v53  ;;  %v7968_v62 = vld [vmem:[#allocation6 + $0x4ac] sm:$0xf0]  ;;  %v231_v0 = vld [vmem:[#allocation3 + $0x300] sm:$0xff] }
  0x56   :  { %v8503_v40 = vpack.c.bf16 %v358_v36, %v352_v35  ;;  %v237_v1 = vld [vmem:[#allocation3 + $0x330] sm:$0xff]  ;;  %v143_v22 = vld [vmem:[#allocation3 + $0x40] sm:$0xff] }
  0x57   :  { %v8000_v3 = vld [vmem:[#allocation6 + $0x5ac] sm:$0xf0]  ;;  %v7308_v23 = vld [vmem:[#allocation6 + $0x480] sm:$0xf]  ;;  %v8509_v34 = vpack.c.bf16 %v237_v1, %v231_v0 }
  0x58   :  { %11522 = vst [vmem:[#allocation51_spill] sm:$0xff] %v8503_v40  ;;  %v7453_v13 = vor.u32 %v8000_v3, %v7452_v63  ;;  %v137_v21 = vld [vmem:[#allocation3 + $0x10] sm:$0xff]  ;;  %v7436_v33 = vld [vmem:[#allocation6 + $0x580] sm:$0xf] }
  0x59   :  { %1842 = vmatpush.bf16.msrb.mxu2 %v7021_v45  ;;  %1946 = vmatpush.bf16.msrb.mxu3 %v7149_v50  ;;  %v7356_v45 = vld [vmem:[#allocation6 + $0x4e0] sm:$0xf]  ;;  %v7485_v50 = vor.u32 %v8008_v48, %v7484_v47  ;;  %v7964_v28 = vld [vmem:[#allocation6 + $0x48c] sm:$0xf0]  ;;  %11523 = vst [vmem:[#allocation52_spill] sm:$0xff] %v8509_v34  ;;  %v8515_v47 = vpack.c.bf16 %v143_v22, %v137_v21 }
  0x5a   :  { %v7357_v49 = vor.u32 %v7976_v46, %v7356_v45  ;;  %v7996_v36 = vld [vmem:[#allocation6 + $0x58c] sm:$0xf0]  ;;  %v7276_v63 = vld [vmem:[#allocation6 + $0x440] sm:$0xf] }
  0x5b   :  { %2149 = vmatpush.bf16.msrb.mxu1 %v7485_v50  ;;  %11526 = vst [vmem:[#allocation55_spill] sm:$0xff] %v8515_v47  ;;  %v7437_v50 = vor.u32 %v7996_v36, %v7436_v33  ;;  %v7960_v53 = vld [vmem:[#allocation6 + $0x46c] sm:$0xf0]  ;;  %v7404_v1 = vld [vmem:[#allocation6 + $0x540] sm:$0xf] }
  0x5c   :  { %2045 = vmatpush.bf16.msrb.mxu0 %v7357_v49  ;;  %v7309_v49 = vor.u32 %v7964_v28, %v7308_v23  ;;  %v7992_v55 = vld [vmem:[#allocation6 + $0x56c] sm:$0xf0]  ;;  %v7260_v22 = vld [vmem:[#allocation6 + $0x420] sm:$0xf] }
  0x5d   :  { %1843 = vmatpush.bf16.msrb.mxu2 %v7005_v51  ;;  %1947 = vmatpush.bf16.msrb.mxu3 %v7133_v2  ;;  %v7340_v51 = vld [vmem:[#allocation6 + $0x4c0] sm:$0xf]  ;;  %v7325_v2 = vor.u32 %v7968_v62, %v7324_v61  ;;  %v7956_v0 = vld [vmem:[#allocation6 + $0x44c] sm:$0xf0] }
  0x5e   :  { %v7341_v54 = vor.u32 %v7972_v52, %v7340_v51  ;;  %v7292_v52 = vld [vmem:[#allocation6 + $0x460] sm:$0xf]  ;;  %v7988_v3 = vld [vmem:[#allocation6 + $0x54c] sm:$0xf0] }
  0x5f   :  { %2150 = vmatpush.bf16.msrb.mxu1 %v7469_v56  ;;  %v7293_v56 = vor.u32 %v7960_v53, %v7292_v52  ;;  %v7952_v23 = vld [vmem:[#allocation6 + $0x42c] sm:$0xf0]  ;;  %v7388_v28 = vld [vmem:[#allocation6 + $0x520] sm:$0xf]  ;;  %v250_v52 = vld [vmem:[#allocation3 + $0x398] sm:$0xff] }
  0x60   :  { %2046 = vmatpush.bf16.msrb.mxu0 %v7341_v54  ;;  %v7420_v54 = vld [vmem:[#allocation6 + $0x560] sm:$0xf]  ;;  %v249_v36 = vld [vmem:[#allocation3 + $0x390] sm:$0xff] }
  0x61   :  { %1844 = vmatpush.bf16.msrb.mxu2 %v6989_v12  ;;  %1948 = vmatpush.bf16.msrb.mxu3 %v7117_v16  ;;  %v144_v12 = vld [vmem:[#allocation3 + $0x48] sm:$0xff]  ;;  %v238_v16 = vld [vmem:[#allocation3 + $0x338] sm:$0xff]  ;;  %v7421_v61 = vor.u32 %v7992_v55, %v7420_v54  ;;  %v243_v33 = vld [vmem:[#allocation3 + $0x360] sm:$0xff]  ;;  %v7261_v55 = vor.u32 %v7952_v23, %v7260_v22 }
  0x62   :  { %v8511_v35 = vpack.c.bf16 %v144_v12, %v138_v9  ;;  %v8513_v46 = vpack.c.bf16 %v238_v16, %v232_v4  ;;  %v7405_v16 = vor.u32 %v7988_v3, %v7404_v1  ;;  %v149_v53 = vld [vmem:[#allocation3 + $0x70] sm:$0xff]  ;;  %v155_v54 = vld [vmem:[#allocation3 + $0xa0] sm:$0xff] }
  0x63   :  { %1647 = vmatmul.bf16.gmra.mxu0 %v8437_v17  ;;  %1702 = vmatmul.bf16.gmra.mxu3 %v8439_v18 }
  0x64   :  { %1751 = vmatmul.bf16.gmra.mxu1 %v8441_v19  ;;  %1806 = vmatmul.bf16.gmra.mxu2 %v8443_v20  ;;  %11524 = vst [vmem:[#allocation53_spill] sm:$0xff] %v8511_v35 }
  0x65   :  { %2047 = vmatpush.bf16.msrb.mxu0 %v7325_v2  ;;  %2151 = vmatpush.bf16.msrb.mxu1 %v7453_v13  ;;  %11525 = vst [vmem:[#allocation54_spill] sm:$0xff] %v8513_v46  ;;  %v7277_v13 = vor.u32 %v7956_v0, %v7276_v63  ;;  %v7948_v63 = vld [vmem:[#allocation6 + $0x40c] sm:$0xf0]  ;;  %v7372_v0 = vld [vmem:[#allocation6 + $0x500] sm:$0xf] }
  0x69   :  { %2048 = vmatpush.bf16.msrb.mxu0 %v7309_v49  ;;  %2152 = vmatpush.bf16.msrb.mxu1 %v7437_v50  ;;  %v150_v49 = vld [vmem:[#allocation3 + $0x78] sm:$0xff]  ;;  %v156_v50 = vld [vmem:[#allocation3 + $0xa8] sm:$0xff] }
  0x6a   :  { %v8529_v3 = vpack.c.bf16 %v156_v50, %v150_v49  ;;  %v261_v50 = vld [vmem:[#allocation3 + $0x3f0] sm:$0xff] }
  0x6c   :  { %11528 = vst [vmem:[#allocation57_spill] sm:$0xff] %v8529_v3 }
  0x6d   :  { %2049 = vmatpush.bf16.msrb.mxu0 %v7293_v56  ;;  %2153 = vmatpush.bf16.msrb.mxu1 %v7421_v61 }
  0x71   :  { %2050 = vmatpush.bf16.msrb.mxu0 %v7277_v13  ;;  %2154 = vmatpush.bf16.msrb.mxu1 %v7405_v16 }
  0x73   :  { %1652 = vmatmul.bf16.gmra.mxu0 %v8449_v29  ;;  %1707 = vmatmul.bf16.gmra.mxu3 %v8451_v30 }
  0x74   :  { %1756 = vmatmul.bf16.gmra.mxu1 %v8453_v31  ;;  %1811 = vmatmul.bf16.gmra.mxu2 %v8455_v32  ;;  %v152_v32 = vld [vmem:[#allocation3 + $0x88] sm:$0xff] }
  0x75   :  { %2051 = vmatpush.bf16.msrb.mxu0 %v7261_v55  ;;  %v262_v55 = vld [vmem:[#allocation3 + $0x3f8] sm:$0xff] }
  0x83   :  { %1657 = vmatmul.bf16.gmra.mxu0 %v8461_v41  ;;  %1712 = vmatmul.bf16.gmra.mxu3 %v8463_v42 }
  0x84   :  { %1761 = vmatmul.bf16.gmra.mxu1 %v8465_v43  ;;  %1816 = vmatmul.bf16.gmra.mxu2 %v8467_v44 }
  0x93   :  { %1662 = vmatmul.bf16.gmra.mxu0 %v8473_v24  ;;  %1717 = vmatmul.bf16.gmra.mxu3 %v8475_v25 }
  0x94   :  { %1766 = vmatmul.bf16.gmra.mxu1 %v8477_v26  ;;  %1821 = vmatmul.bf16.gmra.mxu2 %v8479_v27 }
  0xa3   :  { %1667 = vmatmul.bf16.gmra.mxu0 %v8485_v10  ;;  %1722 = vmatmul.bf16.gmra.mxu3 %v8487_v11  ;;  %v8535_v11 = vpack.c.bf16 %v155_v54, %v149_v53  ;;  %v162_v53 = vld [vmem:[#allocation3 + $0xd8] sm:$0xff]  ;;  %v168_v54 = vld [vmem:[#allocation3 + $0x108] sm:$0xff] }
  0xa4   :  { %1771 = vmatmul.bf16.gmra.mxu1 %v8489_v14  ;;  %1826 = vmatmul.bf16.gmra.mxu2 %v8491_v15 }
  0xa5   :  { %11530 = vst [vmem:[#allocation59_spill] sm:$0xff] %v8535_v11 }
  0xb3   :  { %1672 = vmatmul.bf16.gmra.mxu0 %v8497_v37  ;;  %1727 = vmatmul.bf16.gmra.mxu3 %v8499_v38 }
  0xb4   :  { %1776 = vmatmul.bf16.gmra.mxu1 %v8501_v39  ;;  %1831 = vmatmul.bf16.gmra.mxu2 %v8503_v40 }
  0xc0   :  { %v1638_v45 = vpop.f32.mrf.mxu0 }
  0xc1   :  { %v1742_v48 = vpop.f32.mrf.mxu1 }
  0xc2   :  { %v8517_v51 = vadd.f32 %v1742_v48, %v1638_v45  ;;  %v7984_v45 = vld [vmem:[#allocation6 + $0x52c] sm:$0xf0]  ;;  %v244_v48 = vld [vmem:[#allocation3 + $0x368] sm:$0xff] }
  0xc3   :  { %1677 = vmatmul.bf16.gmra.mxu0 %v8509_v34  ;;  %1949 = vmatmul.bf16.vlgmr.msrb.gmra.mxu3 %v8511_v35  ;;  %v7389_v56 = vor.u32 %v7984_v45, %v7388_v28  ;;  %v8533_v40 = vpack.c.bf16 %v250_v52, %v244_v48  ;;  %v256_v52 = vld [vmem:[#allocation3 + $0x3c8] sm:$0xff] }
  0xc4   :  { %1781 = vmatmul.bf16.gmra.mxu1 %v8513_v46  ;;  %1845 = vmatmul.bf16.vlgmr.msrb.gmra.mxu2 %v8515_v47 }
  0xc5   :  { %11529 = vst [vmem:[#allocation58_spill] sm:$0xff] %v8533_v40  ;;  %2155 = vmatpush.bf16.msrb.mxu1 %v7389_v56  ;;  %v161_v56 = vld [vmem:[#allocation3 + $0xd0] sm:$0xff] }
  0xc6   :  { %v1693_v62 = vpop.f32.mrf.mxu3 }
  0xc7   :  { %v1797_v2 = vpop.f32.mrf.mxu2 }
  0xc8   :  { %v8523_v4 = vadd.f32 %v1797_v2, %v1693_v62  ;;  %v1640_v9 = vpop.f32.mrf.mxu0  ;;  %v7244_v62 = vld [vmem:[#allocation6 + $0x400] sm:$0xf]  ;;  %v8527_v2 = vpack.c.bf16 %v249_v36, %v243_v33 }
  0xc9   :  { %v1744_v12 = vpop.f32.mrf.mxu1  ;;  %v7245_v16 = vor.u32 %v7948_v63, %v7244_v62 }
  0xca   :  { %v8525_v21 = vadd.f32 %v1744_v12, %v1640_v9  ;;  %11527 = vst [vmem:[#allocation56_spill] sm:$0xff] %v8527_v2  ;;  %v7980_v9 = vld [vmem:[#allocation6 + $0x50c] sm:$0xf0] }
  0xcb   :  { %v7373_v22 = vor.u32 %v7980_v9, %v7372_v0  ;;  %2052 = vmatpush.bf16.msrb.mxu0 %v7245_v16  ;;  %v8553_v16 = vpack.c.bf16 %v262_v55, %v256_v52  ;;  %v174_v55 = vld [vmem:[#allocation3 + $0x138] sm:$0xff] }
  0xcd   :  { %2156 = vmatpush.bf16.msrb.mxu1 %v7373_v22  ;;  %11533 = vst [vmem:[#allocation62_spill] sm:$0xff] %v8553_v16 }
  0xce   :  { %v1695_v61 = vpop.f32.mrf.mxu3 }
  0xcf   :  { %v1799_v1 = vpop.f32.mrf.mxu2 }
  0xd0   :  { %v8531_v12 = vadd.f32 %v1799_v1, %v1695_v61  ;;  %v1643_v38 = vpop.f32.mrf.mxu0  ;;  %v167_v61 = vld [vmem:[#allocation3 + $0x100] sm:$0xff]  ;;  %v8549_v1 = vpack.c.bf16 %v168_v54, %v162_v53  ;;  %v173_v54 = vld [vmem:[#allocation3 + $0x130] sm:$0xff] }
  0xd1   :  { %v1747_v13 = vpop.f32.mrf.mxu1  ;;  %v8555_v22 = vpack.c.bf16 %v167_v61, %v161_v56  ;;  %v180_v56 = vld [vmem:[#allocation3 + $0x168] sm:$0xff]  ;;  %v139_v61 = vld [vmem:[#allocation3 + $0x20] sm:$0xff] }
  0xd2   :  { %v8537_v23 = vadd.f32 %v1747_v13, %v1643_v38  ;;  %v255_v38 = vld [vmem:[#allocation3 + $0x3c0] sm:$0xff]  ;;  %11532 = vst [vmem:[#allocation61_spill] sm:$0xff] %v8549_v1  ;;  %v8567_v27 = vpack.c.bf16 %v180_v56, %v174_v55 }
  0xd3   :  { %1682 = vmatmul.bf16.gmra.mxu0 %v8527_v2  ;;  %1954 = vmatmul.bf16.gmra.mxu3 %v8529_v3  ;;  %v8547_v0 = vpack.c.bf16 %v261_v50, %v255_v38  ;;  %11534 = vst [vmem:[#allocation63_spill] sm:$0xff] %v8555_v22 }
  0xd4   :  { %1786 = vmatmul.bf16.gmra.mxu1 %v8533_v40  ;;  %1850 = vmatmul.bf16.gmra.mxu2 %v8535_v11  ;;  %11535 = vst [vmem:[#allocation64_spill] sm:$0xff] %v8567_v27 }
  0xd5   :  { %11531 = vst [vmem:[#allocation60_spill] sm:$0xff] %v8547_v0 }
  0xd6   :  { %v1698_v28 = vpop.f32.mrf.mxu3 }
  0xd7   :  { %v1802_v33 = vpop.f32.mrf.mxu2 }
  0xd8   :  { %v8543_v36 = vadd.f32 %v1802_v33, %v1698_v28  ;;  %v1645_v45 = vpop.f32.mrf.mxu0 }
  0xd9   :  { %v1749_v48 = vpop.f32.mrf.mxu1 }
  0xda   :  { %v8545_v49 = vadd.f32 %v1749_v48, %v1645_v45 }
  0xde   :  { %v1700_v62 = vpop.f32.mrf.mxu3 }
  0xdf   :  { %v1804_v63 = vpop.f32.mrf.mxu2 }
  0xe0   :  { %v8551_v9 = vadd.f32 %v1804_v63, %v1700_v62  ;;  %v1648_v13 = vpop.f32.mrf.mxu0  ;;  %v145_v62 = vld [vmem:[#allocation3 + $0x50] sm:$0xff]  ;;  %v179_v63 = vld [vmem:[#allocation3 + $0x160] sm:$0xff] }
  0xe1   :  { %v1752_v28 = vpop.f32.mrf.mxu1  ;;  %v8569_v42 = vpack.c.bf16 %v145_v62, %v139_v61  ;;  %v8573_v44 = vpack.c.bf16 %v179_v63, %v173_v54  ;;  %v185_v62 = vld [vmem:[#allocation3 + $0x190] sm:$0xff]  ;;  %v186_v63 = vld [vmem:[#allocation3 + $0x198] sm:$0xff] }
  0xe2   :  { %v8557_v33 = vadd.f32 %v1752_v28, %v1648_v13  ;;  %v140_v13 = vld [vmem:[#allocation3 + $0x28] sm:$0xff]  ;;  %v146_v28 = vld [vmem:[#allocation3 + $0x58] sm:$0xff] }
  0xe3   :  { %1687 = vmatmul.bf16.gmra.mxu0 %v8547_v0  ;;  %1959 = vmatmul.bf16.gmra.mxu3 %v8549_v1  ;;  %11536 = vst [vmem:[#allocation65_spill] sm:$0xff] %v8569_v42 }
  0xe4   :  { %1791 = vmatmul.bf16.gmra.mxu1 %v8553_v16  ;;  %1855 = vmatmul.bf16.gmra.mxu2 %v8555_v22  ;;  %11537 = vst [vmem:[#allocation66_spill] sm:$0xff] %v8573_v44 }
  0xe6   :  { %v1703_v45 = vpop.f32.mrf.mxu3 }
  0xe7   :  { %v1807_v48 = vpop.f32.mrf.mxu2 }
  0xe8   :  { %v8563_v38 = vadd.f32 %v1807_v48, %v1703_v45  ;;  %v1650_v50 = vpop.f32.mrf.mxu0 }
  0xe9   :  { %v1754_v52 = vpop.f32.mrf.mxu1 }
  0xea   :  { %v8565_v53 = vadd.f32 %v1754_v52, %v1650_v50  ;;  %v8575_v50 = vpack.c.bf16 %v146_v28, %v140_v13  ;;  %v192_v13 = vld [vmem:[#allocation3 + $0x1c8] sm:$0xff]  ;;  %v151_v28 = vld [vmem:[#allocation3 + $0x80] sm:$0xff] }
  0xeb   :  { %v8587_v6 = vpack.c.bf16 %v192_v13, %v186_v63 }
  0xec   :  { %11538 = vst [vmem:[#allocation67_spill] sm:$0xff] %v8575_v50 }
  0xed   :  { %11539 = vst [vmem:[#allocation68_spill] sm:$0xff] %v8587_v6 }
  0xee   :  { %v1705_v15 = vpop.f32.mrf.mxu3 }
  0xef   :  { %v1809_v25 = vpop.f32.mrf.mxu2 }
  0xf0   :  { %v8571_v45 = vadd.f32 %v1809_v25, %v1705_v15  ;;  %v1653_v48 = vpop.f32.mrf.mxu0 }
  0xf1   :  { %v1757_v52 = vpop.f32.mrf.mxu1 }
  0xf2   :  { %v8577_v30 = vadd.f32 %v1757_v52, %v1653_v48  ;;  %v157_v48 = vld [vmem:[#allocation3 + $0xb0] sm:$0xff]  ;;  %v191_v52 = vld [vmem:[#allocation3 + $0x1c0] sm:$0xff] }
  0xf3   :  { %1964 = vmatmul.bf16.gmra.mxu3 %v8567_v27  ;;  %2053 = vmatmul.bf16.vlgmr.msrb.gmra.mxu0 %v8569_v42  ;;  %v158_v42 = vld [vmem:[#allocation3 + $0xb8] sm:$0xff]  ;;  %v8593_v8 = vpack.c.bf16 %v191_v52, %v185_v62  ;;  %v163_v52 = vld [vmem:[#allocation3 + $0xe0] sm:$0xff] }
  0xf4   :  { %1860 = vmatmul.bf16.gmra.mxu2 %v8573_v44  ;;  %2157 = vmatmul.bf16.vlgmr.msrb.gmra.mxu1 %v8575_v50  ;;  %v8589_v50 = vpack.c.bf16 %v157_v48, %v151_v28  ;;  %v204_v48 = vld [vmem:[#allocation3 + $0x228] sm:$0xff] }
  0xf5   :  { %11541 = vst [vmem:[#allocation70_spill] sm:$0xff] %v8593_v8 }
  0xf6   :  { %v1708_v55 = vpop.f32.mrf.mxu3  ;;  %11540 = vst [vmem:[#allocation69_spill] sm:$0xff] %v8589_v50 }
  0xf7   :  { %v1812_v56 = vpop.f32.mrf.mxu2 }
  0xf8   :  { %v8583_v25 = vadd.f32 %v1812_v56, %v1708_v55  ;;  %v1655_v15 = vpop.f32.mrf.mxu0 }
  0xf9   :  { %v1759_v54 = vpop.f32.mrf.mxu1 }
  0xfa   :  { %v8585_v61 = vadd.f32 %v1759_v54, %v1655_v15  ;;  %v8595_v15 = vpack.c.bf16 %v158_v42, %v152_v32  ;;  %v197_v32 = vld [vmem:[#allocation3 + $0x1f0] sm:$0xff]  ;;  %v198_v42 = vld [vmem:[#allocation3 + $0x1f8] sm:$0xff] }
  0xfb   :  { %v8607_v2 = vpack.c.bf16 %v204_v48, %v198_v42 }
  0xfc   :  { %11542 = vst [vmem:[#allocation71_spill] sm:$0xff] %v8595_v15 }
  0xfd   :  { %11544 = vst [vmem:[#allocation73_spill] sm:$0xff] %v8607_v2 }
  0xfe   :  { %v1710_v18 = vpop.f32.mrf.mxu3 }
  0xff   :  { %v1814_v20 = vpop.f32.mrf.mxu2 }
 0x100   :  { %v8591_v55 = vadd.f32 %v1814_v20, %v1710_v18  ;;  %v1658_v56 = vpop.f32.mrf.mxu0 }
 0x101   :  { %v1762_v54 = vpop.f32.mrf.mxu1 }
 0x102   :  { %v8597_v58 = vadd.f32 %v1762_v54, %v1658_v56  ;;  %v169_v56 = vld [vmem:[#allocation3 + $0x110] sm:$0xff]  ;;  %v203_v54 = vld [vmem:[#allocation3 + $0x220] sm:$0xff] }
 0x103   :  { %1969 = vmatmul.bf16.gmra.mxu3 %v8587_v6  ;;  %2058 = vmatmul.bf16.gmra.mxu0 %v8589_v50  ;;  %v170_v50 = vld [vmem:[#allocation3 + $0x118] sm:$0xff]  ;;  %v8613_v40 = vpack.c.bf16 %v203_v54, %v197_v32  ;;  %v175_v54 = vld [vmem:[#allocation3 + $0x140] sm:$0xff] }
 0x104   :  { %1865 = vmatmul.bf16.gmra.mxu2 %v8593_v8  ;;  %2162 = vmatmul.bf16.gmra.mxu1 %v8595_v15  ;;  %v8609_v15 = vpack.c.bf16 %v169_v56, %v163_v52  ;;  %v216_v56 = vld [vmem:[#allocation3 + $0x288] sm:$0xff] }
 0x105   :  { %11547 = vst [vmem:[#allocation76_spill] sm:$0xff] %v8613_v40 }
 0x106   :  { %v1713_v63 = vpop.f32.mrf.mxu3  ;;  %11545 = vst [vmem:[#allocation74_spill] sm:$0xff] %v8609_v15 }
 0x107   :  { %v1817_v13 = vpop.f32.mrf.mxu2 }
 0x108   :  { %v8603_v18 = vadd.f32 %v1817_v13, %v1713_v63  ;;  %v1660_v20 = vpop.f32.mrf.mxu0 }
 0x109   :  { %v1764_v62 = vpop.f32.mrf.mxu1 }
 0x10a   :  { %11543 = vst [vmem:[#allocation72_spill] sm:$0xff] %v8603_v18  ;;  %v8605_v28 = vadd.f32 %v1764_v62, %v1660_v20  ;;  %v8615_v20 = vpack.c.bf16 %v170_v50, %v164_v60  ;;  %v209_v60 = vld [vmem:[#allocation3 + $0x250] sm:$0xff]  ;;  %v210_v50 = vld [vmem:[#allocation3 + $0x258] sm:$0xff]  ;;  %v4125_v18 = vld [vmem:[#allocation8] sm:$0xf] }
 0x10b   :  { %v8627_v6 = vpack.c.bf16 %v216_v56, %v210_v50 }
 0x10c   :  { %11548 = vst [vmem:[#allocation77_spill] sm:$0xff] %v8615_v20 }
 0x10d   :  { %11550 = vst [vmem:[#allocation79_spill] sm:$0xff] %v8627_v6 }
 0x10e   :  { %v1715_v0 = vpop.f32.mrf.mxu3 }
 0x10f   :  { %v1819_v16 = vpop.f32.mrf.mxu2 }
 0x110   :  { %v8611_v63 = vadd.f32 %v1819_v16, %v1715_v0  ;;  %v1663_v13 = vpop.f32.mrf.mxu0 }
 0x111   :  { %v1767_v62 = vpop.f32.mrf.mxu1 }
 0x112   :  { %11546 = vst [vmem:[#allocation75_spill] sm:$0xff] %v8611_v63  ;;  %v8617_v34 = vadd.f32 %v1767_v62, %v1663_v13  ;;  %v181_v13 = vld [vmem:[#allocation3 + $0x170] sm:$0xff]  ;;  %v215_v62 = vld [vmem:[#allocation3 + $0x280] sm:$0xff] }
 0x113   :  { %1974 = vmatmul.bf16.gmra.mxu3 %v8607_v2  ;;  %2063 = vmatmul.bf16.gmra.mxu0 %v8609_v15  ;;  %v176_v2 = vld [vmem:[#allocation3 + $0x148] sm:$0xff]  ;;  %v182_v15 = vld [vmem:[#allocation3 + $0x178] sm:$0xff]  ;;  %v8633_v37 = vpack.c.bf16 %v215_v62, %v209_v60  ;;  %v187_v62 = vld [vmem:[#allocation3 + $0x1a0] sm:$0xff] }
 0x114   :  { %1870 = vmatmul.bf16.gmra.mxu2 %v8613_v40  ;;  %2167 = vmatmul.bf16.gmra.mxu1 %v8615_v20  ;;  %v8629_v20 = vpack.c.bf16 %v181_v13, %v175_v54  ;;  %v228_v13 = vld [vmem:[#allocation3 + $0x2e8] sm:$0xff] }
 0x115   :  { %11553 = vst [vmem:[#allocation82_spill] sm:$0xff] %v8633_v37 }
 0x116   :  { %v1718_v42 = vpop.f32.mrf.mxu3  ;;  %11551 = vst [vmem:[#allocation80_spill] sm:$0xff] %v8629_v20 }
 0x117   :  { %v1822_v48 = vpop.f32.mrf.mxu2 }
 0x118   :  { %v8623_v0 = vadd.f32 %v1822_v48, %v1718_v42  ;;  %v1665_v16 = vpop.f32.mrf.mxu0 }
 0x119   :  { %v1769_v32 = vpop.f32.mrf.mxu1 }
 0x11a   :  { %11549 = vst [vmem:[#allocation78_spill] sm:$0xff] %v8623_v0  ;;  %v8625_v52 = vadd.f32 %v1769_v32, %v1665_v16  ;;  %v8635_v16 = vpack.c.bf16 %v182_v15, %v176_v2  ;;  %v221_v2 = vld [vmem:[#allocation3 + $0x2b0] sm:$0xff]  ;;  %v222_v15 = vld [vmem:[#allocation3 + $0x2b8] sm:$0xff] }
 0x11b   :  { %v8647_v27 = vpack.c.bf16 %v228_v13, %v222_v15 }
 0x11c   :  { %11554 = vst [vmem:[#allocation83_spill] sm:$0xff] %v8635_v16 }
 0x11d   :  { %11556 = vst [vmem:[#allocation85_spill] sm:$0xff] %v8647_v27 }
 0x11e   :  { %v1720_v46 = vpop.f32.mrf.mxu3 }
 0x11f   :  { %v1824_v40 = vpop.f32.mrf.mxu2 }
 0x120   :  { %v8631_v42 = vadd.f32 %v1824_v40, %v1720_v46  ;;  %v1668_v48 = vpop.f32.mrf.mxu0 }
 0x121   :  { %v1772_v32 = vpop.f32.mrf.mxu1 }
 0x122   :  { %11552 = vst [vmem:[#allocation81_spill] sm:$0xff] %v8631_v42  ;;  %v8637_v8 = vadd.f32 %v1772_v32, %v1668_v48  ;;  %v193_v48 = vld [vmem:[#allocation3 + $0x1d0] sm:$0xff]  ;;  %v227_v32 = vld [vmem:[#allocation3 + $0x2e0] sm:$0xff] }
 0x123   :  { %1979 = vmatmul.bf16.gmra.mxu3 %v8627_v6  ;;  %2068 = vmatmul.bf16.gmra.mxu0 %v8629_v20  ;;  %v188_v6 = vld [vmem:[#allocation3 + $0x1a8] sm:$0xff]  ;;  %v194_v20 = vld [vmem:[#allocation3 + $0x1d8] sm:$0xff] }
 0x124   :  { %1875 = vmatmul.bf16.gmra.mxu2 %v8633_v37  ;;  %2172 = vmatmul.bf16.gmra.mxu1 %v8635_v16  ;;  %v8649_v16 = vpack.c.bf16 %v193_v48, %v187_v62  ;;  %v240_v48 = vld [vmem:[#allocation3 + $0x348] sm:$0xff] }
 0x126   :  { %v1723_v50 = vpop.f32.mrf.mxu3  ;;  %11557 = vst [vmem:[#allocation86_spill] sm:$0xff] %v8649_v16 }
 0x127   :  { %v1827_v56 = vpop.f32.mrf.mxu2 }
 0x128   :  { %v8643_v40 = vadd.f32 %v1827_v56, %v1723_v50  ;;  %v1670_v46 = vpop.f32.mrf.mxu0 }
 0x129   :  { %v1774_v60 = vpop.f32.mrf.mxu1 }
 0x12a   :  { %11555 = vst [vmem:[#allocation84_spill] sm:$0xff] %v8643_v40  ;;  %v8645_v54 = vadd.f32 %v1774_v60, %v1670_v46  ;;  %v8653_v40 = vpack.c.bf16 %v227_v32, %v221_v2  ;;  %v8655_v46 = vpack.c.bf16 %v194_v20, %v188_v6  ;;  %v233_v6 = vld [vmem:[#allocation3 + $0x310] sm:$0xff]  ;;  %v234_v20 = vld [vmem:[#allocation3 + $0x318] sm:$0xff]  ;;  %v199_v32 = vld [vmem:[#allocation3 + $0x200] sm:$0xff] }
 0x12b   :  { %v8667_v44 = vpack.c.bf16 %v240_v48, %v234_v20 }
 0x12c   :  { %11559 = vst [vmem:[#allocation88_spill] sm:$0xff] %v8653_v40 }
 0x12d   :  { %11560 = vst [vmem:[#allocation89_spill] sm:$0xff] %v8655_v46 }
 0x12e   :  { %v1725_v39 = vpop.f32.mrf.mxu3  ;;  %11562 = vst [vmem:[#allocation91_spill] sm:$0xff] %v8667_v44 }
 0x12f   :  { %v1829_v37 = vpop.f32.mrf.mxu2 }
 0x130   :  { %v8651_v50 = vadd.f32 %v1829_v37, %v1725_v39  ;;  %v1673_v56 = vpop.f32.mrf.mxu0 }
 0x131   :  { %v1777_v60 = vpop.f32.mrf.mxu1 }
 0x132   :  { %11558 = vst [vmem:[#allocation87_spill] sm:$0xff] %v8651_v50  ;;  %v8657_v10 = vadd.f32 %v1777_v60, %v1673_v56  ;;  %v205_v56 = vld [vmem:[#allocation3 + $0x230] sm:$0xff]  ;;  %v239_v60 = vld [vmem:[#allocation3 + $0x340] sm:$0xff] }
 0x133   :  { %1984 = vmatmul.bf16.gmra.mxu3 %v8647_v27  ;;  %2073 = vmatmul.bf16.gmra.mxu0 %v8649_v16  ;;  %v200_v27 = vld [vmem:[#allocation3 + $0x208] sm:$0xff]  ;;  %v206_v16 = vld [vmem:[#allocation3 + $0x238] sm:$0xff] }
 0x134   :  { %1880 = vmatmul.bf16.gmra.mxu2 %v8653_v40  ;;  %2177 = vmatmul.bf16.gmra.mxu1 %v8655_v46  ;;  %v8669_v46 = vpack.c.bf16 %v205_v56, %v199_v32  ;;  %v246_v56 = vld [vmem:[#allocation3 + $0x378] sm:$0xff] }
 0x136   :  { %v1728_v15 = vpop.f32.mrf.mxu3  ;;  %11563 = vst [vmem:[#allocation92_spill] sm:$0xff] %v8669_v46 }
 0x137   :  { %v1832_v13 = vpop.f32.mrf.mxu2 }
 0x138   :  { %v8663_v37 = vadd.f32 %v1832_v13, %v1728_v15  ;;  %v1675_v39 = vpop.f32.mrf.mxu0 }
 0x139   :  { %v1779_v2 = vpop.f32.mrf.mxu1 }
 0x13a   :  { %11561 = vst [vmem:[#allocation90_spill] sm:$0xff] %v8663_v37  ;;  %v8665_v62 = vadd.f32 %v1779_v2, %v1675_v39  ;;  %v8673_v37 = vpack.c.bf16 %v239_v60, %v233_v6  ;;  %v8675_v39 = vpack.c.bf16 %v206_v16, %v200_v27  ;;  %v245_v16 = vld [vmem:[#allocation3 + $0x370] sm:$0xff]  ;;  %v252_v60 = vld [vmem:[#allocation3 + $0x3a8] sm:$0xff] }
 0x13b   :  { %v8688_v42 = vpack.c.bf16 %v252_v60, %v246_v56  ;;  %v258_v60 = vld [vmem:[#allocation3 + $0x3d8] sm:$0xff] }
 0x13c   :  { %11565 = vst [vmem:[#allocation94_spill] sm:$0xff] %v8673_v37 }
 0x13d   :  { %11566 = vst [vmem:[#allocation95_spill] sm:$0xff] %v8675_v39 }
 0x13e   :  { %v1730_v50 = vpop.f32.mrf.mxu3  ;;  %11567 = vst [vmem:[#allocation96_spill] sm:$0xff] %v8688_v42 }
 0x13f   :  { %v1834_v40 = vpop.f32.mrf.mxu2 }
 0x140   :  { %v8671_v15 = vadd.f32 %v1834_v40, %v1730_v50  ;;  %v1678_v13 = vpop.f32.mrf.mxu0 }
 0x141   :  { %v1782_v2 = vpop.f32.mrf.mxu1 }
 0x142   :  { %11564 = vst [vmem:[#allocation93_spill] sm:$0xff] %v8671_v15  ;;  %v8677_v14 = vadd.f32 %v1782_v2, %v1678_v13  ;;  %v211_v13 = vld [vmem:[#allocation3 + $0x260] sm:$0xff]  ;;  %v217_v2 = vld [vmem:[#allocation3 + $0x290] sm:$0xff] }
 0x143   :  { %1989 = vmatmul.bf16.gmra.mxu3 %v8667_v44  ;;  %2078 = vmatmul.bf16.gmra.mxu0 %v8669_v46  ;;  %v251_v46 = vld [vmem:[#allocation3 + $0x3a0] sm:$0xff]  ;;  %v212_v44 = vld [vmem:[#allocation3 + $0x268] sm:$0xff]  ;;  %v8690_v0 = vpack.c.bf16 %v217_v2, %v211_v13 }
 0x144   :  { %1885 = vmatmul.bf16.gmra.mxu2 %v8673_v37  ;;  %2182 = vmatmul.bf16.gmra.mxu1 %v8675_v39  ;;  %v218_v37 = vld [vmem:[#allocation3 + $0x298] sm:$0xff]  ;;  %v264_v13 = vld [vmem:[#allocation3 + $0x408] sm:$0xff]  ;;  %v223_v2 = vld [vmem:[#allocation3 + $0x2c0] sm:$0xff] }
 0x145   :  { %11568 = vst [vmem:[#allocation97_spill] sm:$0xff] %v8690_v0 }
 0x146   :  { %v1950_v20 = vpop.f32.mrf.mxu3 }
 0x147   :  { %v1846_v48 = vpop.f32.mrf.mxu2 }
 0x148   :  { %v1847_v40 = vadd.f32 %v1846_v48, %v8517_v51  ;;  %v1680_v50 = vpop.f32.mrf.mxu0  ;;  %v8693_v48 = vpack.c.bf16 %v251_v46, %v245_v16  ;;  %v257_v16 = vld [vmem:[#allocation3 + $0x3d0] sm:$0xff] }
 0x149   :  { %v1784_v6 = vpop.f32.mrf.mxu1 }
 0x14a   :  { %v8684_v32 = vadd.f32 %v1950_v20, %v1847_v40  ;;  %v8686_v27 = vadd.f32 %v1784_v6, %v1680_v50  ;;  %11569 = vst [vmem:[#allocation98_spill] sm:$0xff] %v8693_v48  ;;  %v8695_v40 = vpack.c.bf16 %v218_v37, %v212_v44 }
 0x14c   :  { %11570 = vst [vmem:[#allocation99_spill] sm:$0xff] %v8695_v40 }
 0x14e   :  { %v1952_v15 = vpop.f32.mrf.mxu3 }
 0x14f   :  { %v1848_v39 = vpop.f32.mrf.mxu2 }
 0x150   :  { %v1849_v51 = vadd.f32 %v1848_v39, %v8525_v21  ;;  %v1683_v20 = vpop.f32.mrf.mxu0 }
 0x151   :  { %v1787_v50 = vpop.f32.mrf.mxu1 }
 0x152   :  { %v8697_v6 = vadd.f32 %v1952_v15, %v1849_v51  ;;  %v8699_v1 = vadd.f32 %v1787_v50, %v1683_v20  ;;  %v229_v51 = vld [vmem:[#allocation3 + $0x2f0] sm:$0xff]  ;;  %v263_v20 = vld [vmem:[#allocation3 + $0x400] sm:$0xff]  ;;  %v224_v50 = vld [vmem:[#allocation3 + $0x2c8] sm:$0xff] }
 0x153   :  { %1994 = vmatmul.bf16.gmra.mxu3 %v8688_v42  ;;  %2083 = vmatmul.bf16.gmra.mxu0 %v8690_v0  ;;  %v230_v0 = vld [vmem:[#allocation3 + $0x2f8] sm:$0xff]  ;;  %v8712_v24 = vpack.c.bf16 %v229_v51, %v223_v2  ;;  %v269_v2 = vld [vmem:[#allocation3 + $0x430] sm:$0xff] }
 0x154   :  { %1890 = vmatmul.bf16.gmra.mxu2 %v8693_v48  ;;  %2187 = vmatmul.bf16.gmra.mxu1 %v8695_v40  ;;  %v8710_v48 = vpack.c.bf16 %v264_v13, %v258_v60  ;;  %v270_v51 = vld [vmem:[#allocation3 + $0x438] sm:$0xff] }
 0x155   :  { %11572 = vst [vmem:[#allocation101_spill] sm:$0xff] %v8712_v24 }
 0x156   :  { %v1955_v56 = vpop.f32.mrf.mxu3  ;;  %11571 = vst [vmem:[#allocation100_spill] sm:$0xff] %v8710_v48 }
 0x157   :  { %v1851_v21 = vpop.f32.mrf.mxu2 }
 0x158   :  { %v1852_v46 = vadd.f32 %v1851_v21, %v8537_v23  ;;  %v1685_v39 = vpop.f32.mrf.mxu0  ;;  %v8715_v21 = vpack.c.bf16 %v263_v20, %v257_v16  ;;  %v276_v20 = vld [vmem:[#allocation3 + $0x468] sm:$0xff] }
 0x159   :  { %v1789_v44 = vpop.f32.mrf.mxu1 }
 0x15a   :  { %v8706_v37 = vadd.f32 %v1955_v56, %v1852_v46  ;;  %v8708_v15 = vadd.f32 %v1789_v44, %v1685_v39  ;;  %11573 = vst [vmem:[#allocation102_spill] sm:$0xff] %v8715_v21  ;;  %v8717_v46 = vpack.c.bf16 %v230_v0, %v224_v50  ;;  %v235_v50 = vld [vmem:[#allocation3 + $0x320] sm:$0xff] }
 0x15c   :  { %11574 = vst [vmem:[#allocation103_spill] sm:$0xff] %v8717_v46 }
 0x15e   :  { %v1957_v42 = vpop.f32.mrf.mxu3 }
 0x15f   :  { %v1853_v40 = vpop.f32.mrf.mxu2 }
 0x160   :  { %v1854_v23 = vadd.f32 %v1853_v40, %v8545_v49  ;;  %v1688_v56 = vpop.f32.mrf.mxu0 }
 0x161   :  { %v1792_v39 = vpop.f32.mrf.mxu1 }
 0x162   :  { %v8719_v44 = vadd.f32 %v1957_v42, %v1854_v23  ;;  %v8721_v22 = vadd.f32 %v1792_v39, %v1688_v56  ;;  %v241_v23 = vld [vmem:[#allocation3 + $0x350] sm:$0xff]  ;;  %v275_v56 = vld [vmem:[#allocation3 + $0x460] sm:$0xff]  ;;  %v236_v39 = vld [vmem:[#allocation3 + $0x328] sm:$0xff] }
 0x163   :  { %1999 = vmatmul.bf16.gmra.mxu3 %v8710_v48  ;;  %2088 = vmatmul.bf16.gmra.mxu0 %v8712_v24  ;;  %v242_v24 = vld [vmem:[#allocation3 + $0x358] sm:$0xff]  ;;  %v8734_v26 = vpack.c.bf16 %v241_v23, %v235_v50 }
 0x164   :  { %1895 = vmatmul.bf16.gmra.mxu2 %v8715_v21  ;;  %2192 = vmatmul.bf16.gmra.mxu1 %v8717_v46  ;;  %v8732_v21 = vpack.c.bf16 %v276_v20, %v270_v51 }
 0x165   :  { %11576 = vst [vmem:[#allocation105_spill] sm:$0xff] %v8734_v26 }
 0x166   :  { %v1960_v60 = vpop.f32.mrf.mxu3  ;;  %11575 = vst [vmem:[#allocation104_spill] sm:$0xff] %v8732_v21 }
 0x167   :  { %v1856_v49 = vpop.f32.mrf.mxu2 }
 0x168   :  { %v1857_v40 = vadd.f32 %v1856_v49, %v8557_v33  ;;  %v1690_v16 = vpop.f32.mrf.mxu0  ;;  %v8737_v49 = vpack.c.bf16 %v275_v56, %v269_v2 }
 0x169   :  { %v1794_v0 = vpop.f32.mrf.mxu1 }
 0x16a   :  { %v8728_v13 = vadd.f32 %v1960_v60, %v1857_v40  ;;  %v8730_v42 = vadd.f32 %v1794_v0, %v1690_v16  ;;  %11577 = vst [vmem:[#allocation106_spill] sm:$0xff] %v8737_v49  ;;  %v8739_v40 = vpack.c.bf16 %v242_v24, %v236_v39  ;;  %v4287_v24 = vld [vmem:[%s11170_s3] sm:$0xf]  ;;  %v281_v39 = vld [vmem:[#allocation3 + $0x490] sm:$0xff] }
 0x16b   :  { %v8755_v20 = vperm.slane %v4287_v24, 0 }
 0x16c   :  { %11578 = vst [vmem:[#allocation107_spill] sm:$0xff] %v8739_v40 }
 0x16e   :  { %v1962_v48 = vpop.f32.mrf.mxu3 }
 0x16f   :  { %v1858_v46 = vpop.f32.mrf.mxu2 }
 0x170   :  { %v1859_v33 = vadd.f32 %v1858_v46, %v8565_v53  ;;  %v2054_v60 = vpop.f32.mrf.mxu0  ;;  %v8748_v53 = vperm.slane %v4125_v18, 0 }
 0x171   :  { %v2055_v16 = vadd.f32 %v2054_v60, %v8684_v32  ;;  %v2158_v0 = vpop.f32.mrf.mxu1  ;;  %v288_v60 = vld [vmem:[#allocation3 + $0x4c8] sm:$0xff] }
 0x172   :  { %v8742_v63 = vadd.f32 %v1962_v48, %v1859_v33  ;;  %v282_v33 = vld [vmem:[#allocation3 + $0x498] sm:$0xff] }
 0x173   :  { %v2159_v3 = vadd.f32 %v2158_v0, %v2055_v16  ;;  %2004 = vmatmul.bf16.gmra.mxu3 %v8732_v21  ;;  %2093 = vmatmul.bf16.gmra.mxu0 %v8734_v26  ;;  %v247_v16 = vld [vmem:[#allocation3 + $0x380] sm:$0xff]  ;;  %v253_v0 = vld [vmem:[#allocation3 + $0x3b0] sm:$0xff] }
 0x174   :  { %1900 = vmatmul.bf16.gmra.mxu2 %v8737_v49  ;;  %2197 = vmatmul.bf16.gmra.mxu1 %v8739_v40  ;;  %v248_v40 = vld [vmem:[#allocation3 + $0x388] sm:$0xff] }
 0x175   :  { %v4135_v51 = vmul.f32 %v8748_v53, %v2159_v3  ;;  %v254_v3 = vld [vmem:[#allocation3 + $0x3b8] sm:$0xff] }
 0x176   :  { %v1965_v32 = vpop.f32.mrf.mxu3  ;;  %v8770_v49 = vpack.c.bf16 %v254_v3, %v248_v40  ;;  %v259_v3 = vld [vmem:[#allocation3 + $0x3e0] sm:$0xff] }
 0x177   :  { %v1861_v46 = vpop.f32.mrf.mxu2  ;;  %v4297_v26 = vadd.f32 %v8755_v20, %v4135_v51 }
 0x178   :  { %v1862_v48 = vadd.f32 %v1861_v46, %v8577_v30  ;;  %v2056_v2 = vpop.f32.mrf.mxu0  ;;  %v287_v46 = vld [vmem:[#allocation3 + $0x4c0] sm:$0xff]  ;;  %11582 = vst [vmem:[#allocation111_spill] sm:$0xff] %v8770_v49 }
 0x179   :  { %v2057_v50 = vadd.f32 %v2056_v2, %v8697_v6  ;;  %v2160_v23 = vpop.f32.mrf.mxu1  ;;  %v8763_v2 = vpack.c.bf16 %v288_v60, %v282_v33  ;;  %v4449_v51 = vmax.f32 %v4297_v26, 0.0 }
 0x17a   :  { %v8758_v56 = vadd.f32 %v1965_v32, %v1862_v48  ;;  %v8765_v32 = vpack.c.bf16 %v253_v0, %v247_v16  ;;  %v294_v0 = vld [vmem:[#allocation3 + $0x4f8] sm:$0xff] }
 0x17b   :  { %v2161_v18 = vadd.f32 %v2160_v23, %v2057_v50  ;;  %11579 = vst [vmem:[#allocation108_spill] sm:$0xff] %v8763_v2  ;;  %v8768_v23 = vpack.c.bf16 %v287_v46, %v281_v39  ;;  %v300_v46 = vld [vmem:[#allocation3 + $0x528] sm:$0xff] }
 0x17c   :  { %11580 = vst [vmem:[#allocation109_spill] sm:$0xff] %v8765_v32 }
 0x17d   :  { %v4139_v30 = vmul.f32 %v8748_v53, %v2161_v18  ;;  %11581 = vst [vmem:[#allocation110_spill] sm:$0xff] %v8768_v23 }
 0x17e   :  { %v1967_v24 = vpop.f32.mrf.mxu3 }
 0x17f   :  { %v4301_v21 = vadd.f32 %v8755_v20, %v4139_v30  ;;  %v1863_v6 = vpop.f32.mrf.mxu2 }
 0x180   :  { %v1864_v48 = vadd.f32 %v1863_v6, %v8585_v61  ;;  %v2059_v50 = vpop.f32.mrf.mxu0 }
 0x181   :  { %v4453_v18 = vmax.f32 %v4301_v21, 0.0  ;;  %v2060_v41 = vadd.f32 %v2059_v50, %v8706_v37  ;;  %v2163_v11 = vpop.f32.mrf.mxu1  ;;  %v260_v50 = vld [vmem:[#allocation3 + $0x3e8] sm:$0xff] }
 0x182   :  { %v8773_v43 = vadd.f32 %v1967_v24, %v1864_v48  ;;  %v265_v24 = vld [vmem:[#allocation3 + $0x410] sm:$0xff]  ;;  %v299_v48 = vld [vmem:[#allocation3 + $0x520] sm:$0xff] }
 0x183   :  { %v8775_v30 = vpack.c.bf16 %v4453_v18, %v4449_v51  ;;  %v2164_v33 = vadd.f32 %v2163_v11, %v2060_v41  ;;  %2009 = vmatmul.bf16.gmra.mxu3 %v8763_v2  ;;  %2098 = vmatmul.bf16.gmra.mxu0 %v8765_v32  ;;  %v293_v11 = vld [vmem:[#allocation3 + $0x4f0] sm:$0xff]  ;;  %v266_v51 = vld [vmem:[#allocation3 + $0x418] sm:$0xff] }
 0x184   :  { %1905 = vmatmul.bf16.gmra.mxu2 %v8768_v23  ;;  %2202 = vmatmul.bf16.gmra.mxu1 %v8770_v49 }
 0x185   :  { %11583 = vst [vmem:[#allocation112_spill] sm:$0xff] %v8775_v30  ;;  %v4143_v60 = vmul.f32 %v8748_v53, %v2164_v33  ;;  %v8789_v33 = vpack.c.bf16 %v300_v46, %v294_v0  ;;  %v8794_v30 = vpack.c.bf16 %v299_v48, %v293_v11  ;;  %v7878_v0 = vld [vmem:[#allocation6 + $0x1e4] sm:$0xf]  ;;  %v6974_v46 = vld [vmem:[#allocation6 + $0x1f0] sm:$0xf0] }
 0x186   :  { %v1970_v61 = vpop.f32.mrf.mxu3 }
 0x187   :  { %v1866_v40 = vpop.f32.mrf.mxu2  ;;  %11584 = vst [vmem:[#allocation113_spill] sm:$0xff] %v8789_v33 }
 0x188   :  { %v1867_v26 = vadd.f32 %v1866_v40, %v8597_v58  ;;  %v2061_v21 = vpop.f32.mrf.mxu0  ;;  %v4305_v58 = vadd.f32 %v8755_v20, %v4143_v60  ;;  %11586 = vst [vmem:[#allocation115_spill] sm:$0xff] %v8794_v30 }
 0x189   :  { %v2062_v37 = vadd.f32 %v2061_v21, %v8719_v44  ;;  %v2165_v39 = vpop.f32.mrf.mxu1  ;;  %v6846_v21 = vld [vmem:[#allocation6 + $0xf0] sm:$0xf0] }
 0x18a   :  { %v8784_v16 = vadd.f32 %v1970_v61, %v1867_v26  ;;  %v8791_v61 = vpack.c.bf16 %v265_v24, %v259_v3  ;;  %v7846_v26 = vld [vmem:[#allocation6 + $0xe4] sm:$0xf] }
 0x18b   :  { %v2166_v41 = vadd.f32 %v2165_v39, %v2062_v37  ;;  %v6849_v32 = vor.u32 %v7846_v26, %v6846_v21  ;;  %v312_v26 = vld [vmem:[#allocation3 + $0x588] sm:$0xff]  ;;  %v271_v21 = vld [vmem:[#allocation3 + $0x440] sm:$0xff] }
 0x18c   :  { %11585 = vst [vmem:[#allocation114_spill] sm:$0xff] %v8791_v61 }
 0x18d   :  { %v4147_v6 = vmul.f32 %v8748_v53, %v2166_v41  ;;  %v8796_v41 = vpack.c.bf16 %v266_v51, %v260_v50  ;;  %2253 = vmatpush.bf16.msra.mxu2 %v6849_v32 }
 0x18e   :  { %v1972_v18 = vpop.f32.mrf.mxu3 }
 0x18f   :  { %v4309_v44 = vadd.f32 %v8755_v20, %v4147_v6  ;;  %v1868_v40 = vpop.f32.mrf.mxu2  ;;  %11587 = vst [vmem:[#allocation116_spill] sm:$0xff] %v8796_v41  ;;  %v4457_v6 = vmax.f32 %v4305_v58, 0.0 }
 0x190   :  { %v1869_v37 = vadd.f32 %v1868_v40, %v8605_v28  ;;  %v2064_v39 = vpop.f32.mrf.mxu0  ;;  %v6977_v28 = vor.u32 %v7878_v0, %v6974_v46  ;;  %v306_v40 = vld [vmem:[#allocation3 + $0x558] sm:$0xff] }
 0x191   :  { %v2065_v60 = vadd.f32 %v2064_v39, %v8728_v13  ;;  %v2168_v49 = vpop.f32.mrf.mxu1  ;;  %v4461_v2 = vmax.f32 %v4309_v44, 0.0  ;;  %v305_v44 = vld [vmem:[#allocation3 + $0x550] sm:$0xff]  ;;  %v311_v39 = vld [vmem:[#allocation3 + $0x580] sm:$0xff] }
 0x192   :  { %v8799_v23 = vadd.f32 %v1972_v18, %v1869_v37  ;;  %2357 = vmatpush.bf16.msra.mxu3 %v6977_v28 }
 0x193   :  { %v2169_v3 = vadd.f32 %v2168_v49, %v2065_v60  ;;  %2014 = vmatmul.bf16.gmra.mxu3 %v8789_v33  ;;  %2103 = vmatmul.bf16.gmra.mxu0 %v8791_v61  ;;  %v8805_v11 = vpack.c.bf16 %v4461_v2, %v4457_v6  ;;  %v277_v2 = vld [vmem:[#allocation3 + $0x470] sm:$0xff]  ;;  %v272_v60 = vld [vmem:[#allocation3 + $0x448] sm:$0xff]  ;;  %v278_v6 = vld [vmem:[#allocation3 + $0x478] sm:$0xff] }
 0x194   :  { %1910 = vmatmul.bf16.gmra.mxu2 %v8794_v30  ;;  %2207 = vmatmul.bf16.gmra.mxu1 %v8796_v41  ;;  %v8817_v28 = vpack.c.bf16 %v277_v2, %v271_v21 }
 0x195   :  { %11588 = vst [vmem:[#allocation117_spill] sm:$0xff] %v8805_v11  ;;  %v4151_v51 = vmul.f32 %v8748_v53, %v2169_v3  ;;  %v8815_v3 = vpack.c.bf16 %v312_v26, %v306_v40 }
 0x196   :  { %v1975_v13 = vpop.f32.mrf.mxu3  ;;  %11590 = vst [vmem:[#allocation119_spill] sm:$0xff] %v8817_v28 }
 0x197   :  { %v1871_v24 = vpop.f32.mrf.mxu2  ;;  %11589 = vst [vmem:[#allocation118_spill] sm:$0xff] %v8815_v3 }
 0x198   :  { %v1872_v48 = vadd.f32 %v1871_v24, %v8617_v34  ;;  %v2066_v32 = vpop.f32.mrf.mxu0  ;;  %v4313_v34 = vadd.f32 %v8755_v20, %v4151_v51 }
 0x199   :  { %v2067_v50 = vadd.f32 %v2066_v32, %v8742_v63  ;;  %v2170_v49 = vpop.f32.mrf.mxu1  ;;  %v8822_v32 = vpack.c.bf16 %v278_v6, %v272_v60 }
 0x19a   :  { %v8810_v58 = vadd.f32 %v1975_v13, %v1872_v48  ;;  %v8820_v48 = vpack.c.bf16 %v311_v39, %v305_v44  ;;  %v4465_v51 = vmax.f32 %v4313_v34, 0.0  ;;  %v317_v34 = vld [vmem:[#allocation3 + $0x5b0] sm:$0xff] }
 0x19b   :  { %v2171_v18 = vadd.f32 %v2170_v49, %v2067_v50  ;;  %11592 = vst [vmem:[#allocation121_spill] sm:$0xff] %v8822_v32 }
 0x19c   :  { %11591 = vst [vmem:[#allocation120_spill] sm:$0xff] %v8820_v48 }
 0x19d   :  { %v4155_v37 = vmul.f32 %v8748_v53, %v2171_v18 }
 0x19e   :  { %v1977_v0 = vpop.f32.mrf.mxu3 }
 0x19f   :  { %v4317_v63 = vadd.f32 %v8755_v20, %v4155_v37  ;;  %v1873_v46 = vpop.f32.mrf.mxu2 }
 0x1a0   :  { %v1874_v13 = vadd.f32 %v1873_v46, %v8625_v52  ;;  %v2069_v24 = vpop.f32.mrf.mxu0  ;;  %v283_v46 = vld [vmem:[#allocation3 + $0x4a0] sm:$0xff] }
 0x1a1   :  { %v2070_v50 = vadd.f32 %v2069_v24, %v8758_v56  ;;  %v2173_v49 = vpop.f32.mrf.mxu1  ;;  %v4469_v18 = vmax.f32 %v4317_v63, 0.0  ;;  %v324_v63 = vld [vmem:[#allocation3 + $0x5e8] sm:$0xff] }
 0x1a2   :  { %v8825_v11 = vadd.f32 %v1977_v0, %v1874_v13  ;;  %v318_v0 = vld [vmem:[#allocation3 + $0x5b8] sm:$0xff]  ;;  %v289_v13 = vld [vmem:[#allocation3 + $0x4d0] sm:$0xff] }
 0x1a3   :  { %v2174_v37 = vadd.f32 %v2173_v49, %v2070_v50  ;;  %2019 = vmatmul.bf16.gmra.mxu3 %v8815_v3  ;;  %2108 = vmatmul.bf16.gmra.mxu0 %v8817_v28  ;;  %v8831_v52 = vpack.c.bf16 %v4469_v18, %v4465_v51  ;;  %v323_v50 = vld [vmem:[#allocation3 + $0x5e0] sm:$0xff]  ;;  %v284_v49 = vld [vmem:[#allocation3 + $0x4a8] sm:$0xff]  ;;  %v290_v18 = vld [vmem:[#allocation3 + $0x4d8] sm:$0xff] }
 0x1a4   :  { %1915 = vmatmul.bf16.gmra.mxu2 %v8820_v48  ;;  %2212 = vmatmul.bf16.gmra.mxu1 %v8822_v32 }
 0x1a5   :  { %11593 = vst [vmem:[#allocation122_spill] sm:$0xff] %v8831_v52  ;;  %v4159_v39 = vmul.f32 %v8748_v53, %v2174_v37  ;;  %v8841_v37 = vpack.c.bf16 %v324_v63, %v318_v0  ;;  %v7842_v0 = vld [vmem:[#allocation6 + $0xc4] sm:$0xf]  ;;  %v6830_v63 = vld [vmem:[#allocation6 + $0xd0] sm:$0xf0] }
 0x1a6   :  { %v1980_v44 = vpop.f32.mrf.mxu3 }
 0x1a7   :  { %v1876_v40 = vpop.f32.mrf.mxu2  ;;  %11594 = vst [vmem:[#allocation123_spill] sm:$0xff] %v8841_v37 }
 0x1a8   :  { %v1877_v56 = vadd.f32 %v1876_v40, %v8637_v8  ;;  %v2071_v26 = vpop.f32.mrf.mxu0  ;;  %v4321_v8 = vadd.f32 %v8755_v20, %v4159_v39 }
 0x1a9   :  { %v2072_v21 = vadd.f32 %v2071_v26, %v8773_v43  ;;  %v2175_v2 = vpop.f32.mrf.mxu1 }
 0x1aa   :  { %v8836_v60 = vadd.f32 %v1980_v44, %v1877_v56  ;;  %v8843_v44 = vpack.c.bf16 %v289_v13, %v283_v46  ;;  %v4473_v39 = vmax.f32 %v4321_v8, 0.0  ;;  %v6833_v13 = vor.u32 %v7842_v0, %v6830_v63  ;;  %v330_v0 = vld [vmem:[#allocation3 + $0x618] sm:$0xff] }
 0x1ab   :  { %v2176_v6 = vadd.f32 %v2175_v2, %v2072_v21  ;;  %v8846_v21 = vpack.c.bf16 %v323_v50, %v317_v34  ;;  %v8848_v2 = vpack.c.bf16 %v290_v18, %v284_v49  ;;  %v6958_v50 = vld [vmem:[#allocation6 + $0x1d0] sm:$0xf0] }
 0x1ac   :  { %11595 = vst [vmem:[#allocation124_spill] sm:$0xff] %v8843_v44  ;;  %2254 = vmatpush.bf16.msra.mxu2 %v6833_v13  ;;  %v335_v13 = vld [vmem:[#allocation3 + $0x640] sm:$0xff] }
 0x1ad   :  { %v4163_v24 = vmul.f32 %v8748_v53, %v2176_v6  ;;  %11596 = vst [vmem:[#allocation125_spill] sm:$0xff] %v8846_v21 }
 0x1ae   :  { %v1982_v51 = vpop.f32.mrf.mxu3  ;;  %11597 = vst [vmem:[#allocation126_spill] sm:$0xff] %v8848_v2 }
 0x1af   :  { %v4325_v43 = vadd.f32 %v8755_v20, %v4163_v24  ;;  %v1878_v40 = vpop.f32.mrf.mxu2 }
 0x1b0   :  { %v1879_v56 = vadd.f32 %v1878_v40, %v8645_v54  ;;  %v2074_v26 = vpop.f32.mrf.mxu0 }
 0x1b1   :  { %v2075_v6 = vadd.f32 %v2074_v26, %v8784_v16  ;;  %v2178_v52 = vpop.f32.mrf.mxu1  ;;  %v4477_v28 = vmax.f32 %v4325_v43, 0.0  ;;  %v7874_v16 = vld [vmem:[#allocation6 + $0x1c4] sm:$0xf] }
 0x1b2   :  { %v8851_v32 = vadd.f32 %v1982_v51, %v1879_v56  ;;  %v6961_v18 = vor.u32 %v7874_v16, %v6958_v50  ;;  %v6814_v56 = vld [vmem:[#allocation6 + $0xb0] sm:$0xf0]  ;;  %v7870_v26 = vld [vmem:[#allocation6 + $0x1a4] sm:$0xf] }
 0x1b3   :  { %v2179_v24 = vadd.f32 %v2178_v52, %v2075_v6  ;;  %2024 = vmatmul.bf16.gmra.mxu3 %v8841_v37  ;;  %2113 = vmatmul.bf16.gmra.mxu0 %v8843_v44  ;;  %v8857_v54 = vpack.c.bf16 %v4477_v28, %v4473_v39  ;;  %v7838_v28 = vld [vmem:[#allocation6 + $0xa4] sm:$0xf]  ;;  %v329_v39 = vld [vmem:[#allocation3 + $0x610] sm:$0xff] }
 0x1b4   :  { %1920 = vmatmul.bf16.gmra.mxu2 %v8846_v21  ;;  %2217 = vmatmul.bf16.gmra.mxu1 %v8848_v2  ;;  %v6817_v63 = vor.u32 %v7838_v28, %v6814_v56  ;;  %v301_v16 = vld [vmem:[#allocation3 + $0x530] sm:$0xff] }
 0x1b5   :  { %11598 = vst [vmem:[#allocation127_spill] sm:$0xff] %v8857_v54  ;;  %v4167_v43 = vmul.f32 %v8748_v53, %v2179_v24  ;;  %2358 = vmatpush.bf16.msra.mxu3 %v6961_v18  ;;  %v6942_v54 = vld [vmem:[#allocation6 + $0x1b0] sm:$0xf0]  ;;  %v302_v24 = vld [vmem:[#allocation3 + $0x538] sm:$0xff]  ;;  %v7834_v18 = vld [vmem:[#allocation6 + $0x84] sm:$0xf] }
 0x1b6   :  { %v1985_v34 = vpop.f32.mrf.mxu3  ;;  %v6945_v50 = vor.u32 %v7870_v26, %v6942_v54  ;;  %2255 = vmatpush.bf16.msra.mxu2 %v6817_v63  ;;  %v6926_v26 = vld [vmem:[#allocation6 + $0x190] sm:$0xf0]  ;;  %v8872_v63 = vpack.c.bf16 %v335_v13, %v329_v39 }
 0x1b7   :  { %v1881_v46 = vpop.f32.mrf.mxu2  ;;  %v6782_v39 = vld [vmem:[#allocation6 + $0x70] sm:$0xf0] }
 0x1b8   :  { %v1882_v49 = vadd.f32 %v1881_v46, %v8657_v10  ;;  %v2076_v52 = vpop.f32.mrf.mxu0  ;;  %v336_v10 = vld [vmem:[#allocation3 + $0x648] sm:$0xff]  ;;  %v295_v46 = vld [vmem:[#allocation3 + $0x500] sm:$0xff]  ;;  %11601 = vst [vmem:[#allocation130_spill] sm:$0xff] %v8872_v63 }
 0x1b9   :  { %v2077_v8 = vadd.f32 %v2076_v52, %v8799_v23  ;;  %v2180_v51 = vpop.f32.mrf.mxu1  ;;  %v296_v52 = vld [vmem:[#allocation3 + $0x508] sm:$0xff]  ;;  %2359 = vmatpush.bf16.msra.mxu3 %v6945_v50  ;;  %v8867_v44 = vpack.c.bf16 %v336_v10, %v330_v0  ;;  %v8869_v2 = vpack.c.bf16 %v301_v16, %v295_v46  ;;  %v7862_v46 = vld [vmem:[#allocation6 + $0x164] sm:$0xf] }
 0x1ba   :  { %v8862_v40 = vadd.f32 %v1985_v34, %v1882_v49  ;;  %v4329_v34 = vadd.f32 %v8755_v20, %v4167_v43  ;;  %v8874_v43 = vpack.c.bf16 %v302_v24, %v296_v52  ;;  %v7826_v24 = vld [vmem:[#allocation6 + $0x44] sm:$0xf] }
 0x1bb   :  { %v2181_v6 = vadd.f32 %v2180_v51, %v2077_v8  ;;  %v6798_v8 = vld [vmem:[#allocation6 + $0x90] sm:$0xf0]  ;;  %v7866_v51 = vld [vmem:[#allocation6 + $0x184] sm:$0xf]  ;;  %11599 = vst [vmem:[#allocation128_spill] sm:$0xff] %v8867_v44 }
 0x1bc   :  { %11600 = vst [vmem:[#allocation129_spill] sm:$0xff] %v8869_v2  ;;  %v6801_v54 = vor.u32 %v7834_v18, %v6798_v8  ;;  %v6929_v50 = vor.u32 %v7866_v51, %v6926_v26  ;;  %v4481_v21 = vmax.f32 %v4329_v34, 0.0  ;;  %v6766_v34 = vld [vmem:[#allocation6 + $0x50] sm:$0xf0] }
 0x1bd   :  { %v4171_v23 = vmul.f32 %v8748_v53, %v2181_v6  ;;  %11602 = vst [vmem:[#allocation131_spill] sm:$0xff] %v8874_v43  ;;  %v6894_v18 = vld [vmem:[#allocation6 + $0x150] sm:$0xf0] }
 0x1be   :  { %v1987_v49 = vpop.f32.mrf.mxu3  ;;  %2256 = vmatpush.bf16.msra.mxu2 %v6801_v54  ;;  %2360 = vmatpush.bf16.msra.mxu3 %v6929_v50  ;;  %v6750_v50 = vld [vmem:[#allocation6 + $0x30] sm:$0xf0] }
 0x1bf   :  { %v4333_v28 = vadd.f32 %v8755_v20, %v4171_v23  ;;  %v1883_v56 = vpop.f32.mrf.mxu2 }
 0x1c0   :  { %v1884_v6 = vadd.f32 %v1883_v56, %v8665_v62  ;;  %v2079_v61 = vpop.f32.mrf.mxu0  ;;  %v7830_v62 = vld [vmem:[#allocation6 + $0x64] sm:$0xf] }
 0x1c1   :  { %v2080_v41 = vadd.f32 %v2079_v61, %v8810_v58  ;;  %v2183_v37 = vpop.f32.mrf.mxu1  ;;  %v4485_v23 = vmax.f32 %v4333_v28, 0.0  ;;  %v6910_v61 = vld [vmem:[#allocation6 + $0x170] sm:$0xf0]  ;;  %v6785_v16 = vor.u32 %v7830_v62, %v6782_v39 }
 0x1c2   :  { %v8877_v0 = vadd.f32 %v1987_v49, %v1884_v6  ;;  %v6913_v13 = vor.u32 %v7862_v46, %v6910_v61  ;;  %v6769_v49 = vor.u32 %v7826_v24, %v6766_v34  ;;  %v7822_v6 = vld [vmem:[#allocation6 + $0x24] sm:$0xf]  ;;  %v341_v39 = vld [vmem:[#allocation3 + $0x670] sm:$0xff]  ;;  %v342_v46 = vld [vmem:[#allocation3 + $0x678] sm:$0xff] }
 0x1c3   :  { %v2184_v10 = vadd.f32 %v2183_v37, %v2080_v41  ;;  %2029 = vmatmul.bf16.gmra.mxu3 %v8867_v44  ;;  %2118 = vmatmul.bf16.gmra.mxu0 %v8869_v2  ;;  %v8883_v58 = vpack.c.bf16 %v4485_v23, %v4481_v21  ;;  %v7858_v41 = vld [vmem:[#allocation6 + $0x144] sm:$0xf]  ;;  %v6753_v61 = vor.u32 %v7822_v6, %v6750_v50  ;;  %v313_v24 = vld [vmem:[#allocation3 + $0x590] sm:$0xff] }
 0x1c4   :  { %1925 = vmatmul.bf16.gmra.mxu2 %v8872_v63  ;;  %2222 = vmatmul.bf16.gmra.mxu1 %v8874_v43  ;;  %v6897_v56 = vor.u32 %v7858_v41, %v6894_v18  ;;  %v7854_v23 = vld [vmem:[#allocation6 + $0x124] sm:$0xf]  ;;  %v308_v41 = vld [vmem:[#allocation3 + $0x568] sm:$0xff] }
 0x1c5   :  { %11603 = vst [vmem:[#allocation132_spill] sm:$0xff] %v8883_v58  ;;  %2257 = vmatpush.bf16.msra.mxu2 %v6785_v16  ;;  %2361 = vmatpush.bf16.msra.mxu3 %v6913_v13  ;;  %v4175_v8 = vmul.f32 %v8748_v53, %v2184_v10  ;;  %v6878_v16 = vld [vmem:[#allocation6 + $0x130] sm:$0xf0]  ;;  %v307_v13 = vld [vmem:[#allocation3 + $0x560] sm:$0xff] }
 0x1c6   :  { %v1990_v52 = vpop.f32.mrf.mxu3  ;;  %v6881_v34 = vor.u32 %v7854_v23, %v6878_v16  ;;  %v8895_v6 = vpack.c.bf16 %v313_v24, %v307_v13 }
 0x1c7   :  { %v1886_v37 = vpop.f32.mrf.mxu2  ;;  %v4337_v10 = vadd.f32 %v8755_v20, %v4175_v8  ;;  %v6862_v8 = vld [vmem:[#allocation6 + $0x110] sm:$0xf0] }
 0x1c8   :  { %v1887_v51 = vadd.f32 %v1886_v37, %v8677_v14  ;;  %v2081_v28 = vpop.f32.mrf.mxu0  ;;  %v348_v14 = vld [vmem:[#allocation3 + $0x6a8] sm:$0xff]  ;;  %v314_v37 = vld [vmem:[#allocation3 + $0x598] sm:$0xff]  ;;  %11605 = vst [vmem:[#allocation134_spill] sm:$0xff] %v8895_v6 }
 0x1c9   :  { %v2082_v21 = vadd.f32 %v2081_v28, %v8825_v11  ;;  %v2185_v54 = vpop.f32.mrf.mxu1  ;;  %2258 = vmatpush.bf16.msra.mxu2 %v6769_v49  ;;  %2362 = vmatpush.bf16.msra.mxu3 %v6897_v56  ;;  %v6734_v28 = vld [vmem:[#allocation6 + $0x10] sm:$0xf0]  ;;  %v4489_v50 = vmax.f32 %v4337_v10, 0.0  ;;  %v8900_v58 = vpack.c.bf16 %v314_v37, %v308_v41  ;;  %v354_v37 = vld [vmem:[#allocation3 + $0x6d8] sm:$0xff] }
 0x1ca   :  { %v8888_v26 = vadd.f32 %v1990_v52, %v1887_v51  ;;  %v347_v52 = vld [vmem:[#allocation3 + $0x6a0] sm:$0xff]  ;;  %v353_v41 = vld [vmem:[#allocation3 + $0x6d0] sm:$0xff] }
 0x1cb   :  { %v2186_v62 = vadd.f32 %v2185_v54, %v2082_v21  ;;  %v7818_v51 = vld [vmem:[#allocation6 + $0x4] sm:$0xf]  ;;  %v8893_v54 = vpack.c.bf16 %v348_v14, %v342_v46  ;;  %v8898_v16 = vpack.c.bf16 %v347_v52, %v341_v39  ;;  %11607 = vst [vmem:[#allocation136_spill] sm:$0xff] %v8900_v58 }
 0x1cc   :  { %v7850_v21 = vld [vmem:[#allocation6 + $0x104] sm:$0xf] }
 0x1cd   :  { %v4179_v11 = vmul.f32 %v8748_v53, %v2186_v62  ;;  %11604 = vst [vmem:[#allocation133_spill] sm:$0xff] %v8893_v54  ;;  %2259 = vmatpush.bf16.msra.mxu2 %v6753_v61  ;;  %2363 = vmatpush.bf16.msra.mxu3 %v6881_v34  ;;  %v6865_v44 = vor.u32 %v7850_v21, %v6862_v8  ;;  %v359_v21 = vld [vmem:[#allocation3 + $0x700] sm:$0xf] }
 0x1ce   :  { %v1992_v18 = vpop.f32.mrf.mxu3  ;;  %11606 = vst [vmem:[#allocation135_spill] sm:$0xff] %v8898_v16 }
 0x1cf   :  { %v4341_v49 = vadd.f32 %v8755_v20, %v4179_v11  ;;  %v1888_v56 = vpop.f32.mrf.mxu2  ;;  %v6737_v11 = vor.u32 %v7818_v51, %v6734_v28  ;;  %v319_v51 = vld [vmem:[#allocation3 + $0x5c0] sm:$0xff]  ;;  %v325_v28 = vld [vmem:[#allocation3 + $0x5f0] sm:$0xff] }
 0x1d0   :  { %v1889_v23 = vadd.f32 %v1888_v56, %v8686_v27  ;;  %v2084_v62 = vpop.f32.mrf.mxu0  ;;  %v326_v56 = vld [vmem:[#allocation3 + $0x5f8] sm:$0xff] }
 0x1d1   :  { %v2085_v2 = vadd.f32 %v2084_v62, %v8836_v60  ;;  %v2188_v43 = vpop.f32.mrf.mxu1  ;;  %v4493_v46 = vmax.f32 %v4341_v49, 0.0  ;;  %2260 = vmatpush.bf16.msra.mxu2 %v6737_v11  ;;  %2364 = vmatpush.bf16.msra.mxu3 %v6865_v44  ;;  %v320_v49 = vld [vmem:[#allocation3 + $0x5c8] sm:$0xff]  ;;  %v8921_v62 = vpack.c.bf16 %v325_v28, %v319_v51 }
 0x1d2   :  { %v8903_v14 = vadd.f32 %v1992_v18, %v1889_v23  ;;  %v360_v18 = vld [vmem:[#allocation3 + $0x708] sm:$0xf] }
 0x1d3   :  { %v2189_v13 = vadd.f32 %v2188_v43, %v2085_v2  ;;  %2034 = vmatmul.bf16.gmra.mxu3 %v8893_v54  ;;  %2123 = vmatmul.bf16.gmra.mxu0 %v8895_v6  ;;  %v8907_v61 = vpack.c.bf16 %v4493_v46, %v4489_v50  ;;  %v8919_v23 = vpack.c.bf16 %v360_v18, %v354_v37  ;;  %v7942_v18 = vld [vmem:[#allocation6 + $0x3e4] sm:$0xf] }
 0x1d4   :  { %1930 = vmatmul.bf16.gmra.mxu2 %v8898_v16  ;;  %2227 = vmatmul.bf16.gmra.mxu1 %v8900_v58  ;;  %11610 = vst [vmem:[#allocation139_spill] sm:$0xff] %v8921_v62  ;;  %v7998_v6 = vld [vmem:[#allocation6 + $0x5a4] sm:$0xf] }
 0x1d5   :  { %11608 = vst [vmem:[#allocation137_spill] sm:$0xff] %v8907_v61  ;;  %v4183_v43 = vmul.f32 %v8748_v53, %v2189_v13  ;;  %v8924_v13 = vpack.c.bf16 %v359_v21, %v353_v41  ;;  %v7230_v41 = vld [vmem:[#allocation6 + $0x3f0] sm:$0xf0] }
 0x1d6   :  { %v1995_v27 = vpop.f32.mrf.mxu3  ;;  %11609 = vst [vmem:[#allocation138_spill] sm:$0xff] %v8919_v23  ;;  %v7086_v21 = vld [vmem:[#allocation6 + $0x2d0] sm:$0xf0] }
 0x1d7   :  { %v1891_v60 = vpop.f32.mrf.mxu2  ;;  %11611 = vst [vmem:[#allocation140_spill] sm:$0xff] %v8924_v13 }
 0x1d8   :  { %v1892_v39 = vadd.f32 %v1891_v60, %v8699_v1  ;;  %v2086_v10 = vpop.f32.mrf.mxu0  ;;  %v4345_v1 = vadd.f32 %v8755_v20, %v4183_v43  ;;  %v7910_v43 = vld [vmem:[#allocation6 + $0x2e4] sm:$0xf] }
 0x1d9   :  { %v2087_v24 = vadd.f32 %v2086_v10, %v8851_v32  ;;  %v2190_v2 = vpop.f32.mrf.mxu1 }
 0x1da   :  { %v8914_v34 = vadd.f32 %v1995_v27, %v1892_v39  ;;  %v8926_v27 = vpack.c.bf16 %v326_v56, %v320_v49  ;;  %v7938_v49 = vld [vmem:[#allocation6 + $0x3c4] sm:$0xf] }
 0x1db   :  { %v2191_v52 = vadd.f32 %v2190_v2, %v2087_v24  ;;  %v4497_v24 = vmax.f32 %v4345_v1, 0.0 }
 0x1dc   :  { %11612 = vst [vmem:[#allocation141_spill] sm:$0xff] %v8926_v27 }
 0x1dd   :  { %v4187_v44 = vmul.f32 %v8748_v53, %v2191_v52  ;;  %v7102_v52 = vld [vmem:[#allocation6 + $0x2f0] sm:$0xf0] }
 0x1de   :  { %v1997_v8 = vpop.f32.mrf.mxu3 }
 0x1df   :  { %v4349_v32 = vadd.f32 %v8755_v20, %v4187_v44  ;;  %v1893_v50 = vpop.f32.mrf.mxu2  ;;  %v7906_v44 = vld [vmem:[#allocation6 + $0x2c4] sm:$0xf] }
 0x1e0   :  { %v1894_v11 = vadd.f32 %v1893_v50, %v8708_v15  ;;  %v2089_v46 = vpop.f32.mrf.mxu0  ;;  %v7105_v15 = vor.u32 %v7910_v43, %v7102_v52  ;;  %v7089_v1 = vor.u32 %v7906_v44, %v7086_v21  ;;  %v7070_v43 = vld [vmem:[#allocation6 + $0x2b0] sm:$0xf0]  ;;  %v7934_v52 = vld [vmem:[#allocation6 + $0x3a4] sm:$0xf] }
 0x1e1   :  { %v2090_v60 = vadd.f32 %v2089_v46, %v8862_v40  ;;  %v2193_v39 = vpop.f32.mrf.mxu1  ;;  %v4501_v10 = vmax.f32 %v4349_v32, 0.0  ;;  %v7233_v40 = vor.u32 %v7942_v18, %v7230_v41  ;;  %v7198_v41 = vld [vmem:[#allocation6 + $0x3b0] sm:$0xf0] }
 0x1e2   :  { %v8929_v2 = vadd.f32 %v1997_v8, %v1894_v11  ;;  %2461 = vmatpush.bf16.msra.mxu0 %v7105_v15  ;;  %v7214_v8 = vld [vmem:[#allocation6 + $0x3d0] sm:$0xf0] }
 0x1e3   :  { %v2194_v37 = vadd.f32 %v2193_v39, %v2090_v60  ;;  %2039 = vmatmul.bf16.gmra.mxu3 %v8919_v23  ;;  %2128 = vmatmul.bf16.gmra.mxu0 %v8921_v62  ;;  %v8935_v51 = vpack.c.bf16 %v4501_v10, %v4497_v24  ;;  %v7217_v11 = vor.u32 %v7938_v49, %v7214_v8  ;;  %v7902_v24 = vld [vmem:[#allocation6 + $0x2a4] sm:$0xf]  ;;  %v337_v44 = vld [vmem:[#allocation3 + $0x650] sm:$0xff]  ;;  %v332_v49 = vld [vmem:[#allocation3 + $0x628] sm:$0xff] }
 0x1e4   :  { %1935 = vmatmul.bf16.gmra.mxu2 %v8924_v13  ;;  %2232 = vmatmul.bf16.gmra.mxu1 %v8926_v27  ;;  %v7073_v18 = vor.u32 %v7902_v24, %v7070_v43  ;;  %v7930_v8 = vld [vmem:[#allocation6 + $0x384] sm:$0xf]  ;;  %v11686_v27 = vld [vmem:[#allocation37_spill] sm:$0xff] }
 0x1e5   :  { %11613 = vst [vmem:[#allocation142_spill] sm:$0xff] %v8935_v51  ;;  %2565 = vmatpush.bf16.msra.mxu1 %v7233_v40  ;;  %v4191_v39 = vmul.f32 %v8748_v53, %v2194_v37  ;;  %v331_v40 = vld [vmem:[#allocation3 + $0x620] sm:$0xff] }
 0x1e6   :  { %v2000_v28 = vpop.f32.mrf.mxu3  ;;  %2462 = vmatpush.bf16.msra.mxu0 %v7089_v1  ;;  %v7054_v1 = vld [vmem:[#allocation6 + $0x290] sm:$0xf0] }
 0x1e7   :  { %v1896_v56 = vpop.f32.mrf.mxu2 }
 0x1e8   :  { %v1897_v32 = vadd.f32 %v1896_v56, %v8721_v22  ;;  %v2091_v50 = vpop.f32.mrf.mxu0  ;;  %v7201_v22 = vor.u32 %v7934_v52, %v7198_v41  ;;  %v4353_v56 = vadd.f32 %v8755_v20, %v4191_v39 }
 0x1e9   :  { %v2092_v46 = vadd.f32 %v2091_v50, %v8877_v0  ;;  %v2195_v60 = vpop.f32.mrf.mxu1  ;;  %2566 = vmatpush.bf16.msra.mxu1 %v7217_v11  ;;  %v338_v0 = vld [vmem:[#allocation3 + $0x658] sm:$0xff]  ;;  %v8945_v11 = vpack.c.bf16 %v337_v44, %v331_v40  ;;  %v7038_v40 = vld [vmem:[#allocation6 + $0x270] sm:$0xf0] }
 0x1ea   :  { %v8940_v10 = vadd.f32 %v2000_v28, %v1897_v32  ;;  %2463 = vmatpush.bf16.msra.mxu0 %v7073_v18  ;;  %v7898_v28 = vld [vmem:[#allocation6 + $0x284] sm:$0xf]  ;;  %v8948_v52 = vpack.c.bf16 %v338_v0, %v332_v49  ;;  %v7166_v0 = vld [vmem:[#allocation6 + $0x370] sm:$0xf0] }
 0x1eb   :  { %v2196_v15 = vadd.f32 %v2195_v60, %v2092_v46  ;;  %11614 = vst [vmem:[#allocation143_spill] sm:$0xff] %v8945_v11  ;;  %v7057_v46 = vor.u32 %v7898_v28, %v7054_v1  ;;  %v7182_v60 = vld [vmem:[#allocation6 + $0x390] sm:$0xf0]  ;;  %v7926_v49 = vld [vmem:[#allocation6 + $0x364] sm:$0xf] }
 0x1ec   :  { %11615 = vst [vmem:[#allocation144_spill] sm:$0xff] %v8948_v52  ;;  %v7022_v1 = vld [vmem:[#allocation6 + $0x250] sm:$0xf0] }
 0x1ed   :  { %v4195_v21 = vmul.f32 %v8748_v53, %v2196_v15  ;;  %2567 = vmatpush.bf16.msra.mxu1 %v7201_v22  ;;  %v7185_v15 = vor.u32 %v7930_v8, %v7182_v60  ;;  %v4505_v22 = vmax.f32 %v4353_v56, 0.0  ;;  %v7922_v8 = vld [vmem:[#allocation6 + $0x344] sm:$0xf] }
 0x1ee   :  { %v2002_v37 = vpop.f32.mrf.mxu3  ;;  %2464 = vmatpush.bf16.msra.mxu0 %v7057_v46  ;;  %v7150_v46 = vld [vmem:[#allocation6 + $0x350] sm:$0xf0] }
 0x1ef   :  { %v4357_v32 = vadd.f32 %v8755_v20, %v4195_v21  ;;  %v1898_v50 = vpop.f32.mrf.mxu2  ;;  %v7894_v21 = vld [vmem:[#allocation6 + $0x264] sm:$0xf] }
 0x1f0   :  { %v1899_v24 = vadd.f32 %v1898_v50, %v8730_v42  ;;  %v2094_v43 = vpop.f32.mrf.mxu0  ;;  %v7041_v42 = vor.u32 %v7894_v21, %v7038_v40  ;;  %v7006_v21 = vld [vmem:[#allocation6 + $0x230] sm:$0xf0]  ;;  %v7918_v40 = vld [vmem:[#allocation6 + $0x324] sm:$0xf] }
 0x1f1   :  { %v2095_v39 = vadd.f32 %v2094_v43, %v8888_v26  ;;  %v2198_v18 = vpop.f32.mrf.mxu1  ;;  %v4509_v41 = vmax.f32 %v4357_v32, 0.0  ;;  %2568 = vmatpush.bf16.msra.mxu1 %v7185_v15  ;;  %v7169_v26 = vor.u32 %v7926_v49, %v7166_v0  ;;  %v7153_v43 = vor.u32 %v7922_v8, %v7150_v46  ;;  %v7134_v0 = vld [vmem:[#allocation6 + $0x330] sm:$0xf0]  ;;  %v344_v8 = vld [vmem:[#allocation3 + $0x688] sm:$0xff]  ;;  %v7914_v46 = vld [vmem:[#allocation6 + $0x304] sm:$0xf] }
 0x1f2   :  { %v8951_v51 = vadd.f32 %v2002_v37, %v1899_v24  ;;  %2465 = vmatpush.bf16.msra.mxu0 %v7041_v42  ;;  %v7890_v37 = vld [vmem:[#allocation6 + $0x244] sm:$0xf] }
 0x1f3   :  { %v2199_v44 = vadd.f32 %v2198_v18, %v2095_v39  ;;  %2133 = vmatmul.bf16.gmra.mxu0 %v8945_v11  ;;  %2365 = vmatmul.bf16.vlgmr.msra.gmra.mxu3 %v8417_v59  ;;  %v8957_v28 = vpack.c.bf16 %v4509_v41, %v4505_v22  ;;  %v7025_v50 = vor.u32 %v7890_v37, %v7022_v1  ;;  %v7886_v22 = vld [vmem:[#allocation6 + $0x224] sm:$0xf]  ;;  %v349_v37 = vld [vmem:[#allocation3 + $0x6b0] sm:$0xff] }
 0x1f4   :  { %2237 = vmatmul.bf16.gmra.mxu1 %v8948_v52  ;;  %2261 = vmatmul.bf16.vlgmr.msra.gmra.mxu2 %v8413_v57  ;;  %v7009_v49 = vor.u32 %v7886_v22, %v7006_v21  ;;  %v8006_v11 = vld [vmem:[#allocation6 + $0x5e4] sm:$0xf]  ;;  %v7486_v52 = vld [vmem:[#allocation6 + $0x5f0] sm:$0xf0] }
 0x1f5   :  { %11616 = vst [vmem:[#allocation145_spill] sm:$0xff] %v8957_v28  ;;  %2569 = vmatpush.bf16.msra.mxu1 %v7169_v26  ;;  %v4199_v15 = vmul.f32 %v8748_v53, %v2199_v44  ;;  %v343_v26 = vld [vmem:[#allocation3 + $0x680] sm:$0xff]  ;;  %v7489_v62 = vor.u32 %v8006_v11, %v7486_v52 }
 0x1f6   :  { %v2005_v56 = vpop.f32.mrf.mxu3  ;;  %2466 = vmatpush.bf16.msra.mxu0 %v7025_v50  ;;  %v6990_v50 = vld [vmem:[#allocation6 + $0x210] sm:$0xf0] }
 0x1f7   :  { %v1901_v32 = vpop.f32.mrf.mxu2  ;;  %v4361_v1 = vadd.f32 %v8755_v20, %v4199_v15  ;;  %2773 = vmatpush.bf16.msrb.mxu3 %v7489_v62  ;;  %v11681_v62 = vld [vmem:[#allocation106_spill] sm:$0xff] }
 0x1f8   :  { %v1902_v60 = vadd.f32 %v1901_v32, %v8523_v4  ;;  %v2096_v24 = vpop.f32.mrf.mxu0  ;;  %v7137_v4 = vor.u32 %v7918_v40, %v7134_v0 }
 0x1f9   :  { %v2097_v39 = vadd.f32 %v2096_v24, %v8903_v14  ;;  %v2200_v18 = vpop.f32.mrf.mxu1  ;;  %2570 = vmatpush.bf16.msra.mxu1 %v7153_v43  ;;  %v350_v14 = vld [vmem:[#allocation3 + $0x6b8] sm:$0xff]  ;;  %v8967_v43 = vpack.c.bf16 %v349_v37, %v343_v26 }
 0x1fa   :  { %v8962_v41 = vadd.f32 %v2005_v56, %v1902_v60  ;;  %2467 = vmatpush.bf16.msra.mxu0 %v7009_v49  ;;  %v7882_v56 = vld [vmem:[#allocation6 + $0x204] sm:$0xf]  ;;  %v8970_v21 = vpack.c.bf16 %v350_v14, %v344_v8 }
 0x1fb   :  { %v2201_v42 = vadd.f32 %v2200_v18, %v2097_v39  ;;  %11617 = vst [vmem:[#allocation146_spill] sm:$0xff] %v8967_v43  ;;  %v6993_v39 = vor.u32 %v7882_v56, %v6990_v50  ;;  %v7118_v18 = vld [vmem:[#allocation6 + $0x310] sm:$0xf0] }
 0x1fc   :  { %11618 = vst [vmem:[#allocation147_spill] sm:$0xff] %v8970_v21  ;;  %v7121_v40 = vor.u32 %v7914_v46, %v7118_v18  ;;  %v355_v46 = vld [vmem:[#allocation3 + $0x6e0] sm:$0xff]  ;;  %v356_v18 = vld [vmem:[#allocation3 + $0x6e8] sm:$0xff] }
 0x1fd   :  { %v4203_v44 = vmul.f32 %v8748_v53, %v2201_v42  ;;  %2571 = vmatpush.bf16.msra.mxu1 %v7137_v4  ;;  %v4513_v42 = vmax.f32 %v4361_v1, 0.0 }
 0x1fe   :  { %v2007_v32 = vpop.f32.mrf.mxu3  ;;  %2468 = vmatpush.bf16.msra.mxu0 %v6993_v39 }
 0x1ff   :  { %v4365_v60 = vadd.f32 %v8755_v20, %v4203_v44  ;;  %v1903_v24 = vpop.f32.mrf.mxu2 }
 0x200   :  { %v1904_v22 = vadd.f32 %v1903_v24, %v8531_v12  ;;  %v2099_v15 = vpop.f32.mrf.mxu0 }
 0x201   :  { %v2100_v49 = vadd.f32 %v2099_v15, %v8914_v34  ;;  %v2203_v0 = vpop.f32.mrf.mxu1  ;;  %v4517_v4 = vmax.f32 %v4365_v60, 0.0  ;;  %2572 = vmatpush.bf16.msra.mxu1 %v7121_v40  ;;  %v361_v60 = vld [vmem:[#allocation3 + $0x710] sm:$0xf] }
 0x202   :  { %v8973_v28 = vadd.f32 %v2007_v32, %v1904_v22  ;;  %v362_v22 = vld [vmem:[#allocation3 + $0x718] sm:$0xf] }
 0x203   :  { %v2204_v44 = vadd.f32 %v2203_v0, %v2100_v49  ;;  %2138 = vmatmul.bf16.gmra.mxu0 %v8967_v43  ;;  %2370 = vmatmul.bf16.gmra.mxu3 %v8429_v7  ;;  %v8977_v26 = vpack.c.bf16 %v4517_v4, %v4513_v42  ;;  %v8989_v42 = vpack.c.bf16 %v361_v60, %v355_v46 }
 0x204   :  { %2242 = vmatmul.bf16.gmra.mxu1 %v8970_v21  ;;  %2266 = vmatmul.bf16.gmra.mxu2 %v8425_v5  ;;  %v8992_v0 = vpack.c.bf16 %v362_v22, %v356_v18 }
 0x205   :  { %11619 = vst [vmem:[#allocation148_spill] sm:$0xff] %v8977_v26  ;;  %v4207_v8 = vmul.f32 %v8748_v53, %v2204_v44 }
 0x206   :  { %v2010_v12 = vpop.f32.mrf.mxu3  ;;  %11620 = vst [vmem:[#allocation149_spill] sm:$0xff] %v8989_v42 }
 0x207   :  { %v1906_v37 = vpop.f32.mrf.mxu2  ;;  %v4369_v24 = vadd.f32 %v8755_v20, %v4207_v8  ;;  %11621 = vst [vmem:[#allocation150_spill] sm:$0xff] %v8992_v0 }
 0x208   :  { %v1907_v34 = vadd.f32 %v1906_v37, %v8543_v36  ;;  %v2101_v1 = vpop.f32.mrf.mxu0 }
 0x209   :  { %v2102_v14 = vadd.f32 %v2101_v1, %v8929_v2  ;;  %v2205_v32 = vpop.f32.mrf.mxu1  ;;  %v4521_v4 = vmax.f32 %v4369_v24, 0.0 }
 0x20a   :  { %v8984_v56 = vadd.f32 %v2010_v12, %v1907_v34 }
 0x20b   :  { %v2206_v50 = vadd.f32 %v2205_v32, %v2102_v14 }
 0x20d   :  { %v4211_v39 = vmul.f32 %v8748_v53, %v2206_v50 }
 0x20e   :  { %v2012_v15 = vpop.f32.mrf.mxu3 }
 0x20f   :  { %v4373_v36 = vadd.f32 %v8755_v20, %v4211_v39  ;;  %v1908_v40 = vpop.f32.mrf.mxu2 }
 0x210   :  { %v1909_v2 = vadd.f32 %v1908_v40, %v8551_v9  ;;  %v2104_v49 = vpop.f32.mrf.mxu0 }
 0x211   :  { %v2105_v44 = vadd.f32 %v2104_v49, %v8940_v10  ;;  %v2208_v12 = vpop.f32.mrf.mxu1  ;;  %v4525_v37 = vmax.f32 %v4373_v36, 0.0 }
 0x212   :  { %v8995_v34 = vadd.f32 %v2012_v15, %v1909_v2 }
 0x213   :  { %v2209_v1 = vadd.f32 %v2208_v12, %v2105_v44  ;;  %2143 = vmatmul.bf16.gmra.mxu0 %v8989_v42  ;;  %2375 = vmatmul.bf16.gmra.mxu3 %v8441_v19  ;;  %v8999_v8 = vpack.c.bf16 %v4525_v37, %v4521_v4 }
 0x214   :  { %2247 = vmatmul.bf16.gmra.mxu1 %v8992_v0  ;;  %2271 = vmatmul.bf16.gmra.mxu2 %v8437_v17 }
 0x215   :  { %11622 = vst [vmem:[#allocation151_spill] sm:$0xff] %v8999_v8  ;;  %v4215_v50 = vmul.f32 %v8748_v53, %v2209_v1 }
 0x216   :  { %v2015_v9 = vpop.f32.mrf.mxu3 }
 0x217   :  { %v1911_v14 = vpop.f32.mrf.mxu2  ;;  %v4377_v18 = vadd.f32 %v8755_v20, %v4215_v50 }
 0x218   :  { %v1912_v32 = vadd.f32 %v1911_v14, %v8563_v38  ;;  %v2106_v10 = vpop.f32.mrf.mxu0 }
 0x219   :  { %v2107_v46 = vadd.f32 %v2106_v10, %v8951_v51  ;;  %v2210_v60 = vpop.f32.mrf.mxu1  ;;  %v4529_v49 = vmax.f32 %v4377_v18, 0.0 }
 0x21a   :  { %v9006_v24 = vadd.f32 %v2015_v9, %v1912_v32 }
 0x21b   :  { %v2211_v39 = vadd.f32 %v2210_v60, %v2107_v46 }
 0x21d   :  { %v4219_v22 = vmul.f32 %v8748_v53, %v2211_v39 }
 0x21e   :  { %v2017_v15 = vpop.f32.mrf.mxu3 }
 0x21f   :  { %v4381_v36 = vadd.f32 %v8755_v20, %v4219_v22  ;;  %v1913_v40 = vpop.f32.mrf.mxu2 }
 0x220   :  { %v1914_v2 = vadd.f32 %v1913_v40, %v8571_v45  ;;  %v2109_v38 = vpop.f32.mrf.mxu0 }
 0x221   :  { %v2110_v4 = vadd.f32 %v2109_v38, %v8962_v41  ;;  %v2213_v44 = vpop.f32.mrf.mxu1  ;;  %v4533_v51 = vmax.f32 %v4381_v36, 0.0 }
 0x222   :  { %v9013_v12 = vadd.f32 %v2017_v15, %v1914_v2 }
 0x223   :  { %v2214_v37 = vadd.f32 %v2213_v44, %v2110_v4  ;;  %2380 = vmatmul.bf16.gmra.mxu3 %v8453_v31  ;;  %2469 = vmatmul.bf16.vlgmr.msra.gmra.mxu0 %v8515_v47  ;;  %v9017_v1 = vpack.c.bf16 %v4533_v51, %v4529_v49  ;;  %v11624_v51 = vld [vmem:[#allocation38_spill] sm:$0xff] }
 0x224   :  { %2276 = vmatmul.bf16.gmra.mxu2 %v8449_v29  ;;  %2573 = vmatmul.bf16.vlgmr.msra.gmra.mxu1 %v8511_v35 }
 0x225   :  { %11623 = vst [vmem:[#allocation152_spill] sm:$0xff] %v9017_v1  ;;  %v4223_v32 = vmul.f32 %v8748_v53, %v2214_v37  ;;  %v11625_v37 = vld [vmem:[#allocation59_spill] sm:$0xff]  ;;  %v11637_v1 = vld [vmem:[#allocation81_spill] sm:$0xff] }
 0x226   :  { %v2020_v45 = vpop.f32.mrf.mxu3 }
 0x227   :  { %v1916_v9 = vpop.f32.mrf.mxu2  ;;  %v4385_v39 = vadd.f32 %v8755_v20, %v4223_v32  ;;  %v11629_v32 = vld [vmem:[#allocation72_spill] sm:$0xff] }
 0x228   :  { %v1917_v14 = vadd.f32 %v1916_v9, %v8583_v25  ;;  %v2111_v41 = vpop.f32.mrf.mxu0  ;;  %v11627_v9 = vld [vmem:[#allocation36_spill] sm:$0xff] }
 0x229   :  { %v2112_v10 = vadd.f32 %v2111_v41, %v8973_v28  ;;  %v2215_v50 = vpop.f32.mrf.mxu1  ;;  %v4537_v2 = vmax.f32 %v4385_v39, 0.0 }
 0x22a   :  { %v9024_v46 = vadd.f32 %v2020_v45, %v1917_v14  ;;  %v11628_v14 = vld [vmem:[#allocation57_spill] sm:$0xff] }
 0x22b   :  { %v2216_v60 = vadd.f32 %v2215_v50, %v2112_v10 }
 0x22d   :  { %v4227_v18 = vmul.f32 %v8748_v53, %v2216_v60 }
 0x22e   :  { %v2022_v22 = vpop.f32.mrf.mxu3 }
 0x22f   :  { %v4389_v15 = vadd.f32 %v8755_v20, %v4227_v18  ;;  %v1918_v36 = vpop.f32.mrf.mxu2 }
 0x230   :  { %v1919_v40 = vadd.f32 %v1918_v36, %v8591_v55  ;;  %v2114_v25 = vpop.f32.mrf.mxu0 }
 0x231   :  { %v2115_v38 = vadd.f32 %v2114_v25, %v8984_v56  ;;  %v2218_v49 = vpop.f32.mrf.mxu1  ;;  %v4541_v28 = vmax.f32 %v4389_v15, 0.0 }
 0x232   :  { %v9031_v4 = vadd.f32 %v2022_v22, %v1919_v40 }
 0x233   :  { %v2219_v44 = vadd.f32 %v2218_v49, %v2115_v38  ;;  %2385 = vmatmul.bf16.gmra.mxu3 %v11624_v51  ;;  %2474 = vmatmul.bf16.gmra.mxu0 %v11625_v37  ;;  %v9035_v45 = vpack.c.bf16 %v4541_v28, %v4537_v2  ;;  %v11630_v38 = vld [vmem:[#allocation75_spill] sm:$0xff] }
 0x234   :  { %2281 = vmatmul.bf16.gmra.mxu2 %v11627_v9  ;;  %2578 = vmatmul.bf16.gmra.mxu1 %v11628_v14 }
 0x235   :  { %11626 = vst [vmem:[#allocation153_spill] sm:$0xff] %v9035_v45  ;;  %v4231_v50 = vmul.f32 %v8748_v53, %v2219_v44 }
 0x236   :  { %v2025_v55 = vpop.f32.mrf.mxu3 }
 0x237   :  { %v1921_v41 = vpop.f32.mrf.mxu2  ;;  %v4393_v15 = vadd.f32 %v8755_v20, %v4231_v50  ;;  %v11632_v50 = vld [vmem:[#allocation63_spill] sm:$0xff] }
 0x238   :  { %v1922_v10 = vadd.f32 %v1921_v41, %v11629_v32  ;;  %v2116_v56 = vpop.f32.mrf.mxu0 }
 0x239   :  { %v2117_v60 = vadd.f32 %v2116_v56, %v8995_v34  ;;  %v2220_v39 = vpop.f32.mrf.mxu1  ;;  %v4545_v41 = vmax.f32 %v4393_v15, 0.0  ;;  %v11636_v15 = vld [vmem:[#allocation78_spill] sm:$0xff] }
 0x23a   :  { %v9042_v18 = vadd.f32 %v2025_v55, %v1922_v10  ;;  %v11631_v10 = vld [vmem:[#allocation42_spill] sm:$0xff] }
 0x23b   :  { %v2221_v22 = vadd.f32 %v2220_v39, %v2117_v60  ;;  %v11634_v39 = vld [vmem:[#allocation40_spill] sm:$0xff] }
 0x23d   :  { %v4235_v36 = vmul.f32 %v8748_v53, %v2221_v22  ;;  %v11635_v22 = vld [vmem:[#allocation61_spill] sm:$0xff] }
 0x23e   :  { %v2027_v40 = vpop.f32.mrf.mxu3 }
 0x23f   :  { %v4397_v25 = vadd.f32 %v8755_v20, %v4235_v36  ;;  %v1923_v2 = vpop.f32.mrf.mxu2 }
 0x240   :  { %v1924_v49 = vadd.f32 %v1923_v2, %v11630_v38  ;;  %v2119_v28 = vpop.f32.mrf.mxu0 }
 0x241   :  { %v2120_v44 = vadd.f32 %v2119_v28, %v9006_v24  ;;  %v2223_v32 = vpop.f32.mrf.mxu1  ;;  %v4549_v34 = vmax.f32 %v4397_v25, 0.0 }
 0x242   :  { %v9049_v56 = vadd.f32 %v2027_v40, %v1924_v49 }
 0x243   :  { %v2224_v55 = vadd.f32 %v2223_v32, %v2120_v44  ;;  %2390 = vmatmul.bf16.gmra.mxu3 %v11631_v10  ;;  %2479 = vmatmul.bf16.gmra.mxu0 %v11632_v50  ;;  %v9053_v60 = vpack.c.bf16 %v4549_v34, %v4545_v41 }
 0x244   :  { %2286 = vmatmul.bf16.gmra.mxu2 %v11634_v39  ;;  %2583 = vmatmul.bf16.gmra.mxu1 %v11635_v22 }
 0x245   :  { %11633 = vst [vmem:[#allocation72_spill] sm:$0xff] %v9053_v60  ;;  %v4239_v25 = vmul.f32 %v8748_v53, %v2224_v55 }
 0x246   :  { %v2030_v36 = vpop.f32.mrf.mxu3 }
 0x247   :  { %v1926_v2 = vpop.f32.mrf.mxu2  ;;  %v4401_v41 = vadd.f32 %v8755_v20, %v4239_v25  ;;  %v11639_v25 = vld [vmem:[#allocation66_spill] sm:$0xff] }
 0x248   :  { %v1927_v38 = vadd.f32 %v1926_v2, %v11636_v15  ;;  %v2121_v24 = vpop.f32.mrf.mxu0 }
 0x249   :  { %v2122_v40 = vadd.f32 %v2121_v24, %v9013_v12  ;;  %v2225_v49 = vpop.f32.mrf.mxu1  ;;  %v4553_v15 = vmax.f32 %v4401_v41, 0.0  ;;  %v11643_v41 = vld [vmem:[#allocation84_spill] sm:$0xff] }
 0x24a   :  { %v9060_v28 = vadd.f32 %v2030_v36, %v1927_v38  ;;  %v11638_v38 = vld [vmem:[#allocation46_spill] sm:$0xff] }
 0x24b   :  { %v2226_v44 = vadd.f32 %v2225_v49, %v2122_v40  ;;  %v11641_v49 = vld [vmem:[#allocation44_spill] sm:$0xff] }
 0x24d   :  { %v4243_v32 = vmul.f32 %v8748_v53, %v2226_v44  ;;  %v11642_v44 = vld [vmem:[#allocation64_spill] sm:$0xff] }
 0x24e   :  { %v2032_v34 = vpop.f32.mrf.mxu3 }
 0x24f   :  { %v4405_v60 = vadd.f32 %v8755_v20, %v4243_v32  ;;  %v1928_v45 = vpop.f32.mrf.mxu2 }
 0x250   :  { %v1929_v8 = vadd.f32 %v1928_v45, %v11637_v1  ;;  %v2124_v2 = vpop.f32.mrf.mxu0 }
 0x251   :  { %v2125_v55 = vadd.f32 %v2124_v2, %v9024_v46  ;;  %v2228_v26 = vpop.f32.mrf.mxu1  ;;  %v4557_v12 = vmax.f32 %v4405_v60, 0.0 }
 0x252   :  { %v9067_v24 = vadd.f32 %v2032_v34, %v1929_v8 }
 0x253   :  { %v2229_v36 = vadd.f32 %v2228_v26, %v2125_v55  ;;  %2395 = vmatmul.bf16.gmra.mxu3 %v11638_v38  ;;  %2484 = vmatmul.bf16.gmra.mxu0 %v11639_v25  ;;  %v9071_v40 = vpack.c.bf16 %v4557_v12, %v4553_v15  ;;  %v11644_v25 = vld [vmem:[#allocation87_spill] sm:$0xff] }
 0x254   :  { %2291 = vmatmul.bf16.gmra.mxu2 %v11641_v49  ;;  %2588 = vmatmul.bf16.gmra.mxu1 %v11642_v44 }
 0x255   :  { %11640 = vst [vmem:[#allocation75_spill] sm:$0xff] %v9071_v40  ;;  %v4247_v60 = vmul.f32 %v8748_v53, %v2229_v36 }
 0x256   :  { %v2035_v1 = vpop.f32.mrf.mxu3 }
 0x257   :  { %v1931_v45 = vpop.f32.mrf.mxu2  ;;  %v4409_v15 = vadd.f32 %v8755_v20, %v4247_v60  ;;  %v11646_v60 = vld [vmem:[#allocation70_spill] sm:$0xff] }
 0x258   :  { %v1932_v32 = vadd.f32 %v1931_v45, %v11643_v41  ;;  %v2126_v46 = vpop.f32.mrf.mxu0 }
 0x259   :  { %v2127_v8 = vadd.f32 %v2126_v46, %v9031_v4  ;;  %v2230_v26 = vpop.f32.mrf.mxu1  ;;  %v4561_v41 = vmax.f32 %v4409_v15, 0.0  ;;  %v11650_v15 = vld [vmem:[#allocation90_spill] sm:$0xff] }
 0x25a   :  { %v9078_v34 = vadd.f32 %v2035_v1, %v1932_v32  ;;  %v11645_v32 = vld [vmem:[#allocation50_spill] sm:$0xff] }
 0x25b   :  { %v2231_v2 = vadd.f32 %v2230_v26, %v2127_v8  ;;  %v11648_v26 = vld [vmem:[#allocation48_spill] sm:$0xff] }
 0x25d   :  { %v4251_v55 = vmul.f32 %v8748_v53, %v2231_v2  ;;  %v11649_v2 = vld [vmem:[#allocation68_spill] sm:$0xff] }
 0x25e   :  { %v2037_v12 = vpop.f32.mrf.mxu3 }
 0x25f   :  { %v4413_v40 = vadd.f32 %v8755_v20, %v4251_v55  ;;  %v1933_v61 = vpop.f32.mrf.mxu2 }
 0x260   :  { %v1934_v44 = vadd.f32 %v1933_v61, %v11644_v25  ;;  %v2129_v45 = vpop.f32.mrf.mxu0 }
 0x261   :  { %v2130_v36 = vadd.f32 %v2129_v45, %v9042_v18  ;;  %v2233_v50 = vpop.f32.mrf.mxu1  ;;  %v4565_v4 = vmax.f32 %v4413_v40, 0.0 }
 0x262   :  { %v9085_v46 = vadd.f32 %v2037_v12, %v1934_v44 }
 0x263   :  { %v2234_v1 = vadd.f32 %v2233_v50, %v2130_v36  ;;  %2400 = vmatmul.bf16.gmra.mxu3 %v11645_v32  ;;  %2489 = vmatmul.bf16.gmra.mxu0 %v11646_v60  ;;  %v9089_v8 = vpack.c.bf16 %v4565_v4, %v4561_v41 }
 0x264   :  { %2296 = vmatmul.bf16.gmra.mxu2 %v11648_v26  ;;  %2593 = vmatmul.bf16.gmra.mxu1 %v11649_v2  ;;  %v11651_v2 = vld [vmem:[#allocation93_spill] sm:$0xff] }
 0x265   :  { %11647 = vst [vmem:[#allocation78_spill] sm:$0xff] %v9089_v8  ;;  %v4255_v40 = vmul.f32 %v8748_v53, %v2234_v1 }
 0x266   :  { %v2040_v61 = vpop.f32.mrf.mxu3 }
 0x267   :  { %v1936_v25 = vpop.f32.mrf.mxu2  ;;  %v4417_v36 = vadd.f32 %v8755_v20, %v4255_v40 }
 0x268   :  { %v1937_v55 = vadd.f32 %v1936_v25, %v11650_v15  ;;  %v2131_v18 = vpop.f32.mrf.mxu0 }
 0x269   :  { %v2132_v44 = vadd.f32 %v2131_v18, %v9049_v56  ;;  %v2235_v50 = vpop.f32.mrf.mxu1  ;;  %v4569_v25 = vmax.f32 %v4417_v36, 0.0 }
 0x26a   :  { %v2041_v12 = vadd.f32 %v2040_v61, %v1937_v55  ;;  %v11652_v61 = vld [vmem:[#allocation54_spill] sm:$0xff]  ;;  %v11653_v55 = vld [vmem:[#allocation76_spill] sm:$0xff] }
 0x26b   :  { %v2236_v45 = vadd.f32 %v2235_v50, %v2132_v44  ;;  %v11655_v44 = vld [vmem:[#allocation52_spill] sm:$0xff]  ;;  %v11656_v50 = vld [vmem:[#allocation73_spill] sm:$0xff] }
 0x26d   :  { %v4259_v41 = vmul.f32 %v8748_v53, %v2236_v45 }
 0x26e   :  { %v2042_v4 = vpop.f32.mrf.mxu3 }
 0x26f   :  { %v4421_v8 = vadd.f32 %v8755_v20, %v4259_v41  ;;  %v1938_v60 = vpop.f32.mrf.mxu2 }
 0x270   :  { %v1939_v22 = vadd.f32 %v1938_v60, %v11651_v2  ;;  %v2134_v37 = vpop.f32.mrf.mxu0 }
 0x271   :  { %v2135_v15 = vadd.f32 %v2134_v37, %v9060_v28  ;;  %v2238_v1 = vpop.f32.mrf.mxu1  ;;  %v4573_v14 = vmax.f32 %v4421_v8, 0.0 }
 0x272   :  { %v2043_v56 = vadd.f32 %v2042_v4, %v1939_v22 }
 0x273   :  { %v2239_v18 = vadd.f32 %v2238_v1, %v2135_v15  ;;  %2405 = vmatmul.bf16.gmra.mxu3 %v11652_v61  ;;  %2494 = vmatmul.bf16.gmra.mxu0 %v11653_v55  ;;  %v9103_v40 = vpack.c.bf16 %v4573_v14, %v4569_v25 }
 0x274   :  { %2301 = vmatmul.bf16.gmra.mxu2 %v11655_v44  ;;  %2598 = vmatmul.bf16.gmra.mxu1 %v11656_v50 }
 0x275   :  { %11654 = vst [vmem:[#allocation81_spill] sm:$0xff] %v9103_v40  ;;  %v4263_v37 = vmul.f32 %v8748_v53, %v2239_v18 }
 0x276   :  { %v2366_v45 = vpop.f32.mrf.mxu3 }
 0x277   :  { %v2262_v60 = vpop.f32.mrf.mxu2  ;;  %v4425_v41 = vadd.f32 %v8755_v20, %v4263_v37 }
 0x278   :  { %v9107_v2 = vadd.f32 %v2366_v45, %v2262_v60  ;;  %v2136_v36 = vpop.f32.mrf.mxu0 }
 0x279   :  { %v2137_v22 = vadd.f32 %v2136_v36, %v9067_v24  ;;  %v2240_v28 = vpop.f32.mrf.mxu1  ;;  %v4577_v45 = vmax.f32 %v4425_v41, 0.0  ;;  %v11657_v24 = vld [vmem:[#allocation58_spill] sm:$0xff] }
 0x27a   :  { %v11658_v36 = vld [vmem:[#allocation82_spill] sm:$0xff] }
 0x27b   :  { %v2241_v8 = vadd.f32 %v2240_v28, %v2137_v22  ;;  %v11660_v22 = vld [vmem:[#allocation56_spill] sm:$0xff]  ;;  %v11661_v28 = vld [vmem:[#allocation79_spill] sm:$0xff] }
 0x27d   :  { %v4267_v14 = vmul.f32 %v8748_v53, %v2241_v8 }
 0x27e   :  { %v2368_v4 = vpop.f32.mrf.mxu3 }
 0x27f   :  { %v4429_v25 = vadd.f32 %v8755_v20, %v4267_v14  ;;  %v2264_v15 = vpop.f32.mrf.mxu2 }
 0x280   :  { %v9114_v1 = vadd.f32 %v2368_v4, %v2264_v15  ;;  %v2139_v40 = vpop.f32.mrf.mxu0 }
 0x281   :  { %v2140_v60 = vadd.f32 %v2139_v40, %v9078_v34  ;;  %v2243_v55 = vpop.f32.mrf.mxu1  ;;  %v4581_v18 = vmax.f32 %v4429_v25, 0.0 }
 0x283   :  { %v2244_v50 = vadd.f32 %v2243_v55, %v2140_v60  ;;  %2410 = vmatmul.bf16.gmra.mxu3 %v11657_v24  ;;  %2499 = vmatmul.bf16.gmra.mxu0 %v11658_v36  ;;  %v9119_v37 = vpack.c.bf16 %v4581_v18, %v4577_v45 }
 0x284   :  { %2306 = vmatmul.bf16.gmra.mxu2 %v11660_v22  ;;  %2603 = vmatmul.bf16.gmra.mxu1 %v11661_v28 }
 0x285   :  { %11659 = vst [vmem:[#allocation84_spill] sm:$0xff] %v9119_v37  ;;  %v4271_v41 = vmul.f32 %v8748_v53, %v2244_v50  ;;  %v11662_v50 = vld [vmem:[#allocation62_spill] sm:$0xff] }
 0x286   :  { %v2371_v8 = vpop.f32.mrf.mxu3 }
 0x287   :  { %v2267_v14 = vpop.f32.mrf.mxu2  ;;  %v4433_v25 = vadd.f32 %v8755_v20, %v4271_v41  ;;  %v11665_v41 = vld [vmem:[#allocation60_spill] sm:$0xff] }
 0x288   :  { %v2372_v4 = vadd.f32 %v2371_v8, %v2267_v14  ;;  %v2141_v15 = vpop.f32.mrf.mxu0 }
 0x289   :  { %v2142_v34 = vadd.f32 %v2141_v15, %v9085_v46  ;;  %v2245_v40 = vpop.f32.mrf.mxu1  ;;  %v4585_v47 = vmax.f32 %v4433_v25, 0.0  ;;  %v11663_v46 = vld [vmem:[#allocation88_spill] sm:$0xff] }
 0x28b   :  { %v2246_v55 = vadd.f32 %v2245_v40, %v2142_v34  ;;  %v11666_v34 = vld [vmem:[#allocation85_spill] sm:$0xff] }
 0x28d   :  { %v4275_v60 = vmul.f32 %v8748_v53, %v2246_v55 }
 0x28e   :  { %v2373_v45 = vpop.f32.mrf.mxu3 }
 0x28f   :  { %v4437_v18 = vadd.f32 %v8755_v20, %v4275_v60  ;;  %v2269_v37 = vpop.f32.mrf.mxu2 }
 0x290   :  { %v2374_v36 = vadd.f32 %v2373_v45, %v2269_v37  ;;  %v2144_v28 = vpop.f32.mrf.mxu0 }
 0x291   :  { %v2145_v35 = vadd.f32 %v2144_v28, %v2041_v12  ;;  %v2248_v8 = vpop.f32.mrf.mxu1  ;;  %v4589_v14 = vmax.f32 %v4437_v18, 0.0 }
 0x293   :  { %v2249_v42 = vadd.f32 %v2248_v8, %v2145_v35  ;;  %2415 = vmatmul.bf16.gmra.mxu3 %v11662_v50  ;;  %2504 = vmatmul.bf16.gmra.mxu0 %v11663_v46  ;;  %v9130_v15 = vpack.c.bf16 %v4589_v14, %v4585_v47 }
 0x294   :  { %2311 = vmatmul.bf16.gmra.mxu2 %v11665_v41  ;;  %2608 = vmatmul.bf16.gmra.mxu1 %v11666_v34 }
 0x295   :  { %11664 = vst [vmem:[#allocation87_spill] sm:$0xff] %v9130_v15  ;;  %v4279_v25 = vmul.f32 %v8748_v53, %v2249_v42  ;;  %v11667_v42 = vld [vmem:[#allocation23_spill] sm:$0xff] }
 0x296   :  { %v2376_v40 = vpop.f32.mrf.mxu3 }
 0x297   :  { %v2272_v55 = vpop.f32.mrf.mxu2  ;;  %v4441_v35 = vadd.f32 %v8755_v20, %v4279_v25  ;;  %v11671_v25 = vld [vmem:[#allocation91_spill] sm:$0xff] }
 0x298   :  { %v2377_v60 = vadd.f32 %v2376_v40, %v2272_v55  ;;  %v2146_v37 = vpop.f32.mrf.mxu0 }
 0x299   :  { %v2147_v12 = vadd.f32 %v2146_v37, %v2043_v56  ;;  %v2250_v28 = vpop.f32.mrf.mxu1  ;;  %v4593_v34 = vmax.f32 %v4441_v35, 0.0  ;;  %v11668_v56 = vld [vmem:[#allocation94_spill] sm:$0xff] }
 0x29b   :  { %v2251_v45 = vadd.f32 %v2250_v28, %v2147_v12 }
 0x29d   :  { %v4283_v18 = vmul.f32 %v8748_v53, %v2251_v45  ;;  %v11670_v53 = vld [vmem:[#allocation21_spill] sm:$0xff] }
 0x29e   :  { %v2378_v8 = vpop.f32.mrf.mxu3 }
 0x29f   :  { %v4445_v47 = vadd.f32 %v8755_v20, %v4283_v18  ;;  %v2274_v14 = vpop.f32.mrf.mxu2 }
 0x2a0   :  { %v2379_v15 = vadd.f32 %v2378_v8, %v2274_v14  ;;  %v2470_v46 = vpop.f32.mrf.mxu0 }
 0x2a1   :  { %v2471_v0 = vadd.f32 %v2470_v46, %v9107_v2  ;;  %v2574_v40 = vpop.f32.mrf.mxu1  ;;  %v4597_v55 = vmax.f32 %v4445_v47, 0.0 }
 0x2a3   :  { %v9139_v43 = vadd.f32 %v2574_v40, %v2471_v0  ;;  %2420 = vmatmul.bf16.gmra.mxu3 %v11667_v42  ;;  %2509 = vmatmul.bf16.gmra.mxu0 %v11668_v56  ;;  %v9143_v37 = vpack.c.bf16 %v4597_v55, %v4593_v34  ;;  %v11672_v55 = vld [vmem:[#allocation27_spill] sm:$0xff]  ;;  %v11674_v56 = vld [vmem:[#allocation25_spill] sm:$0xff] }
 0x2a4   :  { %2316 = vmatmul.bf16.gmra.mxu2 %v11670_v53  ;;  %2613 = vmatmul.bf16.gmra.mxu1 %v11671_v25  ;;  %v7326_v42 = vld [vmem:[#allocation6 + $0x4b0] sm:$0xf0] }
 0x2a5   :  { %11669 = vst [vmem:[#allocation90_spill] sm:$0xff] %v9143_v37  ;;  %v11673_v37 = vld [vmem:[#allocation98_spill] sm:$0xff] }
 0x2a6   :  { %v2381_v20 = vpop.f32.mrf.mxu3 }
 0x2a7   :  { %v2277_v12 = vpop.f32.mrf.mxu2 }
 0x2a8   :  { %v2382_v28 = vadd.f32 %v2381_v20, %v2277_v12  ;;  %v2472_v45 = vpop.f32.mrf.mxu0  ;;  %v11675_v20 = vld [vmem:[#allocation96_spill] sm:$0xff] }
 0x2a9   :  { %v2473_v2 = vadd.f32 %v2472_v45, %v9114_v1  ;;  %v2576_v46 = vpop.f32.mrf.mxu1 }
 0x2ab   :  { %v9148_v35 = vadd.f32 %v2576_v46, %v2473_v2 }
 0x2ae   :  { %v2383_v0 = vpop.f32.mrf.mxu3 }
 0x2af   :  { %v2279_v18 = vpop.f32.mrf.mxu2 }
 0x2b0   :  { %v2384_v8 = vadd.f32 %v2383_v0, %v2279_v18  ;;  %v2475_v47 = vpop.f32.mrf.mxu0  ;;  %v7358_v18 = vld [vmem:[#allocation6 + $0x4f0] sm:$0xf0] }
 0x2b1   :  { %v2476_v14 = vadd.f32 %v2475_v47, %v2372_v4  ;;  %v2579_v34 = vpop.f32.mrf.mxu1  ;;  %v7974_v4 = vld [vmem:[#allocation6 + $0x4e4] sm:$0xf] }
 0x2b2   :  { %v7361_v47 = vor.u32 %v7974_v4, %v7358_v18 }
 0x2b3   :  { %v9150_v40 = vadd.f32 %v2579_v34, %v2476_v14  ;;  %2425 = vmatmul.bf16.gmra.mxu3 %v11672_v55  ;;  %2514 = vmatmul.bf16.gmra.mxu0 %v11673_v37 }
 0x2b4   :  { %2321 = vmatmul.bf16.gmra.mxu2 %v11674_v56  ;;  %2618 = vmatmul.bf16.gmra.mxu1 %v11675_v20 }
 0x2b5   :  { %2669 = vmatpush.bf16.msrb.mxu2 %v7361_v47 }
 0x2b6   :  { %v2386_v1 = vpop.f32.mrf.mxu3 }
 0x2b7   :  { %v2282_v12 = vpop.f32.mrf.mxu2 }
 0x2b8   :  { %v2387_v45 = vadd.f32 %v2386_v1, %v2282_v12  ;;  %v2477_v2 = vpop.f32.mrf.mxu0  ;;  %v11676_v1 = vld [vmem:[#allocation31_spill] sm:$0xff]  ;;  %v11679_v12 = vld [vmem:[#allocation100_spill] sm:$0xff] }
 0x2b9   :  { %v2478_v46 = vadd.f32 %v2477_v2, %v2374_v36  ;;  %v2581_v25 = vpop.f32.mrf.mxu1  ;;  %v11677_v36 = vld [vmem:[#allocation102_spill] sm:$0xff] }
 0x2bb   :  { %v9156_v0 = vadd.f32 %v2581_v25, %v2478_v46  ;;  %v11678_v25 = vld [vmem:[#allocation29_spill] sm:$0xff] }
 0x2be   :  { %v2388_v14 = vpop.f32.mrf.mxu3 }
 0x2bf   :  { %v2284_v34 = vpop.f32.mrf.mxu2 }
 0x2c0   :  { %v2389_v21 = vadd.f32 %v2388_v14, %v2284_v34  ;;  %v2480_v37 = vpop.f32.mrf.mxu0 }
 0x2c1   :  { %v2481_v55 = vadd.f32 %v2480_v37, %v2377_v60  ;;  %v2584_v20 = vpop.f32.mrf.mxu1 }
 0x2c3   :  { %v9158_v56 = vadd.f32 %v2584_v20, %v2481_v55  ;;  %2430 = vmatmul.bf16.gmra.mxu3 %v11676_v1  ;;  %2519 = vmatmul.bf16.gmra.mxu0 %v11677_v36 }
 0x2c4   :  { %2326 = vmatmul.bf16.gmra.mxu2 %v11678_v25  ;;  %2623 = vmatmul.bf16.gmra.mxu1 %v11679_v12  ;;  %v11680_v12 = vld [vmem:[#allocation35_spill] sm:$0xff] }
 0x2c6   :  { %v2391_v2 = vpop.f32.mrf.mxu3 }
 0x2c7   :  { %v2287_v46 = vpop.f32.mrf.mxu2 }
 0x2c8   :  { %v9164_v4 = vadd.f32 %v2391_v2, %v2287_v46  ;;  %v2482_v18 = vpop.f32.mrf.mxu0  ;;  %v11682_v2 = vld [vmem:[#allocation33_spill] sm:$0xff]  ;;  %v11683_v46 = vld [vmem:[#allocation104_spill] sm:$0xff] }
 0x2c9   :  { %v2483_v47 = vadd.f32 %v2482_v18, %v2379_v15  ;;  %v2586_v60 = vpop.f32.mrf.mxu1 }
 0x2cb   :  { %v9166_v37 = vadd.f32 %v2586_v60, %v2483_v47 }
 0x2ce   :  { %v2393_v11 = vpop.f32.mrf.mxu3 }
 0x2cf   :  { %v2289_v52 = vpop.f32.mrf.mxu2 }
 0x2d0   :  { %v9168_v55 = vadd.f32 %v2393_v11, %v2289_v52  ;;  %v2485_v20 = vpop.f32.mrf.mxu0 }
 0x2d1   :  { %v2486_v14 = vadd.f32 %v2485_v20, %v2382_v28  ;;  %v2589_v34 = vpop.f32.mrf.mxu1 }
 0x2d3   :  { %v9170_v36 = vadd.f32 %v2589_v34, %v2486_v14  ;;  %2435 = vmatmul.bf16.gmra.mxu3 %v11680_v12  ;;  %2524 = vmatmul.bf16.gmra.mxu0 %v11681_v62 }
 0x2d4   :  { %2331 = vmatmul.bf16.gmra.mxu2 %v11682_v2  ;;  %2628 = vmatmul.bf16.gmra.mxu1 %v11683_v46  ;;  %v11684_v2 = vld [vmem:[#allocation39_spill] sm:$0xff]  ;;  %v11685_v46 = vld [vmem:[#allocation110_spill] sm:$0xff] }
 0x2d6   :  { %v2396_v15 = vpop.f32.mrf.mxu3 }
 0x2d7   :  { %v2292_v18 = vpop.f32.mrf.mxu2 }
 0x2d8   :  { %v9176_v47 = vadd.f32 %v2396_v15, %v2292_v18  ;;  %v2487_v60 = vpop.f32.mrf.mxu0  ;;  %v7970_v15 = vld [vmem:[#allocation6 + $0x4c4] sm:$0xf]  ;;  %v7342_v18 = vld [vmem:[#allocation6 + $0x4d0] sm:$0xf0] }
 0x2d9   :  { %v2488_v11 = vadd.f32 %v2487_v60, %v2384_v8  ;;  %v2591_v52 = vpop.f32.mrf.mxu1  ;;  %v11687_v8 = vld [vmem:[#allocation108_spill] sm:$0xff]  ;;  %v7345_v60 = vor.u32 %v7970_v15, %v7342_v18 }
 0x2db   :  { %v9178_v1 = vadd.f32 %v2591_v52, %v2488_v11  ;;  %v8002_v11 = vld [vmem:[#allocation6 + $0x5c4] sm:$0xf]  ;;  %v7470_v52 = vld [vmem:[#allocation6 + $0x5d0] sm:$0xf0]  ;;  %2670 = vmatpush.bf16.msrb.mxu2 %v7345_v60 }
 0x2dc   :  { %v7310_v60 = vld [vmem:[#allocation6 + $0x490] sm:$0xf0] }
 0x2de   :  { %v2398_v28 = vpop.f32.mrf.mxu3 }
 0x2df   :  { %v2294_v20 = vpop.f32.mrf.mxu2 }
 0x2e0   :  { %v9180_v14 = vadd.f32 %v2398_v28, %v2294_v20  ;;  %v2490_v34 = vpop.f32.mrf.mxu0  ;;  %v7473_v28 = vor.u32 %v8002_v11, %v7470_v52  ;;  %v7962_v11 = vld [vmem:[#allocation6 + $0x484] sm:$0xf] }
 0x2e1   :  { %v2491_v12 = vadd.f32 %v2490_v34, %v2387_v45  ;;  %v2594_v62 = vpop.f32.mrf.mxu1  ;;  %v7994_v52 = vld [vmem:[#allocation6 + $0x584] sm:$0xf] }
 0x2e2   :  { %2774 = vmatpush.bf16.msrb.mxu3 %v7473_v28 }
 0x2e3   :  { %v9182_v25 = vadd.f32 %v2594_v62, %v2491_v12  ;;  %2440 = vmatmul.bf16.gmra.mxu3 %v11684_v2  ;;  %2529 = vmatmul.bf16.gmra.mxu0 %v11685_v46  ;;  %v7966_v46 = vld [vmem:[#allocation6 + $0x4a4] sm:$0xf] }
 0x2e4   :  { %2336 = vmatmul.bf16.gmra.mxu2 %v11686_v27  ;;  %2633 = vmatmul.bf16.gmra.mxu1 %v11687_v8  ;;  %v7329_v27 = vor.u32 %v7966_v46, %v7326_v42  ;;  %v7454_v8 = vld [vmem:[#allocation6 + $0x5b0] sm:$0xf0]  ;;  %v7958_v42 = vld [vmem:[#allocation6 + $0x464] sm:$0xf] }
 0x2e5   :  { %v7457_v15 = vor.u32 %v7998_v6, %v7454_v8  ;;  %v7294_v6 = vld [vmem:[#allocation6 + $0x470] sm:$0xf0]  ;;  %v11688_v8 = vld [vmem:[#allocation43_spill] sm:$0xff] }
 0x2e6   :  { %v2401_v20 = vpop.f32.mrf.mxu3  ;;  %2671 = vmatpush.bf16.msrb.mxu2 %v7329_v27  ;;  %v7990_v27 = vld [vmem:[#allocation6 + $0x564] sm:$0xf] }
 0x2e7   :  { %v2297_v45 = vpop.f32.mrf.mxu2  ;;  %2775 = vmatpush.bf16.msrb.mxu3 %v7457_v15  ;;  %v7422_v15 = vld [vmem:[#allocation6 + $0x570] sm:$0xf0] }
 0x2e8   :  { %v9188_v12 = vadd.f32 %v2401_v20, %v2297_v45  ;;  %v2492_v62 = vpop.f32.mrf.mxu0  ;;  %v7313_v20 = vor.u32 %v7962_v11, %v7310_v60  ;;  %v7438_v45 = vld [vmem:[#allocation6 + $0x590] sm:$0xf0]  ;;  %v7425_v11 = vor.u32 %v7990_v27, %v7422_v15  ;;  %v7954_v60 = vld [vmem:[#allocation6 + $0x444] sm:$0xf] }
 0x2e9   :  { %v2493_v34 = vadd.f32 %v2492_v62, %v2389_v21  ;;  %v2596_v2 = vpop.f32.mrf.mxu1  ;;  %v7441_v62 = vor.u32 %v7994_v52, %v7438_v45  ;;  %v7278_v52 = vld [vmem:[#allocation6 + $0x450] sm:$0xf0] }
 0x2ea   :  { %2672 = vmatpush.bf16.msrb.mxu2 %v7313_v20  ;;  %v7406_v45 = vld [vmem:[#allocation6 + $0x550] sm:$0xf0] }
 0x2eb   :  { %v9190_v53 = vadd.f32 %v2596_v2, %v2493_v34  ;;  %2776 = vmatpush.bf16.msrb.mxu3 %v7441_v62  ;;  %v7297_v34 = vor.u32 %v7958_v42, %v7294_v6  ;;  %v7262_v27 = vld [vmem:[#allocation6 + $0x430] sm:$0xf0] }
 0x2ee   :  { %v2403_v18 = vpop.f32.mrf.mxu3  ;;  %2673 = vmatpush.bf16.msrb.mxu2 %v7297_v34  ;;  %v7982_v34 = vld [vmem:[#allocation6 + $0x524] sm:$0xf] }
 0x2ef   :  { %v2299_v28 = vpop.f32.mrf.mxu2  ;;  %2777 = vmatpush.bf16.msrb.mxu3 %v7425_v11 }
 0x2f0   :  { %v9192_v58 = vadd.f32 %v2403_v18, %v2299_v28  ;;  %v2495_v21 = vpop.f32.mrf.mxu0  ;;  %v11689_v18 = vld [vmem:[#allocation41_spill] sm:$0xff]  ;;  %v7986_v28 = vld [vmem:[#allocation6 + $0x544] sm:$0xf] }
 0x2f1   :  { %v2496_v50 = vadd.f32 %v2495_v21, %v9164_v4  ;;  %v2599_v2 = vpop.f32.mrf.mxu1 }
 0x2f3   :  { %v9195_v46 = vadd.f32 %v2599_v2, %v2496_v50  ;;  %2445 = vmatmul.bf16.gmra.mxu3 %v11688_v8  ;;  %2534 = vmatmul.bf16.gmra.mxu0 %v8794_v30  ;;  %v7281_v50 = vor.u32 %v7954_v60, %v7278_v52  ;;  %v7409_v2 = vor.u32 %v7986_v28, %v7406_v45  ;;  %v7950_v30 = vld [vmem:[#allocation6 + $0x424] sm:$0xf]  ;;  %v7246_v52 = vld [vmem:[#allocation6 + $0x410] sm:$0xf0] }
 0x2f4   :  { %2341 = vmatmul.bf16.gmra.mxu2 %v11689_v18  ;;  %2638 = vmatmul.bf16.gmra.mxu1 %v8789_v33  ;;  %v7265_v11 = vor.u32 %v7950_v30, %v7262_v27  ;;  %v7390_v33 = vld [vmem:[#allocation6 + $0x530] sm:$0xf0] }
 0x2f5   :  { %2674 = vmatpush.bf16.msrb.mxu2 %v7281_v50  ;;  %2778 = vmatpush.bf16.msrb.mxu3 %v7409_v2  ;;  %v7393_v8 = vor.u32 %v7982_v34, %v7390_v33  ;;  %v11690_v33 = vld [vmem:[#allocation47_spill] sm:$0xff] }
 0x2f6   :  { %v2406_v4 = vpop.f32.mrf.mxu3 }
 0x2f7   :  { %v2302_v20 = vpop.f32.mrf.mxu2 }
 0x2f8   :  { %v9201_v21 = vadd.f32 %v2406_v4, %v2302_v20  ;;  %v2497_v62 = vpop.f32.mrf.mxu0  ;;  %v7946_v4 = vld [vmem:[#allocation6 + $0x404] sm:$0xf] }
 0x2f9   :  { %v2498_v42 = vadd.f32 %v2497_v62, %v9168_v55  ;;  %v2601_v6 = vpop.f32.mrf.mxu1  ;;  %2675 = vmatpush.bf16.msrb.mxu2 %v7265_v11  ;;  %2779 = vmatpush.bf16.msrb.mxu3 %v7393_v8  ;;  %v7978_v20 = vld [vmem:[#allocation6 + $0x504] sm:$0xf]  ;;  %v7249_v45 = vor.u32 %v7946_v4, %v7246_v52  ;;  %v7374_v55 = vld [vmem:[#allocation6 + $0x510] sm:$0xf0] }
 0x2fa   :  { %v7377_v2 = vor.u32 %v7978_v20, %v7374_v55  ;;  %v11691_v8 = vld [vmem:[#allocation45_spill] sm:$0xff] }
 0x2fb   :  { %v9204_v15 = vadd.f32 %v2601_v6, %v2498_v42 }
 0x2fd   :  { %2676 = vmatpush.bf16.msrb.mxu2 %v7249_v45  ;;  %2780 = vmatpush.bf16.msrb.mxu3 %v7377_v2  ;;  %v7849_v2 = vld [vmem:[#allocation6 + $0xf4] sm:$0xf0] }
 0x2fe   :  { %v2408_v60 = vpop.f32.mrf.mxu3 }
 0x2ff   :  { %v2304_v28 = vpop.f32.mrf.mxu2 }
 0x300   :  { %v9206_v62 = vadd.f32 %v2408_v60, %v2304_v28  ;;  %v2500_v50 = vpop.f32.mrf.mxu0 }
 0x301   :  { %v2501_v18 = vadd.f32 %v2500_v50, %v9176_v47  ;;  %v2604_v42 = vpop.f32.mrf.mxu1  ;;  %v6852_v50 = vld [vmem:[#allocation6 + $0xe8] sm:$0xf] }
 0x303   :  { %v9209_v30 = vadd.f32 %v2604_v42, %v2501_v18  ;;  %2450 = vmatmul.bf16.gmra.mxu3 %v11690_v33  ;;  %2539 = vmatmul.bf16.gmra.mxu0 %v8820_v48  ;;  %v6980_v42 = vld [vmem:[#allocation6 + $0x1e8] sm:$0xf] }
 0x304   :  { %2346 = vmatmul.bf16.gmra.mxu2 %v11691_v8  ;;  %2643 = vmatmul.bf16.gmra.mxu1 %v8815_v3  ;;  %v6964_v3 = vld [vmem:[#allocation6 + $0x1c8] sm:$0xf] }
 0x306   :  { %v2411_v6 = vpop.f32.mrf.mxu3 }
 0x307   :  { %v2307_v27 = vpop.f32.mrf.mxu2 }
 0x308   :  { %v9215_v34 = vadd.f32 %v2411_v6, %v2307_v27  ;;  %v2502_v11 = vpop.f32.mrf.mxu0  ;;  %v11694_v6 = vld [vmem:[#allocation51_spill] sm:$0xff]  ;;  %v11695_v27 = vld [vmem:[#allocation125_spill] sm:$0xff] }
 0x309   :  { %v2503_v47 = vadd.f32 %v2502_v11, %v9180_v14  ;;  %v2606_v60 = vpop.f32.mrf.mxu1  ;;  %v6853_v14 = vor.u32 %v7849_v2, %v6852_v50  ;;  %v7881_v11 = vld [vmem:[#allocation6 + $0x1f4] sm:$0xf0] }
 0x30b   :  { %v9218_v4 = vadd.f32 %v2606_v60, %v2503_v47  ;;  %v11696_v47 = vld [vmem:[#allocation49_spill] sm:$0xff]  ;;  %v11697_v60 = vld [vmem:[#allocation123_spill] sm:$0xff]  ;;  %2877 = vmatpush.bf16.msrb.mxu0 %v6853_v14 }
 0x30c   :  { %v6948_v14 = vld [vmem:[#allocation6 + $0x1a8] sm:$0xf] }
 0x30d   :  { %11692 = vst [vmem:[#allocation93_spill] sm:$0xff] %v9218_v4 }
 0x30e   :  { %v2413_v18 = vpop.f32.mrf.mxu3 }
 0x30f   :  { %v2309_v52 = vpop.f32.mrf.mxu2 }
 0x310   :  { %v9220_v20 = vadd.f32 %v2413_v18, %v2309_v52  ;;  %v2505_v28 = vpop.f32.mrf.mxu0  ;;  %v6981_v18 = vor.u32 %v7881_v11, %v6980_v42  ;;  %v7841_v42 = vld [vmem:[#allocation6 + $0xb4] sm:$0xf0] }
 0x311   :  { %v2506_v45 = vadd.f32 %v2505_v28, %v9188_v12  ;;  %v2609_v55 = vpop.f32.mrf.mxu1  ;;  %v6836_v12 = vld [vmem:[#allocation6 + $0xc8] sm:$0xf]  ;;  %v7845_v28 = vld [vmem:[#allocation6 + $0xd4] sm:$0xf0] }
 0x312   :  { %2981 = vmatpush.bf16.msrb.mxu1 %v6981_v18 }
 0x313   :  { %v9223_v48 = vadd.f32 %v2609_v55, %v2506_v45  ;;  %2455 = vmatmul.bf16.gmra.mxu3 %v11694_v6  ;;  %2544 = vmatmul.bf16.gmra.mxu0 %v11695_v27  ;;  %v6837_v45 = vor.u32 %v7845_v28, %v6836_v12  ;;  %v7877_v55 = vld [vmem:[#allocation6 + $0x1d4] sm:$0xf0]  ;;  %v6932_v28 = vld [vmem:[#allocation6 + $0x188] sm:$0xf] }
 0x314   :  { %2351 = vmatmul.bf16.gmra.mxu2 %v11696_v47  ;;  %2648 = vmatmul.bf16.gmra.mxu1 %v11697_v60  ;;  %v6965_v27 = vor.u32 %v7877_v55, %v6964_v3  ;;  %v6820_v60 = vld [vmem:[#allocation6 + $0xa8] sm:$0xf]  ;;  %v7873_v47 = vld [vmem:[#allocation6 + $0x1b4] sm:$0xf0] }
 0x315   :  { %11693 = vst [vmem:[#allocation154_spill] sm:$0xff] %v9223_v48  ;;  %2878 = vmatpush.bf16.msrb.mxu0 %v6837_v45  ;;  %v6821_v18 = vor.u32 %v7841_v42, %v6820_v60  ;;  %v6949_v48 = vor.u32 %v7873_v47, %v6948_v14  ;;  %v6788_v60 = vld [vmem:[#allocation6 + $0x68] sm:$0xf]  ;;  %v7833_v47 = vld [vmem:[#allocation6 + $0x74] sm:$0xf0] }
 0x316   :  { %v2416_v52 = vpop.f32.mrf.mxu3  ;;  %2982 = vmatpush.bf16.msrb.mxu1 %v6965_v27  ;;  %v6789_v14 = vor.u32 %v7833_v47, %v6788_v60 }
 0x317   :  { %v2312_v33 = vpop.f32.mrf.mxu2 }
 0x318   :  { %v9229_v8 = vadd.f32 %v2416_v52, %v2312_v33  ;;  %v2507_v6 = vpop.f32.mrf.mxu0  ;;  %v6804_v33 = vld [vmem:[#allocation6 + $0x88] sm:$0xf]  ;;  %v7837_v52 = vld [vmem:[#allocation6 + $0x94] sm:$0xf0] }
 0x319   :  { %v2508_v50 = vadd.f32 %v2507_v6, %v9192_v58  ;;  %v2611_v2 = vpop.f32.mrf.mxu1  ;;  %2879 = vmatpush.bf16.msrb.mxu0 %v6821_v18  ;;  %v6805_v55 = vor.u32 %v7837_v52, %v6804_v33  ;;  %v7869_v58 = vld [vmem:[#allocation6 + $0x194] sm:$0xf0] }
 0x31a   :  { %2983 = vmatpush.bf16.msrb.mxu1 %v6949_v48  ;;  %v6933_v45 = vor.u32 %v7869_v58, %v6932_v28  ;;  %v11700_v48 = vld [vmem:[#allocation67_spill] sm:$0xff]  ;;  %v7865_v18 = vld [vmem:[#allocation6 + $0x174] sm:$0xf0] }
 0x31b   :  { %v9232_v11 = vadd.f32 %v2611_v2, %v2508_v50  ;;  %v6916_v2 = vld [vmem:[#allocation6 + $0x168] sm:$0xf]  ;;  %v11702_v33 = vld [vmem:[#allocation65_spill] sm:$0xff] }
 0x31c   :  { %v6917_v52 = vor.u32 %v7865_v18, %v6916_v2  ;;  %v6772_v28 = vld [vmem:[#allocation6 + $0x48] sm:$0xf]  ;;  %v7825_v2 = vld [vmem:[#allocation6 + $0x34] sm:$0xf0] }
 0x31d   :  { %11698 = vst [vmem:[#allocation155_spill] sm:$0xff] %v9232_v11  ;;  %2880 = vmatpush.bf16.msrb.mxu0 %v6805_v55  ;;  %v6900_v55 = vld [vmem:[#allocation6 + $0x148] sm:$0xf] }
 0x31e   :  { %v2418_v12 = vpop.f32.mrf.mxu3  ;;  %2984 = vmatpush.bf16.msrb.mxu1 %v6933_v45 }
 0x31f   :  { %v2314_v3 = vpop.f32.mrf.mxu2 }
 0x320   :  { %v9234_v6 = vadd.f32 %v2418_v12, %v2314_v3  ;;  %v2510_v27 = vpop.f32.mrf.mxu0  ;;  %v11701_v12 = vld [vmem:[#allocation128_spill] sm:$0xff]  ;;  %v7829_v3 = vld [vmem:[#allocation6 + $0x54] sm:$0xf0] }
 0x321   :  { %v2511_v4 = vadd.f32 %v2510_v27, %v9201_v21  ;;  %v2614_v50 = vpop.f32.mrf.mxu1  ;;  %2881 = vmatpush.bf16.msrb.mxu0 %v6789_v14  ;;  %v7861_v27 = vld [vmem:[#allocation6 + $0x154] sm:$0xf0]  ;;  %v6884_v14 = vld [vmem:[#allocation6 + $0x128] sm:$0xf] }
 0x322   :  { %2985 = vmatpush.bf16.msrb.mxu1 %v6917_v52 }
 0x323   :  { %v9237_v42 = vadd.f32 %v2614_v50, %v2511_v4  ;;  %2549 = vmatmul.bf16.gmra.mxu0 %v8872_v63  ;;  %2781 = vmatmul.bf16.vlgmr.msrb.gmra.mxu3 %v11700_v48  ;;  %v6773_v4 = vor.u32 %v7829_v3, %v6772_v28  ;;  %v6901_v63 = vor.u32 %v7861_v27, %v6900_v55  ;;  %v7857_v48 = vld [vmem:[#allocation6 + $0x134] sm:$0xf0] }
 0x324   :  { %2653 = vmatmul.bf16.gmra.mxu1 %v11701_v12  ;;  %2677 = vmatmul.bf16.vlgmr.msrb.gmra.mxu2 %v11702_v33  ;;  %v6756_v12 = vld [vmem:[#allocation6 + $0x28] sm:$0xf]  ;;  %v6885_v33 = vor.u32 %v7857_v48, %v6884_v14  ;;  %v7821_v3 = vld [vmem:[#allocation6 + $0x14] sm:$0xf0] }
 0x325   :  { %11699 = vst [vmem:[#allocation156_spill] sm:$0xff] %v9237_v42  ;;  %2882 = vmatpush.bf16.msrb.mxu0 %v6773_v4  ;;  %v6757_v52 = vor.u32 %v7825_v2, %v6756_v12  ;;  %v11703_v48 = vld [vmem:[#allocation71_spill] sm:$0xff] }
 0x326   :  { %v2421_v21 = vpop.f32.mrf.mxu3  ;;  %2986 = vmatpush.bf16.msrb.mxu1 %v6901_v63 }
 0x327   :  { %v2317_v58 = vpop.f32.mrf.mxu2 }
 0x328   :  { %v9243_v45 = vadd.f32 %v2421_v21, %v2317_v58  ;;  %v2512_v50 = vpop.f32.mrf.mxu0  ;;  %v6740_v21 = vld [vmem:[#allocation6 + $0x8] sm:$0xf] }
 0x329   :  { %v2513_v60 = vadd.f32 %v2512_v50, %v9206_v62  ;;  %v2616_v47 = vpop.f32.mrf.mxu1  ;;  %2883 = vmatpush.bf16.msrb.mxu0 %v6757_v52  ;;  %v6868_v58 = vld [vmem:[#allocation6 + $0x108] sm:$0xf]  ;;  %v6741_v27 = vor.u32 %v7821_v3, %v6740_v21  ;;  %v7853_v62 = vld [vmem:[#allocation6 + $0x114] sm:$0xf0] }
 0x32a   :  { %2987 = vmatpush.bf16.msrb.mxu1 %v6885_v33  ;;  %v6869_v63 = vor.u32 %v7853_v62, %v6868_v58  ;;  %v11704_v33 = vld [vmem:[#allocation69_spill] sm:$0xff] }
 0x32b   :  { %v9246_v18 = vadd.f32 %v2616_v47, %v2513_v60  ;;  %v11705_v62 = vld [vmem:[#allocation77_spill] sm:$0xff] }
 0x32d   :  { %2884 = vmatpush.bf16.msrb.mxu0 %v6741_v27 }
 0x32e   :  { %v2423_v28 = vpop.f32.mrf.mxu3  ;;  %2988 = vmatpush.bf16.msrb.mxu1 %v6869_v63 }
 0x32f   :  { %v2319_v55 = vpop.f32.mrf.mxu2 }
 0x330   :  { %v2424_v50 = vadd.f32 %v2423_v28, %v2319_v55  ;;  %v2515_v4 = vpop.f32.mrf.mxu0 }
 0x331   :  { %v2516_v42 = vadd.f32 %v2515_v4, %v9215_v34  ;;  %v2619_v11 = vpop.f32.mrf.mxu1  ;;  %v11706_v4 = vld [vmem:[#allocation74_spill] sm:$0xff] }
 0x333   :  { %v9249_v12 = vadd.f32 %v2619_v11, %v2516_v42  ;;  %2554 = vmatmul.bf16.gmra.mxu0 %v8898_v16  ;;  %2786 = vmatmul.bf16.gmra.mxu3 %v11703_v48 }
 0x334   :  { %2658 = vmatmul.bf16.gmra.mxu1 %v8893_v54  ;;  %2682 = vmatmul.bf16.gmra.mxu2 %v11704_v33 }
 0x336   :  { %v2426_v60 = vpop.f32.mrf.mxu3 }
 0x337   :  { %v2322_v47 = vpop.f32.mrf.mxu2 }
 0x338   :  { %v2427_v2 = vadd.f32 %v2426_v60, %v2322_v47  ;;  %v2517_v14 = vpop.f32.mrf.mxu0 }
 0x339   :  { %v2518_v52 = vadd.f32 %v2517_v14, %v9220_v20  ;;  %v2621_v34 = vpop.f32.mrf.mxu1 }
 0x33b   :  { %v9256_v28 = vadd.f32 %v2621_v34, %v2518_v52 }
 0x33e   :  { %v2428_v21 = vpop.f32.mrf.mxu3 }
 0x33f   :  { %v2324_v11 = vpop.f32.mrf.mxu2 }
 0x340   :  { %v2429_v42 = vadd.f32 %v2428_v21, %v2324_v11  ;;  %v2520_v3 = vpop.f32.mrf.mxu0 }
 0x341   :  { %v2521_v58 = vadd.f32 %v2520_v3, %v9229_v8  ;;  %v2624_v55 = vpop.f32.mrf.mxu1 }
 0x343   :  { %v9259_v27 = vadd.f32 %v2624_v55, %v2521_v58  ;;  %2559 = vmatmul.bf16.gmra.mxu0 %v8924_v13  ;;  %2791 = vmatmul.bf16.gmra.mxu3 %v11705_v62 }
 0x344   :  { %2663 = vmatmul.bf16.gmra.mxu1 %v8919_v23  ;;  %2687 = vmatmul.bf16.gmra.mxu2 %v11706_v4  ;;  %v11707_v23 = vld [vmem:[#allocation83_spill] sm:$0xff] }
 0x346   :  { %v2431_v20 = vpop.f32.mrf.mxu3 }
 0x347   :  { %v2327_v63 = vpop.f32.mrf.mxu2 }
 0x348   :  { %v2432_v60 = vadd.f32 %v2431_v20, %v2327_v63  ;;  %v2522_v47 = vpop.f32.mrf.mxu0  ;;  %v11708_v20 = vld [vmem:[#allocation80_spill] sm:$0xff] }
 0x349   :  { %v2523_v14 = vadd.f32 %v2522_v47, %v9234_v6  ;;  %v2626_v52 = vpop.f32.mrf.mxu1 }
 0x34b   :  { %v9266_v34 = vadd.f32 %v2626_v52, %v2523_v14 }
 0x34e   :  { %v2433_v8 = vpop.f32.mrf.mxu3 }
 0x34f   :  { %v2329_v21 = vpop.f32.mrf.mxu2 }
 0x350   :  { %v2434_v11 = vadd.f32 %v2433_v8, %v2329_v21  ;;  %v2525_v3 = vpop.f32.mrf.mxu0 }
 0x351   :  { %v2526_v58 = vadd.f32 %v2525_v3, %v9243_v45  ;;  %v2629_v55 = vpop.f32.mrf.mxu1 }
 0x353   :  { %v9269_v13 = vadd.f32 %v2629_v55, %v2526_v58  ;;  %2796 = vmatmul.bf16.gmra.mxu3 %v11707_v23  ;;  %2885 = vmatmul.bf16.vlgmr.msrb.gmra.mxu0 %v8413_v57  ;;  %v11709_v57 = vld [vmem:[#allocation89_spill] sm:$0xff] }
 0x354   :  { %2692 = vmatmul.bf16.gmra.mxu2 %v11708_v20  ;;  %2989 = vmatmul.bf16.vlgmr.msrb.gmra.mxu1 %v8417_v59  ;;  %v11710_v59 = vld [vmem:[#allocation86_spill] sm:$0xff] }
 0x356   :  { %v2436_v6 = vpop.f32.mrf.mxu3 }
 0x357   :  { %v2332_v63 = vpop.f32.mrf.mxu2 }
 0x358   :  { %v2437_v47 = vadd.f32 %v2436_v6, %v2332_v63  ;;  %v2527_v14 = vpop.f32.mrf.mxu0 }
 0x359   :  { %v2528_v52 = vadd.f32 %v2527_v14, %v2424_v50  ;;  %v2631_v8 = vpop.f32.mrf.mxu1 }
 0x35b   :  { %v9275_v21 = vadd.f32 %v2631_v8, %v2528_v52 }
 0x35e   :  { %v2438_v45 = vpop.f32.mrf.mxu3 }
 0x35f   :  { %v2334_v3 = vpop.f32.mrf.mxu2 }
 0x360   :  { %v2439_v58 = vadd.f32 %v2438_v45, %v2334_v3  ;;  %v2530_v55 = vpop.f32.mrf.mxu0 }
 0x361   :  { %v2531_v16 = vadd.f32 %v2530_v55, %v2427_v2  ;;  %v2634_v54 = vpop.f32.mrf.mxu1 }
 0x363   :  { %v9277_v23 = vadd.f32 %v2634_v54, %v2531_v16  ;;  %2801 = vmatmul.bf16.gmra.mxu3 %v11709_v57  ;;  %2890 = vmatmul.bf16.gmra.mxu0 %v8425_v5  ;;  %v11711_v5 = vld [vmem:[#allocation95_spill] sm:$0xff] }
 0x364   :  { %2697 = vmatmul.bf16.gmra.mxu2 %v11710_v59  ;;  %2994 = vmatmul.bf16.gmra.mxu1 %v8429_v7  ;;  %v11712_v7 = vld [vmem:[#allocation92_spill] sm:$0xff] }
 0x366   :  { %v2441_v50 = vpop.f32.mrf.mxu3 }
 0x367   :  { %v2337_v6 = vpop.f32.mrf.mxu2 }
 0x368   :  { %v2442_v63 = vadd.f32 %v2441_v50, %v2337_v6  ;;  %v2532_v14 = vpop.f32.mrf.mxu0 }
 0x369   :  { %v2533_v52 = vadd.f32 %v2532_v14, %v2429_v42  ;;  %v2636_v8 = vpop.f32.mrf.mxu1 }
 0x36b   :  { %v9283_v45 = vadd.f32 %v2636_v8, %v2533_v52 }
 0x36e   :  { %v2443_v2 = vpop.f32.mrf.mxu3 }
 0x36f   :  { %v2339_v3 = vpop.f32.mrf.mxu2 }
 0x370   :  { %v2444_v54 = vadd.f32 %v2443_v2, %v2339_v3  ;;  %v2535_v16 = vpop.f32.mrf.mxu0 }
 0x371   :  { %v2536_v55 = vadd.f32 %v2535_v16, %v2432_v60  ;;  %v2639_v57 = vpop.f32.mrf.mxu1 }
 0x373   :  { %v9285_v20 = vadd.f32 %v2639_v57, %v2536_v55  ;;  %2806 = vmatmul.bf16.gmra.mxu3 %v11711_v5  ;;  %2895 = vmatmul.bf16.gmra.mxu0 %v8437_v17  ;;  %v11713_v17 = vld [vmem:[#allocation99_spill] sm:$0xff] }
 0x374   :  { %2702 = vmatmul.bf16.gmra.mxu2 %v11712_v7  ;;  %2999 = vmatmul.bf16.gmra.mxu1 %v8441_v19  ;;  %v11714_v19 = vld [vmem:[#allocation97_spill] sm:$0xff] }
 0x376   :  { %v2446_v42 = vpop.f32.mrf.mxu3 }
 0x377   :  { %v2342_v50 = vpop.f32.mrf.mxu2 }
 0x378   :  { %v2447_v6 = vadd.f32 %v2446_v42, %v2342_v50  ;;  %v2537_v14 = vpop.f32.mrf.mxu0 }
 0x379   :  { %v2538_v52 = vadd.f32 %v2537_v14, %v2434_v11  ;;  %v2641_v8 = vpop.f32.mrf.mxu1 }
 0x37b   :  { %v9291_v2 = vadd.f32 %v2641_v8, %v2538_v52 }
 0x37e   :  { %v2448_v60 = vpop.f32.mrf.mxu3 }
 0x37f   :  { %v2344_v3 = vpop.f32.mrf.mxu2 }
 0x380   :  { %v2449_v57 = vadd.f32 %v2448_v60, %v2344_v3  ;;  %v2540_v16 = vpop.f32.mrf.mxu0 }
 0x381   :  { %v2541_v55 = vadd.f32 %v2540_v16, %v2437_v47  ;;  %v2644_v5 = vpop.f32.mrf.mxu1 }
 0x383   :  { %v9293_v59 = vadd.f32 %v2644_v5, %v2541_v55  ;;  %2811 = vmatmul.bf16.gmra.mxu3 %v11713_v17  ;;  %2900 = vmatmul.bf16.gmra.mxu0 %v8449_v29  ;;  %v11715_v29 = vld [vmem:[#allocation103_spill] sm:$0xff] }
 0x384   :  { %2707 = vmatmul.bf16.gmra.mxu2 %v11714_v19  ;;  %3004 = vmatmul.bf16.gmra.mxu1 %v8453_v31  ;;  %v11716_v31 = vld [vmem:[#allocation101_spill] sm:$0xff] }
 0x386   :  { %v2451_v11 = vpop.f32.mrf.mxu3 }
 0x387   :  { %v2347_v42 = vpop.f32.mrf.mxu2 }
 0x388   :  { %v2452_v50 = vadd.f32 %v2451_v11, %v2347_v42  ;;  %v2542_v14 = vpop.f32.mrf.mxu0 }
 0x389   :  { %v2543_v52 = vadd.f32 %v2542_v14, %v2439_v58  ;;  %v2646_v8 = vpop.f32.mrf.mxu1 }
 0x38b   :  { %v9299_v60 = vadd.f32 %v2646_v8, %v2543_v52 }
 0x38e   :  { %v2453_v47 = vpop.f32.mrf.mxu3 }
 0x38f   :  { %v2349_v3 = vpop.f32.mrf.mxu2 }
 0x390   :  { %v2454_v5 = vadd.f32 %v2453_v47, %v2349_v3  ;;  %v2545_v16 = vpop.f32.mrf.mxu0 }
 0x391   :  { %v2546_v55 = vadd.f32 %v2545_v16, %v2442_v63  ;;  %v2649_v17 = vpop.f32.mrf.mxu1 }
 0x393   :  { %v9301_v7 = vadd.f32 %v2649_v17, %v2546_v55  ;;  %2816 = vmatmul.bf16.gmra.mxu3 %v11715_v29  ;;  %2905 = vmatmul.bf16.gmra.mxu0 %v11627_v9 }
 0x394   :  { %2712 = vmatmul.bf16.gmra.mxu2 %v11716_v31  ;;  %3009 = vmatmul.bf16.gmra.mxu1 %v11624_v51  ;;  %v11717_v31 = vld [vmem:[#allocation107_spill] sm:$0xff]  ;;  %v11718_v51 = vld [vmem:[#allocation105_spill] sm:$0xff] }
 0x396   :  { %v2456_v58 = vpop.f32.mrf.mxu3 }
 0x397   :  { %v2352_v11 = vpop.f32.mrf.mxu2 }
 0x398   :  { %v2457_v42 = vadd.f32 %v2456_v58, %v2352_v11  ;;  %v2547_v14 = vpop.f32.mrf.mxu0 }
 0x399   :  { %v2548_v52 = vadd.f32 %v2547_v14, %v2444_v54  ;;  %v2651_v8 = vpop.f32.mrf.mxu1 }
 0x39b   :  { %v9307_v47 = vadd.f32 %v2651_v8, %v2548_v52 }
 0x39e   :  { %v2458_v63 = vpop.f32.mrf.mxu3 }
 0x39f   :  { %v2354_v3 = vpop.f32.mrf.mxu2 }
 0x3a0   :  { %v9309_v17 = vadd.f32 %v2458_v63, %v2354_v3  ;;  %v2550_v16 = vpop.f32.mrf.mxu0 }
 0x3a1   :  { %v2551_v55 = vadd.f32 %v2550_v16, %v2447_v6  ;;  %v2654_v29 = vpop.f32.mrf.mxu1 }
 0x3a3   :  { %v9311_v9 = vadd.f32 %v2654_v29, %v2551_v55  ;;  %2821 = vmatmul.bf16.gmra.mxu3 %v11717_v31  ;;  %2910 = vmatmul.bf16.gmra.mxu0 %v11634_v39  ;;  %v8125_v29 = vld [vmem:[#allocation8] sm:$0xf] }
 0x3a4   :  { %2717 = vmatmul.bf16.gmra.mxu2 %v11718_v51  ;;  %3014 = vmatmul.bf16.gmra.mxu1 %v11631_v10  ;;  %v9320_v3 = vperm.slane %v8125_v29, 1  ;;  %v8126_v10 = vld [vmem:[%s11170_s3] sm:$0xf]  ;;  %v11721_v29 = vld [vmem:[#allocation109_spill] sm:$0xff] }
 0x3a5   :  { %v9326_v31 = vperm.slane %v8126_v10, 1 }
 0x3a6   :  { %v2782_v54 = vpop.f32.mrf.mxu3 }
 0x3a7   :  { %v2678_v58 = vpop.f32.mrf.mxu2 }
 0x3a8   :  { %v2679_v11 = vadd.f32 %v2678_v58, %v9139_v43  ;;  %v2552_v14 = vpop.f32.mrf.mxu0 }
 0x3a9   :  { %v2553_v52 = vadd.f32 %v2552_v14, %v2449_v57  ;;  %v2656_v8 = vpop.f32.mrf.mxu1 }
 0x3aa   :  { %v2783_v63 = vadd.f32 %v2782_v54, %v2679_v11 }
 0x3ab   :  { %v9318_v6 = vadd.f32 %v2656_v8, %v2553_v52  ;;  %v11720_v52 = vld [vmem:[#allocation111_spill] sm:$0xff] }
 0x3ac   :  { %v4136_v39 = vmul.f32 %v9320_v3, %v2783_v63 }
 0x3ae   :  { %v2784_v16 = vpop.f32.mrf.mxu3  ;;  %v4298_v8 = vadd.f32 %v9326_v31, %v4136_v39 }
 0x3af   :  { %v2680_v55 = vpop.f32.mrf.mxu2 }
 0x3b0   :  { %v2681_v43 = vadd.f32 %v2680_v55, %v9148_v35  ;;  %v2555_v57 = vpop.f32.mrf.mxu0  ;;  %v4450_v55 = vmax.f32 %v4298_v8, 0.0 }
 0x3b1   :  { %v2556_v58 = vadd.f32 %v2555_v57, %v2452_v50  ;;  %v2659_v54 = vpop.f32.mrf.mxu1 }
 0x3b2   :  { %v2785_v11 = vadd.f32 %v2784_v16, %v2681_v43 }
 0x3b3   :  { %v9329_v14 = vadd.f32 %v2659_v54, %v2556_v58  ;;  %2826 = vmatmul.bf16.gmra.mxu3 %v11720_v52  ;;  %2915 = vmatmul.bf16.gmra.mxu0 %v11641_v49 }
 0x3b4   :  { %v4140_v63 = vmul.f32 %v9320_v3, %v2785_v11  ;;  %2722 = vmatmul.bf16.gmra.mxu2 %v11721_v29  ;;  %3019 = vmatmul.bf16.gmra.mxu1 %v11638_v38 }
 0x3b5   :  { %11719 = vst [vmem:[#allocation157_spill] sm:$0xff] %v9329_v14 }
 0x3b6   :  { %v4302_v10 = vadd.f32 %v9326_v31, %v4140_v63  ;;  %v2787_v35 = vpop.f32.mrf.mxu3 }
 0x3b7   :  { %v2683_v50 = vpop.f32.mrf.mxu2 }
 0x3b8   :  { %v4454_v16 = vmax.f32 %v4302_v10, 0.0  ;;  %v2684_v43 = vadd.f32 %v2683_v50, %v9150_v40  ;;  %v2557_v57 = vpop.f32.mrf.mxu0  ;;  %v11723_v40 = vld [vmem:[#allocation116_spill] sm:$0xff]  ;;  %v11724_v50 = vld [vmem:[#allocation114_spill] sm:$0xff] }
 0x3b9   :  { %v2558_v58 = vadd.f32 %v2557_v57, %v2454_v5  ;;  %v2661_v54 = vpop.f32.mrf.mxu1 }
 0x3ba   :  { %v9339_v49 = vpack.c.bf16 %v4454_v16, %v4450_v55  ;;  %v2788_v39 = vadd.f32 %v2787_v35, %v2684_v43 }
 0x3bb   :  { %v9341_v52 = vadd.f32 %v2661_v54, %v2558_v58 }
 0x3bc   :  { %11722 = vst [vmem:[#allocation158_spill] sm:$0xff] %v9339_v49  ;;  %v4144_v38 = vmul.f32 %v9320_v3, %v2788_v39 }
 0x3be   :  { %v2789_v11 = vpop.f32.mrf.mxu3  ;;  %v4306_v5 = vadd.f32 %v9326_v31, %v4144_v38 }
 0x3bf   :  { %v2685_v29 = vpop.f32.mrf.mxu2 }
 0x3c0   :  { %v2686_v63 = vadd.f32 %v2685_v29, %v9156_v0  ;;  %v2560_v51 = vpop.f32.mrf.mxu0 }
 0x3c1   :  { %v2561_v19 = vadd.f32 %v2560_v51, %v2457_v42  ;;  %v2664_v8 = vpop.f32.mrf.mxu1  ;;  %v4458_v42 = vmax.f32 %v4306_v5, 0.0 }
 0x3c2   :  { %v2790_v10 = vadd.f32 %v2789_v11, %v2686_v63 }
 0x3c3   :  { %v9345_v14 = vadd.f32 %v2664_v8, %v2561_v19  ;;  %2831 = vmatmul.bf16.gmra.mxu3 %v11723_v40  ;;  %2920 = vmatmul.bf16.gmra.mxu0 %v11648_v26 }
 0x3c4   :  { %v4148_v35 = vmul.f32 %v9320_v3, %v2790_v10  ;;  %2727 = vmatmul.bf16.gmra.mxu2 %v11724_v50  ;;  %3024 = vmatmul.bf16.gmra.mxu1 %v11645_v32 }
 0x3c6   :  { %v4310_v0 = vadd.f32 %v9326_v31, %v4148_v35  ;;  %v2792_v29 = vpop.f32.mrf.mxu3 }
 0x3c7   :  { %v2688_v51 = vpop.f32.mrf.mxu2 }
 0x3c8   :  { %v2689_v19 = vadd.f32 %v2688_v51, %v9158_v56  ;;  %v2562_v55 = vpop.f32.mrf.mxu0  ;;  %v4462_v16 = vmax.f32 %v4310_v0, 0.0  ;;  %v11726_v0 = vld [vmem:[#allocation121_spill] sm:$0xff]  ;;  %v11727_v51 = vld [vmem:[#allocation119_spill] sm:$0xff] }
 0x3c9   :  { %v2563_v43 = vadd.f32 %v2562_v55, %v9309_v17  ;;  %v2666_v57 = vpop.f32.mrf.mxu1 }
 0x3ca   :  { %v2793_v58 = vadd.f32 %v2792_v29, %v2689_v19  ;;  %v9356_v38 = vpack.c.bf16 %v4462_v16, %v4458_v42 }
 0x3cb   :  { %v9358_v54 = vadd.f32 %v2666_v57, %v2563_v43 }
 0x3cc   :  { %11725 = vst [vmem:[#allocation116_spill] sm:$0xff] %v9356_v38  ;;  %v4152_v63 = vmul.f32 %v9320_v3, %v2793_v58 }
 0x3ce   :  { %v2794_v39 = vpop.f32.mrf.mxu3  ;;  %v4314_v17 = vadd.f32 %v9326_v31, %v4152_v63 }
 0x3cf   :  { %v2690_v11 = vpop.f32.mrf.mxu2 }
 0x3d0   :  { %v2691_v8 = vadd.f32 %v2690_v11, %v9166_v37  ;;  %v2886_v10 = vpop.f32.mrf.mxu0  ;;  %v4466_v55 = vmax.f32 %v4314_v17, 0.0 }
 0x3d1   :  { %v2990_v5 = vpop.f32.mrf.mxu1 }
 0x3d2   :  { %v2795_v35 = vadd.f32 %v2794_v39, %v2691_v8  ;;  %v9362_v56 = vadd.f32 %v2990_v5, %v2886_v10 }
 0x3d3   :  { %2836 = vmatmul.bf16.gmra.mxu3 %v11726_v0  ;;  %2925 = vmatmul.bf16.gmra.mxu0 %v11655_v44 }
 0x3d4   :  { %v4156_v29 = vmul.f32 %v9320_v3, %v2795_v35  ;;  %2732 = vmatmul.bf16.gmra.mxu2 %v11727_v51  ;;  %3029 = vmatmul.bf16.gmra.mxu1 %v11652_v61 }
 0x3d6   :  { %v4318_v42 = vadd.f32 %v9326_v31, %v4156_v29  ;;  %v2797_v37 = vpop.f32.mrf.mxu3 }
 0x3d7   :  { %v2693_v19 = vpop.f32.mrf.mxu2 }
 0x3d8   :  { %v2694_v16 = vadd.f32 %v2693_v19, %v9170_v36  ;;  %v2888_v43 = vpop.f32.mrf.mxu0  ;;  %v4470_v57 = vmax.f32 %v4318_v42, 0.0  ;;  %v11729_v36 = vld [vmem:[#allocation126_spill] sm:$0xff]  ;;  %v11730_v19 = vld [vmem:[#allocation124_spill] sm:$0xff] }
 0x3d9   :  { %v2992_v58 = vpop.f32.mrf.mxu1 }
 0x3da   :  { %v2798_v39 = vadd.f32 %v2797_v37, %v2694_v16  ;;  %v9372_v11 = vadd.f32 %v2992_v58, %v2888_v43  ;;  %v9374_v63 = vpack.c.bf16 %v4470_v57, %v4466_v55 }
 0x3dc   :  { %11728 = vst [vmem:[#allocation114_spill] sm:$0xff] %v9374_v63  ;;  %v4160_v5 = vmul.f32 %v9320_v3, %v2798_v39 }
 0x3de   :  { %v2799_v8 = vpop.f32.mrf.mxu3  ;;  %v4322_v42 = vadd.f32 %v9326_v31, %v4160_v5 }
 0x3df   :  { %v2695_v10 = vpop.f32.mrf.mxu2 }
 0x3e0   :  { %v2696_v35 = vadd.f32 %v2695_v10, %v9178_v1  ;;  %v2891_v29 = vpop.f32.mrf.mxu0  ;;  %v4474_v43 = vmax.f32 %v4322_v42, 0.0 }
 0x3e1   :  { %v2995_v38 = vpop.f32.mrf.mxu1 }
 0x3e2   :  { %v2800_v49 = vadd.f32 %v2799_v8, %v2696_v35  ;;  %v9378_v17 = vadd.f32 %v2995_v38, %v2891_v29 }
 0x3e3   :  { %2841 = vmatmul.bf16.gmra.mxu3 %v11729_v36  ;;  %2930 = vmatmul.bf16.gmra.mxu0 %v11660_v22  ;;  %v7108_v22 = vld [vmem:[#allocation6 + $0x2e8] sm:$0xf] }
 0x3e4   :  { %v4164_v37 = vmul.f32 %v9320_v3, %v2800_v49  ;;  %2737 = vmatmul.bf16.gmra.mxu2 %v11730_v19  ;;  %3034 = vmatmul.bf16.gmra.mxu1 %v11657_v24  ;;  %v7913_v24 = vld [vmem:[#allocation6 + $0x2f4] sm:$0xf0] }
 0x3e5   :  { %v7109_v44 = vor.u32 %v7913_v24, %v7108_v22  ;;  %v7236_v24 = vld [vmem:[#allocation6 + $0x3e8] sm:$0xf]  ;;  %v7945_v22 = vld [vmem:[#allocation6 + $0x3f4] sm:$0xf0] }
 0x3e6   :  { %v4326_v55 = vadd.f32 %v9326_v31, %v4164_v37  ;;  %v2802_v1 = vpop.f32.mrf.mxu3 }
 0x3e7   :  { %v2698_v16 = vpop.f32.mrf.mxu2  ;;  %3085 = vmatpush.bf16.msra.mxu2 %v7109_v44 }
 0x3e8   :  { %v2699_v38 = vadd.f32 %v2698_v16, %v9182_v25  ;;  %v2893_v57 = vpop.f32.mrf.mxu0  ;;  %v4478_v58 = vmax.f32 %v4326_v55, 0.0  ;;  %v11732_v55 = vld [vmem:[#allocation131_spill] sm:$0xff] }
 0x3e9   :  { %v2997_v39 = vpop.f32.mrf.mxu1 }
 0x3ea   :  { %v2803_v8 = vadd.f32 %v2802_v1, %v2699_v38  ;;  %v9388_v10 = vadd.f32 %v2997_v39, %v2893_v57  ;;  %v9390_v5 = vpack.c.bf16 %v4478_v58, %v4474_v43  ;;  %v11733_v38 = vld [vmem:[#allocation129_spill] sm:$0xff]  ;;  %v11734_v57 = vld [vmem:[#allocation62_spill] sm:$0xff]  ;;  %v7237_v39 = vor.u32 %v7945_v22, %v7236_v24 }
 0x3ec   :  { %11731 = vst [vmem:[#allocation159_spill] sm:$0xff] %v9390_v5  ;;  %v4168_v29 = vmul.f32 %v9320_v3, %v2803_v8  ;;  %3189 = vmatpush.bf16.msra.mxu3 %v7237_v39  ;;  %v11738_v39 = vld [vmem:[#allocation134_spill] sm:$0xff] }
 0x3ee   :  { %v2804_v49 = vpop.f32.mrf.mxu3  ;;  %v4330_v1 = vadd.f32 %v9326_v31, %v4168_v29 }
 0x3ef   :  { %v2700_v35 = vpop.f32.mrf.mxu2 }
 0x3f0   :  { %v2701_v63 = vadd.f32 %v2700_v35, %v9190_v53  ;;  %v2896_v37 = vpop.f32.mrf.mxu0  ;;  %v4482_v8 = vmax.f32 %v4330_v1, 0.0 }
 0x3f1   :  { %v3000_v42 = vpop.f32.mrf.mxu1 }
 0x3f2   :  { %v2805_v25 = vadd.f32 %v2804_v49, %v2701_v63  ;;  %v9394_v16 = vadd.f32 %v3000_v42, %v2896_v37 }
 0x3f3   :  { %2846 = vmatmul.bf16.gmra.mxu3 %v11732_v55  ;;  %2935 = vmatmul.bf16.gmra.mxu0 %v11665_v41 }
 0x3f4   :  { %v4172_v43 = vmul.f32 %v9320_v3, %v2805_v25  ;;  %2742 = vmatmul.bf16.gmra.mxu2 %v11733_v38  ;;  %3039 = vmatmul.bf16.gmra.mxu1 %v11734_v57 }
 0x3f6   :  { %v4334_v53 = vadd.f32 %v9326_v31, %v4172_v43  ;;  %v2807_v58 = vpop.f32.mrf.mxu3 }
 0x3f7   :  { %v2703_v63 = vpop.f32.mrf.mxu2 }
 0x3f8   :  { %v2704_v49 = vadd.f32 %v2703_v63, %v9195_v46  ;;  %v2898_v35 = vpop.f32.mrf.mxu0  ;;  %v4486_v37 = vmax.f32 %v4334_v53, 0.0  ;;  %v11736_v46 = vld [vmem:[#allocation136_spill] sm:$0xff]  ;;  %v11737_v53 = vld [vmem:[#allocation21_spill] sm:$0xff] }
 0x3f9   :  { %v3002_v29 = vpop.f32.mrf.mxu1 }
 0x3fa   :  { %v2808_v42 = vadd.f32 %v2807_v58, %v2704_v49  ;;  %v9404_v25 = vadd.f32 %v3002_v29, %v2898_v35  ;;  %v9406_v5 = vpack.c.bf16 %v4486_v37, %v4482_v8  ;;  %v11739_v8 = vld [vmem:[#allocation23_spill] sm:$0xff] }
 0x3fc   :  { %11735 = vst [vmem:[#allocation160_spill] sm:$0xff] %v9406_v5  ;;  %v4176_v43 = vmul.f32 %v9320_v3, %v2808_v42 }
 0x3fe   :  { %v2809_v44 = vpop.f32.mrf.mxu3  ;;  %v4338_v58 = vadd.f32 %v9326_v31, %v4176_v43 }
 0x3ff   :  { %v2705_v41 = vpop.f32.mrf.mxu2 }
 0x400   :  { %v2706_v57 = vadd.f32 %v2705_v41, %v9204_v15  ;;  %v2901_v61 = vpop.f32.mrf.mxu0  ;;  %v4490_v35 = vmax.f32 %v4338_v58, 0.0 }
 0x401   :  { %v3005_v24 = vpop.f32.mrf.mxu1 }
 0x402   :  { %v2810_v1 = vadd.f32 %v2809_v44, %v2706_v57  ;;  %v9410_v22 = vadd.f32 %v3005_v24, %v2901_v61 }
 0x403   :  { %2851 = vmatmul.bf16.gmra.mxu3 %v11736_v46  ;;  %2940 = vmatmul.bf16.gmra.mxu0 %v11737_v53  ;;  %v11741_v53 = vld [vmem:[#allocation93_spill] sm:$0xff] }
 0x404   :  { %v4180_v63 = vmul.f32 %v9320_v3, %v2810_v1  ;;  %2747 = vmatmul.bf16.gmra.mxu2 %v11738_v39  ;;  %3044 = vmatmul.bf16.gmra.mxu1 %v11739_v8  ;;  %v7204_v39 = vld [vmem:[#allocation6 + $0x3a8] sm:$0xf] }
 0x406   :  { %v4342_v49 = vadd.f32 %v9326_v31, %v4180_v63  ;;  %v2812_v41 = vpop.f32.mrf.mxu3 }
 0x407   :  { %v2708_v15 = vpop.f32.mrf.mxu2 }
 0x408   :  { %v2709_v61 = vadd.f32 %v2708_v15, %v9209_v30  ;;  %v2903_v57 = vpop.f32.mrf.mxu0  ;;  %v4494_v37 = vmax.f32 %v4342_v49, 0.0  ;;  %v11742_v30 = vld [vmem:[#allocation141_spill] sm:$0xff] }
 0x409   :  { %v3007_v29 = vpop.f32.mrf.mxu1  ;;  %v11743_v49 = vld [vmem:[#allocation25_spill] sm:$0xff] }
 0x40a   :  { %v2813_v42 = vadd.f32 %v2812_v41, %v2709_v61  ;;  %v9420_v44 = vadd.f32 %v3007_v29, %v2903_v57  ;;  %v9422_v43 = vpack.c.bf16 %v4494_v37, %v4490_v35  ;;  %v11744_v35 = vld [vmem:[#allocation139_spill] sm:$0xff]  ;;  %v7909_v29 = vld [vmem:[#allocation6 + $0x2d4] sm:$0xf0] }
 0x40b   :  { %v11745_v61 = vld [vmem:[#allocation27_spill] sm:$0xff] }
 0x40c   :  { %11740 = vst [vmem:[#allocation161_spill] sm:$0xff] %v9422_v43  ;;  %v4184_v5 = vmul.f32 %v9320_v3, %v2813_v42  ;;  %v7092_v37 = vld [vmem:[#allocation6 + $0x2c8] sm:$0xf] }
 0x40d   :  { %v7093_v42 = vor.u32 %v7909_v29, %v7092_v37  ;;  %v7937_v37 = vld [vmem:[#allocation6 + $0x3b4] sm:$0xf0] }
 0x40e   :  { %v2814_v24 = vpop.f32.mrf.mxu3  ;;  %v4346_v41 = vadd.f32 %v9326_v31, %v4184_v5  ;;  %v7205_v29 = vor.u32 %v7937_v37, %v7204_v39  ;;  %v7897_v39 = vld [vmem:[#allocation6 + $0x274] sm:$0xf0]  ;;  %v11749_v37 = vld [vmem:[#allocation144_spill] sm:$0xff] }
 0x40f   :  { %v2710_v1 = vpop.f32.mrf.mxu2  ;;  %3086 = vmatpush.bf16.msra.mxu2 %v7093_v42 }
 0x410   :  { %v2711_v8 = vadd.f32 %v2710_v1, %v11741_v53  ;;  %v2906_v63 = vpop.f32.mrf.mxu0  ;;  %v4498_v1 = vmax.f32 %v4346_v41, 0.0 }
 0x411   :  { %v3010_v26 = vpop.f32.mrf.mxu1 }
 0x412   :  { %v2815_v32 = vadd.f32 %v2814_v24, %v2711_v8  ;;  %v9426_v58 = vadd.f32 %v3010_v26, %v2906_v63  ;;  %v7220_v8 = vld [vmem:[#allocation6 + $0x3c8] sm:$0xf]  ;;  %v7941_v24 = vld [vmem:[#allocation6 + $0x3d4] sm:$0xf0] }
 0x413   :  { %2856 = vmatmul.bf16.gmra.mxu3 %v11742_v30  ;;  %2945 = vmatmul.bf16.gmra.mxu0 %v11743_v49  ;;  %v11746_v63 = vld [vmem:[#allocation154_spill] sm:$0xff]  ;;  %v7221_v5 = vor.u32 %v7941_v24, %v7220_v8 }
 0x414   :  { %v4188_v15 = vmul.f32 %v9320_v3, %v2815_v32  ;;  %2752 = vmatmul.bf16.gmra.mxu2 %v11744_v35  ;;  %3049 = vmatmul.bf16.gmra.mxu1 %v11745_v61  ;;  %v7905_v61 = vld [vmem:[#allocation6 + $0x2b4] sm:$0xf0] }
 0x415   :  { %3190 = vmatpush.bf16.msra.mxu3 %v7221_v5  ;;  %v7901_v8 = vld [vmem:[#allocation6 + $0x294] sm:$0xf0] }
 0x416   :  { %v4350_v57 = vadd.f32 %v9326_v31, %v4188_v15  ;;  %v2817_v53 = vpop.f32.mrf.mxu3  ;;  %v7076_v15 = vld [vmem:[#allocation6 + $0x2a8] sm:$0xf] }
 0x417   :  { %v2713_v26 = vpop.f32.mrf.mxu2  ;;  %v7077_v38 = vor.u32 %v7905_v61, %v7076_v15  ;;  %v7172_v15 = vld [vmem:[#allocation6 + $0x368] sm:$0xf] }
 0x418   :  { %v2714_v43 = vadd.f32 %v2713_v26, %v11746_v63  ;;  %v2908_v49 = vpop.f32.mrf.mxu0  ;;  %v4502_v30 = vmax.f32 %v4350_v57, 0.0  ;;  %v7060_v26 = vld [vmem:[#allocation6 + $0x288] sm:$0xf] }
 0x419   :  { %v3012_v32 = vpop.f32.mrf.mxu1  ;;  %3087 = vmatpush.bf16.msra.mxu2 %v7077_v38  ;;  %3191 = vmatpush.bf16.msra.mxu3 %v7205_v29  ;;  %v7188_v57 = vld [vmem:[#allocation6 + $0x388] sm:$0xf]  ;;  %v7061_v42 = vor.u32 %v7901_v8, %v7060_v26  ;;  %v11750_v29 = vld [vmem:[#allocation29_spill] sm:$0xff] }
 0x41a   :  { %v2818_v35 = vadd.f32 %v2817_v53, %v2714_v43  ;;  %v9436_v46 = vadd.f32 %v3012_v32, %v2908_v49  ;;  %v9438_v55 = vpack.c.bf16 %v4502_v30, %v4498_v1  ;;  %v7933_v43 = vld [vmem:[#allocation6 + $0x394] sm:$0xf0]  ;;  %v11748_v53 = vld [vmem:[#allocation155_spill] sm:$0xff] }
 0x41b   :  { %v7189_v32 = vor.u32 %v7933_v43, %v7188_v57  ;;  %v7044_v38 = vld [vmem:[#allocation6 + $0x268] sm:$0xf]  ;;  %v7929_v8 = vld [vmem:[#allocation6 + $0x374] sm:$0xf0] }
 0x41c   :  { %11747 = vst [vmem:[#allocation93_spill] sm:$0xff] %v9438_v55  ;;  %v4192_v49 = vmul.f32 %v9320_v3, %v2818_v35  ;;  %v7045_v26 = vor.u32 %v7897_v39, %v7044_v38  ;;  %v11751_v57 = vld [vmem:[#allocation143_spill] sm:$0xff]  ;;  %v7925_v39 = vld [vmem:[#allocation6 + $0x354] sm:$0xf0] }
 0x41d   :  { %3088 = vmatpush.bf16.msra.mxu2 %v7061_v42  ;;  %3192 = vmatpush.bf16.msra.mxu3 %v7189_v32  ;;  %v11752_v42 = vld [vmem:[#allocation31_spill] sm:$0xff] }
 0x41e   :  { %v2819_v41 = vpop.f32.mrf.mxu3  ;;  %v4354_v35 = vadd.f32 %v9326_v31, %v4192_v49  ;;  %v7156_v32 = vld [vmem:[#allocation6 + $0x348] sm:$0xf] }
 0x41f   :  { %v2715_v24 = vpop.f32.mrf.mxu2  ;;  %v11753_v49 = vld [vmem:[#allocation156_spill] sm:$0xff] }
 0x420   :  { %v2716_v63 = vadd.f32 %v2715_v24, %v11748_v53  ;;  %v2911_v5 = vpop.f32.mrf.mxu0  ;;  %v4506_v55 = vmax.f32 %v4354_v35, 0.0 }
 0x421   :  { %v3015_v30 = vpop.f32.mrf.mxu1  ;;  %3089 = vmatpush.bf16.msra.mxu2 %v7045_v26 }
 0x422   :  { %v2820_v61 = vadd.f32 %v2819_v41, %v2716_v63  ;;  %v9442_v1 = vadd.f32 %v3015_v30, %v2911_v5  ;;  %v7173_v41 = vor.u32 %v7929_v8, %v7172_v15  ;;  %v7028_v63 = vld [vmem:[#allocation6 + $0x248] sm:$0xf]  ;;  %v7893_v5 = vld [vmem:[#allocation6 + $0x254] sm:$0xf0] }
 0x423   :  { %2861 = vmatmul.bf16.gmra.mxu3 %v11749_v37  ;;  %2950 = vmatmul.bf16.gmra.mxu0 %v11750_v29  ;;  %v7029_v38 = vor.u32 %v7893_v5, %v7028_v63  ;;  %v7157_v37 = vor.u32 %v7925_v39, %v7156_v32  ;;  %v7012_v8 = vld [vmem:[#allocation6 + $0x228] sm:$0xf]  ;;  %v7921_v63 = vld [vmem:[#allocation6 + $0x334] sm:$0xf0] }
 0x424   :  { %v4196_v24 = vmul.f32 %v9320_v3, %v2820_v61  ;;  %2757 = vmatmul.bf16.gmra.mxu2 %v11751_v57  ;;  %3054 = vmatmul.bf16.gmra.mxu1 %v11752_v42  ;;  %v7885_v32 = vld [vmem:[#allocation6 + $0x214] sm:$0xf0] }
 0x425   :  { %3193 = vmatpush.bf16.msra.mxu3 %v7173_v41  ;;  %3090 = vmatpush.bf16.msra.mxu2 %v7029_v38  ;;  %v7140_v41 = vld [vmem:[#allocation6 + $0x328] sm:$0xf] }
 0x426   :  { %v4358_v43 = vadd.f32 %v9326_v31, %v4196_v24  ;;  %v2822_v53 = vpop.f32.mrf.mxu3  ;;  %v7889_v24 = vld [vmem:[#allocation6 + $0x234] sm:$0xf0]  ;;  %v7141_v5 = vor.u32 %v7921_v63, %v7140_v41 }
 0x427   :  { %v2718_v30 = vpop.f32.mrf.mxu2  ;;  %v7013_v19 = vor.u32 %v7889_v24, %v7012_v8  ;;  %v11756_v8 = vld [vmem:[#allocation33_spill] sm:$0xff]  ;;  %v11757_v63 = vld [vmem:[#allocation146_spill] sm:$0xff] }
 0x428   :  { %v2719_v29 = vadd.f32 %v2718_v30, %v11753_v49  ;;  %v2913_v61 = vpop.f32.mrf.mxu0  ;;  %v4510_v57 = vmax.f32 %v4358_v43, 0.0  ;;  %v6996_v30 = vld [vmem:[#allocation6 + $0x208] sm:$0xf] }
 0x429   :  { %v3017_v36 = vpop.f32.mrf.mxu1  ;;  %3194 = vmatpush.bf16.msra.mxu3 %v7157_v37  ;;  %3091 = vmatpush.bf16.msra.mxu2 %v7013_v19  ;;  %v7124_v43 = vld [vmem:[#allocation6 + $0x308] sm:$0xf]  ;;  %v6997_v38 = vor.u32 %v7885_v32, %v6996_v30 }
 0x42a   :  { %v2823_v15 = vadd.f32 %v2822_v53, %v2719_v29  ;;  %v9452_v26 = vadd.f32 %v3017_v36, %v2913_v61  ;;  %v9454_v42 = vpack.c.bf16 %v4510_v57, %v4506_v55  ;;  %v7917_v29 = vld [vmem:[#allocation6 + $0x314] sm:$0xf0]  ;;  %v11755_v19 = vld [vmem:[#allocation147_spill] sm:$0xff] }
 0x42b   :  { %v7125_v49 = vor.u32 %v7917_v29, %v7124_v43 }
 0x42c   :  { %11754 = vst [vmem:[#allocation154_spill] sm:$0xff] %v9454_v42  ;;  %v4200_v36 = vmul.f32 %v9320_v3, %v2823_v15  ;;  %v11758_v15 = vld [vmem:[#allocation35_spill] sm:$0xff] }
 0x42d   :  { %3195 = vmatpush.bf16.msra.mxu3 %v7141_v5  ;;  %3092 = vmatpush.bf16.msra.mxu2 %v6997_v38 }
 0x42e   :  { %v2824_v35 = vpop.f32.mrf.mxu3  ;;  %v4362_v24 = vadd.f32 %v9326_v31, %v4200_v36 }
 0x42f   :  { %v2720_v39 = vpop.f32.mrf.mxu2 }
 0x430   :  { %v2721_v37 = vadd.f32 %v2720_v39, %v9246_v18  ;;  %v2916_v53 = vpop.f32.mrf.mxu0 }
 0x431   :  { %v3020_v55 = vpop.f32.mrf.mxu1  ;;  %3196 = vmatpush.bf16.msra.mxu3 %v7125_v49 }
 0x432   :  { %v2825_v57 = vadd.f32 %v2824_v35, %v2721_v37  ;;  %v9458_v61 = vadd.f32 %v3020_v55, %v2916_v53  ;;  %v4514_v35 = vmax.f32 %v4362_v24, 0.0 }
 0x433   :  { %2866 = vmatmul.bf16.gmra.mxu3 %v11755_v19  ;;  %2955 = vmatmul.bf16.gmra.mxu0 %v11756_v8 }
 0x434   :  { %v4204_v41 = vmul.f32 %v9320_v3, %v2825_v57  ;;  %2762 = vmatmul.bf16.gmra.mxu2 %v11757_v63  ;;  %3059 = vmatmul.bf16.gmra.mxu1 %v11758_v15  ;;  %v11760_v15 = vld [vmem:[#allocation150_spill] sm:$0xff] }
 0x436   :  { %v4366_v18 = vadd.f32 %v9326_v31, %v4204_v41  ;;  %v2827_v5 = vpop.f32.mrf.mxu3 }
 0x437   :  { %v2723_v30 = vpop.f32.mrf.mxu2 }
 0x438   :  { %v2724_v32 = vadd.f32 %v2723_v30, %v9249_v12  ;;  %v2918_v43 = vpop.f32.mrf.mxu0  ;;  %v4518_v39 = vmax.f32 %v4366_v18, 0.0  ;;  %v7364_v12 = vld [vmem:[#allocation6 + $0x4e8] sm:$0xf]  ;;  %v7977_v30 = vld [vmem:[#allocation6 + $0x4f4] sm:$0xf0] }
 0x439   :  { %v3022_v38 = vpop.f32.mrf.mxu1  ;;  %v7492_v18 = vld [vmem:[#allocation6 + $0x5e8] sm:$0xf] }
 0x43a   :  { %v2828_v29 = vadd.f32 %v2827_v5, %v2724_v32  ;;  %v9468_v37 = vadd.f32 %v3022_v38, %v2918_v43  ;;  %v9470_v36 = vpack.c.bf16 %v4518_v39, %v4514_v35  ;;  %v11761_v5 = vld [vmem:[#allocation37_spill] sm:$0xff]  ;;  %v7365_v35 = vor.u32 %v7977_v30, %v7364_v12 }
 0x43b   :  { %v8009_v32 = vld [vmem:[#allocation6 + $0x5f4] sm:$0xf0] }
 0x43c   :  { %11759 = vst [vmem:[#allocation155_spill] sm:$0xff] %v9470_v36  ;;  %v4208_v55 = vmul.f32 %v9320_v3, %v2828_v29  ;;  %v11762_v38 = vld [vmem:[#allocation149_spill] sm:$0xff]  ;;  %v7493_v29 = vor.u32 %v8009_v32, %v7492_v18  ;;  %3293 = vmatpush.bf16.msra.mxu0 %v7365_v35  ;;  %v7332_v32 = vld [vmem:[#allocation6 + $0x4a8] sm:$0xf] }
 0x43d   :  { %v8005_v30 = vld [vmem:[#allocation6 + $0x5d4] sm:$0xf0] }
 0x43e   :  { %v2829_v53 = vpop.f32.mrf.mxu3  ;;  %v4370_v43 = vadd.f32 %v9326_v31, %v4208_v55  ;;  %3397 = vmatpush.bf16.msra.mxu1 %v7493_v29  ;;  %v7460_v29 = vld [vmem:[#allocation6 + $0x5a8] sm:$0xf] }
 0x43f   :  { %v2725_v49 = vpop.f32.mrf.mxu2 }
 0x440   :  { %v2726_v57 = vadd.f32 %v2725_v49, %v9256_v28  ;;  %v2921_v41 = vpop.f32.mrf.mxu0  ;;  %v11763_v28 = vld [vmem:[#allocation39_spill] sm:$0xff] }
 0x441   :  { %v3025_v42 = vpop.f32.mrf.mxu1  ;;  %v7348_v49 = vld [vmem:[#allocation6 + $0x4c8] sm:$0xf] }
 0x442   :  { %v2830_v8 = vadd.f32 %v2829_v53, %v2726_v57  ;;  %v9474_v24 = vadd.f32 %v3025_v42, %v2921_v41  ;;  %v7973_v57 = vld [vmem:[#allocation6 + $0x4d4] sm:$0xf0]  ;;  %v7476_v41 = vld [vmem:[#allocation6 + $0x5c8] sm:$0xf] }
 0x443   :  { %2871 = vmatmul.bf16.gmra.mxu3 %v11760_v15  ;;  %2960 = vmatmul.bf16.gmra.mxu0 %v11761_v5  ;;  %v7349_v12 = vor.u32 %v7973_v57, %v7348_v49  ;;  %v4522_v5 = vmax.f32 %v4370_v43, 0.0  ;;  %v7477_v15 = vor.u32 %v8005_v30, %v7476_v41  ;;  %v8001_v49 = vld [vmem:[#allocation6 + $0x5b4] sm:$0xf0] }
 0x444   :  { %v4212_v39 = vmul.f32 %v9320_v3, %v2830_v8  ;;  %2767 = vmatmul.bf16.gmra.mxu2 %v11762_v38  ;;  %3064 = vmatmul.bf16.gmra.mxu1 %v11763_v28  ;;  %v7461_v57 = vor.u32 %v8001_v49, %v7460_v29  ;;  %v11765_v29 = vld [vmem:[#allocation41_spill] sm:$0xff] }
 0x445   :  { %3294 = vmatpush.bf16.msra.mxu0 %v7349_v12  ;;  %3398 = vmatpush.bf16.msra.mxu1 %v7477_v15  ;;  %v11766_v49 = vld [vmem:[#allocation53_spill] sm:$0xff] }
 0x446   :  { %v4374_v42 = vadd.f32 %v9326_v31, %v4212_v39  ;;  %v2832_v53 = vpop.f32.mrf.mxu3  ;;  %v7969_v39 = vld [vmem:[#allocation6 + $0x4b4] sm:$0xf0] }
 0x447   :  { %v2728_v36 = vpop.f32.mrf.mxu2  ;;  %v7333_v63 = vor.u32 %v7969_v39, %v7332_v32  ;;  %v7961_v32 = vld [vmem:[#allocation6 + $0x474] sm:$0xf0]  ;;  %v7428_v39 = vld [vmem:[#allocation6 + $0x568] sm:$0xf] }
 0x448   :  { %v2729_v55 = vadd.f32 %v2728_v36, %v9259_v27  ;;  %v2923_v8 = vpop.f32.mrf.mxu0  ;;  %v4526_v38 = vmax.f32 %v4374_v42, 0.0  ;;  %v7316_v27 = vld [vmem:[#allocation6 + $0x488] sm:$0xf]  ;;  %v7965_v36 = vld [vmem:[#allocation6 + $0x494] sm:$0xf0] }
 0x449   :  { %v3027_v19 = vpop.f32.mrf.mxu1  ;;  %3295 = vmatpush.bf16.msra.mxu0 %v7333_v63  ;;  %3399 = vmatpush.bf16.msra.mxu1 %v7461_v57  ;;  %v7444_v42 = vld [vmem:[#allocation6 + $0x588] sm:$0xf]  ;;  %v7317_v12 = vor.u32 %v7965_v36, %v7316_v27  ;;  %v7993_v27 = vld [vmem:[#allocation6 + $0x574] sm:$0xf0] }
 0x44a   :  { %v2833_v18 = vadd.f32 %v2832_v53, %v2729_v55  ;;  %v9484_v35 = vadd.f32 %v3027_v19, %v2923_v8  ;;  %v9486_v28 = vpack.c.bf16 %v4526_v38, %v4522_v5  ;;  %v7997_v53 = vld [vmem:[#allocation6 + $0x594] sm:$0xf0]  ;;  %v7300_v63 = vld [vmem:[#allocation6 + $0x468] sm:$0xf] }
 0x44b   :  { %v7445_v55 = vor.u32 %v7997_v53, %v7444_v42  ;;  %v7301_v57 = vor.u32 %v7961_v32, %v7300_v63  ;;  %v11767_v36 = vld [vmem:[#allocation43_spill] sm:$0xff]  ;;  %v7989_v63 = vld [vmem:[#allocation6 + $0x554] sm:$0xf0] }
 0x44c   :  { %11764 = vst [vmem:[#allocation156_spill] sm:$0xff] %v9486_v28  ;;  %v4216_v19 = vmul.f32 %v9320_v3, %v2833_v18  ;;  %v11768_v42 = vld [vmem:[#allocation55_spill] sm:$0xff] }
 0x44d   :  { %3296 = vmatpush.bf16.msra.mxu0 %v7317_v12  ;;  %3400 = vmatpush.bf16.msra.mxu1 %v7445_v55  ;;  %v7284_v53 = vld [vmem:[#allocation6 + $0x448] sm:$0xf] }
 0x44e   :  { %v2834_v43 = vpop.f32.mrf.mxu3  ;;  %v4378_v18 = vadd.f32 %v9326_v31, %v4216_v19 }
 0x44f   :  { %v2730_v41 = vpop.f32.mrf.mxu2 }
 0x450   :  { %v2731_v15 = vadd.f32 %v2730_v41, %v9266_v34  ;;  %v2926_v30 = vpop.f32.mrf.mxu0  ;;  %v4530_v32 = vmax.f32 %v4378_v18, 0.0 }
 0x451   :  { %v3030_v5 = vpop.f32.mrf.mxu1  ;;  %3297 = vmatpush.bf16.msra.mxu0 %v7301_v57 }
 0x452   :  { %v2835_v38 = vadd.f32 %v2834_v43, %v2731_v15  ;;  %v9490_v8 = vadd.f32 %v3030_v5, %v2926_v30  ;;  %v7429_v43 = vor.u32 %v7993_v27, %v7428_v39  ;;  %v7957_v15 = vld [vmem:[#allocation6 + $0x454] sm:$0xf0]  ;;  %v7412_v30 = vld [vmem:[#allocation6 + $0x548] sm:$0xf] }
 0x453   :  { %2965 = vmatmul.bf16.gmra.mxu0 %v11765_v29  ;;  %3197 = vmatmul.bf16.vlgmr.msra.gmra.mxu3 %v11766_v49  ;;  %v7285_v5 = vor.u32 %v7957_v15, %v7284_v53  ;;  %v7413_v28 = vor.u32 %v7989_v63, %v7412_v30  ;;  %v7268_v27 = vld [vmem:[#allocation6 + $0x428] sm:$0xf]  ;;  %v7985_v53 = vld [vmem:[#allocation6 + $0x534] sm:$0xf0] }
 0x454   :  { %v4220_v34 = vmul.f32 %v9320_v3, %v2835_v38  ;;  %3069 = vmatmul.bf16.gmra.mxu1 %v11767_v36  ;;  %3093 = vmatmul.bf16.vlgmr.msra.gmra.mxu2 %v11768_v42  ;;  %v7949_v30 = vld [vmem:[#allocation6 + $0x414] sm:$0xf0] }
 0x455   :  { %3401 = vmatpush.bf16.msra.mxu1 %v7429_v43  ;;  %3298 = vmatpush.bf16.msra.mxu0 %v7285_v5  ;;  %v7396_v43 = vld [vmem:[#allocation6 + $0x528] sm:$0xf] }
 0x456   :  { %v4382_v41 = vadd.f32 %v9326_v31, %v4220_v34  ;;  %v2837_v12 = vpop.f32.mrf.mxu3  ;;  %v7953_v34 = vld [vmem:[#allocation6 + $0x434] sm:$0xf0]  ;;  %v7397_v15 = vor.u32 %v7985_v53, %v7396_v43  ;;  %v11772_v53 = vld [vmem:[#allocation47_spill] sm:$0xff] }
 0x457   :  { %v2733_v55 = vpop.f32.mrf.mxu2  ;;  %v7269_v42 = vor.u32 %v7953_v34, %v7268_v27  ;;  %v11771_v27 = vld [vmem:[#allocation57_spill] sm:$0xff] }
 0x458   :  { %v2734_v19 = vadd.f32 %v2733_v55, %v9269_v13  ;;  %v2928_v38 = vpop.f32.mrf.mxu0  ;;  %v4534_v29 = vmax.f32 %v4382_v41, 0.0  ;;  %v7252_v13 = vld [vmem:[#allocation6 + $0x408] sm:$0xf] }
 0x459   :  { %v3032_v36 = vpop.f32.mrf.mxu1  ;;  %3402 = vmatpush.bf16.msra.mxu1 %v7413_v28  ;;  %3299 = vmatpush.bf16.msra.mxu0 %v7269_v42  ;;  %v7380_v41 = vld [vmem:[#allocation6 + $0x508] sm:$0xf]  ;;  %v7253_v5 = vor.u32 %v7949_v30, %v7252_v13  ;;  %v11770_v42 = vld [vmem:[#allocation45_spill] sm:$0xff] }
 0x45a   :  { %v2838_v39 = vadd.f32 %v2837_v12, %v2734_v19  ;;  %v9500_v57 = vadd.f32 %v3032_v36, %v2928_v38  ;;  %v9502_v49 = vpack.c.bf16 %v4534_v29, %v4530_v32  ;;  %v7981_v12 = vld [vmem:[#allocation6 + $0x514] sm:$0xf0] }
 0x45b   :  { %v7381_v19 = vor.u32 %v7981_v12, %v7380_v41 }
 0x45c   :  { %11769 = vst [vmem:[#allocation162_spill] sm:$0xff] %v9502_v49  ;;  %v4224_v36 = vmul.f32 %v9320_v3, %v2838_v39  ;;  %v11773_v39 = vld [vmem:[#allocation59_spill] sm:$0xff] }
 0x45d   :  { %3403 = vmatpush.bf16.msra.mxu1 %v7397_v15  ;;  %3300 = vmatpush.bf16.msra.mxu0 %v7253_v5 }
 0x45e   :  { %v2839_v18 = vpop.f32.mrf.mxu3  ;;  %v4386_v34 = vadd.f32 %v9326_v31, %v4224_v36 }
 0x45f   :  { %v2735_v55 = vpop.f32.mrf.mxu2 }
 0x460   :  { %v2736_v28 = vadd.f32 %v2735_v55, %v9275_v21  ;;  %v2931_v63 = vpop.f32.mrf.mxu0 }
 0x461   :  { %v3035_v29 = vpop.f32.mrf.mxu1  ;;  %3404 = vmatpush.bf16.msra.mxu1 %v7381_v19 }
 0x462   :  { %v2840_v32 = vadd.f32 %v2839_v18, %v2736_v28  ;;  %v9506_v38 = vadd.f32 %v3035_v29, %v2931_v63  ;;  %v4538_v18 = vmax.f32 %v4386_v34, 0.0 }
 0x463   :  { %2970 = vmatmul.bf16.gmra.mxu0 %v11770_v42  ;;  %3202 = vmatmul.bf16.gmra.mxu3 %v11771_v27 }
 0x464   :  { %v4228_v43 = vmul.f32 %v9320_v3, %v2840_v32  ;;  %3074 = vmatmul.bf16.gmra.mxu1 %v11772_v53  ;;  %3098 = vmatmul.bf16.gmra.mxu2 %v11773_v39 }
 0x466   :  { %v4390_v21 = vadd.f32 %v9326_v31, %v4228_v43  ;;  %v2842_v15 = vpop.f32.mrf.mxu3 }
 0x467   :  { %v2738_v13 = vpop.f32.mrf.mxu2 }
 0x468   :  { %v2739_v30 = vadd.f32 %v2738_v13, %v9277_v23  ;;  %v2933_v41 = vpop.f32.mrf.mxu0  ;;  %v4542_v55 = vmax.f32 %v4390_v21, 0.0  ;;  %v11775_v23 = vld [vmem:[#allocation49_spill] sm:$0xff] }
 0x469   :  { %v3037_v5 = vpop.f32.mrf.mxu1  ;;  %v11776_v21 = vld [vmem:[#allocation61_spill] sm:$0xff] }
 0x46a   :  { %v2843_v12 = vadd.f32 %v2842_v15, %v2739_v30  ;;  %v9516_v28 = vadd.f32 %v3037_v5, %v2933_v41  ;;  %v9518_v36 = vpack.c.bf16 %v4542_v55, %v4538_v18  ;;  %v11777_v18 = vld [vmem:[#allocation51_spill] sm:$0xff] }
 0x46b   :  { %v11778_v30 = vld [vmem:[#allocation63_spill] sm:$0xff] }
 0x46c   :  { %11774 = vst [vmem:[#allocation57_spill] sm:$0xff] %v9518_v36  ;;  %v4232_v29 = vmul.f32 %v9320_v3, %v2843_v12 }
 0x46e   :  { %v2844_v63 = vpop.f32.mrf.mxu3  ;;  %v4394_v15 = vadd.f32 %v9326_v31, %v4232_v29 }
 0x46f   :  { %v2740_v19 = vpop.f32.mrf.mxu2 }
 0x470   :  { %v2741_v32 = vadd.f32 %v2740_v19, %v9283_v45  ;;  %v2936_v43 = vpop.f32.mrf.mxu0  ;;  %v4546_v5 = vmax.f32 %v4394_v15, 0.0 }
 0x471   :  { %v3040_v49 = vpop.f32.mrf.mxu1 }
 0x472   :  { %v2845_v42 = vadd.f32 %v2844_v63, %v2741_v32  ;;  %v9522_v34 = vadd.f32 %v3040_v49, %v2936_v43 }
 0x473   :  { %2975 = vmatmul.bf16.gmra.mxu0 %v11775_v23  ;;  %3207 = vmatmul.bf16.gmra.mxu3 %v11776_v21 }
 0x474   :  { %v4236_v13 = vmul.f32 %v9320_v3, %v2845_v42  ;;  %3079 = vmatmul.bf16.gmra.mxu1 %v11777_v18  ;;  %3103 = vmatmul.bf16.gmra.mxu2 %v11778_v30 }
 0x476   :  { %v4398_v41 = vadd.f32 %v9326_v31, %v4236_v13  ;;  %v2847_v45 = vpop.f32.mrf.mxu3 }
 0x477   :  { %v2743_v55 = vpop.f32.mrf.mxu2 }
 0x478   :  { %v2744_v49 = vadd.f32 %v2743_v55, %v9285_v20  ;;  %v2938_v12 = vpop.f32.mrf.mxu0  ;;  %v4550_v63 = vmax.f32 %v4398_v41, 0.0  ;;  %v11780_v20 = vld [vmem:[#allocation64_spill] sm:$0xff]  ;;  %v11781_v41 = vld [vmem:[#allocation65_spill] sm:$0xff] }
 0x479   :  { %v3042_v19 = vpop.f32.mrf.mxu1 }
 0x47a   :  { %v2848_v32 = vadd.f32 %v2847_v45, %v2744_v49  ;;  %v9532_v43 = vadd.f32 %v3042_v19, %v2938_v12  ;;  %v9534_v29 = vpack.c.bf16 %v4550_v63, %v4546_v5  ;;  %v11782_v5 = vld [vmem:[#allocation66_spill] sm:$0xff]  ;;  %v11783_v49 = vld [vmem:[#allocation67_spill] sm:$0xff] }
 0x47c   :  { %11779 = vst [vmem:[#allocation59_spill] sm:$0xff] %v9534_v29  ;;  %v4240_v23 = vmul.f32 %v9320_v3, %v2848_v32 }
 0x47e   :  { %v2849_v42 = vpop.f32.mrf.mxu3  ;;  %v4402_v45 = vadd.f32 %v9326_v31, %v4240_v23 }
 0x47f   :  { %v2745_v36 = vpop.f32.mrf.mxu2 }
 0x480   :  { %v2746_v18 = vadd.f32 %v2745_v36, %v9291_v2  ;;  %v2941_v13 = vpop.f32.mrf.mxu0  ;;  %v4554_v63 = vmax.f32 %v4402_v45, 0.0 }
 0x481   :  { %v3045_v53 = vpop.f32.mrf.mxu1 }
 0x482   :  { %v2850_v21 = vadd.f32 %v2849_v42, %v2746_v18  ;;  %v9538_v15 = vadd.f32 %v3045_v53, %v2941_v13 }
 0x483   :  { %3212 = vmatmul.bf16.gmra.mxu3 %v11780_v20  ;;  %3301 = vmatmul.bf16.vlgmr.msra.gmra.mxu0 %v11781_v41 }
 0x484   :  { %v4244_v55 = vmul.f32 %v9320_v3, %v2850_v21  ;;  %3108 = vmatmul.bf16.gmra.mxu2 %v11782_v5  ;;  %3405 = vmatmul.bf16.vlgmr.msra.gmra.mxu1 %v11783_v49 }
 0x486   :  { %v4406_v12 = vadd.f32 %v9326_v31, %v4244_v55  ;;  %v2852_v2 = vpop.f32.mrf.mxu3 }
 0x487   :  { %v2748_v36 = vpop.f32.mrf.mxu2 }
 0x488   :  { %v2749_v53 = vadd.f32 %v2748_v36, %v9293_v59  ;;  %v2943_v18 = vpop.f32.mrf.mxu0  ;;  %v4558_v19 = vmax.f32 %v4406_v12, 0.0  ;;  %v11785_v59 = vld [vmem:[#allocation68_spill] sm:$0xff]  ;;  %v11786_v36 = vld [vmem:[#allocation70_spill] sm:$0xff] }
 0x489   :  { %v3047_v32 = vpop.f32.mrf.mxu1 }
 0x48a   :  { %v2853_v42 = vadd.f32 %v2852_v2, %v2749_v53  ;;  %v9548_v13 = vadd.f32 %v3047_v32, %v2943_v18  ;;  %v9550_v23 = vpack.c.bf16 %v4558_v19, %v4554_v63 }
 0x48c   :  { %11784 = vst [vmem:[#allocation63_spill] sm:$0xff] %v9550_v23  ;;  %v4248_v41 = vmul.f32 %v9320_v3, %v2853_v42 }
 0x48e   :  { %v2854_v21 = vpop.f32.mrf.mxu3  ;;  %v4410_v12 = vadd.f32 %v9326_v31, %v4248_v41 }
 0x48f   :  { %v2750_v29 = vpop.f32.mrf.mxu2 }
 0x490   :  { %v2751_v49 = vadd.f32 %v2750_v29, %v9299_v60  ;;  %v2946_v55 = vpop.f32.mrf.mxu0  ;;  %v4562_v53 = vmax.f32 %v4410_v12, 0.0 }
 0x491   :  { %v3050_v20 = vpop.f32.mrf.mxu1 }
 0x492   :  { %v2855_v5 = vadd.f32 %v2854_v21, %v2751_v49  ;;  %v9554_v45 = vadd.f32 %v3050_v20, %v2946_v55 }
 0x493   :  { %3217 = vmatmul.bf16.gmra.mxu3 %v11785_v59  ;;  %3306 = vmatmul.bf16.gmra.mxu0 %v11704_v33 }
 0x494   :  { %v4252_v2 = vmul.f32 %v9320_v3, %v2855_v5  ;;  %3113 = vmatmul.bf16.gmra.mxu2 %v11786_v36  ;;  %3410 = vmatmul.bf16.gmra.mxu1 %v11703_v48 }
 0x496   :  { %v4414_v63 = vadd.f32 %v9326_v31, %v4252_v2  ;;  %v2857_v60 = vpop.f32.mrf.mxu3 }
 0x497   :  { %v2753_v29 = vpop.f32.mrf.mxu2 }
 0x498   :  { %v2754_v20 = vadd.f32 %v2753_v29, %v9301_v7  ;;  %v2948_v49 = vpop.f32.mrf.mxu0  ;;  %v4566_v18 = vmax.f32 %v4414_v63, 0.0  ;;  %v11788_v7 = vld [vmem:[#allocation73_spill] sm:$0xff]  ;;  %v11789_v29 = vld [vmem:[#allocation76_spill] sm:$0xff] }
 0x499   :  { %v3052_v19 = vpop.f32.mrf.mxu1 }
 0x49a   :  { %v2858_v32 = vadd.f32 %v2857_v60, %v2754_v20  ;;  %v9564_v42 = vadd.f32 %v3052_v19, %v2948_v49  ;;  %v9566_v41 = vpack.c.bf16 %v4566_v18, %v4562_v53 }
 0x49c   :  { %11787 = vst [vmem:[#allocation68_spill] sm:$0xff] %v9566_v41  ;;  %v4256_v55 = vmul.f32 %v9320_v3, %v2858_v32 }
 0x49e   :  { %v2859_v5 = vpop.f32.mrf.mxu3  ;;  %v4418_v63 = vadd.f32 %v9326_v31, %v4256_v55 }
 0x49f   :  { %v2755_v21 = vpop.f32.mrf.mxu2 }
 0x4a0   :  { %v2756_v23 = vadd.f32 %v2755_v21, %v9307_v47  ;;  %v2951_v2 = vpop.f32.mrf.mxu0  ;;  %v4570_v49 = vmax.f32 %v4418_v63, 0.0 }
 0x4a1   :  { %v3055_v33 = vpop.f32.mrf.mxu1 }
 0x4a2   :  { %v2860_v48 = vadd.f32 %v2859_v5, %v2756_v23  ;;  %v9570_v12 = vadd.f32 %v3055_v33, %v2951_v2 }
 0x4a3   :  { %3222 = vmatmul.bf16.gmra.mxu3 %v11788_v7  ;;  %3311 = vmatmul.bf16.gmra.mxu0 %v11706_v4 }
 0x4a4   :  { %v4260_v60 = vmul.f32 %v9320_v3, %v2860_v48  ;;  %3118 = vmatmul.bf16.gmra.mxu2 %v11789_v29  ;;  %3415 = vmatmul.bf16.gmra.mxu1 %v11705_v62 }
 0x4a6   :  { %v4422_v53 = vadd.f32 %v9326_v31, %v4260_v60  ;;  %v2862_v47 = vpop.f32.mrf.mxu3 }
 0x4a7   :  { %v2758_v20 = vpop.f32.mrf.mxu2 }
 0x4a8   :  { %v2759_v33 = vadd.f32 %v2758_v20, %v9311_v9  ;;  %v2953_v23 = vpop.f32.mrf.mxu0  ;;  %v4574_v18 = vmax.f32 %v4422_v53, 0.0  ;;  %v11791_v9 = vld [vmem:[#allocation79_spill] sm:$0xff]  ;;  %v11792_v53 = vld [vmem:[#allocation80_spill] sm:$0xff] }
 0x4a9   :  { %v3057_v19 = vpop.f32.mrf.mxu1 }
 0x4aa   :  { %v2863_v32 = vadd.f32 %v2862_v47, %v2759_v33  ;;  %v9580_v5 = vadd.f32 %v3057_v19, %v2953_v23  ;;  %v9582_v21 = vpack.c.bf16 %v4574_v18, %v4570_v49  ;;  %v11793_v49 = vld [vmem:[#allocation82_spill] sm:$0xff]  ;;  %v11794_v33 = vld [vmem:[#allocation83_spill] sm:$0xff] }
 0x4ac   :  { %11790 = vst [vmem:[#allocation70_spill] sm:$0xff] %v9582_v21  ;;  %v4264_v2 = vmul.f32 %v9320_v3, %v2863_v32 }
 0x4ae   :  { %v2864_v48 = vpop.f32.mrf.mxu3  ;;  %v4426_v47 = vadd.f32 %v9326_v31, %v4264_v2 }
 0x4af   :  { %v2760_v55 = vpop.f32.mrf.mxu2 }
 0x4b0   :  { %v2761_v41 = vadd.f32 %v2760_v55, %v9318_v6  ;;  %v2956_v60 = vpop.f32.mrf.mxu0  ;;  %v4578_v19 = vmax.f32 %v4426_v47, 0.0 }
 0x4b1   :  { %v3060_v4 = vpop.f32.mrf.mxu1 }
 0x4b2   :  { %v2865_v62 = vadd.f32 %v2864_v48, %v2761_v41  ;;  %v9586_v63 = vadd.f32 %v3060_v4, %v2956_v60  ;;  %v11795_v41 = vld [vmem:[#allocation157_spill] sm:$0xff] }
 0x4b3   :  { %3227 = vmatmul.bf16.gmra.mxu3 %v11791_v9  ;;  %3316 = vmatmul.bf16.gmra.mxu0 %v11792_v53 }
 0x4b4   :  { %v4268_v20 = vmul.f32 %v9320_v3, %v2865_v62  ;;  %3123 = vmatmul.bf16.gmra.mxu2 %v11793_v49  ;;  %3420 = vmatmul.bf16.gmra.mxu1 %v11794_v33 }
 0x4b6   :  { %v4430_v23 = vadd.f32 %v9326_v31, %v4268_v20  ;;  %v2867_v6 = vpop.f32.mrf.mxu3 }
 0x4b7   :  { %v2763_v18 = vpop.f32.mrf.mxu2 }
 0x4b8   :  { %v2764_v4 = vadd.f32 %v2763_v18, %v11795_v41  ;;  %v2958_v32 = vpop.f32.mrf.mxu0  ;;  %v4582_v48 = vmax.f32 %v4430_v23, 0.0  ;;  %v11797_v18 = vld [vmem:[#allocation85_spill] sm:$0xff]  ;;  %v11798_v23 = vld [vmem:[#allocation86_spill] sm:$0xff]  ;;  %v11799_v41 = vld [vmem:[#allocation88_spill] sm:$0xff] }
 0x4b9   :  { %v3062_v55 = vpop.f32.mrf.mxu1 }
 0x4ba   :  { %v2868_v60 = vadd.f32 %v2867_v6, %v2764_v4  ;;  %v9596_v21 = vadd.f32 %v3062_v55, %v2958_v32  ;;  %v9598_v2 = vpack.c.bf16 %v4582_v48, %v4578_v19  ;;  %v11800_v4 = vld [vmem:[#allocation89_spill] sm:$0xff] }
 0x4bc   :  { %11796 = vst [vmem:[#allocation157_spill] sm:$0xff] %v9598_v2  ;;  %v4272_v9 = vmul.f32 %v9320_v3, %v2868_v60 }
 0x4be   :  { %v2869_v62 = vpop.f32.mrf.mxu3  ;;  %v4434_v6 = vadd.f32 %v9326_v31, %v4272_v9 }
 0x4bf   :  { %v2765_v53 = vpop.f32.mrf.mxu2 }
 0x4c0   :  { %v2766_v33 = vadd.f32 %v2765_v53, %v9341_v52  ;;  %v2961_v20 = vpop.f32.mrf.mxu0  ;;  %v4586_v48 = vmax.f32 %v4434_v6, 0.0 }
 0x4c1   :  { %v3065_v49 = vpop.f32.mrf.mxu1 }
 0x4c2   :  { %v2870_v7 = vadd.f32 %v2869_v62, %v2766_v33  ;;  %v9602_v47 = vadd.f32 %v3065_v49, %v2961_v20 }
 0x4c3   :  { %3232 = vmatmul.bf16.gmra.mxu3 %v11797_v18  ;;  %3321 = vmatmul.bf16.gmra.mxu0 %v11798_v23 }
 0x4c4   :  { %v4276_v19 = vmul.f32 %v9320_v3, %v2870_v7  ;;  %3128 = vmatmul.bf16.gmra.mxu2 %v11799_v41  ;;  %3425 = vmatmul.bf16.gmra.mxu1 %v11800_v4 }
 0x4c6   :  { %v4438_v32 = vadd.f32 %v9326_v31, %v4276_v19  ;;  %v2872_v52 = vpop.f32.mrf.mxu3 }
 0x4c7   :  { %v2768_v53 = vpop.f32.mrf.mxu2 }
 0x4c8   :  { %v2769_v49 = vadd.f32 %v2768_v53, %v9345_v14  ;;  %v2963_v33 = vpop.f32.mrf.mxu0  ;;  %v4590_v55 = vmax.f32 %v4438_v32, 0.0  ;;  %v11802_v14 = vld [vmem:[#allocation91_spill] sm:$0xff]  ;;  %v11803_v32 = vld [vmem:[#allocation92_spill] sm:$0xff] }
 0x4c9   :  { %v3067_v60 = vpop.f32.mrf.mxu1 }
 0x4ca   :  { %v2873_v62 = vadd.f32 %v2872_v52, %v2769_v49  ;;  %v9612_v20 = vadd.f32 %v3067_v60, %v2963_v33  ;;  %v9614_v9 = vpack.c.bf16 %v4590_v55, %v4586_v48  ;;  %v11804_v48 = vld [vmem:[#allocation94_spill] sm:$0xff]  ;;  %v11805_v49 = vld [vmem:[#allocation95_spill] sm:$0xff] }
 0x4cc   :  { %11801 = vst [vmem:[#allocation163_spill] sm:$0xff] %v9614_v9  ;;  %v4280_v23 = vmul.f32 %v9320_v3, %v2873_v62 }
 0x4ce   :  { %v2874_v7 = vpop.f32.mrf.mxu3  ;;  %v4442_v52 = vadd.f32 %v9326_v31, %v4280_v23 }
 0x4cf   :  { %v2770_v2 = vpop.f32.mrf.mxu2 }
 0x4d0   :  { %v2771_v4 = vadd.f32 %v2770_v2, %v9358_v54  ;;  %v2966_v19 = vpop.f32.mrf.mxu0  ;;  %v4594_v55 = vmax.f32 %v4442_v52, 0.0  ;;  %v11807_v52 = vld [vmem:[#allocation96_spill] sm:$0xff] }
 0x4d1   :  { %v3070_v18 = vpop.f32.mrf.mxu1 }
 0x4d2   :  { %v2875_v41 = vadd.f32 %v2874_v7, %v2771_v4  ;;  %v9618_v6 = vadd.f32 %v3070_v18, %v2966_v19 }
 0x4d3   :  { %3237 = vmatmul.bf16.gmra.mxu3 %v11802_v14  ;;  %3326 = vmatmul.bf16.gmra.mxu0 %v11803_v32  ;;  %v11817_v14 = vld [vmem:[#allocation104_spill] sm:$0xff] }
 0x4d4   :  { %v4284_v53 = vmul.f32 %v9320_v3, %v2875_v41  ;;  %3133 = vmatmul.bf16.gmra.mxu2 %v11804_v48  ;;  %3430 = vmatmul.bf16.gmra.mxu1 %v11805_v49  ;;  %v11818_v48 = vld [vmem:[#allocation105_spill] sm:$0xff] }
 0x4d6   :  { %v4446_v33 = vadd.f32 %v9326_v31, %v4284_v53  ;;  %v3198_v54 = vpop.f32.mrf.mxu3 }
 0x4d7   :  { %v3094_v2 = vpop.f32.mrf.mxu2 }
 0x4d8   :  { %v3095_v18 = vadd.f32 %v3094_v2, %v9362_v56  ;;  %v2968_v4 = vpop.f32.mrf.mxu0  ;;  %v4598_v60 = vmax.f32 %v4446_v33, 0.0  ;;  %v11808_v56 = vld [vmem:[#allocation97_spill] sm:$0xff]  ;;  %v11809_v33 = vld [vmem:[#allocation98_spill] sm:$0xff] }
 0x4d9   :  { %v3072_v62 = vpop.f32.mrf.mxu1 }
 0x4da   :  { %v3199_v7 = vadd.f32 %v3198_v54, %v3095_v18  ;;  %v9628_v19 = vadd.f32 %v3072_v62, %v2968_v4  ;;  %v9630_v23 = vpack.c.bf16 %v4598_v60, %v4594_v55  ;;  %v11810_v54 = vld [vmem:[#allocation99_spill] sm:$0xff] }
 0x4dc   :  { %11806 = vst [vmem:[#allocation164_spill] sm:$0xff] %v9630_v23 }
 0x4de   :  { %v3200_v3 = vpop.f32.mrf.mxu3 }
 0x4df   :  { %v3096_v41 = vpop.f32.mrf.mxu2 }
 0x4e0   :  { %v3097_v9 = vadd.f32 %v3096_v41, %v9372_v11  ;;  %v2971_v32 = vpop.f32.mrf.mxu0 }
 0x4e1   :  { %v3075_v49 = vpop.f32.mrf.mxu1 }
 0x4e2   :  { %v3201_v31 = vadd.f32 %v3200_v3, %v3097_v9  ;;  %v9633_v53 = vadd.f32 %v3075_v49, %v2971_v32 }
 0x4e3   :  { %3242 = vmatmul.bf16.gmra.mxu3 %v11807_v52  ;;  %3331 = vmatmul.bf16.gmra.mxu0 %v11808_v56  ;;  %v11812_v52 = vld [vmem:[#allocation100_spill] sm:$0xff] }
 0x4e4   :  { %3138 = vmatmul.bf16.gmra.mxu2 %v11809_v33  ;;  %3435 = vmatmul.bf16.gmra.mxu1 %v11810_v54  ;;  %v11813_v54 = vld [vmem:[#allocation101_spill] sm:$0xff]  ;;  %v11814_v33 = vld [vmem:[#allocation102_spill] sm:$0xff] }
 0x4e6   :  { %v3203_v2 = vpop.f32.mrf.mxu3 }
 0x4e7   :  { %v3099_v55 = vpop.f32.mrf.mxu2 }
 0x4e8   :  { %v3100_v18 = vadd.f32 %v3099_v55, %v9378_v17  ;;  %v2973_v4 = vpop.f32.mrf.mxu0  ;;  %v11815_v17 = vld [vmem:[#allocation103_spill] sm:$0xff] }
 0x4e9   :  { %v3077_v60 = vpop.f32.mrf.mxu1 }
 0x4ea   :  { %v3204_v11 = vadd.f32 %v3203_v2, %v3100_v18  ;;  %v9640_v62 = vadd.f32 %v3077_v60, %v2973_v4 }
 0x4ee   :  { %v3205_v9 = vpop.f32.mrf.mxu3 }
 0x4ef   :  { %v3101_v32 = vpop.f32.mrf.mxu2 }
 0x4f0   :  { %v3102_v49 = vadd.f32 %v3101_v32, %v9388_v10  ;;  %v2976_v3 = vpop.f32.mrf.mxu0 }
 0x4f1   :  { %v3080_v41 = vpop.f32.mrf.mxu1 }
 0x4f2   :  { %v3206_v23 = vadd.f32 %v3205_v9, %v3102_v49  ;;  %v9643_v56 = vadd.f32 %v3080_v41, %v2976_v3 }
 0x4f3   :  { %3247 = vmatmul.bf16.gmra.mxu3 %v11812_v52  ;;  %3336 = vmatmul.bf16.gmra.mxu0 %v11813_v54 }
 0x4f4   :  { %11811 = vst [vmem:[#allocation165_spill] sm:$0xff] %v9643_v56  ;;  %3143 = vmatmul.bf16.gmra.mxu2 %v11814_v33  ;;  %3440 = vmatmul.bf16.gmra.mxu1 %v11815_v17 }
 0x4f6   :  { %v3208_v2 = vpop.f32.mrf.mxu3 }
 0x4f7   :  { %v3104_v55 = vpop.f32.mrf.mxu2 }
 0x4f8   :  { %v3105_v18 = vadd.f32 %v3104_v55, %v9394_v16  ;;  %v2978_v4 = vpop.f32.mrf.mxu0  ;;  %v11819_v16 = vld [vmem:[#allocation106_spill] sm:$0xff] }
 0x4f9   :  { %v3082_v60 = vpop.f32.mrf.mxu1  ;;  %v8127_v55 = vld [vmem:[#allocation8] sm:$0xf] }
 0x4fa   :  { %v9650_v10 = vadd.f32 %v3208_v2, %v3105_v18  ;;  %v9652_v32 = vadd.f32 %v3082_v60, %v2978_v4  ;;  %v11820_v2 = vld [vmem:[#allocation107_spill] sm:$0xff]  ;;  %v9661_v18 = vperm.slane %v8127_v55, 2 }
 0x4fc   :  { %11816 = vst [vmem:[#allocation166_spill] sm:$0xff] %v9652_v32 }
 0x4fe   :  { %v3210_v9 = vpop.f32.mrf.mxu3 }
 0x4ff   :  { %v3106_v49 = vpop.f32.mrf.mxu2 }
 0x500   :  { %v3107_v3 = vadd.f32 %v3106_v49, %v9404_v25  ;;  %v3302_v41 = vpop.f32.mrf.mxu0 }
 0x501   :  { %v3303_v54 = vadd.f32 %v3302_v41, %v3199_v7  ;;  %v3406_v52 = vpop.f32.mrf.mxu1 }
 0x502   :  { %v9655_v33 = vadd.f32 %v3210_v9, %v3107_v3 }
 0x503   :  { %v3407_v17 = vadd.f32 %v3406_v52, %v3303_v54  ;;  %3252 = vmatmul.bf16.gmra.mxu3 %v11817_v14  ;;  %3341 = vmatmul.bf16.gmra.mxu0 %v11818_v48  ;;  %v8128_v52 = vld [vmem:[%s11170_s3] sm:$0xf] }
 0x504   :  { %3148 = vmatmul.bf16.gmra.mxu2 %v11819_v16  ;;  %3445 = vmatmul.bf16.gmra.mxu1 %v11820_v2  ;;  %v9668_v54 = vperm.slane %v8128_v52, 2 }
 0x505   :  { %v4137_v9 = vmul.f32 %v9661_v18, %v3407_v17 }
 0x506   :  { %v3213_v4 = vpop.f32.mrf.mxu3 }
 0x507   :  { %v3109_v60 = vpop.f32.mrf.mxu2  ;;  %v4299_v55 = vadd.f32 %v9668_v54, %v4137_v9  ;;  %v11823_v9 = vld [vmem:[#allocation109_spill] sm:$0xff] }
 0x508   :  { %v3110_v25 = vadd.f32 %v3109_v60, %v9410_v22  ;;  %v3304_v7 = vpop.f32.mrf.mxu0 }
 0x509   :  { %v3305_v49 = vadd.f32 %v3304_v7, %v3201_v31  ;;  %v3408_v3 = vpop.f32.mrf.mxu1  ;;  %v4451_v29 = vmax.f32 %v4299_v55, 0.0  ;;  %v11822_v7 = vld [vmem:[#allocation108_spill] sm:$0xff] }
 0x50a   :  { %v9670_v41 = vadd.f32 %v3213_v4, %v3110_v25 }
 0x50b   :  { %v3409_v48 = vadd.f32 %v3408_v3, %v3305_v49 }
 0x50d   :  { %v4141_v2 = vmul.f32 %v9661_v18, %v3409_v48  ;;  %v11824_v48 = vld [vmem:[#allocation110_spill] sm:$0xff] }
 0x50e   :  { %v3215_v14 = vpop.f32.mrf.mxu3 }
 0x50f   :  { %v4303_v22 = vadd.f32 %v9668_v54, %v4141_v2  ;;  %v3111_v60 = vpop.f32.mrf.mxu2  ;;  %v11825_v2 = vld [vmem:[#allocation111_spill] sm:$0xff] }
 0x510   :  { %v3112_v17 = vadd.f32 %v3111_v60, %v9420_v44  ;;  %v3307_v16 = vpop.f32.mrf.mxu0 }
 0x511   :  { %v4455_v32 = vmax.f32 %v4303_v22, 0.0  ;;  %v3308_v52 = vadd.f32 %v3307_v16, %v3204_v11  ;;  %v3411_v56 = vpop.f32.mrf.mxu1 }
 0x512   :  { %v9676_v31 = vadd.f32 %v3215_v14, %v3112_v17 }
 0x513   :  { %v9678_v4 = vpack.c.bf16 %v4455_v32, %v4451_v29  ;;  %v3412_v25 = vadd.f32 %v3411_v56, %v3308_v52  ;;  %3257 = vmatmul.bf16.gmra.mxu3 %v11822_v7  ;;  %3346 = vmatmul.bf16.gmra.mxu0 %v11823_v9  ;;  %v6854_v9 = vld [vmem:[#allocation6 + $0xf8] sm:$0xf0] }
 0x514   :  { %3153 = vmatmul.bf16.gmra.mxu2 %v11824_v48  ;;  %3450 = vmatmul.bf16.gmra.mxu1 %v11825_v2 }
 0x515   :  { %11821 = vst [vmem:[#allocation167_spill] sm:$0xff] %v9678_v4  ;;  %v4145_v11 = vmul.f32 %v9661_v18, %v3412_v25  ;;  %v7847_v4 = vld [vmem:[#allocation6 + $0xec] sm:$0xf] }
 0x516   :  { %v3218_v49 = vpop.f32.mrf.mxu3  ;;  %v6857_v2 = vor.u32 %v7847_v4, %v6854_v9 }
 0x517   :  { %v3114_v44 = vpop.f32.mrf.mxu2  ;;  %v4307_v32 = vadd.f32 %v9668_v54, %v4145_v11  ;;  %v7879_v11 = vld [vmem:[#allocation6 + $0x1ec] sm:$0xf] }
 0x518   :  { %v3115_v3 = vadd.f32 %v3114_v44, %v9426_v58  ;;  %v3309_v55 = vpop.f32.mrf.mxu0  ;;  %3501 = vmatpush.bf16.msrb.mxu2 %v6857_v2 }
 0x519   :  { %v3310_v14 = vadd.f32 %v3309_v55, %v3206_v23  ;;  %v3413_v16 = vpop.f32.mrf.mxu1  ;;  %v4459_v25 = vmax.f32 %v4307_v32, 0.0 }
 0x51a   :  { %v9686_v29 = vadd.f32 %v3218_v49, %v3115_v3 }
 0x51b   :  { %v3414_v56 = vadd.f32 %v3413_v16, %v3310_v14  ;;  %v6982_v14 = vld [vmem:[#allocation6 + $0x1f8] sm:$0xf0] }
 0x51d   :  { %v4149_v22 = vmul.f32 %v9661_v18, %v3414_v56  ;;  %v11826_v56 = vld [vmem:[#allocation113_spill] sm:$0xff] }
 0x51e   :  { %v3220_v60 = vpop.f32.mrf.mxu3 }
 0x51f   :  { %v4311_v17 = vadd.f32 %v9668_v54, %v4149_v22  ;;  %v3116_v52 = vpop.f32.mrf.mxu2  ;;  %v6985_v22 = vor.u32 %v7879_v11, %v6982_v14 }
 0x520   :  { %v3117_v58 = vadd.f32 %v3116_v52, %v9436_v46  ;;  %v3312_v44 = vpop.f32.mrf.mxu0  ;;  %v11828_v46 = vld [vmem:[#allocation115_spill] sm:$0xff] }
 0x521   :  { %v3313_v23 = vadd.f32 %v3312_v44, %v9650_v10  ;;  %v3416_v49 = vpop.f32.mrf.mxu1  ;;  %v4463_v3 = vmax.f32 %v4311_v17, 0.0  ;;  %3605 = vmatpush.bf16.msrb.mxu3 %v6985_v22 }
 0x522   :  { %v9693_v55 = vadd.f32 %v3220_v60, %v3117_v58 }
 0x523   :  { %v3417_v16 = vadd.f32 %v3416_v49, %v3313_v23  ;;  %3262 = vmatmul.bf16.gmra.mxu3 %v11826_v56  ;;  %3351 = vmatmul.bf16.gmra.mxu0 %v11724_v50  ;;  %v9697_v7 = vpack.c.bf16 %v4463_v3, %v4459_v25 }
 0x524   :  { %3158 = vmatmul.bf16.gmra.mxu2 %v11828_v46  ;;  %3455 = vmatmul.bf16.gmra.mxu1 %v11723_v40 }
 0x525   :  { %11827 = vst [vmem:[#allocation110_spill] sm:$0xff] %v9697_v7  ;;  %v4153_v32 = vmul.f32 %v9661_v18, %v3417_v16  ;;  %v6822_v7 = vld [vmem:[#allocation6 + $0xb8] sm:$0xf0] }
 0x526   :  { %v3223_v10 = vpop.f32.mrf.mxu3 }
 0x527   :  { %v3119_v4 = vpop.f32.mrf.mxu2  ;;  %v4315_v44 = vadd.f32 %v9668_v54, %v4153_v32  ;;  %v11831_v32 = vld [vmem:[#allocation120_spill] sm:$0xff] }
 0x528   :  { %v3120_v9 = vadd.f32 %v3119_v4, %v9442_v1  ;;  %v3314_v2 = vpop.f32.mrf.mxu0 }
 0x529   :  { %v3315_v60 = vadd.f32 %v3314_v2, %v9655_v33  ;;  %v3418_v17 = vpop.f32.mrf.mxu1  ;;  %v4467_v14 = vmax.f32 %v4315_v44, 0.0 }
 0x52a   :  { %v9704_v52 = vadd.f32 %v3223_v10, %v3120_v9  ;;  %v11829_v9 = vld [vmem:[#allocation118_spill] sm:$0xff] }
 0x52b   :  { %v3419_v58 = vadd.f32 %v3418_v17, %v3315_v60 }
 0x52d   :  { %v4157_v25 = vmul.f32 %v9661_v18, %v3419_v58 }
 0x52e   :  { %v3225_v23 = vpop.f32.mrf.mxu3 }
 0x52f   :  { %v4319_v49 = vadd.f32 %v9668_v54, %v4157_v25  ;;  %v3121_v3 = vpop.f32.mrf.mxu2 }
 0x530   :  { %v3122_v11 = vadd.f32 %v3121_v3, %v9452_v26  ;;  %v3317_v1 = vpop.f32.mrf.mxu0 }
 0x531   :  { %v3318_v16 = vadd.f32 %v3317_v1, %v9670_v41  ;;  %v3421_v22 = vpop.f32.mrf.mxu1  ;;  %v4471_v33 = vmax.f32 %v4319_v49, 0.0 }
 0x532   :  { %v9711_v4 = vadd.f32 %v3225_v23, %v3122_v11 }
 0x533   :  { %v3422_v10 = vadd.f32 %v3421_v22, %v3318_v16  ;;  %3267 = vmatmul.bf16.gmra.mxu3 %v11829_v9  ;;  %3356 = vmatmul.bf16.gmra.mxu0 %v11727_v51  ;;  %v9715_v2 = vpack.c.bf16 %v4471_v33, %v4467_v14 }
 0x534   :  { %3163 = vmatmul.bf16.gmra.mxu2 %v11831_v32  ;;  %3460 = vmatmul.bf16.gmra.mxu1 %v11726_v0  ;;  %v11837_v0 = vld [vmem:[#allocation128_spill] sm:$0xff] }
 0x535   :  { %11830 = vst [vmem:[#allocation113_spill] sm:$0xff] %v9715_v2  ;;  %v4161_v58 = vmul.f32 %v9661_v18, %v3422_v10  ;;  %v7839_v2 = vld [vmem:[#allocation6 + $0xac] sm:$0xf] }
 0x536   :  { %v3228_v26 = vpop.f32.mrf.mxu3  ;;  %v6825_v51 = vor.u32 %v7839_v2, %v6822_v7 }
 0x537   :  { %v3124_v60 = vpop.f32.mrf.mxu2  ;;  %v4323_v3 = vadd.f32 %v9668_v54, %v4161_v58  ;;  %v11833_v58 = vld [vmem:[#allocation124_spill] sm:$0xff] }
 0x538   :  { %v3125_v17 = vadd.f32 %v3124_v60, %v9458_v61  ;;  %v3319_v41 = vpop.f32.mrf.mxu0 }
 0x539   :  { %v3320_v44 = vadd.f32 %v3319_v41, %v9676_v31  ;;  %v3423_v25 = vpop.f32.mrf.mxu1  ;;  %v4475_v33 = vmax.f32 %v4323_v3, 0.0  ;;  %v6838_v3 = vld [vmem:[#allocation6 + $0xd8] sm:$0xf0] }
 0x53a   :  { %v9722_v23 = vadd.f32 %v3228_v26, %v3125_v17  ;;  %v11832_v17 = vld [vmem:[#allocation123_spill] sm:$0xff] }
 0x53b   :  { %v3424_v49 = vadd.f32 %v3423_v25, %v3320_v44  ;;  %v11835_v25 = vld [vmem:[#allocation125_spill] sm:$0xff] }
 0x53d   :  { %v4165_v11 = vmul.f32 %v9661_v18, %v3424_v49  ;;  %v11836_v49 = vld [vmem:[#allocation126_spill] sm:$0xff] }
 0x53e   :  { %v3230_v1 = vpop.f32.mrf.mxu3 }
 0x53f   :  { %v4327_v14 = vadd.f32 %v9668_v54, %v4165_v11  ;;  %v3126_v16 = vpop.f32.mrf.mxu2  ;;  %v7843_v11 = vld [vmem:[#allocation6 + $0xcc] sm:$0xf] }
 0x540   :  { %v3127_v22 = vadd.f32 %v3126_v16, %v9468_v37  ;;  %v3322_v61 = vpop.f32.mrf.mxu0  ;;  %v7875_v16 = vld [vmem:[#allocation6 + $0x1cc] sm:$0xf] }
 0x541   :  { %v3323_v10 = vadd.f32 %v3322_v61, %v9686_v29  ;;  %v3426_v60 = vpop.f32.mrf.mxu1  ;;  %v4479_v31 = vmax.f32 %v4327_v14, 0.0  ;;  %v6841_v61 = vor.u32 %v7843_v11, %v6838_v3  ;;  %v6966_v14 = vld [vmem:[#allocation6 + $0x1d8] sm:$0xf0] }
 0x542   :  { %v9729_v41 = vadd.f32 %v3230_v1, %v3127_v22  ;;  %v6950_v11 = vld [vmem:[#allocation6 + $0x1b8] sm:$0xf0] }
 0x543   :  { %v3427_v26 = vadd.f32 %v3426_v60, %v3323_v10  ;;  %3272 = vmatmul.bf16.gmra.mxu3 %v11832_v17  ;;  %3361 = vmatmul.bf16.gmra.mxu0 %v11833_v58  ;;  %v9733_v44 = vpack.c.bf16 %v4479_v31, %v4475_v33  ;;  %v6969_v10 = vor.u32 %v7875_v16, %v6966_v14  ;;  %v7871_v58 = vld [vmem:[#allocation6 + $0x1ac] sm:$0xf] }
 0x544   :  { %3168 = vmatmul.bf16.gmra.mxu2 %v11835_v25  ;;  %3465 = vmatmul.bf16.gmra.mxu1 %v11836_v49  ;;  %v6953_v3 = vor.u32 %v7871_v58, %v6950_v11  ;;  %v6790_v11 = vld [vmem:[#allocation6 + $0x78] sm:$0xf0] }
 0x545   :  { %11834 = vst [vmem:[#allocation115_spill] sm:$0xff] %v9733_v44  ;;  %v4169_v60 = vmul.f32 %v9661_v18, %v3427_v26  ;;  %3502 = vmatpush.bf16.msrb.mxu2 %v6841_v61  ;;  %3606 = vmatpush.bf16.msrb.mxu3 %v6969_v10  ;;  %v7867_v61 = vld [vmem:[#allocation6 + $0x18c] sm:$0xf] }
 0x546   :  { %v3233_v37 = vpop.f32.mrf.mxu3 }
 0x547   :  { %v3129_v29 = vpop.f32.mrf.mxu2 }
 0x548   :  { %v3130_v1 = vadd.f32 %v3129_v29, %v9474_v24  ;;  %v3324_v22 = vpop.f32.mrf.mxu0  ;;  %v4331_v24 = vadd.f32 %v9668_v54, %v4169_v60  ;;  %v6806_v29 = vld [vmem:[#allocation6 + $0x98] sm:$0xf0] }
 0x549   :  { %v3325_v33 = vadd.f32 %v3324_v22, %v9693_v55  ;;  %v3428_v31 = vpop.f32.mrf.mxu1  ;;  %3503 = vmatpush.bf16.msrb.mxu2 %v6825_v51  ;;  %3607 = vmatpush.bf16.msrb.mxu3 %v6953_v3  ;;  %v7835_v55 = vld [vmem:[#allocation6 + $0x8c] sm:$0xf]  ;;  %v6934_v22 = vld [vmem:[#allocation6 + $0x198] sm:$0xf0] }
 0x54a   :  { %v9740_v44 = vadd.f32 %v3233_v37, %v3130_v1  ;;  %v6809_v1 = vor.u32 %v7835_v55, %v6806_v29  ;;  %v6937_v2 = vor.u32 %v7867_v61, %v6934_v22  ;;  %v4483_v58 = vmax.f32 %v4331_v24, 0.0  ;;  %v7863_v3 = vld [vmem:[#allocation6 + $0x16c] sm:$0xf]  ;;  %v11838_v55 = vld [vmem:[#allocation129_spill] sm:$0xff]  ;;  %v6918_v29 = vld [vmem:[#allocation6 + $0x178] sm:$0xf0] }
 0x54b   :  { %v3429_v49 = vadd.f32 %v3428_v31, %v3325_v33  ;;  %v7831_v31 = vld [vmem:[#allocation6 + $0x6c] sm:$0xf]  ;;  %v11840_v24 = vld [vmem:[#allocation130_spill] sm:$0xff] }
 0x54c   :  { %v7859_v22 = vld [vmem:[#allocation6 + $0x14c] sm:$0xf] }
 0x54d   :  { %v4173_v16 = vmul.f32 %v9661_v18, %v3429_v49  ;;  %3504 = vmatpush.bf16.msrb.mxu2 %v6809_v1  ;;  %3608 = vmatpush.bf16.msrb.mxu3 %v6937_v2  ;;  %v6774_v1 = vld [vmem:[#allocation6 + $0x58] sm:$0xf0] }
 0x54e   :  { %v3235_v26 = vpop.f32.mrf.mxu3  ;;  %v6902_v2 = vld [vmem:[#allocation6 + $0x158] sm:$0xf0] }
 0x54f   :  { %v4335_v37 = vadd.f32 %v9668_v54, %v4173_v16  ;;  %v3131_v14 = vpop.f32.mrf.mxu2 }
 0x550   :  { %v3132_v10 = vadd.f32 %v3131_v14, %v9484_v35  ;;  %v3327_v7 = vpop.f32.mrf.mxu0  ;;  %v6793_v35 = vor.u32 %v7831_v31, %v6790_v11  ;;  %v7827_v14 = vld [vmem:[#allocation6 + $0x4c] sm:$0xf]  ;;  %v6905_v31 = vor.u32 %v7859_v22, %v6902_v2 }
 0x551   :  { %v3328_v60 = vadd.f32 %v3327_v7, %v9704_v52  ;;  %v3431_v33 = vpop.f32.mrf.mxu1  ;;  %v4487_v51 = vmax.f32 %v4335_v37, 0.0  ;;  %v11841_v52 = vld [vmem:[#allocation131_spill] sm:$0xff]  ;;  %v6921_v37 = vor.u32 %v7863_v3, %v6918_v29  ;;  %v6777_v7 = vor.u32 %v7827_v14, %v6774_v1  ;;  %v6758_v29 = vld [vmem:[#allocation6 + $0x38] sm:$0xf0] }
 0x552   :  { %v9747_v49 = vadd.f32 %v3235_v26, %v3132_v10  ;;  %3505 = vmatpush.bf16.msrb.mxu2 %v6793_v35  ;;  %v7823_v35 = vld [vmem:[#allocation6 + $0x2c] sm:$0xf]  ;;  %v6886_v14 = vld [vmem:[#allocation6 + $0x138] sm:$0xf0] }
 0x553   :  { %v3432_v16 = vadd.f32 %v3431_v33, %v3328_v60  ;;  %3277 = vmatmul.bf16.gmra.mxu3 %v11837_v0  ;;  %3366 = vmatmul.bf16.gmra.mxu0 %v11838_v55  ;;  %v9751_v61 = vpack.c.bf16 %v4487_v51, %v4483_v58  ;;  %v6761_v55 = vor.u32 %v7823_v35, %v6758_v29 }
 0x554   :  { %3173 = vmatmul.bf16.gmra.mxu2 %v11840_v24  ;;  %3470 = vmatmul.bf16.gmra.mxu1 %v11841_v52  ;;  %v11852_v52 = vld [vmem:[#allocation143_spill] sm:$0xff] }
 0x555   :  { %11839 = vst [vmem:[#allocation118_spill] sm:$0xff] %v9751_v61  ;;  %3609 = vmatpush.bf16.msrb.mxu3 %v6921_v37  ;;  %v4177_v58 = vmul.f32 %v9661_v18, %v3432_v16  ;;  %v7855_v37 = vld [vmem:[#allocation6 + $0x12c] sm:$0xf] }
 0x556   :  { %v3238_v26 = vpop.f32.mrf.mxu3  ;;  %3506 = vmatpush.bf16.msrb.mxu2 %v6777_v7  ;;  %v6889_v1 = vor.u32 %v7855_v37, %v6886_v14  ;;  %v7851_v7 = vld [vmem:[#allocation6 + $0x10c] sm:$0xf]  ;;  %v11842_v14 = vld [vmem:[#allocation133_spill] sm:$0xff] }
 0x557   :  { %v3134_v10 = vpop.f32.mrf.mxu2 }
 0x558   :  { %v3135_v60 = vadd.f32 %v3134_v10, %v9490_v8  ;;  %v3329_v33 = vpop.f32.mrf.mxu0  ;;  %v4339_v8 = vadd.f32 %v9668_v54, %v4177_v58  ;;  %v6742_v10 = vld [vmem:[#allocation6 + $0x18] sm:$0xf0] }
 0x559   :  { %v3330_v51 = vadd.f32 %v3329_v33, %v9711_v4  ;;  %v3433_v11 = vpop.f32.mrf.mxu1  ;;  %3610 = vmatpush.bf16.msrb.mxu3 %v6905_v31  ;;  %v7819_v4 = vld [vmem:[#allocation6 + $0xc] sm:$0xf]  ;;  %v6870_v33 = vld [vmem:[#allocation6 + $0x118] sm:$0xf0] }
 0x55a   :  { %v9758_v3 = vadd.f32 %v3238_v26, %v3135_v60  ;;  %3507 = vmatpush.bf16.msrb.mxu2 %v6761_v55  ;;  %v6745_v60 = vor.u32 %v7819_v4, %v6742_v10  ;;  %v4491_v35 = vmax.f32 %v4339_v8, 0.0  ;;  %v11845_v4 = vld [vmem:[#allocation135_spill] sm:$0xff] }
 0x55b   :  { %v3434_v61 = vadd.f32 %v3433_v11, %v3330_v51  ;;  %v6873_v11 = vor.u32 %v7851_v7, %v6870_v33 }
 0x55d   :  { %v4181_v22 = vmul.f32 %v9661_v18, %v3434_v61  ;;  %3611 = vmatpush.bf16.msrb.mxu3 %v6889_v1  ;;  %v11843_v1 = vld [vmem:[#allocation134_spill] sm:$0xff] }
 0x55e   :  { %v3240_v16 = vpop.f32.mrf.mxu3  ;;  %3508 = vmatpush.bf16.msrb.mxu2 %v6745_v60 }
 0x55f   :  { %v4343_v26 = vadd.f32 %v9668_v54, %v4181_v22  ;;  %v3136_v2 = vpop.f32.mrf.mxu2 }
 0x560   :  { %v3137_v31 = vadd.f32 %v3136_v2, %v9500_v57  ;;  %v3332_v51 = vpop.f32.mrf.mxu0  ;;  %v11846_v57 = vld [vmem:[#allocation136_spill] sm:$0xff] }
 0x561   :  { %v3333_v58 = vadd.f32 %v3332_v51, %v9722_v23  ;;  %v3436_v29 = vpop.f32.mrf.mxu1  ;;  %v4495_v55 = vmax.f32 %v4343_v26, 0.0  ;;  %3612 = vmatpush.bf16.msrb.mxu3 %v6873_v11 }
 0x562   :  { %v9765_v61 = vadd.f32 %v3240_v16, %v3137_v31 }
 0x563   :  { %v3437_v37 = vadd.f32 %v3436_v29, %v3333_v58  ;;  %3282 = vmatmul.bf16.gmra.mxu3 %v11842_v14  ;;  %3371 = vmatmul.bf16.gmra.mxu0 %v11843_v1  ;;  %v9769_v22 = vpack.c.bf16 %v4495_v55, %v4491_v35 }
 0x564   :  { %3178 = vmatmul.bf16.gmra.mxu2 %v11845_v4  ;;  %3475 = vmatmul.bf16.gmra.mxu1 %v11846_v57 }
 0x565   :  { %11844 = vst [vmem:[#allocation120_spill] sm:$0xff] %v9769_v22  ;;  %v4185_v16 = vmul.f32 %v9661_v18, %v3437_v37  ;;  %v7238_v22 = vld [vmem:[#allocation6 + $0x3f8] sm:$0xf0] }
 0x566   :  { %v3243_v8 = vpop.f32.mrf.mxu3 }
 0x567   :  { %v3139_v10 = vpop.f32.mrf.mxu2  ;;  %v4347_v31 = vadd.f32 %v9668_v54, %v4185_v16 }
 0x568   :  { %v3140_v23 = vadd.f32 %v3139_v10, %v9506_v38  ;;  %v3334_v7 = vpop.f32.mrf.mxu0 }
 0x569   :  { %v3335_v26 = vadd.f32 %v3334_v7, %v9729_v41  ;;  %v3438_v2 = vpop.f32.mrf.mxu1  ;;  %v4499_v55 = vmax.f32 %v4347_v31, 0.0  ;;  %v11851_v31 = vld [vmem:[#allocation141_spill] sm:$0xff] }
 0x56a   :  { %v9776_v60 = vadd.f32 %v3243_v8, %v3140_v23  ;;  %v7911_v8 = vld [vmem:[#allocation6 + $0x2ec] sm:$0xf]  ;;  %v7110_v23 = vld [vmem:[#allocation6 + $0x2f8] sm:$0xf0] }
 0x56b   :  { %v3439_v33 = vadd.f32 %v3438_v2, %v3335_v26  ;;  %v7943_v26 = vld [vmem:[#allocation6 + $0x3ec] sm:$0xf]  ;;  %v11847_v2 = vld [vmem:[#allocation138_spill] sm:$0xff] }
 0x56d   :  { %v4189_v51 = vmul.f32 %v9661_v18, %v3439_v33  ;;  %v11848_v33 = vld [vmem:[#allocation139_spill] sm:$0xff] }
 0x56e   :  { %v3245_v11 = vpop.f32.mrf.mxu3 }
 0x56f   :  { %v4351_v35 = vadd.f32 %v9668_v54, %v4189_v51  ;;  %v3141_v58 = vpop.f32.mrf.mxu2  ;;  %v7113_v51 = vor.u32 %v7911_v8, %v7110_v23 }
 0x570   :  { %v3142_v29 = vadd.f32 %v3141_v58, %v9516_v28  ;;  %v3337_v38 = vpop.f32.mrf.mxu0  ;;  %v11850_v28 = vld [vmem:[#allocation140_spill] sm:$0xff]  ;;  %v7094_v58 = vld [vmem:[#allocation6 + $0x2d8] sm:$0xf0] }
 0x571   :  { %v3338_v37 = vadd.f32 %v3337_v38, %v9740_v44  ;;  %v3441_v10 = vpop.f32.mrf.mxu1  ;;  %v4503_v41 = vmax.f32 %v4351_v35, 0.0  ;;  %v7241_v44 = vor.u32 %v7943_v26, %v7238_v22  ;;  %3709 = vmatpush.bf16.msrb.mxu0 %v7113_v51  ;;  %v7907_v35 = vld [vmem:[#allocation6 + $0x2cc] sm:$0xf]  ;;  %v7078_v51 = vld [vmem:[#allocation6 + $0x2b8] sm:$0xf0] }
 0x572   :  { %v9783_v7 = vadd.f32 %v3245_v11, %v3142_v29  ;;  %v7939_v29 = vld [vmem:[#allocation6 + $0x3cc] sm:$0xf] }
 0x573   :  { %v3442_v16 = vadd.f32 %v3441_v10, %v3338_v37  ;;  %3287 = vmatmul.bf16.gmra.mxu3 %v11847_v2  ;;  %3376 = vmatmul.bf16.gmra.mxu0 %v11848_v33  ;;  %v9787_v1 = vpack.c.bf16 %v4503_v41, %v4499_v55  ;;  %v7097_v37 = vor.u32 %v7907_v35, %v7094_v58  ;;  %v7222_v10 = vld [vmem:[#allocation6 + $0x3d8] sm:$0xf0]  ;;  %v7903_v26 = vld [vmem:[#allocation6 + $0x2ac] sm:$0xf] }
 0x574   :  { %3183 = vmatmul.bf16.gmra.mxu2 %v11850_v28  ;;  %3480 = vmatmul.bf16.gmra.mxu1 %v11851_v31  ;;  %v7225_v23 = vor.u32 %v7939_v29, %v7222_v10  ;;  %v7081_v57 = vor.u32 %v7903_v26, %v7078_v51  ;;  %v7206_v35 = vld [vmem:[#allocation6 + $0x3b8] sm:$0xf0] }
 0x575   :  { %11849 = vst [vmem:[#allocation123_spill] sm:$0xff] %v9787_v1  ;;  %3813 = vmatpush.bf16.msrb.mxu1 %v7241_v44  ;;  %v4193_v55 = vmul.f32 %v9661_v18, %v3442_v16  ;;  %3710 = vmatpush.bf16.msrb.mxu0 %v7097_v37  ;;  %v7935_v44 = vld [vmem:[#allocation6 + $0x3ac] sm:$0xf] }
 0x576   :  { %v3248_v11 = vpop.f32.mrf.mxu3  ;;  %v7209_v58 = vor.u32 %v7935_v44, %v7206_v35  ;;  %v7931_v37 = vld [vmem:[#allocation6 + $0x38c] sm:$0xf]  ;;  %v7046_v35 = vld [vmem:[#allocation6 + $0x278] sm:$0xf0] }
 0x577   :  { %v3144_v38 = vpop.f32.mrf.mxu2  ;;  %v7895_v44 = vld [vmem:[#allocation6 + $0x26c] sm:$0xf] }
 0x578   :  { %v3145_v33 = vadd.f32 %v3144_v38, %v9522_v34  ;;  %v3339_v8 = vpop.f32.mrf.mxu0  ;;  %v4355_v34 = vadd.f32 %v9668_v54, %v4193_v55  ;;  %v7062_v38 = vld [vmem:[#allocation6 + $0x298] sm:$0xf0] }
 0x579   :  { %v3340_v41 = vadd.f32 %v3339_v8, %v9747_v49  ;;  %v3443_v1 = vpop.f32.mrf.mxu1  ;;  %3814 = vmatpush.bf16.msrb.mxu1 %v7225_v23  ;;  %3711 = vmatpush.bf16.msrb.mxu0 %v7081_v57  ;;  %v7899_v49 = vld [vmem:[#allocation6 + $0x28c] sm:$0xf]  ;;  %v7190_v8 = vld [vmem:[#allocation6 + $0x398] sm:$0xf0] }
 0x57a   :  { %v9794_v22 = vadd.f32 %v3248_v11, %v3145_v33  ;;  %v7065_v10 = vor.u32 %v7899_v49, %v7062_v38  ;;  %v4507_v26 = vmax.f32 %v4355_v34, 0.0  ;;  %v11853_v49 = vld [vmem:[#allocation22_spill] sm:$0xff]  ;;  %v11855_v34 = vld [vmem:[#allocation144_spill] sm:$0xff] }
 0x57b   :  { %v3444_v31 = vadd.f32 %v3443_v1, %v3340_v41  ;;  %v7193_v41 = vor.u32 %v7931_v37, %v7190_v8  ;;  %v7174_v38 = vld [vmem:[#allocation6 + $0x378] sm:$0xf0]  ;;  %v7923_v8 = vld [vmem:[#allocation6 + $0x34c] sm:$0xf] }
 0x57d   :  { %v4197_v29 = vmul.f32 %v9661_v18, %v3444_v31  ;;  %3815 = vmatpush.bf16.msrb.mxu1 %v7209_v58  ;;  %3712 = vmatpush.bf16.msrb.mxu0 %v7065_v10  ;;  %v7927_v58 = vld [vmem:[#allocation6 + $0x36c] sm:$0xf]  ;;  %v7030_v10 = vld [vmem:[#allocation6 + $0x258] sm:$0xf0] }
 0x57e   :  { %v3250_v16 = vpop.f32.mrf.mxu3 }
 0x57f   :  { %v4359_v33 = vadd.f32 %v9668_v54, %v4197_v29  ;;  %v3146_v11 = vpop.f32.mrf.mxu2 }
 0x580   :  { %v3147_v1 = vadd.f32 %v3146_v11, %v9532_v43  ;;  %v3342_v23 = vpop.f32.mrf.mxu0  ;;  %v7049_v43 = vor.u32 %v7895_v44, %v7046_v35  ;;  %v7891_v11 = vld [vmem:[#allocation6 + $0x24c] sm:$0xf] }
 0x581   :  { %v3343_v55 = vadd.f32 %v3342_v23, %v9758_v3  ;;  %v3446_v51 = vpop.f32.mrf.mxu1  ;;  %v4511_v57 = vmax.f32 %v4359_v33, 0.0  ;;  %3816 = vmatpush.bf16.msrb.mxu1 %v7193_v41  ;;  %v11856_v3 = vld [vmem:[#allocation20_spill] sm:$0xff]  ;;  %v7177_v33 = vor.u32 %v7927_v58, %v7174_v38  ;;  %v7033_v23 = vor.u32 %v7891_v11, %v7030_v10  ;;  %v7158_v41 = vld [vmem:[#allocation6 + $0x358] sm:$0xf0] }
 0x582   :  { %v9801_v31 = vadd.f32 %v3250_v16, %v3147_v1  ;;  %3713 = vmatpush.bf16.msrb.mxu0 %v7049_v43  ;;  %v7161_v44 = vor.u32 %v7923_v8, %v7158_v41  ;;  %v7014_v43 = vld [vmem:[#allocation6 + $0x238] sm:$0xf0]  ;;  %v7919_v38 = vld [vmem:[#allocation6 + $0x32c] sm:$0xf] }
 0x583   :  { %v3447_v29 = vadd.f32 %v3446_v51, %v3343_v55  ;;  %3381 = vmatmul.bf16.gmra.mxu0 %v11852_v52  ;;  %3613 = vmatmul.bf16.vlgmr.msrb.gmra.mxu3 %v11853_v49  ;;  %v9805_v37 = vpack.c.bf16 %v4511_v57, %v4507_v26  ;;  %v7887_v49 = vld [vmem:[#allocation6 + $0x22c] sm:$0xf]  ;;  %v7142_v11 = vld [vmem:[#allocation6 + $0x338] sm:$0xf0] }
 0x584   :  { %3485 = vmatmul.bf16.gmra.mxu1 %v11855_v34  ;;  %3509 = vmatmul.bf16.vlgmr.msrb.gmra.mxu2 %v11856_v3  ;;  %v7145_v10 = vor.u32 %v7919_v38, %v7142_v11  ;;  %v11857_v11 = vld [vmem:[#allocation146_spill] sm:$0xff] }
 0x585   :  { %11854 = vst [vmem:[#allocation125_spill] sm:$0xff] %v9805_v37  ;;  %3817 = vmatpush.bf16.msrb.mxu1 %v7177_v33  ;;  %v4201_v26 = vmul.f32 %v9661_v18, %v3447_v29  ;;  %v7017_v33 = vor.u32 %v7887_v49, %v7014_v43 }
 0x586   :  { %v3253_v16 = vpop.f32.mrf.mxu3  ;;  %3714 = vmatpush.bf16.msrb.mxu0 %v7033_v23  ;;  %v7915_v23 = vld [vmem:[#allocation6 + $0x30c] sm:$0xf] }
 0x587   :  { %v3149_v1 = vpop.f32.mrf.mxu2 }
 0x588   :  { %v3150_v55 = vadd.f32 %v3149_v1, %v9538_v15  ;;  %v3344_v51 = vpop.f32.mrf.mxu0  ;;  %v4363_v15 = vadd.f32 %v9668_v54, %v4201_v26  ;;  %v6998_v1 = vld [vmem:[#allocation6 + $0x218] sm:$0xf0] }
 0x589   :  { %v3345_v57 = vadd.f32 %v3344_v51, %v9765_v61  ;;  %v3448_v35 = vpop.f32.mrf.mxu1  ;;  %3818 = vmatpush.bf16.msrb.mxu1 %v7161_v44  ;;  %v7883_v61 = vld [vmem:[#allocation6 + $0x20c] sm:$0xf]  ;;  %v7126_v51 = vld [vmem:[#allocation6 + $0x318] sm:$0xf0] }
 0x58a   :  { %v9812_v58 = vadd.f32 %v3253_v16, %v3150_v55  ;;  %3715 = vmatpush.bf16.msrb.mxu0 %v7017_v33  ;;  %v7001_v55 = vor.u32 %v7883_v61, %v6998_v1  ;;  %v4515_v49 = vmax.f32 %v4363_v15, 0.0  ;;  %v11860_v61 = vld [vmem:[#allocation147_spill] sm:$0xff] }
 0x58b   :  { %v3449_v3 = vadd.f32 %v3448_v35, %v3345_v57  ;;  %v7129_v35 = vor.u32 %v7915_v23, %v7126_v51 }
 0x58d   :  { %v4205_v8 = vmul.f32 %v9661_v18, %v3449_v3  ;;  %3819 = vmatpush.bf16.msrb.mxu1 %v7145_v10  ;;  %v11858_v10 = vld [vmem:[#allocation26_spill] sm:$0xff] }
 0x58e   :  { %v3255_v29 = vpop.f32.mrf.mxu3  ;;  %3716 = vmatpush.bf16.msrb.mxu0 %v7001_v55 }
 0x58f   :  { %v4367_v16 = vadd.f32 %v9668_v54, %v4205_v8  ;;  %v3151_v41 = vpop.f32.mrf.mxu2 }
 0x590   :  { %v3152_v44 = vadd.f32 %v3151_v41, %v9548_v13  ;;  %v3347_v57 = vpop.f32.mrf.mxu0  ;;  %v11861_v13 = vld [vmem:[#allocation24_spill] sm:$0xff] }
 0x591   :  { %v3348_v26 = vadd.f32 %v3347_v57, %v9776_v60  ;;  %v3451_v43 = vpop.f32.mrf.mxu1  ;;  %v4519_v38 = vmax.f32 %v4367_v16, 0.0  ;;  %3820 = vmatpush.bf16.msrb.mxu1 %v7129_v35 }
 0x592   :  { %v9819_v3 = vadd.f32 %v3255_v29, %v3152_v44 }
 0x593   :  { %v3452_v33 = vadd.f32 %v3451_v43, %v3348_v26  ;;  %3386 = vmatmul.bf16.gmra.mxu0 %v11857_v11  ;;  %3618 = vmatmul.bf16.gmra.mxu3 %v11858_v10  ;;  %v9823_v8 = vpack.c.bf16 %v4519_v38, %v4515_v49 }
 0x594   :  { %3490 = vmatmul.bf16.gmra.mxu1 %v11860_v61  ;;  %3514 = vmatmul.bf16.gmra.mxu2 %v11861_v13 }
 0x595   :  { %11859 = vst [vmem:[#allocation128_spill] sm:$0xff] %v9823_v8  ;;  %v4209_v29 = vmul.f32 %v9661_v18, %v3452_v33  ;;  %v11950_v8 = vld [vmem:[#allocation97_spill] sm:$0xff] }
 0x596   :  { %v3258_v15 = vpop.f32.mrf.mxu3 }
 0x597   :  { %v3154_v1 = vpop.f32.mrf.mxu2  ;;  %v4371_v44 = vadd.f32 %v9668_v54, %v4209_v29  ;;  %v11865_v29 = vld [vmem:[#allocation150_spill] sm:$0xff] }
 0x598   :  { %v3155_v60 = vadd.f32 %v3154_v1, %v9554_v45  ;;  %v3349_v23 = vpop.f32.mrf.mxu0  ;;  %v11862_v1 = vld [vmem:[#allocation149_spill] sm:$0xff] }
 0x599   :  { %v3350_v16 = vadd.f32 %v3349_v23, %v9783_v7  ;;  %v3453_v41 = vpop.f32.mrf.mxu1  ;;  %v4523_v38 = vmax.f32 %v4371_v44, 0.0 }
 0x59a   :  { %v9830_v55 = vadd.f32 %v3258_v15, %v3155_v60  ;;  %v11863_v60 = vld [vmem:[#allocation30_spill] sm:$0xff] }
 0x59b   :  { %v3454_v51 = vadd.f32 %v3453_v41, %v3350_v16  ;;  %v11866_v16 = vld [vmem:[#allocation28_spill] sm:$0xff] }
 0x59d   :  { %v4213_v57 = vmul.f32 %v9661_v18, %v3454_v51 }
 0x59e   :  { %v3260_v35 = vpop.f32.mrf.mxu3 }
 0x59f   :  { %v4375_v49 = vadd.f32 %v9668_v54, %v4213_v57  ;;  %v3156_v26 = vpop.f32.mrf.mxu2 }
 0x5a0   :  { %v3157_v43 = vadd.f32 %v3156_v26, %v9564_v42  ;;  %v3352_v45 = vpop.f32.mrf.mxu0 }
 0x5a1   :  { %v3353_v33 = vadd.f32 %v3352_v45, %v9794_v22  ;;  %v3456_v10 = vpop.f32.mrf.mxu1  ;;  %v4527_v7 = vmax.f32 %v4375_v49, 0.0 }
 0x5a2   :  { %v9837_v13 = vadd.f32 %v3260_v35, %v3157_v43 }
 0x5a3   :  { %v3457_v15 = vadd.f32 %v3456_v10, %v3353_v33  ;;  %3391 = vmatmul.bf16.gmra.mxu0 %v11862_v1  ;;  %3623 = vmatmul.bf16.gmra.mxu3 %v11863_v60  ;;  %v9841_v23 = vpack.c.bf16 %v4527_v7, %v4523_v38 }
 0x5a4   :  { %3495 = vmatmul.bf16.gmra.mxu1 %v11865_v29  ;;  %3519 = vmatmul.bf16.gmra.mxu2 %v11866_v16 }
 0x5a5   :  { %11864 = vst [vmem:[#allocation130_spill] sm:$0xff] %v9841_v23  ;;  %v4217_v44 = vmul.f32 %v9661_v18, %v3457_v15  ;;  %v11948_v23 = vld [vmem:[#allocation99_spill] sm:$0xff] }
 0x5a6   :  { %v3263_v42 = vpop.f32.mrf.mxu3 }
 0x5a7   :  { %v3159_v41 = vpop.f32.mrf.mxu2  ;;  %v4379_v43 = vadd.f32 %v9668_v54, %v4217_v44 }
 0x5a8   :  { %v3160_v51 = vadd.f32 %v3159_v41, %v9570_v12  ;;  %v3354_v22 = vpop.f32.mrf.mxu0 }
 0x5a9   :  { %v3355_v57 = vadd.f32 %v3354_v22, %v9801_v31  ;;  %v3458_v35 = vpop.f32.mrf.mxu1  ;;  %v4531_v60 = vmax.f32 %v4379_v43, 0.0  ;;  %v11868_v22 = vld [vmem:[#allocation55_spill] sm:$0xff] }
 0x5aa   :  { %v9848_v49 = vadd.f32 %v3263_v42, %v3160_v51  ;;  %v11867_v51 = vld [vmem:[#allocation34_spill] sm:$0xff] }
 0x5ab   :  { %v3459_v26 = vadd.f32 %v3458_v35, %v3355_v57  ;;  %v11870_v57 = vld [vmem:[#allocation32_spill] sm:$0xff]  ;;  %v11871_v35 = vld [vmem:[#allocation53_spill] sm:$0xff] }
 0x5ad   :  { %v4221_v45 = vmul.f32 %v9661_v18, %v3459_v26 }
 0x5ae   :  { %v3265_v38 = vpop.f32.mrf.mxu3 }
 0x5af   :  { %v4383_v33 = vadd.f32 %v9668_v54, %v4221_v45  ;;  %v3161_v10 = vpop.f32.mrf.mxu2 }
 0x5b0   :  { %v3162_v7 = vadd.f32 %v3161_v10, %v9580_v5  ;;  %v3357_v12 = vpop.f32.mrf.mxu0 }
 0x5b1   :  { %v3358_v15 = vadd.f32 %v3357_v12, %v9812_v58  ;;  %v3461_v16 = vpop.f32.mrf.mxu1  ;;  %v4535_v31 = vmax.f32 %v4383_v33, 0.0 }
 0x5b2   :  { %v9855_v41 = vadd.f32 %v3265_v38, %v3162_v7 }
 0x5b3   :  { %v3462_v42 = vadd.f32 %v3461_v16, %v3358_v15  ;;  %3628 = vmatmul.bf16.gmra.mxu3 %v11867_v51  ;;  %3717 = vmatmul.bf16.vlgmr.msrb.gmra.mxu0 %v11868_v22  ;;  %v9859_v44 = vpack.c.bf16 %v4535_v31, %v4531_v60 }
 0x5b4   :  { %3524 = vmatmul.bf16.gmra.mxu2 %v11870_v57  ;;  %3821 = vmatmul.bf16.vlgmr.msrb.gmra.mxu1 %v11871_v35 }
 0x5b5   :  { %11869 = vst [vmem:[#allocation133_spill] sm:$0xff] %v9859_v44  ;;  %v4225_v45 = vmul.f32 %v9661_v18, %v3462_v42 }
 0x5b6   :  { %v3268_v5 = vpop.f32.mrf.mxu3 }
 0x5b7   :  { %v3164_v26 = vpop.f32.mrf.mxu2  ;;  %v4387_v12 = vadd.f32 %v9668_v54, %v4225_v45 }
 0x5b8   :  { %v3165_v43 = vadd.f32 %v3164_v26, %v9586_v63  ;;  %v3359_v58 = vpop.f32.mrf.mxu0  ;;  %v11872_v26 = vld [vmem:[#allocation38_spill] sm:$0xff] }
 0x5b9   :  { %v3360_v38 = vadd.f32 %v3359_v58, %v9819_v3  ;;  %v3463_v33 = vpop.f32.mrf.mxu1  ;;  %v4539_v22 = vmax.f32 %v4387_v12, 0.0  ;;  %v11874_v58 = vld [vmem:[#allocation36_spill] sm:$0xff] }
 0x5ba   :  { %v9866_v10 = vadd.f32 %v3268_v5, %v3165_v43 }
 0x5bb   :  { %v3464_v7 = vadd.f32 %v3463_v33, %v3360_v38 }
 0x5bd   :  { %v4229_v60 = vmul.f32 %v9661_v18, %v3464_v7 }
 0x5be   :  { %v3270_v15 = vpop.f32.mrf.mxu3 }
 0x5bf   :  { %v4391_v16 = vadd.f32 %v9668_v54, %v4229_v60  ;;  %v3166_v31 = vpop.f32.mrf.mxu2 }
 0x5c0   :  { %v3167_v51 = vadd.f32 %v3166_v31, %v9596_v21  ;;  %v3362_v63 = vpop.f32.mrf.mxu0 }
 0x5c1   :  { %v3363_v42 = vadd.f32 %v3362_v63, %v9830_v55  ;;  %v3466_v57 = vpop.f32.mrf.mxu1  ;;  %v4543_v3 = vmax.f32 %v4391_v16, 0.0 }
 0x5c2   :  { %v9873_v35 = vadd.f32 %v3270_v15, %v3167_v51 }
 0x5c3   :  { %v3467_v5 = vadd.f32 %v3466_v57, %v3363_v42  ;;  %3633 = vmatmul.bf16.gmra.mxu3 %v11872_v26  ;;  %3722 = vmatmul.bf16.gmra.mxu0 %v11773_v39  ;;  %v9877_v43 = vpack.c.bf16 %v4543_v3, %v4539_v22  ;;  %v11875_v26 = vld [vmem:[#allocation42_spill] sm:$0xff] }
 0x5c4   :  { %3529 = vmatmul.bf16.gmra.mxu2 %v11874_v58  ;;  %3826 = vmatmul.bf16.gmra.mxu1 %v11771_v27 }
 0x5c5   :  { %11873 = vst [vmem:[#allocation135_spill] sm:$0xff] %v9877_v43  ;;  %v4233_v33 = vmul.f32 %v9661_v18, %v3467_v5 }
 0x5c6   :  { %v3273_v21 = vpop.f32.mrf.mxu3 }
 0x5c7   :  { %v3169_v45 = vpop.f32.mrf.mxu2  ;;  %v4395_v39 = vadd.f32 %v9668_v54, %v4233_v33 }
 0x5c8   :  { %v3170_v38 = vadd.f32 %v3169_v45, %v9602_v47  ;;  %v3364_v55 = vpop.f32.mrf.mxu0  ;;  %v11878_v45 = vld [vmem:[#allocation61_spill] sm:$0xff] }
 0x5c9   :  { %v3365_v7 = vadd.f32 %v3364_v55, %v9837_v13  ;;  %v3468_v12 = vpop.f32.mrf.mxu1  ;;  %v4547_v22 = vmax.f32 %v4395_v39, 0.0 }
 0x5ca   :  { %v9884_v60 = vadd.f32 %v3273_v21, %v3170_v38  ;;  %v11877_v21 = vld [vmem:[#allocation40_spill] sm:$0xff] }
 0x5cb   :  { %v3469_v15 = vadd.f32 %v3468_v12, %v3365_v7 }
 0x5cd   :  { %v4237_v16 = vmul.f32 %v9661_v18, %v3469_v15 }
 0x5ce   :  { %v3275_v31 = vpop.f32.mrf.mxu3 }
 0x5cf   :  { %v4399_v27 = vadd.f32 %v9668_v54, %v4237_v16  ;;  %v3171_v51 = vpop.f32.mrf.mxu2 }
 0x5d0   :  { %v3172_v63 = vadd.f32 %v3171_v51, %v9612_v20  ;;  %v3367_v47 = vpop.f32.mrf.mxu0 }
 0x5d1   :  { %v3368_v42 = vadd.f32 %v3367_v47, %v9848_v49  ;;  %v3471_v57 = vpop.f32.mrf.mxu1  ;;  %v4551_v13 = vmax.f32 %v4399_v27, 0.0 }
 0x5d2   :  { %v9891_v3 = vadd.f32 %v3275_v31, %v3172_v63 }
 0x5d3   :  { %v3472_v5 = vadd.f32 %v3471_v57, %v3368_v42  ;;  %3638 = vmatmul.bf16.gmra.mxu3 %v11875_v26  ;;  %3727 = vmatmul.bf16.gmra.mxu0 %v11778_v30  ;;  %v9895_v58 = vpack.c.bf16 %v4551_v13, %v4547_v22  ;;  %v11880_v26 = vld [vmem:[#allocation66_spill] sm:$0xff] }
 0x5d4   :  { %3534 = vmatmul.bf16.gmra.mxu2 %v11877_v21  ;;  %3831 = vmatmul.bf16.gmra.mxu1 %v11878_v45  ;;  %v11882_v45 = vld [vmem:[#allocation44_spill] sm:$0xff] }
 0x5d5   :  { %11876 = vst [vmem:[#allocation138_spill] sm:$0xff] %v9895_v58  ;;  %v4241_v33 = vmul.f32 %v9661_v18, %v3472_v5  ;;  %v11879_v5 = vld [vmem:[#allocation46_spill] sm:$0xff]  ;;  %v11946_v58 = vld [vmem:[#allocation92_spill] sm:$0xff] }
 0x5d6   :  { %v3278_v20 = vpop.f32.mrf.mxu3 }
 0x5d7   :  { %v3174_v38 = vpop.f32.mrf.mxu2  ;;  %v4403_v30 = vadd.f32 %v9668_v54, %v4241_v33 }
 0x5d8   :  { %v3175_v55 = vadd.f32 %v3174_v38, %v9618_v6  ;;  %v3369_v49 = vpop.f32.mrf.mxu0 }
 0x5d9   :  { %v3370_v7 = vadd.f32 %v3369_v49, %v9855_v41  ;;  %v3473_v12 = vpop.f32.mrf.mxu1  ;;  %v4555_v47 = vmax.f32 %v4403_v30, 0.0 }
 0x5da   :  { %v9902_v15 = vadd.f32 %v3278_v20, %v3175_v55  ;;  %v11883_v20 = vld [vmem:[#allocation64_spill] sm:$0xff] }
 0x5db   :  { %v3474_v39 = vadd.f32 %v3473_v12, %v3370_v7 }
 0x5dd   :  { %v4245_v16 = vmul.f32 %v9661_v18, %v3474_v39 }
 0x5de   :  { %v3280_v31 = vpop.f32.mrf.mxu3 }
 0x5df   :  { %v4407_v27 = vadd.f32 %v9668_v54, %v4245_v16  ;;  %v3176_v51 = vpop.f32.mrf.mxu2 }
 0x5e0   :  { %v3177_v63 = vadd.f32 %v3176_v51, %v9628_v19  ;;  %v3372_v6 = vpop.f32.mrf.mxu0 }
 0x5e1   :  { %v3373_v22 = vadd.f32 %v3372_v6, %v9866_v10  ;;  %v3476_v42 = vpop.f32.mrf.mxu1  ;;  %v4559_v41 = vmax.f32 %v4407_v27, 0.0 }
 0x5e2   :  { %v9909_v57 = vadd.f32 %v3280_v31, %v3177_v63 }
 0x5e3   :  { %v3477_v13 = vadd.f32 %v3476_v42, %v3373_v22  ;;  %3643 = vmatmul.bf16.gmra.mxu3 %v11879_v5  ;;  %3732 = vmatmul.bf16.gmra.mxu0 %v11880_v26  ;;  %v9913_v21 = vpack.c.bf16 %v4559_v41, %v4555_v47  ;;  %v11886_v26 = vld [vmem:[#allocation48_spill] sm:$0xff] }
 0x5e4   :  { %3539 = vmatmul.bf16.gmra.mxu2 %v11882_v45  ;;  %3836 = vmatmul.bf16.gmra.mxu1 %v11883_v20  ;;  %v11887_v20 = vld [vmem:[#allocation165_spill] sm:$0xff] }
 0x5e5   :  { %11881 = vst [vmem:[#allocation140_spill] sm:$0xff] %v9913_v21  ;;  %v4249_v49 = vmul.f32 %v9661_v18, %v3477_v13  ;;  %v11884_v13 = vld [vmem:[#allocation50_spill] sm:$0xff]  ;;  %v11944_v21 = vld [vmem:[#allocation95_spill] sm:$0xff] }
 0x5e6   :  { %v3283_v19 = vpop.f32.mrf.mxu3 }
 0x5e7   :  { %v3179_v38 = vpop.f32.mrf.mxu2  ;;  %v4411_v30 = vadd.f32 %v9668_v54, %v4249_v49 }
 0x5e8   :  { %v3180_v55 = vadd.f32 %v3179_v38, %v9633_v53  ;;  %v3374_v10 = vpop.f32.mrf.mxu0 }
 0x5e9   :  { %v3375_v33 = vadd.f32 %v3374_v10, %v9873_v35  ;;  %v3478_v7 = vpop.f32.mrf.mxu1  ;;  %v4563_v6 = vmax.f32 %v4411_v30, 0.0 }
 0x5ea   :  { %v9920_v12 = vadd.f32 %v3283_v19, %v3180_v55 }
 0x5eb   :  { %v3479_v39 = vadd.f32 %v3478_v7, %v3375_v33 }
 0x5ed   :  { %v4253_v16 = vmul.f32 %v9661_v18, %v3479_v39 }
 0x5ee   :  { %v3285_v31 = vpop.f32.mrf.mxu3 }
 0x5ef   :  { %v4415_v27 = vadd.f32 %v9668_v54, %v4253_v16  ;;  %v3181_v51 = vpop.f32.mrf.mxu2  ;;  %v11888_v16 = vld [vmem:[#allocation166_spill] sm:$0xff] }
 0x5f0   :  { %v3182_v63 = vadd.f32 %v3181_v51, %v9640_v62  ;;  %v3377_v53 = vpop.f32.mrf.mxu0 }
 0x5f1   :  { %v3378_v47 = vadd.f32 %v3377_v53, %v9884_v60  ;;  %v3481_v22 = vpop.f32.mrf.mxu1  ;;  %v4567_v35 = vmax.f32 %v4415_v27, 0.0 }
 0x5f2   :  { %v9927_v42 = vadd.f32 %v3285_v31, %v3182_v63 }
 0x5f3   :  { %v3482_v41 = vadd.f32 %v3481_v22, %v3378_v47  ;;  %3648 = vmatmul.bf16.gmra.mxu3 %v11884_v13  ;;  %3737 = vmatmul.bf16.gmra.mxu0 %v11786_v36  ;;  %v9931_v5 = vpack.c.bf16 %v4567_v35, %v4563_v6  ;;  %v11889_v22 = vld [vmem:[#allocation54_spill] sm:$0xff]  ;;  %v11890_v35 = vld [vmem:[#allocation76_spill] sm:$0xff] }
 0x5f4   :  { %3544 = vmatmul.bf16.gmra.mxu2 %v11886_v26  ;;  %3841 = vmatmul.bf16.gmra.mxu1 %v11785_v59  ;;  %v11892_v13 = vld [vmem:[#allocation52_spill] sm:$0xff]  ;;  %v11893_v26 = vld [vmem:[#allocation73_spill] sm:$0xff] }
 0x5f5   :  { %11885 = vst [vmem:[#allocation143_spill] sm:$0xff] %v9931_v5  ;;  %v4257_v38 = vmul.f32 %v9661_v18, %v3482_v41 }
 0x5f6   :  { %v3288_v62 = vpop.f32.mrf.mxu3 }
 0x5f7   :  { %v3184_v45 = vpop.f32.mrf.mxu2  ;;  %v4419_v36 = vadd.f32 %v9668_v54, %v4257_v38 }
 0x5f8   :  { %v3185_v19 = vadd.f32 %v3184_v45, %v11887_v20  ;;  %v3379_v60 = vpop.f32.mrf.mxu0 }
 0x5f9   :  { %v3380_v55 = vadd.f32 %v3379_v60, %v9891_v3  ;;  %v3483_v10 = vpop.f32.mrf.mxu1  ;;  %v4571_v51 = vmax.f32 %v4419_v36, 0.0 }
 0x5fa   :  { %v3289_v49 = vadd.f32 %v3288_v62, %v3185_v19 }
 0x5fb   :  { %v3484_v33 = vadd.f32 %v3483_v10, %v3380_v55 }
 0x5fd   :  { %v4261_v7 = vmul.f32 %v9661_v18, %v3484_v33 }
 0x5fe   :  { %v3290_v39 = vpop.f32.mrf.mxu3 }
 0x5ff   :  { %v4423_v30 = vadd.f32 %v9668_v54, %v4261_v7  ;;  %v3186_v59 = vpop.f32.mrf.mxu2 }
 0x600   :  { %v3187_v31 = vadd.f32 %v3186_v59, %v11888_v16  ;;  %v3382_v27 = vpop.f32.mrf.mxu0 }
 0x601   :  { %v3383_v63 = vadd.f32 %v3382_v27, %v9902_v15  ;;  %v3486_v53 = vpop.f32.mrf.mxu1  ;;  %v4575_v6 = vmax.f32 %v4423_v30, 0.0 }
 0x602   :  { %v3291_v3 = vadd.f32 %v3290_v39, %v3187_v31 }
 0x603   :  { %v3487_v47 = vadd.f32 %v3486_v53, %v3383_v63  ;;  %3653 = vmatmul.bf16.gmra.mxu3 %v11889_v22  ;;  %3742 = vmatmul.bf16.gmra.mxu0 %v11890_v35  ;;  %v9945_v41 = vpack.c.bf16 %v4575_v6, %v4571_v51  ;;  %v11895_v53 = vld [vmem:[#allocation82_spill] sm:$0xff]  ;;  %v11898_v22 = vld [vmem:[#allocation79_spill] sm:$0xff] }
 0x604   :  { %3549 = vmatmul.bf16.gmra.mxu2 %v11892_v13  ;;  %3846 = vmatmul.bf16.gmra.mxu1 %v11893_v26 }
 0x605   :  { %11891 = vst [vmem:[#allocation22_spill] sm:$0xff] %v9945_v41  ;;  %v4265_v15 = vmul.f32 %v9661_v18, %v3487_v47  ;;  %v11897_v47 = vld [vmem:[#allocation56_spill] sm:$0xff] }
 0x606   :  { %v3614_v62 = vpop.f32.mrf.mxu3 }
 0x607   :  { %v3510_v45 = vpop.f32.mrf.mxu2  ;;  %v4427_v10 = vadd.f32 %v9668_v54, %v4265_v15 }
 0x608   :  { %v9949_v20 = vadd.f32 %v3614_v62, %v3510_v45  ;;  %v3384_v19 = vpop.f32.mrf.mxu0 }
 0x609   :  { %v3385_v60 = vadd.f32 %v3384_v19, %v9909_v57  ;;  %v3488_v38 = vpop.f32.mrf.mxu1  ;;  %v4579_v16 = vmax.f32 %v4427_v10, 0.0  ;;  %v11894_v57 = vld [vmem:[#allocation58_spill] sm:$0xff] }
 0x60b   :  { %v3489_v55 = vadd.f32 %v3488_v38, %v3385_v60 }
 0x60d   :  { %v4269_v33 = vmul.f32 %v9661_v18, %v3489_v55 }
 0x60e   :  { %v3616_v36 = vpop.f32.mrf.mxu3 }
 0x60f   :  { %v4431_v7 = vadd.f32 %v9668_v54, %v4269_v33  ;;  %v3512_v39 = vpop.f32.mrf.mxu2 }
 0x610   :  { %v9956_v30 = vadd.f32 %v3616_v36, %v3512_v39  ;;  %v3387_v59 = vpop.f32.mrf.mxu0 }
 0x611   :  { %v3388_v31 = vadd.f32 %v3387_v59, %v9920_v12  ;;  %v3491_v27 = vpop.f32.mrf.mxu1  ;;  %v4583_v51 = vmax.f32 %v4431_v7, 0.0 }
 0x613   :  { %v3492_v63 = vadd.f32 %v3491_v27, %v3388_v31  ;;  %3658 = vmatmul.bf16.gmra.mxu3 %v11894_v57  ;;  %3747 = vmatmul.bf16.gmra.mxu0 %v11895_v53  ;;  %v9961_v6 = vpack.c.bf16 %v4583_v51, %v4579_v16  ;;  %v11899_v51 = vld [vmem:[#allocation62_spill] sm:$0xff]  ;;  %v11902_v57 = vld [vmem:[#allocation60_spill] sm:$0xff]  ;;  %v11903_v53 = vld [vmem:[#allocation85_spill] sm:$0xff] }
 0x614   :  { %3554 = vmatmul.bf16.gmra.mxu2 %v11897_v47  ;;  %3851 = vmatmul.bf16.gmra.mxu1 %v11898_v22 }
 0x615   :  { %11896 = vst [vmem:[#allocation144_spill] sm:$0xff] %v9961_v6  ;;  %v4273_v45 = vmul.f32 %v9661_v18, %v3492_v63 }
 0x616   :  { %v3619_v35 = vpop.f32.mrf.mxu3 }
 0x617   :  { %v3515_v13 = vpop.f32.mrf.mxu2  ;;  %v4435_v60 = vadd.f32 %v9668_v54, %v4273_v45 }
 0x618   :  { %v3620_v26 = vadd.f32 %v3619_v35, %v3515_v13  ;;  %v3389_v62 = vpop.f32.mrf.mxu0 }
 0x619   :  { %v3390_v12 = vadd.f32 %v3389_v62, %v9927_v42  ;;  %v3493_v19 = vpop.f32.mrf.mxu1  ;;  %v4587_v39 = vmax.f32 %v4435_v60, 0.0  ;;  %v11900_v42 = vld [vmem:[#allocation88_spill] sm:$0xff] }
 0x61b   :  { %v3494_v15 = vadd.f32 %v3493_v19, %v3390_v12 }
 0x61d   :  { %v4277_v38 = vmul.f32 %v9661_v18, %v3494_v15 }
 0x61e   :  { %v3621_v55 = vpop.f32.mrf.mxu3 }
 0x61f   :  { %v4439_v10 = vadd.f32 %v9668_v54, %v4277_v38  ;;  %v3517_v33 = vpop.f32.mrf.mxu2 }
 0x620   :  { %v3622_v36 = vadd.f32 %v3621_v55, %v3517_v33  ;;  %v3392_v7 = vpop.f32.mrf.mxu0 }
 0x621   :  { %v3393_v59 = vadd.f32 %v3392_v7, %v3289_v49  ;;  %v3496_v16 = vpop.f32.mrf.mxu1  ;;  %v4591_v31 = vmax.f32 %v4439_v10, 0.0 }
 0x623   :  { %v3497_v27 = vadd.f32 %v3496_v16, %v3393_v59  ;;  %3663 = vmatmul.bf16.gmra.mxu3 %v11899_v51  ;;  %3752 = vmatmul.bf16.gmra.mxu0 %v11900_v42  ;;  %v9972_v63 = vpack.c.bf16 %v4591_v31, %v4587_v39  ;;  %v11908_v42 = vld [vmem:[#allocation91_spill] sm:$0xff] }
 0x624   :  { %3559 = vmatmul.bf16.gmra.mxu2 %v11902_v57  ;;  %3856 = vmatmul.bf16.gmra.mxu1 %v11903_v53 }
 0x625   :  { %11901 = vst [vmem:[#allocation20_spill] sm:$0xff] %v9972_v63  ;;  %v4281_v62 = vmul.f32 %v9661_v18, %v3497_v27  ;;  %v11905_v27 = vld [vmem:[#allocation94_spill] sm:$0xff] }
 0x626   :  { %v3624_v47 = vpop.f32.mrf.mxu3 }
 0x627   :  { %v3520_v22 = vpop.f32.mrf.mxu2  ;;  %v4443_v19 = vadd.f32 %v9668_v54, %v4281_v62 }
 0x628   :  { %v3625_v35 = vadd.f32 %v3624_v47, %v3520_v22  ;;  %v3394_v13 = vpop.f32.mrf.mxu0 }
 0x629   :  { %v3395_v49 = vadd.f32 %v3394_v13, %v3291_v3  ;;  %v3498_v45 = vpop.f32.mrf.mxu1  ;;  %v4595_v7 = vmax.f32 %v4443_v19, 0.0  ;;  %v11904_v3 = vld [vmem:[#allocation23_spill] sm:$0xff] }
 0x62b   :  { %v3499_v12 = vadd.f32 %v3498_v45, %v3395_v49 }
 0x62d   :  { %v4285_v15 = vmul.f32 %v9661_v18, %v3499_v12  ;;  %v11907_v18 = vld [vmem:[#allocation21_spill] sm:$0xff] }
 0x62e   :  { %v3626_v60 = vpop.f32.mrf.mxu3 }
 0x62f   :  { %v4447_v38 = vadd.f32 %v9668_v54, %v4285_v15  ;;  %v3522_v55 = vpop.f32.mrf.mxu2 }
 0x630   :  { %v3627_v10 = vadd.f32 %v3626_v60, %v3522_v55  ;;  %v3718_v33 = vpop.f32.mrf.mxu0  ;;  %v11910_v55 = vld [vmem:[#allocation98_spill] sm:$0xff] }
 0x631   :  { %v3719_v39 = vadd.f32 %v3718_v33, %v9949_v20  ;;  %v3822_v59 = vpop.f32.mrf.mxu1  ;;  %v4599_v16 = vmax.f32 %v4447_v38, 0.0  ;;  %v11909_v38 = vld [vmem:[#allocation27_spill] sm:$0xff]  ;;  %v11911_v33 = vld [vmem:[#allocation25_spill] sm:$0xff] }
 0x633   :  { %v9981_v31 = vadd.f32 %v3822_v59, %v3719_v39  ;;  %3668 = vmatmul.bf16.gmra.mxu3 %v11904_v3  ;;  %3757 = vmatmul.bf16.gmra.mxu0 %v11905_v27  ;;  %v9985_v51 = vpack.c.bf16 %v4599_v16, %v4595_v7  ;;  %v11912_v7 = vld [vmem:[#allocation96_spill] sm:$0xff] }
 0x634   :  { %3564 = vmatmul.bf16.gmra.mxu2 %v11907_v18  ;;  %3861 = vmatmul.bf16.gmra.mxu1 %v11908_v42  ;;  %v7366_v42 = vld [vmem:[#allocation6 + $0x4f8] sm:$0xf0] }
 0x635   :  { %11906 = vst [vmem:[#allocation146_spill] sm:$0xff] %v9985_v51 }
 0x636   :  { %v3629_v54 = vpop.f32.mrf.mxu3 }
 0x637   :  { %v3525_v57 = vpop.f32.mrf.mxu2 }
 0x638   :  { %v3630_v53 = vadd.f32 %v3629_v54, %v3525_v57  ;;  %v3720_v47 = vpop.f32.mrf.mxu0 }
 0x639   :  { %v3721_v20 = vadd.f32 %v3720_v47, %v9956_v30  ;;  %v3824_v22 = vpop.f32.mrf.mxu1 }
 0x63b   :  { %v9990_v13 = vadd.f32 %v3824_v22, %v3721_v20 }
 0x63e   :  { %v3631_v62 = vpop.f32.mrf.mxu3 }
 0x63f   :  { %v3527_v49 = vpop.f32.mrf.mxu2 }
 0x640   :  { %v3632_v45 = vadd.f32 %v3631_v62, %v3527_v49  ;;  %v3723_v12 = vpop.f32.mrf.mxu0  ;;  %v8007_v62 = vld [vmem:[#allocation6 + $0x5ec] sm:$0xf]  ;;  %v7494_v49 = vld [vmem:[#allocation6 + $0x5f8] sm:$0xf0] }
 0x641   :  { %v3724_v19 = vadd.f32 %v3723_v12, %v3620_v26  ;;  %v3827_v15 = vpop.f32.mrf.mxu1  ;;  %v7975_v26 = vld [vmem:[#allocation6 + $0x4ec] sm:$0xf] }
 0x642   :  { %v7369_v54 = vor.u32 %v7975_v26, %v7366_v42 }
 0x643   :  { %v9992_v60 = vadd.f32 %v3827_v15, %v3724_v19  ;;  %3673 = vmatmul.bf16.gmra.mxu3 %v11909_v38  ;;  %3762 = vmatmul.bf16.gmra.mxu0 %v11910_v55  ;;  %v7497_v15 = vor.u32 %v8007_v62, %v7494_v49  ;;  %v11913_v55 = vld [vmem:[#allocation31_spill] sm:$0xff] }
 0x644   :  { %3569 = vmatmul.bf16.gmra.mxu2 %v11911_v33  ;;  %3866 = vmatmul.bf16.gmra.mxu1 %v11912_v7  ;;  %v11915_v33 = vld [vmem:[#allocation29_spill] sm:$0xff]  ;;  %v11916_v7 = vld [vmem:[#allocation100_spill] sm:$0xff] }
 0x645   :  { %3917 = vmatpush.bf16.msra.mxu2 %v7369_v54  ;;  %4021 = vmatpush.bf16.msra.mxu3 %v7497_v15  ;;  %v11919_v15 = vld [vmem:[#allocation33_spill] sm:$0xff] }
 0x646   :  { %v3634_v30 = vpop.f32.mrf.mxu3 }
 0x647   :  { %v3530_v39 = vpop.f32.mrf.mxu2 }
 0x648   :  { %v3635_v59 = vadd.f32 %v3634_v30, %v3530_v39  ;;  %v3725_v16 = vpop.f32.mrf.mxu0 }
 0x649   :  { %v3726_v3 = vadd.f32 %v3725_v16, %v3622_v36  ;;  %v3829_v27 = vpop.f32.mrf.mxu1  ;;  %v11914_v36 = vld [vmem:[#allocation102_spill] sm:$0xff] }
 0x64b   :  { %v9998_v18 = vadd.f32 %v3829_v27, %v3726_v3 }
 0x64e   :  { %v3636_v57 = vpop.f32.mrf.mxu3 }
 0x64f   :  { %v3532_v47 = vpop.f32.mrf.mxu2 }
 0x650   :  { %v3637_v20 = vadd.f32 %v3636_v57, %v3532_v47  ;;  %v3728_v22 = vpop.f32.mrf.mxu0 }
 0x651   :  { %v3729_v12 = vadd.f32 %v3728_v22, %v3625_v35  ;;  %v3832_v19 = vpop.f32.mrf.mxu1 }
 0x653   :  { %v10000_v38 = vadd.f32 %v3832_v19, %v3729_v12  ;;  %3678 = vmatmul.bf16.gmra.mxu3 %v11913_v55  ;;  %3767 = vmatmul.bf16.gmra.mxu0 %v11914_v36  ;;  %v11917_v12 = vld [vmem:[#allocation35_spill] sm:$0xff]  ;;  %v11918_v19 = vld [vmem:[#allocation106_spill] sm:$0xff]  ;;  %v11920_v55 = vld [vmem:[#allocation104_spill] sm:$0xff] }
 0x654   :  { %3574 = vmatmul.bf16.gmra.mxu2 %v11915_v33  ;;  %3871 = vmatmul.bf16.gmra.mxu1 %v11916_v7 }
 0x656   :  { %v3639_v30 = vpop.f32.mrf.mxu3 }
 0x657   :  { %v3535_v39 = vpop.f32.mrf.mxu2 }
 0x658   :  { %v10006_v16 = vadd.f32 %v3639_v30, %v3535_v39  ;;  %v3730_v3 = vpop.f32.mrf.mxu0 }
 0x659   :  { %v3731_v27 = vadd.f32 %v3730_v3, %v3627_v10  ;;  %v3834_v35 = vpop.f32.mrf.mxu1 }
 0x65b   :  { %v10008_v26 = vadd.f32 %v3834_v35, %v3731_v27 }
 0x65e   :  { %v3641_v42 = vpop.f32.mrf.mxu3 }
 0x65f   :  { %v3537_v54 = vpop.f32.mrf.mxu2 }
 0x660   :  { %v10010_v57 = vadd.f32 %v3641_v42, %v3537_v54  ;;  %v3733_v47 = vpop.f32.mrf.mxu0 }
 0x661   :  { %v3734_v22 = vadd.f32 %v3733_v47, %v3630_v53  ;;  %v3837_v62 = vpop.f32.mrf.mxu1 }
 0x663   :  { %v10012_v49 = vadd.f32 %v3837_v62, %v3734_v22  ;;  %3683 = vmatmul.bf16.gmra.mxu3 %v11917_v12  ;;  %3772 = vmatmul.bf16.gmra.mxu0 %v11918_v19  ;;  %v11921_v62 = vld [vmem:[#allocation39_spill] sm:$0xff]  ;;  %v7971_v12 = vld [vmem:[#allocation6 + $0x4cc] sm:$0xf]  ;;  %v7350_v19 = vld [vmem:[#allocation6 + $0x4d8] sm:$0xf0] }
 0x664   :  { %3579 = vmatmul.bf16.gmra.mxu2 %v11919_v15  ;;  %3876 = vmatmul.bf16.gmra.mxu1 %v11920_v55  ;;  %v11922_v15 = vld [vmem:[#allocation37_spill] sm:$0xff]  ;;  %v7353_v55 = vor.u32 %v7971_v12, %v7350_v19 }
 0x666   :  { %v3644_v10 = vpop.f32.mrf.mxu3  ;;  %3918 = vmatpush.bf16.msra.mxu2 %v7353_v55  ;;  %v7318_v55 = vld [vmem:[#allocation6 + $0x498] sm:$0xf0] }
 0x667   :  { %v3540_v36 = vpop.f32.mrf.mxu2 }
 0x668   :  { %v10018_v33 = vadd.f32 %v3644_v10, %v3540_v36  ;;  %v3735_v7 = vpop.f32.mrf.mxu0  ;;  %v8003_v10 = vld [vmem:[#allocation6 + $0x5cc] sm:$0xf]  ;;  %v7478_v36 = vld [vmem:[#allocation6 + $0x5d8] sm:$0xf0] }
 0x669   :  { %v3736_v30 = vadd.f32 %v3735_v7, %v3632_v45  ;;  %v3839_v39 = vpop.f32.mrf.mxu1  ;;  %v11923_v45 = vld [vmem:[#allocation108_spill] sm:$0xff]  ;;  %v7481_v7 = vor.u32 %v8003_v10, %v7478_v36 }
 0x66a   :  { %v7963_v10 = vld [vmem:[#allocation6 + $0x48c] sm:$0xf] }
 0x66b   :  { %v10020_v3 = vadd.f32 %v3839_v39, %v3736_v30  ;;  %4022 = vmatpush.bf16.msra.mxu3 %v7481_v7  ;;  %v7995_v36 = vld [vmem:[#allocation6 + $0x58c] sm:$0xf] }
 0x66e   :  { %v3646_v53 = vpop.f32.mrf.mxu3 }
 0x66f   :  { %v3542_v27 = vpop.f32.mrf.mxu2 }
 0x670   :  { %v10022_v35 = vadd.f32 %v3646_v53, %v3542_v27  ;;  %v3738_v42 = vpop.f32.mrf.mxu0 }
 0x671   :  { %v3739_v54 = vadd.f32 %v3738_v42, %v3635_v59  ;;  %v3842_v47 = vpop.f32.mrf.mxu1 }
 0x673   :  { %v10024_v22 = vadd.f32 %v3842_v47, %v3739_v54  ;;  %3688 = vmatmul.bf16.gmra.mxu3 %v11921_v62  ;;  %3777 = vmatmul.bf16.gmra.mxu0 %v11824_v48  ;;  %v7967_v48 = vld [vmem:[#allocation6 + $0x4ac] sm:$0xf]  ;;  %v7334_v54 = vld [vmem:[#allocation6 + $0x4b8] sm:$0xf0] }
 0x674   :  { %3584 = vmatmul.bf16.gmra.mxu2 %v11922_v15  ;;  %3881 = vmatmul.bf16.gmra.mxu1 %v11923_v45  ;;  %v7999_v47 = vld [vmem:[#allocation6 + $0x5ac] sm:$0xf]  ;;  %v7337_v15 = vor.u32 %v7967_v48, %v7334_v54  ;;  %v7462_v45 = vld [vmem:[#allocation6 + $0x5b8] sm:$0xf0] }
 0x675   :  { %v7465_v12 = vor.u32 %v7999_v47, %v7462_v45  ;;  %v7302_v48 = vld [vmem:[#allocation6 + $0x478] sm:$0xf0]  ;;  %v7991_v54 = vld [vmem:[#allocation6 + $0x56c] sm:$0xf] }
 0x676   :  { %v3649_v30 = vpop.f32.mrf.mxu3  ;;  %3919 = vmatpush.bf16.msra.mxu2 %v7337_v15  ;;  %v11924_v15 = vld [vmem:[#allocation43_spill] sm:$0xff] }
 0x677   :  { %v3545_v59 = vpop.f32.mrf.mxu2  ;;  %4023 = vmatpush.bf16.msra.mxu3 %v7465_v12  ;;  %v7430_v12 = vld [vmem:[#allocation6 + $0x578] sm:$0xf0] }
 0x678   :  { %v10030_v39 = vadd.f32 %v3649_v30, %v3545_v59  ;;  %v3740_v53 = vpop.f32.mrf.mxu0  ;;  %v7321_v30 = vor.u32 %v7963_v10, %v7318_v55  ;;  %v7446_v59 = vld [vmem:[#allocation6 + $0x598] sm:$0xf0]  ;;  %v7433_v10 = vor.u32 %v7991_v54, %v7430_v12  ;;  %v7955_v55 = vld [vmem:[#allocation6 + $0x44c] sm:$0xf] }
 0x679   :  { %v3741_v27 = vadd.f32 %v3740_v53, %v3637_v20  ;;  %v3844_v42 = vpop.f32.mrf.mxu1  ;;  %v7449_v53 = vor.u32 %v7995_v36, %v7446_v59  ;;  %v7286_v36 = vld [vmem:[#allocation6 + $0x458] sm:$0xf0]  ;;  %v7983_v54 = vld [vmem:[#allocation6 + $0x52c] sm:$0xf] }
 0x67a   :  { %3920 = vmatpush.bf16.msra.mxu2 %v7321_v30  ;;  %v7414_v59 = vld [vmem:[#allocation6 + $0x558] sm:$0xf0] }
 0x67b   :  { %v10032_v62 = vadd.f32 %v3844_v42, %v3741_v27  ;;  %4024 = vmatpush.bf16.msra.mxu3 %v7449_v53  ;;  %v7959_v42 = vld [vmem:[#allocation6 + $0x46c] sm:$0xf]  ;;  %v7398_v12 = vld [vmem:[#allocation6 + $0x538] sm:$0xf0] }
 0x67c   :  { %v7305_v45 = vor.u32 %v7959_v42, %v7302_v48  ;;  %v7270_v48 = vld [vmem:[#allocation6 + $0x438] sm:$0xf0] }
 0x67e   :  { %v3651_v19 = vpop.f32.mrf.mxu3  ;;  %3921 = vmatpush.bf16.msra.mxu2 %v7305_v45 }
 0x67f   :  { %v3547_v7 = vpop.f32.mrf.mxu2  ;;  %4025 = vmatpush.bf16.msra.mxu3 %v7433_v10 }
 0x680   :  { %v10034_v51 = vadd.f32 %v3651_v19, %v3547_v7  ;;  %v3743_v20 = vpop.f32.mrf.mxu0  ;;  %v11925_v19 = vld [vmem:[#allocation41_spill] sm:$0xff]  ;;  %v7987_v7 = vld [vmem:[#allocation6 + $0x54c] sm:$0xf] }
 0x681   :  { %v3744_v63 = vadd.f32 %v3743_v20, %v10006_v16  ;;  %v3847_v27 = vpop.f32.mrf.mxu1 }
 0x683   :  { %v10037_v47 = vadd.f32 %v3847_v27, %v3744_v63  ;;  %3693 = vmatmul.bf16.gmra.mxu3 %v11924_v15  ;;  %3782 = vmatmul.bf16.gmra.mxu0 %v11828_v46  ;;  %v7289_v63 = vor.u32 %v7955_v55, %v7286_v36  ;;  %v7417_v46 = vor.u32 %v7987_v7, %v7414_v59  ;;  %v7254_v55 = vld [vmem:[#allocation6 + $0x418] sm:$0xf0]  ;;  %v7979_v36 = vld [vmem:[#allocation6 + $0x50c] sm:$0xf] }
 0x684   :  { %3589 = vmatmul.bf16.gmra.mxu2 %v11925_v19  ;;  %3886 = vmatmul.bf16.gmra.mxu1 %v11826_v56  ;;  %v7951_v56 = vld [vmem:[#allocation6 + $0x42c] sm:$0xf]  ;;  %v7401_v19 = vor.u32 %v7983_v54, %v7398_v12 }
 0x685   :  { %3922 = vmatpush.bf16.msra.mxu2 %v7289_v63  ;;  %4026 = vmatpush.bf16.msra.mxu3 %v7417_v46  ;;  %v7273_v45 = vor.u32 %v7951_v56, %v7270_v48  ;;  %v11926_v56 = vld [vmem:[#allocation47_spill] sm:$0xff]  ;;  %v11927_v48 = vld [vmem:[#allocation45_spill] sm:$0xff] }
 0x686   :  { %v3654_v16 = vpop.f32.mrf.mxu3 }
 0x687   :  { %v3550_v30 = vpop.f32.mrf.mxu2 }
 0x688   :  { %v10043_v20 = vadd.f32 %v3654_v16, %v3550_v30  ;;  %v3745_v53 = vpop.f32.mrf.mxu0  ;;  %v7947_v16 = vld [vmem:[#allocation6 + $0x40c] sm:$0xf] }
 0x689   :  { %v3746_v27 = vadd.f32 %v3745_v53, %v10010_v57  ;;  %v3849_v42 = vpop.f32.mrf.mxu1  ;;  %3923 = vmatpush.bf16.msra.mxu2 %v7273_v45  ;;  %4027 = vmatpush.bf16.msra.mxu3 %v7401_v19  ;;  %v7257_v30 = vor.u32 %v7947_v16, %v7254_v55  ;;  %v7382_v57 = vld [vmem:[#allocation6 + $0x518] sm:$0xf0] }
 0x68a   :  { %v7385_v53 = vor.u32 %v7979_v36, %v7382_v57 }
 0x68b   :  { %v10046_v15 = vadd.f32 %v3849_v42, %v3746_v27 }
 0x68d   :  { %3924 = vmatpush.bf16.msra.mxu2 %v7257_v30  ;;  %4028 = vmatpush.bf16.msra.mxu3 %v7385_v53  ;;  %v7620_v53 = vld [vmem:[#allocation9 + $0xf0] sm:$0xf] }
 0x68e   :  { %v3656_v10 = vpop.f32.mrf.mxu3 }
 0x68f   :  { %v3552_v7 = vpop.f32.mrf.mxu2 }
 0x690   :  { %v10048_v59 = vadd.f32 %v3656_v10, %v3552_v7  ;;  %v3748_v63 = vpop.f32.mrf.mxu0 }
 0x691   :  { %v3749_v46 = vadd.f32 %v3748_v63, %v10018_v33  ;;  %v3852_v27 = vpop.f32.mrf.mxu1  ;;  %v7556_v63 = vld [vmem:[#allocation9 + $0x70] sm:$0xf] }
 0x693   :  { %v10051_v42 = vadd.f32 %v3852_v27, %v3749_v46  ;;  %3698 = vmatmul.bf16.gmra.mxu3 %v11926_v56  ;;  %3787 = vmatmul.bf16.gmra.mxu0 %v11831_v32  ;;  %v11928_v27 = vld [vmem:[#allocation51_spill] sm:$0xff]  ;;  %v8041_v56 = vld [vmem:[#allocation9 + $0xf4] sm:$0xf0] }
 0x694   :  { %3594 = vmatmul.bf16.gmra.mxu2 %v11927_v48  ;;  %3891 = vmatmul.bf16.gmra.mxu1 %v11829_v9  ;;  %v8025_v9 = vld [vmem:[#allocation9 + $0x74] sm:$0xf0]  ;;  %v11929_v48 = vld [vmem:[#allocation49_spill] sm:$0xff] }
 0x696   :  { %v3659_v54 = vpop.f32.mrf.mxu3 }
 0x697   :  { %v3555_v45 = vpop.f32.mrf.mxu2 }
 0x698   :  { %v10057_v12 = vadd.f32 %v3659_v54, %v3555_v45  ;;  %v3750_v19 = vpop.f32.mrf.mxu0  ;;  %v7621_v54 = vor.u32 %v8041_v56, %v7620_v53  ;;  %v7604_v53 = vld [vmem:[#allocation9 + $0xd0] sm:$0xf]  ;;  %v8037_v56 = vld [vmem:[#allocation9 + $0xd4] sm:$0xf0] }
 0x699   :  { %v3751_v33 = vadd.f32 %v3750_v19, %v10022_v35  ;;  %v3854_v10 = vpop.f32.mrf.mxu1  ;;  %v7557_v35 = vor.u32 %v8025_v9, %v7556_v63  ;;  %v8023_v19 = vld [vmem:[#allocation9 + $0x64] sm:$0xf0]  ;;  %v8021_v9 = vld [vmem:[#allocation9 + $0x54] sm:$0xf0] }
 0x69a   :  { %5165 = vmatpush.bf16.msra.mxu1 %v7621_v54 }
 0x69b   :  { %v10060_v16 = vadd.f32 %v3854_v10, %v3751_v33  ;;  %5061 = vmatpush.bf16.msra.mxu0 %v7557_v35  ;;  %v7612_v33 = vld [vmem:[#allocation9 + $0xe0] sm:$0xf] }
 0x69e   :  { %v3661_v55 = vpop.f32.mrf.mxu3 }
 0x69f   :  { %v3557_v36 = vpop.f32.mrf.mxu2 }
 0x6a0   :  { %v10062_v7 = vadd.f32 %v3661_v55, %v3557_v36  ;;  %v3753_v30 = vpop.f32.mrf.mxu0  ;;  %v8039_v36 = vld [vmem:[#allocation9 + $0xe4] sm:$0xf0] }
 0x6a1   :  { %v3754_v32 = vadd.f32 %v3753_v30, %v10030_v39  ;;  %v3857_v57 = vpop.f32.mrf.mxu1  ;;  %v7548_v39 = vld [vmem:[#allocation9 + $0x60] sm:$0xf] }
 0x6a2   :  { %v7549_v55 = vor.u32 %v8023_v19, %v7548_v39  ;;  %v8019_v39 = vld [vmem:[#allocation9 + $0x44] sm:$0xf0]  ;;  %v7596_v19 = vld [vmem:[#allocation9 + $0xc0] sm:$0xf] }
 0x6a3   :  { %v10065_v46 = vadd.f32 %v3857_v57, %v3754_v32  ;;  %3703 = vmatmul.bf16.gmra.mxu3 %v11928_v27  ;;  %3792 = vmatmul.bf16.gmra.mxu0 %v11835_v25  ;;  %v7613_v25 = vor.u32 %v8039_v36, %v7612_v33 }
 0x6a4   :  { %3599 = vmatmul.bf16.gmra.mxu2 %v11929_v48  ;;  %3896 = vmatmul.bf16.gmra.mxu1 %v11832_v17  ;;  %v7540_v17 = vld [vmem:[#allocation9 + $0x50] sm:$0xf]  ;;  %v7605_v48 = vor.u32 %v8037_v56, %v7604_v53 }
 0x6a5   :  { %5062 = vmatpush.bf16.msra.mxu0 %v7549_v55  ;;  %5166 = vmatpush.bf16.msra.mxu1 %v7613_v25  ;;  %v7541_v35 = vor.u32 %v8021_v9, %v7540_v17  ;;  %v8017_v17 = vld [vmem:[#allocation9 + $0x34] sm:$0xf0]  ;;  %v7588_v9 = vld [vmem:[#allocation9 + $0xb0] sm:$0xf] }
 0x6a6   :  { %v3664_v45 = vpop.f32.mrf.mxu3 }
 0x6a7   :  { %v3560_v10 = vpop.f32.mrf.mxu2 }
 0x6a8   :  { %v10071_v30 = vadd.f32 %v3664_v45, %v3560_v10  ;;  %v3755_v32 = vpop.f32.mrf.mxu0  ;;  %v7532_v45 = vld [vmem:[#allocation9 + $0x40] sm:$0xf] }
 0x6a9   :  { %v3756_v57 = vadd.f32 %v3755_v32, %v10034_v51  ;;  %v3859_v63 = vpop.f32.mrf.mxu1  ;;  %5063 = vmatpush.bf16.msra.mxu0 %v7541_v35  ;;  %5167 = vmatpush.bf16.msra.mxu1 %v7605_v48  ;;  %v7533_v10 = vor.u32 %v8019_v39, %v7532_v45  ;;  %v8035_v51 = vld [vmem:[#allocation9 + $0xc4] sm:$0xf0]  ;;  %v11930_v35 = vld [vmem:[#allocation67_spill] sm:$0xff]  ;;  %v8033_v48 = vld [vmem:[#allocation9 + $0xb4] sm:$0xf0] }
 0x6aa   :  { %v7597_v32 = vor.u32 %v8035_v51, %v7596_v19  ;;  %v7589_v45 = vor.u32 %v8033_v48, %v7588_v9  ;;  %v7516_v39 = vld [vmem:[#allocation9 + $0x20] sm:$0xf]  ;;  %v8015_v19 = vld [vmem:[#allocation9 + $0x24] sm:$0xf0]  ;;  %v7572_v9 = vld [vmem:[#allocation9 + $0x90] sm:$0xf] }
 0x6ab   :  { %v10074_v27 = vadd.f32 %v3859_v63, %v3756_v57  ;;  %v7524_v63 = vld [vmem:[#allocation9 + $0x30] sm:$0xf]  ;;  %v7517_v51 = vor.u32 %v8015_v19, %v7516_v39  ;;  %v8029_v48 = vld [vmem:[#allocation9 + $0x94] sm:$0xf0]  ;;  %v8011_v39 = vld [vmem:[#allocation9 + $0x4] sm:$0xf0] }
 0x6ac   :  { %v7525_v56 = vor.u32 %v8017_v17, %v7524_v63  ;;  %v8013_v17 = vld [vmem:[#allocation9 + $0x14] sm:$0xf0]  ;;  %v7564_v19 = vld [vmem:[#allocation9 + $0x80] sm:$0xf] }
 0x6ad   :  { %5064 = vmatpush.bf16.msra.mxu0 %v7533_v10  ;;  %5168 = vmatpush.bf16.msra.mxu1 %v7597_v32 }
 0x6ae   :  { %v3666_v54 = vpop.f32.mrf.mxu3 }
 0x6af   :  { %v3562_v33 = vpop.f32.mrf.mxu2 }
 0x6b0   :  { %v10076_v36 = vadd.f32 %v3666_v54, %v3562_v33  ;;  %v3758_v55 = vpop.f32.mrf.mxu0  ;;  %v11931_v54 = vld [vmem:[#allocation65_spill] sm:$0xff]  ;;  %v7580_v33 = vld [vmem:[#allocation9 + $0xa0] sm:$0xf] }
 0x6b1   :  { %v3759_v25 = vadd.f32 %v3758_v55, %v10043_v20  ;;  %v3862_v57 = vpop.f32.mrf.mxu1  ;;  %5065 = vmatpush.bf16.msra.mxu0 %v7525_v56  ;;  %5169 = vmatpush.bf16.msra.mxu1 %v7589_v45  ;;  %v8031_v55 = vld [vmem:[#allocation9 + $0xa4] sm:$0xf0] }
 0x6b3   :  { %v10079_v53 = vadd.f32 %v3862_v57, %v3759_v25  ;;  %3797 = vmatmul.bf16.gmra.mxu0 %v11840_v24  ;;  %4029 = vmatmul.bf16.vlgmr.msra.gmra.mxu3 %v11930_v35  ;;  %v7581_v25 = vor.u32 %v8031_v55, %v7580_v33 }
 0x6b4   :  { %3901 = vmatmul.bf16.gmra.mxu1 %v11837_v0  ;;  %3925 = vmatmul.bf16.vlgmr.msra.gmra.mxu2 %v11931_v54  ;;  %v7508_v0 = vld [vmem:[#allocation9 + $0x10] sm:$0xf]  ;;  %v7573_v54 = vor.u32 %v8029_v48, %v7572_v9 }
 0x6b5   :  { %5066 = vmatpush.bf16.msra.mxu0 %v7517_v51  ;;  %5170 = vmatpush.bf16.msra.mxu1 %v7581_v25  ;;  %v7509_v56 = vor.u32 %v8013_v17, %v7508_v0  ;;  %v11933_v0 = vld [vmem:[#allocation69_spill] sm:$0xff] }
 0x6b6   :  { %v3669_v20 = vpop.f32.mrf.mxu3 }
 0x6b7   :  { %v3565_v10 = vpop.f32.mrf.mxu2 }
 0x6b8   :  { %v10085_v32 = vadd.f32 %v3669_v20, %v3565_v10  ;;  %v3760_v24 = vpop.f32.mrf.mxu0  ;;  %v7500_v20 = vld [vmem:[#allocation9] sm:$0xf] }
 0x6b9   :  { %v3761_v57 = vadd.f32 %v3760_v24, %v10048_v59  ;;  %v3864_v63 = vpop.f32.mrf.mxu1  ;;  %5067 = vmatpush.bf16.msra.mxu0 %v7509_v56  ;;  %5171 = vmatpush.bf16.msra.mxu1 %v7573_v54  ;;  %v7501_v10 = vor.u32 %v8011_v39, %v7500_v20  ;;  %v8027_v59 = vld [vmem:[#allocation9 + $0x84] sm:$0xf0] }
 0x6ba   :  { %v7565_v24 = vor.u32 %v8027_v59, %v7564_v19  ;;  %v11935_v59 = vld [vmem:[#allocation74_spill] sm:$0xff] }
 0x6bb   :  { %v10088_v35 = vadd.f32 %v3864_v63, %v3761_v57  ;;  %v11932_v63 = vld [vmem:[#allocation71_spill] sm:$0xff] }
 0x6bd   :  { %5068 = vmatpush.bf16.msra.mxu0 %v7501_v10  ;;  %5172 = vmatpush.bf16.msra.mxu1 %v7565_v24 }
 0x6be   :  { %v3671_v45 = vpop.f32.mrf.mxu3 }
 0x6bf   :  { %v3567_v33 = vpop.f32.mrf.mxu2 }
 0x6c0   :  { %v3672_v55 = vadd.f32 %v3671_v45, %v3567_v33  ;;  %v3763_v51 = vpop.f32.mrf.mxu0 }
 0x6c1   :  { %v3764_v25 = vadd.f32 %v3763_v51, %v10057_v12  ;;  %v3867_v6 = vpop.f32.mrf.mxu1 }
 0x6c3   :  { %v10091_v57 = vadd.f32 %v3867_v6, %v3764_v25  ;;  %3802 = vmatmul.bf16.gmra.mxu0 %v11845_v4  ;;  %4034 = vmatmul.bf16.gmra.mxu3 %v11932_v63 }
 0x6c4   :  { %3906 = vmatmul.bf16.gmra.mxu1 %v11842_v14  ;;  %3930 = vmatmul.bf16.gmra.mxu2 %v11933_v0  ;;  %v11934_v14 = vld [vmem:[#allocation77_spill] sm:$0xff] }
 0x6c6   :  { %v3674_v17 = vpop.f32.mrf.mxu3 }
 0x6c7   :  { %v3570_v9 = vpop.f32.mrf.mxu2 }
 0x6c8   :  { %v3675_v56 = vadd.f32 %v3674_v17, %v3570_v9  ;;  %v3765_v48 = vpop.f32.mrf.mxu0 }
 0x6c9   :  { %v3766_v54 = vadd.f32 %v3765_v48, %v10062_v7  ;;  %v3869_v12 = vpop.f32.mrf.mxu1 }
 0x6cb   :  { %v10098_v45 = vadd.f32 %v3869_v12, %v3766_v54 }
 0x6ce   :  { %v3676_v20 = vpop.f32.mrf.mxu3 }
 0x6cf   :  { %v3572_v6 = vpop.f32.mrf.mxu2 }
 0x6d0   :  { %v3677_v39 = vadd.f32 %v3676_v20, %v3572_v6  ;;  %v3768_v19 = vpop.f32.mrf.mxu0  ;;  %v11937_v6 = vld [vmem:[#allocation112_spill] sm:$0xff] }
 0x6d1   :  { %v3769_v4 = vadd.f32 %v3768_v19, %v10071_v30  ;;  %v3872_v33 = vpop.f32.mrf.mxu1  ;;  %v11938_v19 = vld [vmem:[#allocation80_spill] sm:$0xff] }
 0x6d3   :  { %v10101_v10 = vadd.f32 %v3872_v33, %v3769_v4  ;;  %3807 = vmatmul.bf16.gmra.mxu0 %v11850_v28  ;;  %4039 = vmatmul.bf16.gmra.mxu3 %v11934_v14  ;;  %v11939_v4 = vld [vmem:[#allocation158_spill] sm:$0xff] }
 0x6d4   :  { %3911 = vmatmul.bf16.gmra.mxu1 %v11847_v2  ;;  %3935 = vmatmul.bf16.gmra.mxu2 %v11935_v59  ;;  %v11936_v2 = vld [vmem:[#allocation83_spill] sm:$0xff] }
 0x6d6   :  { %v3679_v7 = vpop.f32.mrf.mxu3 }
 0x6d7   :  { %v3575_v51 = vpop.f32.mrf.mxu2 }
 0x6d8   :  { %v3680_v24 = vadd.f32 %v3679_v7, %v3575_v51  ;;  %v3770_v25 = vpop.f32.mrf.mxu0 }
 0x6d9   :  { %v3771_v63 = vadd.f32 %v3770_v25, %v10076_v36  ;;  %v3874_v0 = vpop.f32.mrf.mxu1 }
 0x6db   :  { %v10108_v17 = vadd.f32 %v3874_v0, %v3771_v63 }
 0x6de   :  { %v3681_v30 = vpop.f32.mrf.mxu3 }
 0x6df   :  { %v3577_v9 = vpop.f32.mrf.mxu2 }
 0x6e0   :  { %v3682_v48 = vadd.f32 %v3681_v30, %v3577_v9  ;;  %v3773_v54 = vpop.f32.mrf.mxu0 }
 0x6e1   :  { %v3774_v28 = vadd.f32 %v3773_v54, %v10085_v32  ;;  %v3877_v12 = vpop.f32.mrf.mxu1 }
 0x6e3   :  { %v10111_v20 = vadd.f32 %v3877_v12, %v3774_v28  ;;  %4044 = vmatmul.bf16.gmra.mxu3 %v11936_v2  ;;  %5069 = vmatmul.bf16.vlgmr.msra.gmra.mxu0 %v11937_v6  ;;  %v11940_v12 = vld [vmem:[#allocation89_spill] sm:$0xff] }
 0x6e4   :  { %3940 = vmatmul.bf16.gmra.mxu2 %v11938_v19  ;;  %5173 = vmatmul.bf16.vlgmr.msra.gmra.mxu1 %v11939_v4  ;;  %v11941_v2 = vld [vmem:[#allocation117_spill] sm:$0xff]  ;;  %v11942_v19 = vld [vmem:[#allocation86_spill] sm:$0xff] }
 0x6e6   :  { %v3684_v36 = vpop.f32.mrf.mxu3 }
 0x6e7   :  { %v3580_v33 = vpop.f32.mrf.mxu2 }
 0x6e8   :  { %v3685_v14 = vadd.f32 %v3684_v36, %v3580_v33  ;;  %v3775_v59 = vpop.f32.mrf.mxu0  ;;  %v11943_v36 = vld [vmem:[#allocation116_spill] sm:$0xff] }
 0x6e9   :  { %v3776_v7 = vadd.f32 %v3775_v59, %v3672_v55  ;;  %v3879_v51 = vpop.f32.mrf.mxu1 }
 0x6eb   :  { %v10117_v25 = vadd.f32 %v3879_v51, %v3776_v7 }
 0x6ee   :  { %v3686_v32 = vpop.f32.mrf.mxu3 }
 0x6ef   :  { %v3582_v63 = vpop.f32.mrf.mxu2 }
 0x6f0   :  { %v3687_v0 = vadd.f32 %v3686_v32, %v3582_v63  ;;  %v3778_v30 = vpop.f32.mrf.mxu0 }
 0x6f1   :  { %v3779_v9 = vadd.f32 %v3778_v30, %v3675_v56  ;;  %v3882_v54 = vpop.f32.mrf.mxu1 }
 0x6f3   :  { %v10119_v28 = vadd.f32 %v3882_v54, %v3779_v9  ;;  %4049 = vmatmul.bf16.gmra.mxu3 %v11940_v12  ;;  %5074 = vmatmul.bf16.gmra.mxu0 %v11941_v2 }
 0x6f4   :  { %3945 = vmatmul.bf16.gmra.mxu2 %v11942_v19  ;;  %5178 = vmatmul.bf16.gmra.mxu1 %v11943_v36  ;;  %v11945_v19 = vld [vmem:[#allocation122_spill] sm:$0xff] }
 0x6f6   :  { %v3689_v55 = vpop.f32.mrf.mxu3 }
 0x6f7   :  { %v3585_v33 = vpop.f32.mrf.mxu2 }
 0x6f8   :  { %v3690_v59 = vadd.f32 %v3689_v55, %v3585_v33  ;;  %v3780_v7 = vpop.f32.mrf.mxu0  ;;  %v11947_v55 = vld [vmem:[#allocation114_spill] sm:$0xff] }
 0x6f9   :  { %v3781_v51 = vadd.f32 %v3780_v7, %v3677_v39  ;;  %v3884_v41 = vpop.f32.mrf.mxu1 }
 0x6fb   :  { %v10125_v32 = vadd.f32 %v3884_v41, %v3781_v51 }
 0x6fe   :  { %v3691_v56 = vpop.f32.mrf.mxu3 }
 0x6ff   :  { %v3587_v63 = vpop.f32.mrf.mxu2 }
 0x700   :  { %v3692_v30 = vadd.f32 %v3691_v56, %v3587_v63  ;;  %v3783_v9 = vpop.f32.mrf.mxu0 }
 0x701   :  { %v3784_v54 = vadd.f32 %v3783_v9, %v3680_v24  ;;  %v3887_v12 = vpop.f32.mrf.mxu1 }
 0x703   :  { %v10127_v5 = vadd.f32 %v3887_v12, %v3784_v54  ;;  %4054 = vmatmul.bf16.gmra.mxu3 %v11944_v21  ;;  %5079 = vmatmul.bf16.gmra.mxu0 %v11945_v19 }
 0x704   :  { %3950 = vmatmul.bf16.gmra.mxu2 %v11946_v58  ;;  %5183 = vmatmul.bf16.gmra.mxu1 %v11947_v55  ;;  %v11949_v58 = vld [vmem:[#allocation127_spill] sm:$0xff] }
 0x706   :  { %v3694_v39 = vpop.f32.mrf.mxu3 }
 0x707   :  { %v3590_v33 = vpop.f32.mrf.mxu2 }
 0x708   :  { %v3695_v41 = vadd.f32 %v3694_v39, %v3590_v33  ;;  %v3785_v7 = vpop.f32.mrf.mxu0  ;;  %v11951_v39 = vld [vmem:[#allocation159_spill] sm:$0xff] }
 0x709   :  { %v3786_v51 = vadd.f32 %v3785_v7, %v3682_v48  ;;  %v3889_v43 = vpop.f32.mrf.mxu1 }
 0x70b   :  { %v10133_v56 = vadd.f32 %v3889_v43, %v3786_v51 }
 0x70e   :  { %v3696_v24 = vpop.f32.mrf.mxu3 }
 0x70f   :  { %v3592_v63 = vpop.f32.mrf.mxu2 }
 0x710   :  { %v3697_v9 = vadd.f32 %v3696_v24, %v3592_v63  ;;  %v3788_v54 = vpop.f32.mrf.mxu0 }
 0x711   :  { %v3789_v12 = vadd.f32 %v3788_v54, %v3685_v14  ;;  %v3892_v21 = vpop.f32.mrf.mxu1 }
 0x713   :  { %v10135_v44 = vadd.f32 %v3892_v21, %v3789_v12  ;;  %4059 = vmatmul.bf16.gmra.mxu3 %v11948_v23  ;;  %5084 = vmatmul.bf16.gmra.mxu0 %v11949_v58  ;;  %v11953_v58 = vld [vmem:[#allocation103_spill] sm:$0xff] }
 0x714   :  { %3955 = vmatmul.bf16.gmra.mxu2 %v11950_v8  ;;  %5188 = vmatmul.bf16.gmra.mxu1 %v11951_v39  ;;  %v11954_v8 = vld [vmem:[#allocation132_spill] sm:$0xff]  ;;  %v11955_v39 = vld [vmem:[#allocation101_spill] sm:$0xff] }
 0x716   :  { %v3699_v48 = vpop.f32.mrf.mxu3 }
 0x717   :  { %v3595_v33 = vpop.f32.mrf.mxu2 }
 0x718   :  { %v3700_v43 = vadd.f32 %v3699_v48, %v3595_v33  ;;  %v3790_v7 = vpop.f32.mrf.mxu0  ;;  %v11956_v48 = vld [vmem:[#allocation160_spill] sm:$0xff] }
 0x719   :  { %v3791_v51 = vadd.f32 %v3790_v7, %v3687_v0  ;;  %v3894_v37 = vpop.f32.mrf.mxu1 }
 0x71b   :  { %v10141_v24 = vadd.f32 %v3894_v37, %v3791_v51 }
 0x71e   :  { %v3701_v14 = vpop.f32.mrf.mxu3 }
 0x71f   :  { %v3597_v63 = vpop.f32.mrf.mxu2 }
 0x720   :  { %v3702_v54 = vadd.f32 %v3701_v14, %v3597_v63  ;;  %v3793_v12 = vpop.f32.mrf.mxu0 }
 0x721   :  { %v3794_v21 = vadd.f32 %v3793_v12, %v3690_v59  ;;  %v3897_v23 = vpop.f32.mrf.mxu1 }
 0x723   :  { %v10143_v55 = vadd.f32 %v3897_v23, %v3794_v21  ;;  %4064 = vmatmul.bf16.gmra.mxu3 %v11953_v58  ;;  %5089 = vmatmul.bf16.gmra.mxu0 %v11954_v8 }
 0x724   :  { %3960 = vmatmul.bf16.gmra.mxu2 %v11955_v39  ;;  %5193 = vmatmul.bf16.gmra.mxu1 %v11956_v48  ;;  %v11959_v39 = vld [vmem:[#allocation107_spill] sm:$0xff]  ;;  %v11960_v48 = vld [vmem:[#allocation137_spill] sm:$0xff] }
 0x725   :  { %11952 = vst [vmem:[#allocation26_spill] sm:$0xff] %v10143_v55  ;;  %v11961_v55 = vld [vmem:[#allocation105_spill] sm:$0xff] }
 0x726   :  { %v3704_v0 = vpop.f32.mrf.mxu3 }
 0x727   :  { %v3600_v33 = vpop.f32.mrf.mxu2 }
 0x728   :  { %v3705_v37 = vadd.f32 %v3704_v0, %v3600_v33  ;;  %v3795_v7 = vpop.f32.mrf.mxu0  ;;  %v11962_v0 = vld [vmem:[#allocation161_spill] sm:$0xff] }
 0x729   :  { %v3796_v51 = vadd.f32 %v3795_v7, %v3692_v30  ;;  %v3899_v19 = vpop.f32.mrf.mxu1 }
 0x72b   :  { %v10149_v14 = vadd.f32 %v3899_v19, %v3796_v51 }
 0x72d   :  { %11957 = vst [vmem:[#allocation147_spill] sm:$0xff] %v10149_v14 }
 0x72e   :  { %v3706_v59 = vpop.f32.mrf.mxu3 }
 0x72f   :  { %v3602_v63 = vpop.f32.mrf.mxu2 }
 0x730   :  { %v10151_v12 = vadd.f32 %v3706_v59, %v3602_v63  ;;  %v3798_v21 = vpop.f32.mrf.mxu0 }
 0x731   :  { %v3799_v58 = vadd.f32 %v3798_v21, %v3695_v41  ;;  %v3902_v23 = vpop.f32.mrf.mxu1  ;;  %v8129_v21 = vld [vmem:[#allocation8] sm:$0xf] }
 0x733   :  { %v10153_v8 = vadd.f32 %v3902_v23, %v3799_v58  ;;  %4069 = vmatmul.bf16.gmra.mxu3 %v11959_v39  ;;  %5094 = vmatmul.bf16.gmra.mxu0 %v11960_v48  ;;  %v10162_v58 = vperm.slane %v8129_v21, 3 }
 0x734   :  { %3965 = vmatmul.bf16.gmra.mxu2 %v11961_v55  ;;  %5198 = vmatmul.bf16.gmra.mxu1 %v11962_v0  ;;  %v8130_v55 = vld [vmem:[%s11170_s3] sm:$0xf] }
 0x735   :  { %11958 = vst [vmem:[#allocation24_spill] sm:$0xff] %v10153_v8  ;;  %v10168_v0 = vperm.slane %v8130_v55, 3  ;;  %v11968_v55 = vld [vmem:[#allocation93_spill] sm:$0xff] }
 0x736   :  { %v4030_v30 = vpop.f32.mrf.mxu3 }
 0x737   :  { %v3926_v19 = vpop.f32.mrf.mxu2 }
 0x738   :  { %v3927_v33 = vadd.f32 %v3926_v19, %v9981_v31  ;;  %v3800_v7 = vpop.f32.mrf.mxu0 }
 0x739   :  { %v3801_v51 = vadd.f32 %v3800_v7, %v3697_v9  ;;  %v3904_v59 = vpop.f32.mrf.mxu1 }
 0x73a   :  { %v4031_v63 = vadd.f32 %v4030_v30, %v3927_v33 }
 0x73b   :  { %v10160_v41 = vadd.f32 %v3904_v59, %v3801_v51  ;;  %v11965_v51 = vld [vmem:[#allocation111_spill] sm:$0xff]  ;;  %v11966_v59 = vld [vmem:[#allocation142_spill] sm:$0xff] }
 0x73c   :  { %v4138_v48 = vmul.f32 %v10162_v58, %v4031_v63 }
 0x73d   :  { %11963 = vst [vmem:[#allocation149_spill] sm:$0xff] %v10160_v41  ;;  %v11967_v41 = vld [vmem:[#allocation109_spill] sm:$0xff] }
 0x73e   :  { %v4032_v23 = vpop.f32.mrf.mxu3  ;;  %v4300_v63 = vadd.f32 %v10168_v0, %v4138_v48 }
 0x73f   :  { %v3928_v39 = vpop.f32.mrf.mxu2 }
 0x740   :  { %v3929_v31 = vadd.f32 %v3928_v39, %v9990_v13  ;;  %v3803_v9 = vpop.f32.mrf.mxu0 }
 0x741   :  { %v3804_v19 = vadd.f32 %v3803_v9, %v3700_v43  ;;  %v3907_v30 = vpop.f32.mrf.mxu1  ;;  %v4452_v9 = vmax.f32 %v4300_v63, 0.0 }
 0x742   :  { %v4033_v33 = vadd.f32 %v4032_v23, %v3929_v31 }
 0x743   :  { %v10171_v7 = vadd.f32 %v3907_v30, %v3804_v19  ;;  %4074 = vmatmul.bf16.gmra.mxu3 %v11965_v51  ;;  %5099 = vmatmul.bf16.gmra.mxu0 %v11966_v59 }
 0x744   :  { %v4142_v21 = vmul.f32 %v10162_v58, %v4033_v33  ;;  %3970 = vmatmul.bf16.gmra.mxu2 %v11967_v41  ;;  %5203 = vmatmul.bf16.gmra.mxu1 %v11968_v55 }
 0x745   :  { %11964 = vst [vmem:[#allocation30_spill] sm:$0xff] %v10171_v7 }
 0x746   :  { %v4304_v13 = vadd.f32 %v10168_v0, %v4142_v21  ;;  %v4035_v39 = vpop.f32.mrf.mxu3 }
 0x747   :  { %v3931_v43 = vpop.f32.mrf.mxu2 }
 0x748   :  { %v4456_v23 = vmax.f32 %v4304_v13, 0.0  ;;  %v3932_v31 = vadd.f32 %v3931_v43, %v9992_v60  ;;  %v3805_v19 = vpop.f32.mrf.mxu0  ;;  %v11970_v60 = vld [vmem:[#allocation145_spill] sm:$0xff]  ;;  %v11971_v43 = vld [vmem:[#allocation154_spill] sm:$0xff] }
 0x749   :  { %v3806_v30 = vadd.f32 %v3805_v19, %v3702_v54  ;;  %v3909_v51 = vpop.f32.mrf.mxu1 }
 0x74a   :  { %v10181_v59 = vpack.c.bf16 %v4456_v23, %v4452_v9  ;;  %v4036_v48 = vadd.f32 %v4035_v39, %v3932_v31 }
 0x74b   :  { %v10183_v7 = vadd.f32 %v3909_v51, %v3806_v30 }
 0x74c   :  { %11969 = vst [vmem:[#allocation150_spill] sm:$0xff] %v10181_v59  ;;  %v4146_v55 = vmul.f32 %v10162_v58, %v4036_v48 }
 0x74e   :  { %v4037_v33 = vpop.f32.mrf.mxu3  ;;  %v4308_v54 = vadd.f32 %v10168_v0, %v4146_v55 }
 0x74f   :  { %v3933_v41 = vpop.f32.mrf.mxu2 }
 0x750   :  { %v3934_v21 = vadd.f32 %v3933_v41, %v9998_v18  ;;  %v3808_v8 = vpop.f32.mrf.mxu0 }
 0x751   :  { %v3809_v14 = vadd.f32 %v3808_v8, %v3705_v37  ;;  %v3912_v63 = vpop.f32.mrf.mxu1  ;;  %v4460_v37 = vmax.f32 %v4308_v54, 0.0  ;;  %v11972_v54 = vld [vmem:[#allocation121_spill] sm:$0xff] }
 0x752   :  { %v4038_v13 = vadd.f32 %v4037_v33, %v3934_v21 }
 0x753   :  { %v10187_v36 = vadd.f32 %v3912_v63, %v3809_v14  ;;  %4079 = vmatmul.bf16.gmra.mxu3 %v11723_v40  ;;  %5104 = vmatmul.bf16.gmra.mxu0 %v11970_v60 }
 0x754   :  { %v4150_v39 = vmul.f32 %v10162_v58, %v4038_v13  ;;  %3975 = vmatmul.bf16.gmra.mxu2 %v11724_v50  ;;  %5208 = vmatmul.bf16.gmra.mxu1 %v11971_v43 }
 0x756   :  { %v4312_v18 = vadd.f32 %v10168_v0, %v4150_v39  ;;  %v4040_v9 = vpop.f32.mrf.mxu3 }
 0x757   :  { %v3936_v8 = vpop.f32.mrf.mxu2 }
 0x758   :  { %v3937_v14 = vadd.f32 %v3936_v8, %v10000_v38  ;;  %v3810_v23 = vpop.f32.mrf.mxu0  ;;  %v4464_v31 = vmax.f32 %v4312_v18, 0.0  ;;  %v11975_v8 = vld [vmem:[#allocation155_spill] sm:$0xff] }
 0x759   :  { %v3811_v40 = vadd.f32 %v3810_v23, %v10151_v12  ;;  %v3914_v19 = vpop.f32.mrf.mxu1  ;;  %v11973_v12 = vld [vmem:[#allocation148_spill] sm:$0xff] }
 0x75a   :  { %v4041_v30 = vadd.f32 %v4040_v9, %v3937_v14  ;;  %v10198_v55 = vpack.c.bf16 %v4464_v31, %v4460_v37  ;;  %v11974_v9 = vld [vmem:[#allocation119_spill] sm:$0xff] }
 0x75b   :  { %v10200_v51 = vadd.f32 %v3914_v19, %v3811_v40 }
 0x75c   :  { %v4154_v33 = vmul.f32 %v10162_v58, %v4041_v30 }
 0x75e   :  { %v4042_v50 = vpop.f32.mrf.mxu3  ;;  %v4316_v39 = vadd.f32 %v10168_v0, %v4154_v33 }
 0x75f   :  { %v3938_v48 = vpop.f32.mrf.mxu2 }
 0x760   :  { %v3939_v41 = vadd.f32 %v3938_v48, %v10008_v26  ;;  %v5070_v21 = vpop.f32.mrf.mxu0  ;;  %v4468_v23 = vmax.f32 %v4316_v39, 0.0 }
 0x761   :  { %v5174_v63 = vpop.f32.mrf.mxu1 }
 0x762   :  { %v4043_v13 = vadd.f32 %v4042_v50, %v3939_v41  ;;  %v10204_v38 = vadd.f32 %v5174_v63, %v5070_v21 }
 0x763   :  { %4084 = vmatmul.bf16.gmra.mxu3 %v11972_v54  ;;  %5109 = vmatmul.bf16.gmra.mxu0 %v11973_v12 }
 0x764   :  { %v4158_v18 = vmul.f32 %v10162_v58, %v4043_v13  ;;  %3980 = vmatmul.bf16.gmra.mxu2 %v11974_v9  ;;  %5213 = vmatmul.bf16.gmra.mxu1 %v11975_v8  ;;  %v8057_v8 = vld [vmem:[#allocation9 + $0x174] sm:$0xf0] }
 0x766   :  { %v4320_v37 = vadd.f32 %v10168_v0, %v4158_v18  ;;  %v4045_v26 = vpop.f32.mrf.mxu3 }
 0x767   :  { %v3941_v14 = vpop.f32.mrf.mxu2 }
 0x768   :  { %v3942_v31 = vadd.f32 %v3941_v14, %v10012_v49  ;;  %v5072_v40 = vpop.f32.mrf.mxu0  ;;  %v4472_v19 = vmax.f32 %v4320_v37, 0.0  ;;  %v11977_v49 = vld [vmem:[#allocation126_spill] sm:$0xff]  ;;  %v11978_v37 = vld [vmem:[#allocation151_spill] sm:$0xff] }
 0x769   :  { %v5176_v30 = vpop.f32.mrf.mxu1 }
 0x76a   :  { %v4046_v50 = vadd.f32 %v4045_v26, %v3942_v31  ;;  %v10214_v48 = vadd.f32 %v5176_v30, %v5072_v40  ;;  %v10216_v33 = vpack.c.bf16 %v4472_v19, %v4468_v23  ;;  %v11979_v23 = vld [vmem:[#allocation124_spill] sm:$0xff] }
 0x76b   :  { %v11980_v31 = vld [vmem:[#allocation156_spill] sm:$0xff] }
 0x76c   :  { %11976 = vst [vmem:[#allocation28_spill] sm:$0xff] %v10216_v33  ;;  %v4162_v63 = vmul.f32 %v10162_v58, %v4046_v50 }
 0x76e   :  { %v4047_v41 = vpop.f32.mrf.mxu3  ;;  %v4324_v26 = vadd.f32 %v10168_v0, %v4162_v63 }
 0x76f   :  { %v3943_v21 = vpop.f32.mrf.mxu2 }
 0x770   :  { %v3944_v13 = vadd.f32 %v3943_v21, %v10020_v3  ;;  %v5075_v54 = vpop.f32.mrf.mxu0  ;;  %v4476_v30 = vmax.f32 %v4324_v26, 0.0 }
 0x771   :  { %v5179_v18 = vpop.f32.mrf.mxu1 }
 0x772   :  { %v4048_v9 = vadd.f32 %v4047_v41, %v3944_v13  ;;  %v10220_v39 = vadd.f32 %v5179_v18, %v5075_v54 }
 0x773   :  { %4089 = vmatmul.bf16.gmra.mxu3 %v11977_v49  ;;  %5114 = vmatmul.bf16.gmra.mxu0 %v11978_v37  ;;  %v7684_v37 = vld [vmem:[#allocation9 + $0x170] sm:$0xf] }
 0x774   :  { %v4166_v14 = vmul.f32 %v10162_v58, %v4048_v9  ;;  %3985 = vmatmul.bf16.gmra.mxu2 %v11979_v23  ;;  %5218 = vmatmul.bf16.gmra.mxu1 %v11980_v31  ;;  %v7685_v12 = vor.u32 %v8057_v8, %v7684_v37  ;;  %v7748_v8 = vld [vmem:[#allocation9 + $0x1f0] sm:$0xf]  ;;  %v8073_v37 = vld [vmem:[#allocation9 + $0x1f4] sm:$0xf0] }
 0x776   :  { %v4328_v40 = vadd.f32 %v10168_v0, %v4166_v14  ;;  %v4050_v3 = vpop.f32.mrf.mxu3  ;;  %5269 = vmatpush.bf16.msrb.mxu2 %v7685_v12 }
 0x777   :  { %v3946_v19 = vpop.f32.mrf.mxu2 }
 0x778   :  { %v3947_v50 = vadd.f32 %v3946_v19, %v10024_v22  ;;  %v5077_v41 = vpop.f32.mrf.mxu0  ;;  %v4480_v21 = vmax.f32 %v4328_v40, 0.0  ;;  %v11983_v40 = vld [vmem:[#allocation131_spill] sm:$0xff] }
 0x779   :  { %v5181_v13 = vpop.f32.mrf.mxu1 }
 0x77a   :  { %v4051_v54 = vadd.f32 %v4050_v3, %v3947_v50  ;;  %v10230_v18 = vadd.f32 %v5181_v13, %v5077_v41  ;;  %v10232_v63 = vpack.c.bf16 %v4480_v21, %v4476_v30  ;;  %v11984_v3 = vld [vmem:[#allocation152_spill] sm:$0xff]  ;;  %v11985_v41 = vld [vmem:[#allocation129_spill] sm:$0xff]  ;;  %v11986_v21 = vld [vmem:[#allocation162_spill] sm:$0xff] }
 0x77c   :  { %11981 = vst [vmem:[#allocation34_spill] sm:$0xff] %v10232_v63  ;;  %v4170_v23 = vmul.f32 %v10162_v58, %v4051_v54  ;;  %v7749_v54 = vor.u32 %v8073_v37, %v7748_v8 }
 0x77e   :  { %v4052_v9 = vpop.f32.mrf.mxu3  ;;  %v4332_v30 = vadd.f32 %v10168_v0, %v4170_v23  ;;  %5373 = vmatpush.bf16.msrb.mxu3 %v7749_v54  ;;  %v11992_v54 = vld [vmem:[#allocation134_spill] sm:$0xff] }
 0x77f   :  { %v3948_v49 = vpop.f32.mrf.mxu2 }
 0x780   :  { %v3949_v31 = vadd.f32 %v3948_v49, %v10032_v62  ;;  %v5080_v14 = vpop.f32.mrf.mxu0 }
 0x781   :  { %v5184_v26 = vpop.f32.mrf.mxu1 }
 0x782   :  { %v4053_v22 = vadd.f32 %v4052_v9, %v3949_v31  ;;  %v10236_v19 = vadd.f32 %v5184_v26, %v5080_v14  ;;  %v4484_v9 = vmax.f32 %v4332_v30, 0.0 }
 0x783   :  { %4094 = vmatmul.bf16.gmra.mxu3 %v11983_v40  ;;  %5119 = vmatmul.bf16.gmra.mxu0 %v11984_v3 }
 0x784   :  { %11982 = vst [vmem:[#allocation55_spill] sm:$0xff] %v10236_v19  ;;  %v4174_v50 = vmul.f32 %v10162_v58, %v4053_v22  ;;  %3990 = vmatmul.bf16.gmra.mxu2 %v11985_v41  ;;  %5223 = vmatmul.bf16.gmra.mxu1 %v11986_v21 }
 0x786   :  { %v4336_v62 = vadd.f32 %v10168_v0, %v4174_v50  ;;  %v4055_v13 = vpop.f32.mrf.mxu3 }
 0x787   :  { %v3951_v31 = vpop.f32.mrf.mxu2 }
 0x788   :  { %v3952_v49 = vadd.f32 %v3951_v31, %v10037_v47  ;;  %v5082_v14 = vpop.f32.mrf.mxu0  ;;  %v4488_v26 = vmax.f32 %v4336_v62, 0.0  ;;  %v11990_v47 = vld [vmem:[#allocation136_spill] sm:$0xff]  ;;  %v11991_v62 = vld [vmem:[#allocation153_spill] sm:$0xff] }
 0x789   :  { %v5186_v23 = vpop.f32.mrf.mxu1 }
 0x78a   :  { %v4056_v22 = vadd.f32 %v4055_v13, %v3952_v49  ;;  %v10246_v40 = vadd.f32 %v5186_v23, %v5082_v14  ;;  %v10248_v41 = vpack.c.bf16 %v4488_v26, %v4484_v9  ;;  %v11993_v9 = vld [vmem:[#allocation57_spill] sm:$0xff] }
 0x78c   :  { %11987 = vst [vmem:[#allocation32_spill] sm:$0xff] %v10246_v40  ;;  %v4178_v50 = vmul.f32 %v10162_v58, %v4056_v22 }
 0x78d   :  { %11988 = vst [vmem:[#allocation53_spill] sm:$0xff] %v10248_v41 }
 0x78e   :  { %v4057_v12 = vpop.f32.mrf.mxu3  ;;  %v4340_v13 = vadd.f32 %v10168_v0, %v4178_v50 }
 0x78f   :  { %v3953_v21 = vpop.f32.mrf.mxu2 }
 0x790   :  { %v3954_v3 = vadd.f32 %v3953_v21, %v10046_v15  ;;  %v5085_v19 = vpop.f32.mrf.mxu0  ;;  %v4492_v14 = vmax.f32 %v4340_v13, 0.0 }
 0x791   :  { %v5189_v8 = vpop.f32.mrf.mxu1 }
 0x792   :  { %v4058_v30 = vadd.f32 %v4057_v12, %v3954_v3  ;;  %v10252_v37 = vadd.f32 %v5189_v8, %v5085_v19 }
 0x793   :  { %4099 = vmatmul.bf16.gmra.mxu3 %v11990_v47  ;;  %5124 = vmatmul.bf16.gmra.mxu0 %v11991_v62 }
 0x794   :  { %11989 = vst [vmem:[#allocation38_spill] sm:$0xff] %v10252_v37  ;;  %v4182_v31 = vmul.f32 %v10162_v58, %v4058_v30  ;;  %3995 = vmatmul.bf16.gmra.mxu2 %v11992_v54  ;;  %5228 = vmatmul.bf16.gmra.mxu1 %v11993_v9 }
 0x796   :  { %v4344_v49 = vadd.f32 %v10168_v0, %v4182_v31  ;;  %v4060_v15 = vpop.f32.mrf.mxu3 }
 0x797   :  { %v3956_v21 = vpop.f32.mrf.mxu2 }
 0x798   :  { %v3957_v19 = vadd.f32 %v3956_v21, %v10051_v42  ;;  %v5087_v3 = vpop.f32.mrf.mxu0  ;;  %v4496_v26 = vmax.f32 %v4344_v49, 0.0  ;;  %v11997_v42 = vld [vmem:[#allocation141_spill] sm:$0xff]  ;;  %v11998_v49 = vld [vmem:[#allocation72_spill] sm:$0xff] }
 0x799   :  { %v5191_v23 = vpop.f32.mrf.mxu1 }
 0x79a   :  { %v4061_v22 = vadd.f32 %v4060_v15, %v3957_v19  ;;  %v10262_v12 = vadd.f32 %v5191_v23, %v5087_v3  ;;  %v10264_v50 = vpack.c.bf16 %v4496_v26, %v4492_v14  ;;  %v11999_v14 = vld [vmem:[#allocation139_spill] sm:$0xff]  ;;  %v8055_v23 = vld [vmem:[#allocation9 + $0x164] sm:$0xf0] }
 0x79b   :  { %v12000_v19 = vld [vmem:[#allocation59_spill] sm:$0xff] }
 0x79c   :  { %11994 = vst [vmem:[#allocation36_spill] sm:$0xff] %v10262_v12  ;;  %v4186_v47 = vmul.f32 %v10162_v58, %v4061_v22  ;;  %v7676_v26 = vld [vmem:[#allocation9 + $0x160] sm:$0xf]  ;;  %v7732_v12 = vld [vmem:[#allocation9 + $0x1d0] sm:$0xf] }
 0x79d   :  { %11995 = vst [vmem:[#allocation42_spill] sm:$0xff] %v10264_v50  ;;  %v7740_v22 = vld [vmem:[#allocation9 + $0x1e0] sm:$0xf] }
 0x79e   :  { %v4062_v8 = vpop.f32.mrf.mxu3  ;;  %v4348_v15 = vadd.f32 %v10168_v0, %v4186_v47 }
 0x79f   :  { %v3958_v30 = vpop.f32.mrf.mxu2 }
 0x7a0   :  { %v3959_v54 = vadd.f32 %v3958_v30, %v10060_v16  ;;  %v5090_v31 = vpop.f32.mrf.mxu0  ;;  %v8071_v30 = vld [vmem:[#allocation9 + $0x1e4] sm:$0xf0] }
 0x7a1   :  { %v5194_v9 = vpop.f32.mrf.mxu1  ;;  %v7741_v47 = vor.u32 %v8071_v30, %v7740_v22  ;;  %v8051_v22 = vld [vmem:[#allocation9 + $0x144] sm:$0xf0] }
 0x7a2   :  { %v4063_v62 = vadd.f32 %v4062_v8, %v3959_v54  ;;  %v10268_v13 = vadd.f32 %v5194_v9, %v5090_v31  ;;  %v7677_v8 = vor.u32 %v8055_v23, %v7676_v26  ;;  %v4500_v54 = vmax.f32 %v4348_v15, 0.0  ;;  %v8069_v26 = vld [vmem:[#allocation9 + $0x1d4] sm:$0xf0] }
 0x7a3   :  { %4104 = vmatmul.bf16.gmra.mxu3 %v11997_v42  ;;  %5129 = vmatmul.bf16.gmra.mxu0 %v11998_v49  ;;  %v7733_v23 = vor.u32 %v8069_v26, %v7732_v12  ;;  %v8049_v12 = vld [vmem:[#allocation9 + $0x134] sm:$0xf0] }
 0x7a4   :  { %11996 = vst [vmem:[#allocation40_spill] sm:$0xff] %v10268_v13  ;;  %v4190_v21 = vmul.f32 %v10162_v58, %v4063_v62  ;;  %4000 = vmatmul.bf16.gmra.mxu2 %v11999_v14  ;;  %5233 = vmatmul.bf16.gmra.mxu1 %v12000_v19  ;;  %v8053_v19 = vld [vmem:[#allocation9 + $0x154] sm:$0xf0] }
 0x7a5   :  { %5270 = vmatpush.bf16.msrb.mxu2 %v7677_v8  ;;  %5374 = vmatpush.bf16.msrb.mxu3 %v7741_v47 }
 0x7a6   :  { %v4352_v3 = vadd.f32 %v10168_v0, %v4190_v21  ;;  %v4065_v16 = vpop.f32.mrf.mxu3  ;;  %v7668_v21 = vld [vmem:[#allocation9 + $0x150] sm:$0xf] }
 0x7a7   :  { %v3961_v9 = vpop.f32.mrf.mxu2  ;;  %v7669_v40 = vor.u32 %v8053_v19, %v7668_v21  ;;  %v12002_v21 = vld [vmem:[#allocation75_spill] sm:$0xff] }
 0x7a8   :  { %v3962_v31 = vadd.f32 %v3961_v9, %v10065_v46  ;;  %v5092_v42 = vpop.f32.mrf.mxu0  ;;  %v4504_v49 = vmax.f32 %v4352_v3, 0.0  ;;  %v7660_v46 = vld [vmem:[#allocation9 + $0x140] sm:$0xf] }
 0x7a9   :  { %v5196_v62 = vpop.f32.mrf.mxu1  ;;  %5271 = vmatpush.bf16.msrb.mxu2 %v7669_v40  ;;  %5375 = vmatpush.bf16.msrb.mxu3 %v7733_v23  ;;  %v7724_v3 = vld [vmem:[#allocation9 + $0x1c0] sm:$0xf]  ;;  %v7661_v8 = vor.u32 %v8051_v22, %v7660_v46  ;;  %v7652_v40 = vld [vmem:[#allocation9 + $0x130] sm:$0xf]  ;;  %v8065_v23 = vld [vmem:[#allocation9 + $0x1b4] sm:$0xf0] }
 0x7aa   :  { %v4066_v14 = vadd.f32 %v4065_v16, %v3962_v31  ;;  %v10278_v13 = vadd.f32 %v5196_v62, %v5092_v42  ;;  %v10280_v37 = vpack.c.bf16 %v4504_v49, %v4500_v54  ;;  %v8067_v16 = vld [vmem:[#allocation9 + $0x1c4] sm:$0xf0]  ;;  %v7716_v62 = vld [vmem:[#allocation9 + $0x1b0] sm:$0xf]  ;;  %v7653_v26 = vor.u32 %v8049_v12, %v7652_v40  ;;  %v12003_v46 = vld [vmem:[#allocation63_spill] sm:$0xff] }
 0x7ab   :  { %v7725_v47 = vor.u32 %v8067_v16, %v7724_v3 }
 0x7ac   :  { %12001 = vst [vmem:[#allocation61_spill] sm:$0xff] %v10280_v37  ;;  %v4194_v30 = vmul.f32 %v10162_v58, %v4066_v14 }
 0x7ad   :  { %5272 = vmatpush.bf16.msrb.mxu2 %v7661_v8  ;;  %5376 = vmatpush.bf16.msrb.mxu3 %v7725_v47  ;;  %v7708_v8 = vld [vmem:[#allocation9 + $0x1a0] sm:$0xf] }
 0x7ae   :  { %v4067_v15 = vpop.f32.mrf.mxu3  ;;  %v4356_v14 = vadd.f32 %v10168_v0, %v4194_v30 }
 0x7af   :  { %v3963_v9 = vpop.f32.mrf.mxu2 }
 0x7b0   :  { %v3964_v31 = vadd.f32 %v3963_v9, %v10074_v27  ;;  %v5095_v42 = vpop.f32.mrf.mxu0  ;;  %v7644_v9 = vld [vmem:[#allocation9 + $0x120] sm:$0xf]  ;;  %v4508_v47 = vmax.f32 %v4356_v14, 0.0 }
 0x7b1   :  { %v5199_v49 = vpop.f32.mrf.mxu1  ;;  %5273 = vmatpush.bf16.msrb.mxu2 %v7653_v26  ;;  %v7636_v26 = vld [vmem:[#allocation9 + $0x110] sm:$0xf] }
 0x7b2   :  { %v4068_v19 = vadd.f32 %v4067_v15, %v3964_v31  ;;  %v10284_v54 = vadd.f32 %v5199_v49, %v5095_v42  ;;  %v7717_v15 = vor.u32 %v8065_v23, %v7716_v62  ;;  %v8063_v42 = vld [vmem:[#allocation9 + $0x1a4] sm:$0xf0]  ;;  %v8045_v23 = vld [vmem:[#allocation9 + $0x114] sm:$0xf0] }
 0x7b3   :  { %4109 = vmatmul.bf16.gmra.mxu3 %v11855_v34  ;;  %5134 = vmatmul.bf16.gmra.mxu0 %v12002_v21  ;;  %v8047_v34 = vld [vmem:[#allocation9 + $0x124] sm:$0xf0] }
 0x7b4   :  { %v4198_v27 = vmul.f32 %v10162_v58, %v4068_v19  ;;  %4005 = vmatmul.bf16.gmra.mxu2 %v11852_v52  ;;  %5238 = vmatmul.bf16.gmra.mxu1 %v12003_v46  ;;  %v7645_v31 = vor.u32 %v8047_v34, %v7644_v9  ;;  %v7709_v19 = vor.u32 %v8063_v42, %v7708_v8  ;;  %v8061_v9 = vld [vmem:[#allocation9 + $0x194] sm:$0xf0]  ;;  %v8043_v8 = vld [vmem:[#allocation9 + $0x104] sm:$0xf0] }
 0x7b5   :  { %5377 = vmatpush.bf16.msrb.mxu3 %v7717_v15  ;;  %v7637_v46 = vor.u32 %v8045_v23, %v7636_v26 }
 0x7b6   :  { %v4360_v22 = vadd.f32 %v10168_v0, %v4198_v27  ;;  %v4070_v3 = vpop.f32.mrf.mxu3  ;;  %5274 = vmatpush.bf16.msrb.mxu2 %v7645_v31  ;;  %v7700_v27 = vld [vmem:[#allocation9 + $0x190] sm:$0xf] }
 0x7b7   :  { %v3966_v16 = vpop.f32.mrf.mxu2  ;;  %v7701_v34 = vor.u32 %v8061_v9, %v7700_v27 }
 0x7b8   :  { %v3967_v30 = vadd.f32 %v3966_v16, %v10079_v53  ;;  %v5097_v49 = vpop.f32.mrf.mxu0  ;;  %v4512_v52 = vmax.f32 %v4360_v22, 0.0  ;;  %v7628_v53 = vld [vmem:[#allocation9 + $0x100] sm:$0xf] }
 0x7b9   :  { %v5201_v40 = vpop.f32.mrf.mxu1  ;;  %5378 = vmatpush.bf16.msrb.mxu3 %v7709_v19  ;;  %v7692_v22 = vld [vmem:[#allocation9 + $0x180] sm:$0xf]  ;;  %v7629_v31 = vor.u32 %v8043_v8, %v7628_v53 }
 0x7ba   :  { %v4071_v12 = vadd.f32 %v4070_v3, %v3967_v30  ;;  %v10294_v62 = vadd.f32 %v5201_v40, %v5097_v49  ;;  %v10296_v15 = vpack.c.bf16 %v4512_v52, %v4508_v47  ;;  %5275 = vmatpush.bf16.msrb.mxu2 %v7637_v46  ;;  %v8059_v3 = vld [vmem:[#allocation9 + $0x184] sm:$0xf0]  ;;  %v12005_v46 = vld [vmem:[#allocation78_spill] sm:$0xff] }
 0x7bb   :  { %v7693_v19 = vor.u32 %v8059_v3, %v7692_v22 }
 0x7bc   :  { %12004 = vst [vmem:[#allocation46_spill] sm:$0xff] %v10296_v15  ;;  %v4202_v42 = vmul.f32 %v10162_v58, %v4071_v12  ;;  %v12006_v12 = vld [vmem:[#allocation68_spill] sm:$0xff] }
 0x7bd   :  { %5379 = vmatpush.bf16.msrb.mxu3 %v7701_v34 }
 0x7be   :  { %v4072_v14 = vpop.f32.mrf.mxu3  ;;  %5276 = vmatpush.bf16.msrb.mxu2 %v7629_v31  ;;  %v4364_v26 = vadd.f32 %v10168_v0, %v4202_v42 }
 0x7bf   :  { %v3968_v16 = vpop.f32.mrf.mxu2 }
 0x7c0   :  { %v3969_v30 = vadd.f32 %v3968_v16, %v10088_v35  ;;  %v5100_v49 = vpop.f32.mrf.mxu0  ;;  %v4516_v34 = vmax.f32 %v4364_v26, 0.0  ;;  %v7558_v26 = vld [vmem:[#allocation9 + $0x78] sm:$0xf0] }
 0x7c1   :  { %v5204_v47 = vpop.f32.mrf.mxu1  ;;  %5380 = vmatpush.bf16.msrb.mxu3 %v7693_v19 }
 0x7c2   :  { %v4073_v52 = vadd.f32 %v4072_v14, %v3969_v30  ;;  %v10300_v40 = vadd.f32 %v5204_v47, %v5100_v49 }
 0x7c3   :  { %4114 = vmatmul.bf16.gmra.mxu3 %v11860_v61  ;;  %5139 = vmatmul.bf16.gmra.mxu0 %v12005_v46 }
 0x7c4   :  { %v4206_v23 = vmul.f32 %v10162_v58, %v4073_v52  ;;  %4010 = vmatmul.bf16.gmra.mxu2 %v11857_v11  ;;  %5243 = vmatmul.bf16.gmra.mxu1 %v12006_v12 }
 0x7c6   :  { %v4368_v35 = vadd.f32 %v10168_v0, %v4206_v23  ;;  %v4075_v27 = vpop.f32.mrf.mxu3  ;;  %v8040_v23 = vld [vmem:[#allocation9 + $0xf4] sm:$0xf] }
 0x7c7   :  { %v3971_v9 = vpop.f32.mrf.mxu2 }
 0x7c8   :  { %v3972_v14 = vadd.f32 %v3971_v9, %v10091_v57  ;;  %v5102_v53 = vpop.f32.mrf.mxu0  ;;  %v4520_v8 = vmax.f32 %v4368_v35, 0.0  ;;  %v8024_v57 = vld [vmem:[#allocation9 + $0x74] sm:$0xf]  ;;  %v7622_v9 = vld [vmem:[#allocation9 + $0xf8] sm:$0xf0] }
 0x7c9   :  { %v5206_v61 = vpop.f32.mrf.mxu1  ;;  %v12008_v35 = vld [vmem:[#allocation81_spill] sm:$0xff] }
 0x7ca   :  { %v4076_v22 = vadd.f32 %v4075_v27, %v3972_v14  ;;  %v10310_v16 = vadd.f32 %v5206_v61, %v5102_v53  ;;  %v10312_v31 = vpack.c.bf16 %v4520_v8, %v4516_v34  ;;  %v7561_v27 = vor.u32 %v8024_v57, %v7558_v26 }
 0x7cb   :  { %v7625_v53 = vor.u32 %v8040_v23, %v7622_v9  ;;  %v8020_v9 = vld [vmem:[#allocation9 + $0x54] sm:$0xf] }
 0x7cc   :  { %12007 = vst [vmem:[#allocation66_spill] sm:$0xff] %v10312_v31  ;;  %v4210_v11 = vmul.f32 %v10162_v58, %v4076_v22  ;;  %5477 = vmatpush.bf16.msrb.mxu0 %v7561_v27  ;;  %v8022_v22 = vld [vmem:[#allocation9 + $0x64] sm:$0xf] }
 0x7cd   :  { %5581 = vmatpush.bf16.msrb.mxu1 %v7625_v53  ;;  %v8036_v53 = vld [vmem:[#allocation9 + $0xd4] sm:$0xf] }
 0x7ce   :  { %v4077_v3 = vpop.f32.mrf.mxu3  ;;  %v4372_v34 = vadd.f32 %v10168_v0, %v4210_v11 }
 0x7cf   :  { %v3973_v42 = vpop.f32.mrf.mxu2 }
 0x7d0   :  { %v3974_v30 = vadd.f32 %v3973_v42, %v10098_v45  ;;  %v5105_v49 = vpop.f32.mrf.mxu0  ;;  %v12009_v45 = vld [vmem:[#allocation70_spill] sm:$0xff] }
 0x7d1   :  { %v5209_v19 = vpop.f32.mrf.mxu1 }
 0x7d2   :  { %v4078_v47 = vadd.f32 %v4077_v3, %v3974_v30  ;;  %v10316_v52 = vadd.f32 %v5209_v19, %v5105_v49  ;;  %v8038_v3 = vld [vmem:[#allocation9 + $0xe4] sm:$0xf]  ;;  %v7614_v49 = vld [vmem:[#allocation9 + $0xe8] sm:$0xf0]  ;;  %v4524_v19 = vmax.f32 %v4372_v34, 0.0 }
 0x7d3   :  { %4119 = vmatmul.bf16.gmra.mxu3 %v11865_v29  ;;  %5144 = vmatmul.bf16.gmra.mxu0 %v12008_v35  ;;  %v7550_v29 = vld [vmem:[#allocation9 + $0x68] sm:$0xf0]  ;;  %v7617_v57 = vor.u32 %v8038_v3, %v7614_v49 }
 0x7d4   :  { %v4214_v14 = vmul.f32 %v10162_v58, %v4078_v47  ;;  %4015 = vmatmul.bf16.gmra.mxu2 %v11862_v1  ;;  %5248 = vmatmul.bf16.gmra.mxu1 %v12009_v45  ;;  %v7553_v30 = vor.u32 %v8022_v22, %v7550_v29  ;;  %v7606_v22 = vld [vmem:[#allocation9 + $0xd8] sm:$0xf0]  ;;  %v7534_v3 = vld [vmem:[#allocation9 + $0x48] sm:$0xf0] }
 0x7d5   :  { %5582 = vmatpush.bf16.msrb.mxu1 %v7617_v57  ;;  %v7609_v29 = vor.u32 %v8036_v53, %v7606_v22  ;;  %v12011_v53 = vld [vmem:[#allocation84_spill] sm:$0xff] }
 0x7d6   :  { %v4376_v8 = vadd.f32 %v10168_v0, %v4214_v14  ;;  %v4080_v61 = vpop.f32.mrf.mxu3  ;;  %5478 = vmatpush.bf16.msrb.mxu0 %v7553_v30  ;;  %v7542_v14 = vld [vmem:[#allocation9 + $0x58] sm:$0xf0] }
 0x7d7   :  { %v3976_v42 = vpop.f32.mrf.mxu2  ;;  %v7545_v35 = vor.u32 %v8020_v9, %v7542_v14  ;;  %v7526_v9 = vld [vmem:[#allocation9 + $0x38] sm:$0xf0]  ;;  %v8032_v14 = vld [vmem:[#allocation9 + $0xb4] sm:$0xf] }
 0x7d8   :  { %v3977_v11 = vadd.f32 %v3976_v42, %v10101_v10  ;;  %v5107_v47 = vpop.f32.mrf.mxu0  ;;  %v4528_v1 = vmax.f32 %v4376_v8, 0.0  ;;  %v8018_v10 = vld [vmem:[#allocation9 + $0x44] sm:$0xf] }
 0x7d9   :  { %v5211_v26 = vpop.f32.mrf.mxu1  ;;  %5583 = vmatpush.bf16.msrb.mxu1 %v7609_v29  ;;  %v8034_v8 = vld [vmem:[#allocation9 + $0xc4] sm:$0xf]  ;;  %v7537_v30 = vor.u32 %v8018_v10, %v7534_v3  ;;  %v7590_v29 = vld [vmem:[#allocation9 + $0xb8] sm:$0xf0]  ;;  %v12012_v10 = vld [vmem:[#allocation157_spill] sm:$0xff] }
 0x7da   :  { %v4081_v23 = vadd.f32 %v4080_v61, %v3977_v11  ;;  %v10326_v27 = vadd.f32 %v5211_v26, %v5107_v47  ;;  %v10328_v45 = vpack.c.bf16 %v4528_v1, %v4524_v19  ;;  %5479 = vmatpush.bf16.msrb.mxu0 %v7545_v35  ;;  %v7598_v61 = vld [vmem:[#allocation9 + $0xc8] sm:$0xf0]  ;;  %v8016_v35 = vld [vmem:[#allocation9 + $0x34] sm:$0xf]  ;;  %v12013_v3 = vld [vmem:[#allocation167_spill] sm:$0xff] }
 0x7db   :  { %v7601_v57 = vor.u32 %v8034_v8, %v7598_v61  ;;  %v7529_v22 = vor.u32 %v8016_v35, %v7526_v9  ;;  %v7518_v61 = vld [vmem:[#allocation9 + $0x28] sm:$0xf0] }
 0x7dc   :  { %12010 = vst [vmem:[#allocation44_spill] sm:$0xff] %v10328_v45  ;;  %v4218_v49 = vmul.f32 %v10162_v58, %v4081_v23 }
 0x7dd   :  { %5584 = vmatpush.bf16.msrb.mxu1 %v7601_v57 }
 0x7de   :  { %v4082_v34 = vpop.f32.mrf.mxu3  ;;  %5480 = vmatpush.bf16.msrb.mxu0 %v7537_v30  ;;  %v4380_v23 = vadd.f32 %v10168_v0, %v4218_v49  ;;  %v8014_v30 = vld [vmem:[#allocation9 + $0x24] sm:$0xf] }
 0x7df   :  { %v3978_v42 = vpop.f32.mrf.mxu2  ;;  %v7521_v57 = vor.u32 %v8014_v30, %v7518_v61  ;;  %v7574_v30 = vld [vmem:[#allocation9 + $0x98] sm:$0xf0] }
 0x7e0   :  { %v3979_v11 = vadd.f32 %v3978_v42, %v10108_v17  ;;  %v5110_v47 = vpop.f32.mrf.mxu0  ;;  %v4532_v35 = vmax.f32 %v4380_v23, 0.0 }
 0x7e1   :  { %v5214_v19 = vpop.f32.mrf.mxu1 }
 0x7e2   :  { %v4083_v1 = vadd.f32 %v4082_v34, %v3979_v11  ;;  %v10332_v26 = vadd.f32 %v5214_v19, %v5110_v47  ;;  %v7593_v34 = vor.u32 %v8032_v14, %v7590_v29  ;;  %5481 = vmatpush.bf16.msrb.mxu0 %v7529_v22  ;;  %v8030_v11 = vld [vmem:[#allocation9 + $0xa4] sm:$0xf]  ;;  %v7582_v19 = vld [vmem:[#allocation9 + $0xa8] sm:$0xf0]  ;;  %v8012_v29 = vld [vmem:[#allocation9 + $0x14] sm:$0xf] }
 0x7e3   :  { %5149 = vmatmul.bf16.gmra.mxu0 %v12011_v53  ;;  %5381 = vmatmul.bf16.vlgmr.msrb.gmra.mxu3 %v10181_v59  ;;  %v7585_v9 = vor.u32 %v8030_v11, %v7582_v19  ;;  %v7502_v11 = vld [vmem:[#allocation9 + $0x8] sm:$0xf0] }
 0x7e4   :  { %v4222_v17 = vmul.f32 %v10162_v58, %v4083_v1  ;;  %5253 = vmatmul.bf16.gmra.mxu1 %v12012_v10  ;;  %5277 = vmatmul.bf16.vlgmr.msrb.gmra.mxu2 %v12013_v3 }
 0x7e5   :  { %5585 = vmatpush.bf16.msrb.mxu1 %v7593_v34  ;;  %v8028_v34 = vld [vmem:[#allocation9 + $0x94] sm:$0xf] }
 0x7e6   :  { %v4384_v8 = vadd.f32 %v10168_v0, %v4222_v17  ;;  %v4085_v42 = vpop.f32.mrf.mxu3  ;;  %5482 = vmatpush.bf16.msrb.mxu0 %v7521_v57  ;;  %v7510_v17 = vld [vmem:[#allocation9 + $0x18] sm:$0xf0]  ;;  %v7577_v61 = vor.u32 %v8028_v34, %v7574_v30 }
 0x7e7   :  { %v3981_v47 = vpop.f32.mrf.mxu2  ;;  %v7513_v53 = vor.u32 %v8012_v29, %v7510_v17  ;;  %v12016_v34 = vld [vmem:[#allocation163_spill] sm:$0xff] }
 0x7e8   :  { %v3982_v49 = vadd.f32 %v3981_v47, %v10111_v20  ;;  %v5112_v1 = vpop.f32.mrf.mxu0  ;;  %v4536_v10 = vmax.f32 %v4384_v8, 0.0  ;;  %v8010_v20 = vld [vmem:[#allocation9 + $0x4] sm:$0xf] }
 0x7e9   :  { %v5216_v59 = vpop.f32.mrf.mxu1  ;;  %5586 = vmatpush.bf16.msrb.mxu1 %v7585_v9  ;;  %v8026_v8 = vld [vmem:[#allocation9 + $0x84] sm:$0xf]  ;;  %v7505_v57 = vor.u32 %v8010_v20, %v7502_v11 }
 0x7ea   :  { %v4086_v14 = vadd.f32 %v4085_v42, %v3982_v49  ;;  %v10342_v22 = vadd.f32 %v5216_v59, %v5112_v1  ;;  %v10344_v3 = vpack.c.bf16 %v4536_v10, %v4532_v35  ;;  %5483 = vmatpush.bf16.msrb.mxu0 %v7513_v53  ;;  %v7566_v42 = vld [vmem:[#allocation9 + $0x88] sm:$0xf0]  ;;  %v12015_v53 = vld [vmem:[#allocation87_spill] sm:$0xff] }
 0x7eb   :  { %v7569_v1 = vor.u32 %v8026_v8, %v7566_v42 }
 0x7ec   :  { %12014 = vst [vmem:[#allocation64_spill] sm:$0xff] %v10344_v3  ;;  %v4226_v59 = vmul.f32 %v10162_v58, %v4086_v14  ;;  %v12017_v14 = vld [vmem:[#allocation110_spill] sm:$0xff] }
 0x7ed   :  { %5587 = vmatpush.bf16.msrb.mxu1 %v7577_v61 }
 0x7ee   :  { %v4087_v23 = vpop.f32.mrf.mxu3  ;;  %5484 = vmatpush.bf16.msrb.mxu0 %v7505_v57  ;;  %v4388_v29 = vadd.f32 %v10168_v0, %v4226_v59 }
 0x7ef   :  { %v3983_v47 = vpop.f32.mrf.mxu2 }
 0x7f0   :  { %v3984_v19 = vadd.f32 %v3983_v47, %v10117_v25  ;;  %v5115_v49 = vpop.f32.mrf.mxu0 }
 0x7f1   :  { %v5219_v10 = vpop.f32.mrf.mxu1  ;;  %5588 = vmatpush.bf16.msrb.mxu1 %v7569_v1 }
 0x7f2   :  { %v4088_v35 = vadd.f32 %v4087_v23, %v3984_v19  ;;  %v10348_v9 = vadd.f32 %v5219_v10, %v5115_v49  ;;  %v4540_v23 = vmax.f32 %v4388_v29, 0.0 }
 0x7f3   :  { %5154 = vmatmul.bf16.gmra.mxu0 %v12015_v53  ;;  %5386 = vmatmul.bf16.gmra.mxu3 %v10198_v55 }
 0x7f4   :  { %v4230_v17 = vmul.f32 %v10162_v58, %v4088_v35  ;;  %5258 = vmatmul.bf16.gmra.mxu1 %v12016_v34  ;;  %5282 = vmatmul.bf16.gmra.mxu2 %v12017_v14 }
 0x7f6   :  { %v4392_v25 = vadd.f32 %v10168_v0, %v4230_v17  ;;  %v4090_v30 = vpop.f32.mrf.mxu3 }
 0x7f7   :  { %v3986_v61 = vpop.f32.mrf.mxu2 }
 0x7f8   :  { %v3987_v20 = vadd.f32 %v3986_v61, %v10119_v28  ;;  %v5117_v11 = vpop.f32.mrf.mxu0  ;;  %v4544_v8 = vmax.f32 %v4392_v25, 0.0  ;;  %v12019_v28 = vld [vmem:[#allocation90_spill] sm:$0xff]  ;;  %v12020_v61 = vld [vmem:[#allocation164_spill] sm:$0xff] }
 0x7f9   :  { %v5221_v47 = vpop.f32.mrf.mxu1 }
 0x7fa   :  { %v4091_v57 = vadd.f32 %v4090_v30, %v3987_v20  ;;  %v10358_v42 = vadd.f32 %v5221_v47, %v5117_v11  ;;  %v10360_v59 = vpack.c.bf16 %v4544_v8, %v4540_v23  ;;  %v12021_v23 = vld [vmem:[#allocation113_spill] sm:$0xff] }
 0x7fc   :  { %12018 = vst [vmem:[#allocation50_spill] sm:$0xff] %v10360_v59  ;;  %v4234_v1 = vmul.f32 %v10162_v58, %v4091_v57 }
 0x7fe   :  { %v4092_v19 = vpop.f32.mrf.mxu3  ;;  %v4396_v25 = vadd.f32 %v10168_v0, %v4234_v1 }
 0x7ff   :  { %v3988_v49 = vpop.f32.mrf.mxu2 }
 0x800   :  { %v3989_v10 = vadd.f32 %v3988_v49, %v10125_v32  ;;  %v5120_v35 = vpop.f32.mrf.mxu0  ;;  %v4548_v8 = vmax.f32 %v4396_v25, 0.0 }
 0x801   :  { %v5224_v17 = vpop.f32.mrf.mxu1 }
 0x802   :  { %v4093_v14 = vadd.f32 %v4092_v19, %v3989_v10  ;;  %v10364_v29 = vadd.f32 %v5224_v17, %v5120_v35 }
 0x803   :  { %5159 = vmatmul.bf16.gmra.mxu0 %v12019_v28  ;;  %5391 = vmatmul.bf16.gmra.mxu3 %v10216_v33 }
 0x804   :  { %v4238_v30 = vmul.f32 %v10162_v58, %v4093_v14  ;;  %5263 = vmatmul.bf16.gmra.mxu1 %v12020_v61  ;;  %5287 = vmatmul.bf16.gmra.mxu2 %v12021_v23 }
 0x806   :  { %v4400_v20 = vadd.f32 %v10168_v0, %v4238_v30  ;;  %v4095_v32 = vpop.f32.mrf.mxu3 }
 0x807   :  { %v3991_v11 = vpop.f32.mrf.mxu2 }
 0x808   :  { %v3992_v47 = vadd.f32 %v3991_v11, %v10127_v5  ;;  %v5122_v57 = vpop.f32.mrf.mxu0  ;;  %v4552_v19 = vmax.f32 %v4400_v20, 0.0 }
 0x809   :  { %v5226_v49 = vpop.f32.mrf.mxu1 }
 0x80a   :  { %v4096_v10 = vadd.f32 %v4095_v32, %v3992_v47  ;;  %v10374_v35 = vadd.f32 %v5226_v49, %v5122_v57  ;;  %v10376_v1 = vpack.c.bf16 %v4552_v19, %v4548_v8  ;;  %v12023_v32 = vld [vmem:[#allocation115_spill] sm:$0xff] }
 0x80c   :  { %12022 = vst [vmem:[#allocation48_spill] sm:$0xff] %v10376_v1  ;;  %v4242_v61 = vmul.f32 %v10162_v58, %v4096_v10 }
 0x80e   :  { %v4097_v14 = vpop.f32.mrf.mxu3  ;;  %v4404_v5 = vadd.f32 %v10168_v0, %v4242_v61 }
 0x80f   :  { %v3993_v17 = vpop.f32.mrf.mxu2 }
 0x810   :  { %v3994_v23 = vadd.f32 %v3993_v17, %v10133_v56  ;;  %v5125_v30 = vpop.f32.mrf.mxu0  ;;  %v4556_v47 = vmax.f32 %v4404_v5, 0.0 }
 0x811   :  { %v5229_v33 = vpop.f32.mrf.mxu1 }
 0x812   :  { %v4098_v28 = vadd.f32 %v4097_v14, %v3994_v23  ;;  %v10380_v25 = vadd.f32 %v5229_v33, %v5125_v30 }
 0x813   :  { %5396 = vmatmul.bf16.gmra.mxu3 %v10232_v63  ;;  %5485 = vmatmul.bf16.vlgmr.msrb.gmra.mxu0 %v11937_v6 }
 0x814   :  { %v4246_v20 = vmul.f32 %v10162_v58, %v4098_v28  ;;  %5292 = vmatmul.bf16.gmra.mxu2 %v12023_v32  ;;  %5589 = vmatmul.bf16.vlgmr.msrb.gmra.mxu1 %v11939_v4 }
 0x816   :  { %v4408_v11 = vadd.f32 %v10168_v0, %v4246_v20  ;;  %v4100_v56 = vpop.f32.mrf.mxu3 }
 0x817   :  { %v3996_v8 = vpop.f32.mrf.mxu2 }
 0x818   :  { %v3997_v33 = vadd.f32 %v3996_v8, %v10135_v44  ;;  %v5127_v23 = vpop.f32.mrf.mxu0  ;;  %v4560_v57 = vmax.f32 %v4408_v11, 0.0  ;;  %v12026_v8 = vld [vmem:[#allocation116_spill] sm:$0xff] }
 0x819   :  { %v5231_v19 = vpop.f32.mrf.mxu1 }
 0x81a   :  { %v4101_v49 = vadd.f32 %v4100_v56, %v3997_v33  ;;  %v10390_v6 = vadd.f32 %v5231_v19, %v5127_v23  ;;  %v10392_v61 = vpack.c.bf16 %v4560_v57, %v4556_v47  ;;  %v12025_v56 = vld [vmem:[#allocation118_spill] sm:$0xff] }
 0x81b   :  { %v12027_v57 = vld [vmem:[#allocation26_spill] sm:$0xff] }
 0x81c   :  { %12024 = vst [vmem:[#allocation165_spill] sm:$0xff] %v10392_v61  ;;  %v4250_v14 = vmul.f32 %v10162_v58, %v4101_v49 }
 0x81e   :  { %v4102_v28 = vpop.f32.mrf.mxu3  ;;  %v4412_v44 = vadd.f32 %v10168_v0, %v4250_v14 }
 0x81f   :  { %v3998_v10 = vpop.f32.mrf.mxu2 }
 0x820   :  { %v3999_v4 = vadd.f32 %v3998_v10, %v10141_v24  ;;  %v5130_v17 = vpop.f32.mrf.mxu0  ;;  %v4564_v23 = vmax.f32 %v4412_v44, 0.0 }
 0x821   :  { %v5234_v30 = vpop.f32.mrf.mxu1 }
 0x822   :  { %v4103_v20 = vadd.f32 %v4102_v28, %v3999_v4  ;;  %v10396_v5 = vadd.f32 %v5234_v30, %v5130_v17 }
 0x823   :  { %5401 = vmatmul.bf16.gmra.mxu3 %v10248_v41  ;;  %5490 = vmatmul.bf16.gmra.mxu0 %v11941_v2 }
 0x824   :  { %v4254_v11 = vmul.f32 %v10162_v58, %v4103_v20  ;;  %5297 = vmatmul.bf16.gmra.mxu2 %v12025_v56  ;;  %5594 = vmatmul.bf16.gmra.mxu1 %v12026_v8  ;;  %v12029_v8 = vld [vmem:[#allocation147_spill] sm:$0xff] }
 0x826   :  { %v4416_v47 = vadd.f32 %v10168_v0, %v4254_v11  ;;  %v4105_v24 = vpop.f32.mrf.mxu3 }
 0x827   :  { %v4001_v33 = vpop.f32.mrf.mxu2 }
 0x828   :  { %v4002_v19 = vadd.f32 %v4001_v33, %v12027_v57  ;;  %v5132_v49 = vpop.f32.mrf.mxu0  ;;  %v4568_v28 = vmax.f32 %v4416_v47, 0.0  ;;  %v12031_v47 = vld [vmem:[#allocation122_spill] sm:$0xff] }
 0x829   :  { %v5236_v10 = vpop.f32.mrf.mxu1  ;;  %v12033_v57 = vld [vmem:[#allocation114_spill] sm:$0xff] }
 0x82a   :  { %v4106_v4 = vadd.f32 %v4105_v24, %v4002_v19  ;;  %v10406_v2 = vadd.f32 %v5236_v10, %v5132_v49  ;;  %v10408_v14 = vpack.c.bf16 %v4568_v28, %v4564_v23  ;;  %v12032_v23 = vld [vmem:[#allocation120_spill] sm:$0xff] }
 0x82c   :  { %12028 = vst [vmem:[#allocation166_spill] sm:$0xff] %v10408_v14  ;;  %v4258_v20 = vmul.f32 %v10162_v58, %v4106_v4 }
 0x82e   :  { %v4107_v17 = vpop.f32.mrf.mxu3  ;;  %v4420_v24 = vadd.f32 %v10168_v0, %v4258_v20 }
 0x82f   :  { %v4003_v30 = vpop.f32.mrf.mxu2 }
 0x830   :  { %v4004_v56 = vadd.f32 %v4003_v30, %v12029_v8  ;;  %v5135_v11 = vpop.f32.mrf.mxu0  ;;  %v4572_v10 = vmax.f32 %v4420_v24, 0.0 }
 0x831   :  { %v5239_v41 = vpop.f32.mrf.mxu1 }
 0x832   :  { %v4108_v32 = vadd.f32 %v4107_v17, %v4004_v56  ;;  %v10412_v44 = vadd.f32 %v5239_v41, %v5135_v11  ;;  %v12034_v56 = vld [vmem:[#allocation24_spill] sm:$0xff] }
 0x833   :  { %5406 = vmatmul.bf16.gmra.mxu3 %v10264_v50  ;;  %5495 = vmatmul.bf16.gmra.mxu0 %v12031_v47 }
 0x834   :  { %12030 = vst [vmem:[#allocation54_spill] sm:$0xff] %v10412_v44  ;;  %v4262_v33 = vmul.f32 %v10162_v58, %v4108_v32  ;;  %5302 = vmatmul.bf16.gmra.mxu2 %v12032_v23  ;;  %5599 = vmatmul.bf16.gmra.mxu1 %v12033_v57  ;;  %v12036_v57 = vld [vmem:[#allocation149_spill] sm:$0xff] }
 0x836   :  { %v4424_v19 = vadd.f32 %v10168_v0, %v4262_v33  ;;  %v4110_v49 = vpop.f32.mrf.mxu3 }
 0x837   :  { %v4006_v28 = vpop.f32.mrf.mxu2 }
 0x838   :  { %v4007_v41 = vadd.f32 %v4006_v28, %v12034_v56  ;;  %v5137_v4 = vpop.f32.mrf.mxu0  ;;  %v4576_v17 = vmax.f32 %v4424_v19, 0.0  ;;  %v12038_v19 = vld [vmem:[#allocation127_spill] sm:$0xff] }
 0x839   :  { %v5241_v30 = vpop.f32.mrf.mxu1  ;;  %v12040_v56 = vld [vmem:[#allocation159_spill] sm:$0xff] }
 0x83a   :  { %v4111_v8 = vadd.f32 %v4110_v49, %v4007_v41  ;;  %v10422_v11 = vadd.f32 %v5241_v30, %v5137_v4  ;;  %v10424_v20 = vpack.c.bf16 %v4576_v17, %v4572_v10  ;;  %v12039_v10 = vld [vmem:[#allocation123_spill] sm:$0xff] }
 0x83c   :  { %12035 = vst [vmem:[#allocation76_spill] sm:$0xff] %v10424_v20  ;;  %v4266_v23 = vmul.f32 %v10162_v58, %v4111_v8 }
 0x83e   :  { %v4112_v32 = vpop.f32.mrf.mxu3  ;;  %v4428_v49 = vadd.f32 %v10168_v0, %v4266_v23 }
 0x83f   :  { %v4008_v47 = vpop.f32.mrf.mxu2 }
 0x840   :  { %v4009_v50 = vadd.f32 %v4008_v47, %v12036_v57  ;;  %v5140_v33 = vpop.f32.mrf.mxu0  ;;  %v4580_v30 = vmax.f32 %v4428_v49, 0.0 }
 0x841   :  { %v5244_v63 = vpop.f32.mrf.mxu1 }
 0x842   :  { %v4113_v44 = vadd.f32 %v4112_v32, %v4009_v50  ;;  %v10428_v24 = vadd.f32 %v5244_v63, %v5140_v33  ;;  %v12041_v50 = vld [vmem:[#allocation30_spill] sm:$0xff] }
 0x843   :  { %5411 = vmatmul.bf16.gmra.mxu3 %v10280_v37  ;;  %5500 = vmatmul.bf16.gmra.mxu0 %v12038_v19 }
 0x844   :  { %12037 = vst [vmem:[#allocation52_spill] sm:$0xff] %v10428_v24  ;;  %v4270_v28 = vmul.f32 %v10162_v58, %v4113_v44  ;;  %5307 = vmatmul.bf16.gmra.mxu2 %v12039_v10  ;;  %5604 = vmatmul.bf16.gmra.mxu1 %v12040_v56 }
 0x846   :  { %v4432_v41 = vadd.f32 %v10168_v0, %v4270_v28  ;;  %v4115_v4 = vpop.f32.mrf.mxu3 }
 0x847   :  { %v4011_v17 = vpop.f32.mrf.mxu2 }
 0x848   :  { %v4012_v63 = vadd.f32 %v4011_v17, %v12041_v50  ;;  %v5142_v8 = vpop.f32.mrf.mxu0  ;;  %v4584_v32 = vmax.f32 %v4432_v41, 0.0  ;;  %v12042_v41 = vld [vmem:[#allocation132_spill] sm:$0xff] }
 0x849   :  { %v5246_v47 = vpop.f32.mrf.mxu1  ;;  %v12044_v50 = vld [vmem:[#allocation160_spill] sm:$0xff] }
 0x84a   :  { %v4116_v57 = vadd.f32 %v4115_v4, %v4012_v63  ;;  %v10438_v33 = vadd.f32 %v5246_v47, %v5142_v8  ;;  %v10440_v23 = vpack.c.bf16 %v4584_v32, %v4580_v30  ;;  %v12043_v30 = vld [vmem:[#allocation125_spill] sm:$0xff] }
 0x84c   :  { %v4274_v10 = vmul.f32 %v10162_v58, %v4116_v57 }
 0x84e   :  { %v4117_v44 = vpop.f32.mrf.mxu3  ;;  %v4436_v4 = vadd.f32 %v10168_v0, %v4274_v10 }
 0x84f   :  { %v4013_v19 = vpop.f32.mrf.mxu2 }
 0x850   :  { %v4014_v56 = vadd.f32 %v4013_v19, %v10183_v7  ;;  %v5145_v28 = vpop.f32.mrf.mxu0  ;;  %v4588_v32 = vmax.f32 %v4436_v4, 0.0 }
 0x851   :  { %v5249_v37 = vpop.f32.mrf.mxu1 }
 0x852   :  { %v4118_v24 = vadd.f32 %v4117_v44, %v4014_v56  ;;  %v10444_v49 = vadd.f32 %v5249_v37, %v5145_v28 }
 0x853   :  { %5416 = vmatmul.bf16.gmra.mxu3 %v10296_v15  ;;  %5505 = vmatmul.bf16.gmra.mxu0 %v12042_v41 }
 0x854   :  { %v4278_v17 = vmul.f32 %v10162_v58, %v4118_v24  ;;  %5312 = vmatmul.bf16.gmra.mxu2 %v12043_v30  ;;  %5609 = vmatmul.bf16.gmra.mxu1 %v12044_v50 }
 0x856   :  { %v4440_v63 = vadd.f32 %v10168_v0, %v4278_v17  ;;  %v4120_v7 = vpop.f32.mrf.mxu3 }
 0x857   :  { %v4016_v8 = vpop.f32.mrf.mxu2 }
 0x858   :  { %v4017_v37 = vadd.f32 %v4016_v8, %v10187_v36  ;;  %v5147_v47 = vpop.f32.mrf.mxu0  ;;  %v4592_v57 = vmax.f32 %v4440_v63, 0.0  ;;  %v12045_v36 = vld [vmem:[#allocation137_spill] sm:$0xff]  ;;  %v12046_v8 = vld [vmem:[#allocation128_spill] sm:$0xff] }
 0x859   :  { %v5251_v44 = vpop.f32.mrf.mxu1 }
 0x85a   :  { %v4121_v19 = vadd.f32 %v4120_v7, %v4017_v37  ;;  %v10454_v56 = vadd.f32 %v5251_v44, %v5147_v47  ;;  %v10456_v10 = vpack.c.bf16 %v4592_v57, %v4588_v32  ;;  %v12047_v32 = vld [vmem:[#allocation161_spill] sm:$0xff] }
 0x85c   :  { %v4282_v41 = vmul.f32 %v10162_v58, %v4121_v19 }
 0x85e   :  { %v4122_v24 = vpop.f32.mrf.mxu3  ;;  %v4444_v63 = vadd.f32 %v10168_v0, %v4282_v41 }
 0x85f   :  { %v4018_v28 = vpop.f32.mrf.mxu2 }
 0x860   :  { %v4019_v50 = vadd.f32 %v4018_v28, %v10200_v51  ;;  %v5150_v17 = vpop.f32.mrf.mxu0  ;;  %v4596_v57 = vmax.f32 %v4444_v63, 0.0 }
 0x861   :  { %v5254_v30 = vpop.f32.mrf.mxu1 }
 0x862   :  { %v4123_v15 = vadd.f32 %v4122_v24, %v4019_v50  ;;  %v10460_v4 = vadd.f32 %v5254_v30, %v5150_v17  ;;  %v5893_v24 = vld [vmem:[%s11172_s5] sm:$0x3] }
 0x863   :  { %5421 = vmatmul.bf16.gmra.mxu3 %v10312_v31  ;;  %5510 = vmatmul.bf16.gmra.mxu0 %v12045_v36  ;;  %v10477_v50 = vperm.slane %v5893_v24, 0 }
 0x864   :  { %v4286_v7 = vmul.f32 %v10162_v58, %v4123_v15  ;;  %5317 = vmatmul.bf16.gmra.mxu2 %v12046_v8  ;;  %5614 = vmatmul.bf16.gmra.mxu1 %v12047_v32 }
 0x866   :  { %v4448_v37 = vadd.f32 %v10168_v0, %v4286_v7  ;;  %v5382_v51 = vpop.f32.mrf.mxu3  ;;  %v5975_v0 = vld [vmem:[#allocation11] sm:$0x3] }
 0x867   :  { %v5278_v47 = vpop.f32.mrf.mxu2 }
 0x868   :  { %v5279_v30 = vadd.f32 %v5278_v47, %v10204_v38  ;;  %v5152_v44 = vpop.f32.mrf.mxu0  ;;  %v4600_v19 = vmax.f32 %v4448_v37, 0.0  ;;  %v10480_v38 = vperm.slane %v5975_v0, 0 }
 0x869   :  { %v5256_v28 = vpop.f32.mrf.mxu1 }
 0x86a   :  { %v5383_v41 = vadd.f32 %v5382_v51, %v5279_v30  ;;  %v10473_v58 = vadd.f32 %v5256_v28, %v5152_v44  ;;  %v10475_v15 = vpack.c.bf16 %v4600_v19, %v4596_v57  ;;  %v12048_v51 = vld [vmem:[#allocation142_spill] sm:$0xff]  ;;  %v12050_v19 = vld [vmem:[#allocation93_spill] sm:$0xff] }
 0x86b   :  { %v12049_v44 = vld [vmem:[#allocation130_spill] sm:$0xff] }
 0x86c   :  { %v5899_v63 = vmul.f32 %v10477_v50, %v5383_v41 }
 0x86e   :  { %v5384_v17 = vpop.f32.mrf.mxu3  ;;  %v5981_v57 = vadd.f32 %v10480_v38, %v5899_v63 }
 0x86f   :  { %v5280_v36 = vpop.f32.mrf.mxu2 }
 0x870   :  { %v5281_v7 = vadd.f32 %v5280_v36, %v10214_v48  ;;  %v5155_v32 = vpop.f32.mrf.mxu0  ;;  %v6057_v41 = vmax.f32 %v5981_v57, 0.0 }
 0x871   :  { %v5259_v37 = vpop.f32.mrf.mxu1 }
 0x872   :  { %v5385_v47 = vadd.f32 %v5384_v17, %v5281_v7  ;;  %v10483_v8 = vadd.f32 %v5259_v37, %v5155_v32 }
 0x873   :  { %5426 = vmatmul.bf16.gmra.mxu3 %v10328_v45  ;;  %5515 = vmatmul.bf16.gmra.mxu0 %v12048_v51 }
 0x874   :  { %v5901_v30 = vmul.f32 %v10477_v50, %v5385_v47  ;;  %5322 = vmatmul.bf16.gmra.mxu2 %v12049_v44  ;;  %5619 = vmatmul.bf16.gmra.mxu1 %v12050_v19 }
 0x876   :  { %v5983_v24 = vadd.f32 %v10480_v38, %v5901_v30  ;;  %v5387_v48 = vpop.f32.mrf.mxu3 }
 0x877   :  { %v5283_v28 = vpop.f32.mrf.mxu2 }
 0x878   :  { %v6059_v0 = vmax.f32 %v5983_v24, 0.0  ;;  %v5284_v17 = vadd.f32 %v5283_v28, %v10220_v39  ;;  %v5157_v36 = vpop.f32.mrf.mxu0 }
 0x879   :  { %v5261_v7 = vpop.f32.mrf.mxu1 }
 0x87a   :  { %v10493_v32 = vpack.c.bf16 %v6059_v0, %v6057_v41  ;;  %v5388_v37 = vadd.f32 %v5387_v48, %v5284_v17  ;;  %v10495_v63 = vadd.f32 %v5261_v7, %v5157_v36  ;;  %v12051_v48 = vld [vmem:[#allocation133_spill] sm:$0xff]  ;;  %v12052_v17 = vld [vmem:[#allocation55_spill] sm:$0xff] }
 0x87c   :  { %v5903_v44 = vmul.f32 %v10477_v50, %v5388_v37 }
 0x87e   :  { %v5389_v47 = vpop.f32.mrf.mxu3  ;;  %v5985_v39 = vadd.f32 %v10480_v38, %v5903_v44 }
 0x87f   :  { %v5285_v51 = vpop.f32.mrf.mxu2 }
 0x880   :  { %v5286_v19 = vadd.f32 %v5285_v51, %v10230_v18  ;;  %v5160_v30 = vpop.f32.mrf.mxu0  ;;  %v6061_v0 = vmax.f32 %v5985_v39, 0.0 }
 0x881   :  { %v5264_v45 = vpop.f32.mrf.mxu1 }
 0x882   :  { %v5390_v31 = vadd.f32 %v5389_v47, %v5286_v19  ;;  %v10499_v57 = vadd.f32 %v5264_v45, %v5160_v30 }
 0x883   :  { %5431 = vmatmul.bf16.gmra.mxu3 %v10344_v3  ;;  %5520 = vmatmul.bf16.gmra.mxu0 %v11970_v60 }
 0x884   :  { %v5905_v24 = vmul.f32 %v10477_v50, %v5390_v31  ;;  %5327 = vmatmul.bf16.gmra.mxu2 %v12051_v48  ;;  %5624 = vmatmul.bf16.gmra.mxu1 %v11971_v43  ;;  %v12054_v43 = vld [vmem:[#allocation32_spill] sm:$0xff] }
 0x886   :  { %v5987_v28 = vadd.f32 %v10480_v38, %v5905_v24  ;;  %v5392_v18 = vpop.f32.mrf.mxu3 }
 0x887   :  { %v5288_v41 = vpop.f32.mrf.mxu2 }
 0x888   :  { %v5289_v45 = vadd.f32 %v5288_v41, %v12052_v17  ;;  %v5162_v36 = vpop.f32.mrf.mxu0  ;;  %v6063_v7 = vmax.f32 %v5987_v28, 0.0  ;;  %v12056_v28 = vld [vmem:[#allocation148_spill] sm:$0xff]  ;;  %v12058_v17 = vld [vmem:[#allocation155_spill] sm:$0xff] }
 0x889   :  { %v5266_v37 = vpop.f32.mrf.mxu1 }
 0x88a   :  { %v5393_v47 = vadd.f32 %v5392_v18, %v5289_v45  ;;  %v10509_v60 = vadd.f32 %v5266_v37, %v5162_v36  ;;  %v10511_v44 = vpack.c.bf16 %v6063_v7, %v6061_v0  ;;  %v12057_v0 = vld [vmem:[#allocation135_spill] sm:$0xff] }
 0x88c   :  { %12053 = vst [vmem:[#allocation73_spill] sm:$0xff] %v10509_v60  ;;  %v5907_v19 = vmul.f32 %v10477_v50, %v5393_v47  ;;  %v12059_v47 = vld [vmem:[#allocation38_spill] sm:$0xff] }
 0x88e   :  { %v5394_v31 = vpop.f32.mrf.mxu3  ;;  %v5989_v18 = vadd.f32 %v10480_v38, %v5907_v19 }
 0x88f   :  { %v5290_v51 = vpop.f32.mrf.mxu2 }
 0x890   :  { %v5291_v30 = vadd.f32 %v5290_v51, %v12054_v43  ;;  %v5486_v24 = vpop.f32.mrf.mxu0  ;;  %v6065_v37 = vmax.f32 %v5989_v18, 0.0 }
 0x891   :  { %v5590_v48 = vpop.f32.mrf.mxu1 }
 0x892   :  { %v5395_v3 = vadd.f32 %v5394_v31, %v5291_v30  ;;  %v10515_v39 = vadd.f32 %v5590_v48, %v5486_v24 }
 0x893   :  { %5436 = vmatmul.bf16.gmra.mxu3 %v10360_v59  ;;  %5525 = vmatmul.bf16.gmra.mxu0 %v12056_v28 }
 0x894   :  { %12055 = vst [vmem:[#allocation58_spill] sm:$0xff] %v10515_v39  ;;  %v5909_v41 = vmul.f32 %v10477_v50, %v5395_v3  ;;  %5332 = vmatmul.bf16.gmra.mxu2 %v12057_v0  ;;  %5629 = vmatmul.bf16.gmra.mxu1 %v12058_v17  ;;  %v12061_v17 = vld [vmem:[#allocation36_spill] sm:$0xff] }
 0x896   :  { %v5991_v45 = vadd.f32 %v10480_v38, %v5909_v41  ;;  %v5397_v36 = vpop.f32.mrf.mxu3 }
 0x897   :  { %v5293_v7 = vpop.f32.mrf.mxu2 }
 0x898   :  { %v5294_v48 = vadd.f32 %v5293_v7, %v12059_v47  ;;  %v5488_v31 = vpop.f32.mrf.mxu0  ;;  %v6067_v51 = vmax.f32 %v5991_v45, 0.0  ;;  %v12063_v45 = vld [vmem:[#allocation151_spill] sm:$0xff]  ;;  %v12065_v47 = vld [vmem:[#allocation156_spill] sm:$0xff] }
 0x899   :  { %v5592_v43 = vpop.f32.mrf.mxu1 }
 0x89a   :  { %v5398_v30 = vadd.f32 %v5397_v36, %v5294_v48  ;;  %v10525_v24 = vadd.f32 %v5592_v43, %v5488_v31  ;;  %v10527_v19 = vpack.c.bf16 %v6067_v51, %v6065_v37  ;;  %v12064_v37 = vld [vmem:[#allocation138_spill] sm:$0xff] }
 0x89c   :  { %12060 = vst [vmem:[#allocation82_spill] sm:$0xff] %v10525_v24  ;;  %v5911_v0 = vmul.f32 %v10477_v50, %v5398_v30 }
 0x89e   :  { %v5399_v3 = vpop.f32.mrf.mxu3  ;;  %v5993_v36 = vadd.f32 %v10480_v38, %v5911_v0 }
 0x89f   :  { %v5295_v28 = vpop.f32.mrf.mxu2 }
 0x8a0   :  { %v5296_v59 = vadd.f32 %v5295_v28, %v12061_v17  ;;  %v5491_v41 = vpop.f32.mrf.mxu0  ;;  %v6069_v43 = vmax.f32 %v5993_v36, 0.0 }
 0x8a1   :  { %v5595_v39 = vpop.f32.mrf.mxu1 }
 0x8a2   :  { %v5400_v60 = vadd.f32 %v5399_v3, %v5296_v59  ;;  %v10531_v18 = vadd.f32 %v5595_v39, %v5491_v41  ;;  %v12066_v59 = vld [vmem:[#allocation40_spill] sm:$0xff] }
 0x8a3   :  { %5441 = vmatmul.bf16.gmra.mxu3 %v10376_v1  ;;  %5530 = vmatmul.bf16.gmra.mxu0 %v12063_v45  ;;  %v8056_v1 = vld [vmem:[#allocation9 + $0x174] sm:$0xf] }
 0x8a4   :  { %12062 = vst [vmem:[#allocation56_spill] sm:$0xff] %v10531_v18  ;;  %v5913_v7 = vmul.f32 %v10477_v50, %v5400_v60  ;;  %5337 = vmatmul.bf16.gmra.mxu2 %v12064_v37  ;;  %5634 = vmatmul.bf16.gmra.mxu1 %v12065_v47  ;;  %v7686_v18 = vld [vmem:[#allocation9 + $0x178] sm:$0xf0] }
 0x8a5   :  { %v7689_v24 = vor.u32 %v8056_v1, %v7686_v18  ;;  %v8072_v1 = vld [vmem:[#allocation9 + $0x1f4] sm:$0xf]  ;;  %v7750_v18 = vld [vmem:[#allocation9 + $0x1f8] sm:$0xf0] }
 0x8a6   :  { %v5995_v48 = vadd.f32 %v10480_v38, %v5913_v7  ;;  %v5402_v31 = vpop.f32.mrf.mxu3 }
 0x8a7   :  { %v5298_v51 = vpop.f32.mrf.mxu2  ;;  %5685 = vmatpush.bf16.msra.mxu2 %v7689_v24 }
 0x8a8   :  { %v5299_v39 = vadd.f32 %v5298_v51, %v12066_v59  ;;  %v5493_v30 = vpop.f32.mrf.mxu0  ;;  %v6071_v3 = vmax.f32 %v5995_v48, 0.0  ;;  %v12067_v48 = vld [vmem:[#allocation152_spill] sm:$0xff] }
 0x8a9   :  { %v5597_v28 = vpop.f32.mrf.mxu1 }
 0x8aa   :  { %v5403_v17 = vadd.f32 %v5402_v31, %v5299_v39  ;;  %v10541_v41 = vadd.f32 %v5597_v28, %v5493_v30  ;;  %v10543_v0 = vpack.c.bf16 %v6071_v3, %v6069_v43  ;;  %v12068_v39 = vld [vmem:[#allocation140_spill] sm:$0xff]  ;;  %v12069_v30 = vld [vmem:[#allocation162_spill] sm:$0xff] }
 0x8ac   :  { %v5915_v37 = vmul.f32 %v10477_v50, %v5403_v17  ;;  %v7753_v17 = vor.u32 %v8072_v1, %v7750_v18 }
 0x8ae   :  { %v5404_v60 = vpop.f32.mrf.mxu3  ;;  %v5997_v31 = vadd.f32 %v10480_v38, %v5915_v37  ;;  %5789 = vmatpush.bf16.msra.mxu3 %v7753_v17  ;;  %v12072_v17 = vld [vmem:[#allocation57_spill] sm:$0xff] }
 0x8af   :  { %v5300_v45 = vpop.f32.mrf.mxu2 }
 0x8b0   :  { %v5301_v47 = vadd.f32 %v5300_v45, %v10278_v13  ;;  %v5496_v7 = vpop.f32.mrf.mxu0 }
 0x8b1   :  { %v5600_v36 = vpop.f32.mrf.mxu1 }
 0x8b2   :  { %v5405_v51 = vadd.f32 %v5404_v60, %v5301_v47  ;;  %v10547_v59 = vadd.f32 %v5600_v36, %v5496_v7  ;;  %v6073_v60 = vmax.f32 %v5997_v31, 0.0 }
 0x8b3   :  { %5446 = vmatmul.bf16.gmra.mxu3 %v10392_v61  ;;  %5535 = vmatmul.bf16.gmra.mxu0 %v12067_v48 }
 0x8b4   :  { %v5917_v43 = vmul.f32 %v10477_v50, %v5405_v51  ;;  %5342 = vmatmul.bf16.gmra.mxu2 %v12068_v39  ;;  %5639 = vmatmul.bf16.gmra.mxu1 %v12069_v30 }
 0x8b6   :  { %v5999_v13 = vadd.f32 %v10480_v38, %v5917_v43  ;;  %v5407_v3 = vpop.f32.mrf.mxu3 }
 0x8b7   :  { %v5303_v28 = vpop.f32.mrf.mxu2 }
 0x8b8   :  { %v5304_v45 = vadd.f32 %v5303_v28, %v10284_v54  ;;  %v5498_v47 = vpop.f32.mrf.mxu0  ;;  %v6075_v7 = vmax.f32 %v5999_v13, 0.0  ;;  %v12070_v54 = vld [vmem:[#allocation153_spill] sm:$0xff]  ;;  %v12071_v28 = vld [vmem:[#allocation143_spill] sm:$0xff] }
 0x8b9   :  { %v5602_v37 = vpop.f32.mrf.mxu1 }
 0x8ba   :  { %v5408_v36 = vadd.f32 %v5407_v3, %v5304_v45  ;;  %v10557_v51 = vadd.f32 %v5602_v37, %v5498_v47  ;;  %v10559_v48 = vpack.c.bf16 %v6075_v7, %v6073_v60 }
 0x8bc   :  { %v5919_v43 = vmul.f32 %v10477_v50, %v5408_v36 }
 0x8be   :  { %v5409_v24 = vpop.f32.mrf.mxu3  ;;  %v6001_v13 = vadd.f32 %v10480_v38, %v5919_v43 }
 0x8bf   :  { %v5305_v30 = vpop.f32.mrf.mxu2 }
 0x8c0   :  { %v5306_v39 = vadd.f32 %v5305_v30, %v10294_v62  ;;  %v5501_v61 = vpop.f32.mrf.mxu0  ;;  %v6077_v47 = vmax.f32 %v6001_v13, 0.0 }
 0x8c1   :  { %v5605_v1 = vpop.f32.mrf.mxu1 }
 0x8c2   :  { %v5410_v31 = vadd.f32 %v5409_v24, %v5306_v39  ;;  %v10563_v18 = vadd.f32 %v5605_v1, %v5501_v61 }
 0x8c3   :  { %5451 = vmatmul.bf16.gmra.mxu3 %v10408_v14  ;;  %5540 = vmatmul.bf16.gmra.mxu0 %v12070_v54  ;;  %v8068_v14 = vld [vmem:[#allocation9 + $0x1d4] sm:$0xf] }
 0x8c4   :  { %v5921_v3 = vmul.f32 %v10477_v50, %v5410_v31  ;;  %5347 = vmatmul.bf16.gmra.mxu2 %v12071_v28  ;;  %5644 = vmatmul.bf16.gmra.mxu1 %v12072_v17 }
 0x8c6   :  { %v6003_v60 = vadd.f32 %v10480_v38, %v5921_v3  ;;  %v5412_v62 = vpop.f32.mrf.mxu3 }
 0x8c7   :  { %v5308_v45 = vpop.f32.mrf.mxu2 }
 0x8c8   :  { %v5309_v61 = vadd.f32 %v5308_v45, %v10300_v40  ;;  %v5503_v39 = vpop.f32.mrf.mxu0  ;;  %v6079_v7 = vmax.f32 %v6003_v60, 0.0  ;;  %v12075_v40 = vld [vmem:[#allocation72_spill] sm:$0xff]  ;;  %v12076_v45 = vld [vmem:[#allocation22_spill] sm:$0xff] }
 0x8c9   :  { %v5607_v37 = vpop.f32.mrf.mxu1 }
 0x8ca   :  { %v5413_v36 = vadd.f32 %v5412_v62, %v5309_v61  ;;  %v10573_v24 = vadd.f32 %v5607_v37, %v5503_v39  ;;  %v10575_v30 = vpack.c.bf16 %v6079_v7, %v6077_v47  ;;  %v12077_v47 = vld [vmem:[#allocation59_spill] sm:$0xff]  ;;  %v7678_v7 = vld [vmem:[#allocation9 + $0x168] sm:$0xf0] }
 0x8cb   :  { %v8054_v39 = vld [vmem:[#allocation9 + $0x164] sm:$0xf] }
 0x8cc   :  { %12073 = vst [vmem:[#allocation79_spill] sm:$0xff] %v10573_v24  ;;  %v5923_v31 = vmul.f32 %v10477_v50, %v5413_v36  ;;  %v8070_v37 = vld [vmem:[#allocation9 + $0x1e4] sm:$0xf] }
 0x8ce   :  { %v5414_v43 = vpop.f32.mrf.mxu3  ;;  %v6005_v60 = vadd.f32 %v10480_v38, %v5923_v31 }
 0x8cf   :  { %v5310_v1 = vpop.f32.mrf.mxu2 }
 0x8d0   :  { %v5311_v54 = vadd.f32 %v5310_v1, %v10310_v16  ;;  %v5506_v3 = vpop.f32.mrf.mxu0  ;;  %v7742_v1 = vld [vmem:[#allocation9 + $0x1e8] sm:$0xf0] }
 0x8d1   :  { %v5610_v17 = vpop.f32.mrf.mxu1  ;;  %v7745_v31 = vor.u32 %v8070_v37, %v7742_v1  ;;  %v7662_v37 = vld [vmem:[#allocation9 + $0x148] sm:$0xf0] }
 0x8d2   :  { %v5415_v28 = vadd.f32 %v5414_v43, %v5311_v54  ;;  %v10579_v13 = vadd.f32 %v5610_v17, %v5506_v3  ;;  %v7681_v43 = vor.u32 %v8054_v39, %v7678_v7  ;;  %v6081_v54 = vmax.f32 %v6005_v60, 0.0  ;;  %v7734_v39 = vld [vmem:[#allocation9 + $0x1d8] sm:$0xf0] }
 0x8d3   :  { %5456 = vmatmul.bf16.gmra.mxu3 %v10424_v20  ;;  %5545 = vmatmul.bf16.gmra.mxu0 %v12075_v40  ;;  %v7737_v7 = vor.u32 %v8068_v14, %v7734_v39  ;;  %v8048_v14 = vld [vmem:[#allocation9 + $0x134] sm:$0xf]  ;;  %v7718_v39 = vld [vmem:[#allocation9 + $0x1b8] sm:$0xf0] }
 0x8d4   :  { %12074 = vst [vmem:[#allocation62_spill] sm:$0xff] %v10579_v13  ;;  %v5925_v62 = vmul.f32 %v10477_v50, %v5415_v28  ;;  %5352 = vmatmul.bf16.gmra.mxu2 %v12076_v45  ;;  %5649 = vmatmul.bf16.gmra.mxu1 %v12077_v47  ;;  %v7670_v47 = vld [vmem:[#allocation9 + $0x158] sm:$0xf0] }
 0x8d5   :  { %5686 = vmatpush.bf16.msra.mxu2 %v7681_v43  ;;  %5790 = vmatpush.bf16.msra.mxu3 %v7745_v31 }
 0x8d6   :  { %v6007_v61 = vadd.f32 %v10480_v38, %v5925_v62  ;;  %v5417_v16 = vpop.f32.mrf.mxu3  ;;  %v8052_v62 = vld [vmem:[#allocation9 + $0x154] sm:$0xf] }
 0x8d7   :  { %v5313_v36 = vpop.f32.mrf.mxu2  ;;  %v7673_v24 = vor.u32 %v8052_v62, %v7670_v47  ;;  %v8064_v62 = vld [vmem:[#allocation9 + $0x1b4] sm:$0xf] }
 0x8d8   :  { %v5314_v3 = vadd.f32 %v5313_v36, %v10316_v52  ;;  %v5508_v17 = vpop.f32.mrf.mxu0  ;;  %v6083_v40 = vmax.f32 %v6007_v61, 0.0  ;;  %v8050_v52 = vld [vmem:[#allocation9 + $0x144] sm:$0xf] }
 0x8d9   :  { %v5612_v28 = vpop.f32.mrf.mxu1  ;;  %5687 = vmatpush.bf16.msra.mxu2 %v7673_v24  ;;  %5791 = vmatpush.bf16.msra.mxu3 %v7737_v7  ;;  %v8066_v61 = vld [vmem:[#allocation9 + $0x1c4] sm:$0xf]  ;;  %v7665_v43 = vor.u32 %v8050_v52, %v7662_v37  ;;  %v7654_v24 = vld [vmem:[#allocation9 + $0x138] sm:$0xf0] }
 0x8da   :  { %v5418_v45 = vadd.f32 %v5417_v16, %v5314_v3  ;;  %v10589_v20 = vadd.f32 %v5612_v28, %v5508_v17  ;;  %v10591_v13 = vpack.c.bf16 %v6083_v40, %v6081_v54  ;;  %v7726_v16 = vld [vmem:[#allocation9 + $0x1c8] sm:$0xf0]  ;;  %v7657_v47 = vor.u32 %v8048_v14, %v7654_v24  ;;  %v12079_v52 = vld [vmem:[#allocation63_spill] sm:$0xff] }
 0x8db   :  { %v7729_v31 = vor.u32 %v8066_v61, %v7726_v16  ;;  %v12078_v7 = vld [vmem:[#allocation144_spill] sm:$0xff] }
 0x8dc   :  { %v5927_v1 = vmul.f32 %v10477_v50, %v5418_v45  ;;  %v8062_v16 = vld [vmem:[#allocation9 + $0x1a4] sm:$0xf] }
 0x8dd   :  { %5688 = vmatpush.bf16.msra.mxu2 %v7665_v43  ;;  %5792 = vmatpush.bf16.msra.mxu3 %v7729_v31  ;;  %v7646_v43 = vld [vmem:[#allocation9 + $0x128] sm:$0xf0] }
 0x8de   :  { %v5419_v60 = vpop.f32.mrf.mxu3  ;;  %v6009_v45 = vadd.f32 %v10480_v38, %v5927_v1 }
 0x8df   :  { %v5315_v36 = vpop.f32.mrf.mxu2 }
 0x8e0   :  { %v5316_v3 = vadd.f32 %v5315_v36, %v10326_v27  ;;  %v5511_v17 = vpop.f32.mrf.mxu0  ;;  %v8046_v36 = vld [vmem:[#allocation9 + $0x124] sm:$0xf]  ;;  %v6085_v31 = vmax.f32 %v6009_v45, 0.0 }
 0x8e1   :  { %v5615_v54 = vpop.f32.mrf.mxu1  ;;  %5689 = vmatpush.bf16.msra.mxu2 %v7657_v47 }
 0x8e2   :  { %v5420_v40 = vadd.f32 %v5419_v60, %v5316_v3  ;;  %v10595_v28 = vadd.f32 %v5615_v54, %v5511_v17  ;;  %v7721_v60 = vor.u32 %v8064_v62, %v7718_v39  ;;  %v7649_v3 = vor.u32 %v8046_v36, %v7646_v43  ;;  %v7710_v17 = vld [vmem:[#allocation9 + $0x1a8] sm:$0xf0]  ;;  %v8044_v39 = vld [vmem:[#allocation9 + $0x114] sm:$0xf]  ;;  %v7702_v36 = vld [vmem:[#allocation9 + $0x198] sm:$0xf0] }
 0x8e3   :  { %5461 = vmatmul.bf16.gmra.mxu3 %v10440_v23  ;;  %5550 = vmatmul.bf16.gmra.mxu0 %v12002_v21 }
 0x8e4   :  { %v5929_v27 = vmul.f32 %v10477_v50, %v5420_v40  ;;  %5357 = vmatmul.bf16.gmra.mxu2 %v12078_v7  ;;  %5654 = vmatmul.bf16.gmra.mxu1 %v12079_v52  ;;  %v7713_v40 = vor.u32 %v8062_v16, %v7710_v17  ;;  %v8060_v52 = vld [vmem:[#allocation9 + $0x194] sm:$0xf]  ;;  %v7630_v16 = vld [vmem:[#allocation9 + $0x108] sm:$0xf0] }
 0x8e5   :  { %5793 = vmatpush.bf16.msra.mxu3 %v7721_v60  ;;  %5690 = vmatpush.bf16.msra.mxu2 %v7649_v3  ;;  %v7705_v43 = vor.u32 %v8060_v52, %v7702_v36 }
 0x8e6   :  { %v6011_v37 = vadd.f32 %v10480_v38, %v5929_v27  ;;  %v5422_v61 = vpop.f32.mrf.mxu3  ;;  %v7638_v27 = vld [vmem:[#allocation9 + $0x118] sm:$0xf0] }
 0x8e7   :  { %v5318_v21 = vpop.f32.mrf.mxu2  ;;  %v7641_v7 = vor.u32 %v8044_v39, %v7638_v27  ;;  %v12080_v27 = vld [vmem:[#allocation20_spill] sm:$0xff] }
 0x8e8   :  { %v5319_v1 = vadd.f32 %v5318_v21, %v10332_v26  ;;  %v5513_v54 = vpop.f32.mrf.mxu0  ;;  %v6087_v14 = vmax.f32 %v6011_v37, 0.0  ;;  %v8042_v26 = vld [vmem:[#allocation9 + $0x104] sm:$0xf] }
 0x8e9   :  { %v5617_v24 = vpop.f32.mrf.mxu1  ;;  %5794 = vmatpush.bf16.msra.mxu3 %v7713_v40  ;;  %5691 = vmatpush.bf16.msra.mxu2 %v7641_v7  ;;  %v8058_v37 = vld [vmem:[#allocation9 + $0x184] sm:$0xf]  ;;  %v7633_v3 = vor.u32 %v8042_v26, %v7630_v16 }
 0x8ea   :  { %v5423_v62 = vadd.f32 %v5422_v61, %v5319_v1  ;;  %v10605_v47 = vadd.f32 %v5617_v24, %v5513_v54  ;;  %v10607_v60 = vpack.c.bf16 %v6087_v14, %v6085_v31  ;;  %v7694_v61 = vld [vmem:[#allocation9 + $0x188] sm:$0xf0] }
 0x8eb   :  { %v7697_v40 = vor.u32 %v8058_v37, %v7694_v61 }
 0x8ec   :  { %v5931_v17 = vmul.f32 %v10477_v50, %v5423_v62 }
 0x8ed   :  { %5795 = vmatpush.bf16.msra.mxu3 %v7705_v43  ;;  %5692 = vmatpush.bf16.msra.mxu2 %v7633_v3 }
 0x8ee   :  { %v5424_v45 = vpop.f32.mrf.mxu3  ;;  %v6013_v7 = vadd.f32 %v10480_v38, %v5931_v17 }
 0x8ef   :  { %v5320_v21 = vpop.f32.mrf.mxu2 }
 0x8f0   :  { %v5321_v1 = vadd.f32 %v5320_v21, %v10342_v22  ;;  %v5516_v54 = vpop.f32.mrf.mxu0  ;;  %v6089_v36 = vmax.f32 %v6013_v7, 0.0 }
 0x8f1   :  { %v5620_v31 = vpop.f32.mrf.mxu1  ;;  %5796 = vmatpush.bf16.msra.mxu3 %v7697_v40 }
 0x8f2   :  { %v5425_v14 = vadd.f32 %v5424_v45, %v5321_v1  ;;  %v10611_v24 = vadd.f32 %v5620_v31, %v5516_v54 }
 0x8f3   :  { %5466 = vmatmul.bf16.gmra.mxu3 %v10456_v10  ;;  %5555 = vmatmul.bf16.gmra.mxu0 %v12005_v46 }
 0x8f4   :  { %v5933_v39 = vmul.f32 %v10477_v50, %v5425_v14  ;;  %5362 = vmatmul.bf16.gmra.mxu2 %v12080_v27  ;;  %5659 = vmatmul.bf16.gmra.mxu1 %v12006_v12  ;;  %v8081_v14 = vld [vmem:[#allocation12 + $0x38] sm:$0xff] }
 0x8f5   :  { %6299 = vmatpush.bf16.msra.mxu0 %v8081_v14 }
 0x8f6   :  { %v6015_v22 = vadd.f32 %v10480_v38, %v5933_v39  ;;  %v5427_v62 = vpop.f32.mrf.mxu3 }
 0x8f7   :  { %v5323_v52 = vpop.f32.mrf.mxu2 }
 0x8f8   :  { %v5324_v43 = vadd.f32 %v5323_v52, %v10348_v9  ;;  %v5518_v45 = vpop.f32.mrf.mxu0  ;;  %v6091_v26 = vmax.f32 %v6015_v22, 0.0  ;;  %v12081_v9 = vld [vmem:[#allocation81_spill] sm:$0xff]  ;;  %v12082_v22 = vld [vmem:[#allocation146_spill] sm:$0xff] }
 0x8f9   :  { %v5622_v16 = vpop.f32.mrf.mxu1 }
 0x8fa   :  { %v5428_v37 = vadd.f32 %v5427_v62, %v5324_v43  ;;  %v10621_v46 = vadd.f32 %v5622_v16, %v5518_v45  ;;  %v10623_v21 = vpack.c.bf16 %v6091_v26, %v6089_v36  ;;  %v12083_v62 = vld [vmem:[#allocation70_spill] sm:$0xff] }
 0x8fb   :  { %v8080_v43 = vld [vmem:[#allocation12 + $0x30] sm:$0xff] }
 0x8fc   :  { %v5935_v17 = vmul.f32 %v10477_v50, %v5428_v37  ;;  %6300 = vmatpush.bf16.msra.mxu0 %v8080_v43 }
 0x8fe   :  { %v5429_v3 = vpop.f32.mrf.mxu3  ;;  %v6017_v7 = vadd.f32 %v10480_v38, %v5935_v17 }
 0x8ff   :  { %v5325_v61 = vpop.f32.mrf.mxu2 }
 0x900   :  { %v5326_v12 = vadd.f32 %v5325_v61, %v10358_v42  ;;  %v5521_v1 = vpop.f32.mrf.mxu0  ;;  %v6093_v45 = vmax.f32 %v6017_v7, 0.0 }
 0x901   :  { %v5625_v54 = vpop.f32.mrf.mxu1 }
 0x902   :  { %v5430_v40 = vadd.f32 %v5429_v3, %v5326_v12  ;;  %v10627_v31 = vadd.f32 %v5625_v54, %v5521_v1  ;;  %v8079_v12 = vld [vmem:[#allocation12 + $0x28] sm:$0xff] }
 0x903   :  { %5471 = vmatmul.bf16.gmra.mxu3 %v10475_v15  ;;  %5560 = vmatmul.bf16.gmra.mxu0 %v12081_v9 }
 0x904   :  { %v5937_v39 = vmul.f32 %v10477_v50, %v5430_v40  ;;  %5367 = vmatmul.bf16.gmra.mxu2 %v12082_v22  ;;  %5664 = vmatmul.bf16.gmra.mxu1 %v12083_v62  ;;  %v8078_v40 = vld [vmem:[#allocation12 + $0x20] sm:$0xff] }
 0x905   :  { %6301 = vmatpush.bf16.msra.mxu0 %v8079_v12 }
 0x906   :  { %v6019_v42 = vadd.f32 %v10480_v38, %v5937_v39  ;;  %v5432_v52 = vpop.f32.mrf.mxu3 }
 0x907   :  { %v5328_v36 = vpop.f32.mrf.mxu2 }
 0x908   :  { %v5329_v26 = vadd.f32 %v5328_v36, %v10364_v29  ;;  %v10637_v16 = vpop.f32.mrf.mxu0  ;;  %v6095_v37 = vmax.f32 %v6019_v42, 0.0  ;;  %v12084_v42 = vld [vmem:[#allocation84_spill] sm:$0xff]  ;;  %v8077_v36 = vld [vmem:[#allocation12 + $0x18] sm:$0xff] }
 0x909   :  { %v10639_v3 = vpop.f32.mrf.mxu1  ;;  %6302 = vmatpush.bf16.msra.mxu0 %v8078_v40 }
 0x90a   :  { %v5433_v61 = vadd.f32 %v5432_v52, %v5329_v26  ;;  %v10641_v17 = vpack.c.bf16 %v6095_v37, %v6093_v45  ;;  %v12085_v52 = vld [vmem:[#allocation150_spill] sm:$0xff]  ;;  %v12086_v26 = vld [vmem:[#allocation157_spill] sm:$0xff]  ;;  %v12087_v37 = vld [vmem:[#allocation167_spill] sm:$0xff] }
 0x90c   :  { %v5939_v9 = vmul.f32 %v10477_v50, %v5433_v61 }
 0x90d   :  { %6303 = vmatpush.bf16.msra.mxu0 %v8077_v36 }
 0x90e   :  { %v5434_v1 = vpop.f32.mrf.mxu3  ;;  %v6021_v43 = vadd.f32 %v10480_v38, %v5939_v9 }
 0x90f   :  { %v5330_v54 = vpop.f32.mrf.mxu2 }
 0x910   :  { %v5331_v14 = vadd.f32 %v5330_v54, %v10374_v35  ;;  %v5526_v7 = vpop.f32.mrf.mxu0  ;;  %v6097_v54 = vmax.f32 %v6021_v43, 0.0 }
 0x911   :  { %v5630_v29 = vpop.f32.mrf.mxu1 }
 0x912   :  { %v5435_v39 = vadd.f32 %v5434_v1, %v5331_v14  ;;  %v10645_v62 = vadd.f32 %v5630_v29, %v5526_v7  ;;  %v8076_v1 = vld [vmem:[#allocation12 + $0x10] sm:$0xff] }
 0x913   :  { %5565 = vmatmul.bf16.gmra.mxu0 %v12084_v42  ;;  %5797 = vmatmul.bf16.vlgmr.msra.gmra.mxu3 %v12085_v52  ;;  %v8075_v42 = vld [vmem:[#allocation12 + $0x8] sm:$0xff] }
 0x914   :  { %v5941_v45 = vmul.f32 %v10477_v50, %v5435_v39  ;;  %5669 = vmatmul.bf16.gmra.mxu1 %v12086_v26  ;;  %5693 = vmatmul.bf16.vlgmr.msra.gmra.mxu2 %v12087_v37 }
 0x915   :  { %6304 = vmatpush.bf16.msra.mxu0 %v8076_v1 }
 0x916   :  { %v6023_v35 = vadd.f32 %v10480_v38, %v5941_v45  ;;  %v5437_v61 = vpop.f32.mrf.mxu3  ;;  %v8074_v45 = vld [vmem:[#allocation12] sm:$0xff] }
 0x917   :  { %v5333_v12 = vpop.f32.mrf.mxu2 }
 0x918   :  { %v5334_v40 = vadd.f32 %v5333_v12, %v10380_v25  ;;  %v10655_v14 = vpop.f32.mrf.mxu0  ;;  %v6099_v7 = vmax.f32 %v6023_v35, 0.0 }
 0x919   :  { %v10657_v29 = vpop.f32.mrf.mxu1  ;;  %6305 = vmatpush.bf16.msra.mxu0 %v8075_v42 }
 0x91a   :  { %v5438_v9 = vadd.f32 %v5437_v61, %v5334_v40  ;;  %v10659_v39 = vpack.c.bf16 %v6099_v7, %v6097_v54  ;;  %v12088_v54 = vld [vmem:[#allocation110_spill] sm:$0xff] }
 0x91c   :  { %v5943_v26 = vmul.f32 %v10477_v50, %v5438_v9 }
 0x91d   :  { %6306 = vmatpush.bf16.msra.mxu0 %v8074_v45 }
 0x91e   :  { %v5439_v52 = vpop.f32.mrf.mxu3  ;;  %v6025_v61 = vadd.f32 %v10480_v38, %v5943_v26 }
 0x91f   :  { %v5335_v36 = vpop.f32.mrf.mxu2 }
 0x920   :  { %v5336_v43 = vadd.f32 %v5335_v36, %v10390_v6  ;;  %v5531_v37 = vpop.f32.mrf.mxu0  ;;  %v6101_v9 = vmax.f32 %v6025_v61, 0.0 }
 0x921   :  { %v5635_v25 = vpop.f32.mrf.mxu1 }
 0x922   :  { %v5440_v12 = vadd.f32 %v5439_v52, %v5336_v43  ;;  %v10663_v35 = vadd.f32 %v5635_v25, %v5531_v37 }
 0x923   :  { %5570 = vmatmul.bf16.gmra.mxu0 %v12015_v53  ;;  %5802 = vmatmul.bf16.gmra.mxu3 %v10198_v55 }
 0x924   :  { %v5945_v1 = vmul.f32 %v10477_v50, %v5440_v12  ;;  %5674 = vmatmul.bf16.gmra.mxu1 %v12016_v34  ;;  %5698 = vmatmul.bf16.gmra.mxu2 %v12088_v54  ;;  %v12091_v54 = vld [vmem:[#allocation28_spill] sm:$0xff] }
 0x926   :  { %v6027_v6 = vadd.f32 %v10480_v38, %v5945_v1  ;;  %v5442_v40 = vpop.f32.mrf.mxu3 }
 0x927   :  { %v5338_v7 = vpop.f32.mrf.mxu2 }
 0x928   :  { %v5339_v42 = vadd.f32 %v5338_v7, %v10396_v5  ;;  %v10673_v52 = vpop.f32.mrf.mxu0  ;;  %v6103_v53 = vmax.f32 %v6027_v6, 0.0  ;;  %v12090_v5 = vld [vmem:[#allocation90_spill] sm:$0xff]  ;;  %v12092_v7 = vld [vmem:[#allocation164_spill] sm:$0xff] }
 0x929   :  { %v10675_v36 = vpop.f32.mrf.mxu1 }
 0x92a   :  { %v5443_v55 = vadd.f32 %v5442_v40, %v5339_v42  ;;  %v10677_v45 = vpack.c.bf16 %v6103_v53, %v6101_v9  ;;  %v12093_v9 = vld [vmem:[#allocation113_spill] sm:$0xff] }
 0x92c   :  { %v5947_v34 = vmul.f32 %v10477_v50, %v5443_v55 }
 0x92e   :  { %v5444_v26 = vpop.f32.mrf.mxu3  ;;  %v6029_v6 = vadd.f32 %v10480_v38, %v5947_v34 }
 0x92f   :  { %v5340_v43 = vpop.f32.mrf.mxu2 }
 0x930   :  { %v5341_v37 = vadd.f32 %v5340_v43, %v10406_v2  ;;  %v5536_v25 = vpop.f32.mrf.mxu0  ;;  %v6105_v55 = vmax.f32 %v6029_v6, 0.0 }
 0x931   :  { %v5640_v12 = vpop.f32.mrf.mxu1 }
 0x932   :  { %v5445_v1 = vadd.f32 %v5444_v26, %v5341_v37  ;;  %v10681_v61 = vadd.f32 %v5640_v12, %v5536_v25  ;;  %v12094_v26 = vld [vmem:[#allocation54_spill] sm:$0xff] }
 0x933   :  { %5575 = vmatmul.bf16.gmra.mxu0 %v12090_v5  ;;  %5807 = vmatmul.bf16.gmra.mxu3 %v12091_v54 }
 0x934   :  { %12089 = vst [vmem:[#allocation88_spill] sm:$0xff] %v10681_v61  ;;  %v5949_v40 = vmul.f32 %v10477_v50, %v5445_v1  ;;  %5679 = vmatmul.bf16.gmra.mxu1 %v12092_v7  ;;  %5703 = vmatmul.bf16.gmra.mxu2 %v12093_v9 }
 0x936   :  { %v6031_v42 = vadd.f32 %v10480_v38, %v5949_v40  ;;  %v5447_v2 = vpop.f32.mrf.mxu3 }
 0x937   :  { %v5343_v53 = vpop.f32.mrf.mxu2 }
 0x938   :  { %v5344_v43 = vadd.f32 %v5343_v53, %v12094_v26  ;;  %v10691_v37 = vpop.f32.mrf.mxu0  ;;  %v6107_v25 = vmax.f32 %v6031_v42, 0.0  ;;  %v12098_v53 = vld [vmem:[#allocation34_spill] sm:$0xff] }
 0x939   :  { %12095 = vst [vmem:[#allocation60_spill] sm:$0xff] %v10691_v37  ;;  %v10693_v12 = vpop.f32.mrf.mxu1 }
 0x93a   :  { %12096 = vst [vmem:[#allocation85_spill] sm:$0xff] %v10693_v12  ;;  %v5448_v5 = vadd.f32 %v5447_v2, %v5344_v43  ;;  %v10695_v34 = vpack.c.bf16 %v6107_v25, %v6105_v55  ;;  %v12099_v55 = vld [vmem:[#allocation115_spill] sm:$0xff] }
 0x93b   :  { %v8089_v25 = vld [vmem:[#allocation12 + $0x78] sm:$0xff] }
 0x93c   :  { %v5951_v7 = vmul.f32 %v10477_v50, %v5448_v5  ;;  %6403 = vmatpush.bf16.msra.mxu1 %v8089_v25  ;;  %v12102_v25 = vld [vmem:[#allocation118_spill] sm:$0xff] }
 0x93e   :  { %v5449_v1 = vpop.f32.mrf.mxu3  ;;  %v6033_v42 = vadd.f32 %v10480_v38, %v5951_v7 }
 0x93f   :  { %v5345_v54 = vpop.f32.mrf.mxu2 }
 0x940   :  { %v5346_v9 = vadd.f32 %v5345_v54, %v10422_v11  ;;  %v5541_v40 = vpop.f32.mrf.mxu0  ;;  %v6109_v5 = vmax.f32 %v6033_v42, 0.0  ;;  %v12100_v54 = vld [vmem:[#allocation52_spill] sm:$0xff] }
 0x941   :  { %v5645_v61 = vpop.f32.mrf.mxu1 }
 0x942   :  { %v5450_v22 = vadd.f32 %v5449_v1, %v5346_v9  ;;  %v10699_v6 = vadd.f32 %v5645_v61, %v5541_v40 }
 0x943   :  { %5812 = vmatmul.bf16.gmra.mxu3 %v12098_v53  ;;  %6307 = vmatmul.bf16.vlgmr.msra.gmra.mxu0 %v10493_v32 }
 0x944   :  { %12097 = vst [vmem:[#allocation23_spill] sm:$0xff] %v10699_v6  ;;  %v5953_v2 = vmul.f32 %v10477_v50, %v5450_v22  ;;  %5708 = vmatmul.bf16.gmra.mxu2 %v12099_v55 }
 0x946   :  { %v6035_v26 = vadd.f32 %v10480_v38, %v5953_v2  ;;  %v5452_v43 = vpop.f32.mrf.mxu3 }
 0x947   :  { %v5348_v11 = vpop.f32.mrf.mxu2 }
 0x948   :  { %v5349_v1 = vadd.f32 %v5348_v11, %v12100_v54  ;;  %v10708_v61 = vpop.f32.mrf.mxu0  ;;  %v6111_v9 = vmax.f32 %v6035_v26, 0.0  ;;  %v12101_v11 = vld [vmem:[#allocation53_spill] sm:$0xff] }
 0x949   :  { %v10710_v40 = vpop.f32.mrf.mxu1 }
 0x94a   :  { %v5453_v32 = vadd.f32 %v5452_v43, %v5349_v1  ;;  %v10712_v7 = vpack.c.bf16 %v6111_v9, %v6109_v5 }
 0x94c   :  { %v5955_v55 = vmul.f32 %v10477_v50, %v5453_v32 }
 0x94e   :  { %v5454_v22 = vpop.f32.mrf.mxu3  ;;  %v6037_v26 = vadd.f32 %v10480_v38, %v5955_v55 }
 0x94f   :  { %v5350_v53 = vpop.f32.mrf.mxu2 }
 0x950   :  { %v5351_v2 = vadd.f32 %v5350_v53, %v10438_v33  ;;  %v5546_v6 = vpop.f32.mrf.mxu0  ;;  %v6113_v33 = vmax.f32 %v6037_v26, 0.0 }
 0x951   :  { %v5650_v12 = vpop.f32.mrf.mxu1 }
 0x952   :  { %v5455_v42 = vadd.f32 %v5454_v22, %v5351_v2  ;;  %v10716_v37 = vadd.f32 %v5650_v12, %v5546_v6 }
 0x953   :  { %5817 = vmatmul.bf16.gmra.mxu3 %v12101_v11  ;;  %6312 = vmatmul.bf16.gmra.mxu0 %v10511_v44 }
 0x954   :  { %v5957_v43 = vmul.f32 %v10477_v50, %v5455_v42  ;;  %5713 = vmatmul.bf16.gmra.mxu2 %v12102_v25 }
 0x956   :  { %v6039_v5 = vadd.f32 %v10480_v38, %v5957_v43  ;;  %v5457_v54 = vpop.f32.mrf.mxu3 }
 0x957   :  { %v5353_v1 = vpop.f32.mrf.mxu2 }
 0x958   :  { %v5354_v9 = vadd.f32 %v5353_v1, %v10444_v49  ;;  %v10725_v32 = vpop.f32.mrf.mxu0  ;;  %v6115_v12 = vmax.f32 %v6039_v5, 0.0  ;;  %v12104_v49 = vld [vmem:[#allocation42_spill] sm:$0xff]  ;;  %v12105_v1 = vld [vmem:[#allocation120_spill] sm:$0xff] }
 0x959   :  { %v10727_v6 = vpop.f32.mrf.mxu1 }
 0x95a   :  { %v5458_v22 = vadd.f32 %v5457_v54, %v5354_v9  ;;  %v10729_v44 = vpack.c.bf16 %v6115_v12, %v6113_v33 }
 0x95c   :  { %v5959_v2 = vmul.f32 %v10477_v50, %v5458_v22 }
 0x95e   :  { %v5459_v53 = vpop.f32.mrf.mxu3  ;;  %v6041_v5 = vadd.f32 %v10480_v38, %v5959_v2 }
 0x95f   :  { %v5355_v55 = vpop.f32.mrf.mxu2 }
 0x960   :  { %v5356_v42 = vadd.f32 %v5355_v55, %v10454_v56  ;;  %v5551_v11 = vpop.f32.mrf.mxu0  ;;  %v6117_v56 = vmax.f32 %v6041_v5, 0.0 }
 0x961   :  { %v5655_v43 = vpop.f32.mrf.mxu1 }
 0x962   :  { %v5460_v25 = vadd.f32 %v5459_v53, %v5356_v42  ;;  %v10733_v26 = vadd.f32 %v5655_v43, %v5551_v11 }
 0x963   :  { %5822 = vmatmul.bf16.gmra.mxu3 %v12104_v49  ;;  %6317 = vmatmul.bf16.gmra.mxu0 %v10527_v19 }
 0x964   :  { %12103 = vst [vmem:[#allocation94_spill] sm:$0xff] %v10733_v26  ;;  %v5961_v54 = vmul.f32 %v10477_v50, %v5460_v25  ;;  %5718 = vmatmul.bf16.gmra.mxu2 %v12105_v1  ;;  %v8088_v25 = vld [vmem:[#allocation12 + $0x70] sm:$0xff] }
 0x965   :  { %6404 = vmatpush.bf16.msra.mxu1 %v8088_v25 }
 0x966   :  { %v6043_v33 = vadd.f32 %v10480_v38, %v5961_v54  ;;  %v5462_v9 = vpop.f32.mrf.mxu3 }
 0x967   :  { %v5358_v12 = vpop.f32.mrf.mxu2 }
 0x968   :  { %v5359_v22 = vadd.f32 %v5358_v12, %v10460_v4  ;;  %v10742_v53 = vpop.f32.mrf.mxu0  ;;  %v6119_v55 = vmax.f32 %v6043_v33, 0.0  ;;  %v12107_v12 = vld [vmem:[#allocation61_spill] sm:$0xff] }
 0x969   :  { %v10744_v42 = vpop.f32.mrf.mxu1  ;;  %v8087_v33 = vld [vmem:[#allocation12 + $0x68] sm:$0xff] }
 0x96a   :  { %v5463_v11 = vadd.f32 %v5462_v9, %v5359_v22  ;;  %v10746_v19 = vpack.c.bf16 %v6119_v55, %v6117_v56  ;;  %v12108_v22 = vld [vmem:[#allocation123_spill] sm:$0xff]  ;;  %6405 = vmatpush.bf16.msra.mxu1 %v8087_v33 }
 0x96c   :  { %v5963_v49 = vmul.f32 %v10477_v50, %v5463_v11 }
 0x96e   :  { %v5464_v2 = vpop.f32.mrf.mxu3  ;;  %v6045_v9 = vadd.f32 %v10480_v38, %v5963_v49 }
 0x96f   :  { %v5360_v43 = vpop.f32.mrf.mxu2 }
 0x970   :  { %v5361_v54 = vadd.f32 %v5360_v43, %v10473_v58  ;;  %v5556_v1 = vpop.f32.mrf.mxu0  ;;  %v8086_v43 = vld [vmem:[#allocation12 + $0x60] sm:$0xff] }
 0x971   :  { %v5660_v26 = vpop.f32.mrf.mxu1  ;;  %6406 = vmatpush.bf16.msra.mxu1 %v8086_v43 }
 0x972   :  { %v5465_v5 = vadd.f32 %v5464_v2, %v5361_v54  ;;  %v10750_v4 = vadd.f32 %v5660_v26, %v5556_v1  ;;  %v6121_v2 = vmax.f32 %v6045_v9, 0.0 }
 0x973   :  { %5827 = vmatmul.bf16.gmra.mxu3 %v12107_v12  ;;  %6322 = vmatmul.bf16.gmra.mxu0 %v10543_v0 }
 0x974   :  { %12106 = vst [vmem:[#allocation21_spill] sm:$0xff] %v10750_v4  ;;  %v5965_v56 = vmul.f32 %v10477_v50, %v5465_v5  ;;  %5723 = vmatmul.bf16.gmra.mxu2 %v12108_v22  ;;  %v8085_v5 = vld [vmem:[#allocation12 + $0x58] sm:$0xff] }
 0x975   :  { %6407 = vmatpush.bf16.msra.mxu1 %v8085_v5  ;;  %v8082_v5 = vld [vmem:[#allocation12 + $0x40] sm:$0xff] }
 0x976   :  { %v6047_v58 = vadd.f32 %v10480_v38, %v5965_v56  ;;  %v5467_v55 = vpop.f32.mrf.mxu3  ;;  %v8084_v56 = vld [vmem:[#allocation12 + $0x50] sm:$0xff] }
 0x977   :  { %v5363_v11 = vpop.f32.mrf.mxu2 }
 0x978   :  { %v5364_v26 = vadd.f32 %v5363_v11, %v10483_v8  ;;  %v10759_v25 = vpop.f32.mrf.mxu0  ;;  %v6123_v54 = vmax.f32 %v6047_v58, 0.0 }
 0x979   :  { %12109 = vst [vmem:[#allocation91_spill] sm:$0xff] %v10759_v25  ;;  %v10761_v0 = vpop.f32.mrf.mxu1  ;;  %6408 = vmatpush.bf16.msra.mxu1 %v8084_v56 }
 0x97a   :  { %12110 = vst [vmem:[#allocation27_spill] sm:$0xff] %v10761_v0  ;;  %v5468_v49 = vadd.f32 %v5467_v55, %v5364_v26  ;;  %v10763_v1 = vpack.c.bf16 %v6123_v54, %v6121_v2  ;;  %v12112_v0 = vld [vmem:[#allocation46_spill] sm:$0xff]  ;;  %v8083_v55 = vld [vmem:[#allocation12 + $0x48] sm:$0xff] }
 0x97b   :  { %v12113_v26 = vld [vmem:[#allocation125_spill] sm:$0xff] }
 0x97c   :  { %v5967_v22 = vmul.f32 %v10477_v50, %v5468_v49 }
 0x97d   :  { %6409 = vmatpush.bf16.msra.mxu1 %v8083_v55  ;;  %v12114_v55 = vld [vmem:[#allocation73_spill] sm:$0xff] }
 0x97e   :  { %v5469_v12 = vpop.f32.mrf.mxu3  ;;  %v6049_v43 = vadd.f32 %v10480_v38, %v5967_v22 }
 0x97f   :  { %v5365_v33 = vpop.f32.mrf.mxu2 }
 0x980   :  { %v5366_v9 = vadd.f32 %v5365_v33, %v10495_v63  ;;  %v5561_v4 = vpop.f32.mrf.mxu0 }
 0x981   :  { %v5665_v8 = vpop.f32.mrf.mxu1  ;;  %6410 = vmatpush.bf16.msra.mxu1 %v8082_v5 }
 0x982   :  { %v5470_v11 = vadd.f32 %v5469_v12, %v5366_v9  ;;  %v10767_v58 = vadd.f32 %v5665_v8, %v5561_v4  ;;  %v6125_v12 = vmax.f32 %v6049_v43, 0.0 }
 0x983   :  { %5832 = vmatmul.bf16.gmra.mxu3 %v12112_v0  ;;  %6327 = vmatmul.bf16.gmra.mxu0 %v10559_v48 }
 0x984   :  { %12111 = vst [vmem:[#allocation98_spill] sm:$0xff] %v10767_v58  ;;  %v5969_v2 = vmul.f32 %v10477_v50, %v5470_v11  ;;  %5728 = vmatmul.bf16.gmra.mxu2 %v12113_v26 }
 0x986   :  { %v6051_v63 = vadd.f32 %v10480_v38, %v5969_v2  ;;  %v5472_v54 = vpop.f32.mrf.mxu3 }
 0x987   :  { %v5368_v49 = vpop.f32.mrf.mxu2 }
 0x988   :  { %v5369_v4 = vadd.f32 %v5368_v49, %v10499_v57  ;;  %v10776_v33 = vpop.f32.mrf.mxu0  ;;  %v6127_v0 = vmax.f32 %v6051_v63, 0.0  ;;  %v12116_v57 = vld [vmem:[#allocation66_spill] sm:$0xff]  ;;  %v12117_v49 = vld [vmem:[#allocation128_spill] sm:$0xff] }
 0x989   :  { %v10778_v48 = vpop.f32.mrf.mxu1 }
 0x98a   :  { %v5473_v56 = vadd.f32 %v5472_v54, %v5369_v4  ;;  %v10780_v22 = vpack.c.bf16 %v6127_v0, %v6125_v12 }
 0x98c   :  { %v5971_v11 = vmul.f32 %v10477_v50, %v5473_v56  ;;  %v12118_v56 = vld [vmem:[#allocation58_spill] sm:$0xff] }
 0x98e   :  { %v5474_v9 = vpop.f32.mrf.mxu3  ;;  %v6053_v63 = vadd.f32 %v10480_v38, %v5971_v11 }
 0x98f   :  { %v5370_v8 = vpop.f32.mrf.mxu2 }
 0x990   :  { %v5371_v2 = vadd.f32 %v5370_v8, %v12114_v55  ;;  %v5566_v26 = vpop.f32.mrf.mxu0  ;;  %v6129_v0 = vmax.f32 %v6053_v63, 0.0 }
 0x991   :  { %v5670_v58 = vpop.f32.mrf.mxu1 }
 0x992   :  { %v5475_v43 = vadd.f32 %v5474_v9, %v5371_v2  ;;  %v10784_v25 = vadd.f32 %v5670_v58, %v5566_v26 }
 0x993   :  { %5837 = vmatmul.bf16.gmra.mxu3 %v12116_v57  ;;  %6332 = vmatmul.bf16.gmra.mxu0 %v10575_v30  ;;  %v8132_v57 = vld [vmem:[#allocation11] sm:$0x3] }
 0x994   :  { %12115 = vst [vmem:[#allocation25_spill] sm:$0xff] %v10784_v25  ;;  %v5973_v54 = vmul.f32 %v10477_v50, %v5475_v43  ;;  %5733 = vmatmul.bf16.gmra.mxu2 %v12117_v49  ;;  %v8131_v50 = vld [vmem:[%s11172_s5] sm:$0x3]  ;;  %v10805_v63 = vperm.slane %v8132_v57, 1 }
 0x995   :  { %v10802_v11 = vperm.slane %v8131_v50, 1  ;;  %v12124_v50 = vld [vmem:[#allocation130_spill] sm:$0xff] }
 0x996   :  { %v6055_v5 = vadd.f32 %v10480_v38, %v5973_v54  ;;  %v5798_v12 = vpop.f32.mrf.mxu3  ;;  %v12121_v54 = vld [vmem:[#allocation82_spill] sm:$0xff] }
 0x997   :  { %v5694_v4 = vpop.f32.mrf.mxu2 }
 0x998   :  { %v5695_v8 = vadd.f32 %v5694_v4, %v12118_v56  ;;  %v10793_v9 = vpop.f32.mrf.mxu0  ;;  %v6131_v58 = vmax.f32 %v6055_v5, 0.0 }
 0x999   :  { %12119 = vst [vmem:[#allocation96_spill] sm:$0xff] %v10793_v9  ;;  %v10795_v55 = vpop.f32.mrf.mxu1  ;;  %v12125_v9 = vld [vmem:[#allocation56_spill] sm:$0xff] }
 0x99a   :  { %12120 = vst [vmem:[#allocation31_spill] sm:$0xff] %v10795_v55  ;;  %v10797_v2 = vpack.c.bf16 %v6131_v58, %v6129_v0  ;;  %v5799_v30 = vadd.f32 %v5798_v12, %v5695_v8  ;;  %v12123_v12 = vld [vmem:[#allocation44_spill] sm:$0xff] }
 0x99c   :  { %v5900_v43 = vmul.f32 %v10802_v11, %v5799_v30 }
 0x99e   :  { %v5800_v38 = vpop.f32.mrf.mxu3  ;;  %v5982_v8 = vadd.f32 %v10805_v63, %v5900_v43 }
 0x99f   :  { %v5696_v26 = vpop.f32.mrf.mxu2 }
 0x9a0   :  { %v5697_v49 = vadd.f32 %v5696_v26, %v12121_v54  ;;  %v5571_v5 = vpop.f32.mrf.mxu0  ;;  %v6058_v26 = vmax.f32 %v5982_v8, 0.0 }
 0x9a1   :  { %v5675_v4 = vpop.f32.mrf.mxu1 }
 0x9a2   :  { %v5801_v0 = vadd.f32 %v5800_v38, %v5697_v49  ;;  %v10808_v56 = vadd.f32 %v5675_v4, %v5571_v5 }
 0x9a3   :  { %5842 = vmatmul.bf16.gmra.mxu3 %v12123_v12  ;;  %6337 = vmatmul.bf16.gmra.mxu0 %v10591_v13 }
 0x9a4   :  { %12122 = vst [vmem:[#allocation102_spill] sm:$0xff] %v10808_v56  ;;  %v5902_v58 = vmul.f32 %v10802_v11, %v5801_v0  ;;  %5738 = vmatmul.bf16.gmra.mxu2 %v12124_v50 }
 0x9a6   :  { %v5984_v30 = vadd.f32 %v10805_v63, %v5902_v58  ;;  %v5803_v57 = vpop.f32.mrf.mxu3 }
 0x9a7   :  { %v5699_v55 = vpop.f32.mrf.mxu2 }
 0x9a8   :  { %v6060_v54 = vmax.f32 %v5984_v30, 0.0  ;;  %v5700_v38 = vadd.f32 %v5699_v55, %v12125_v9  ;;  %v10817_v49 = vpop.f32.mrf.mxu0  ;;  %v12126_v30 = vld [vmem:[#allocation64_spill] sm:$0xff] }
 0x9a9   :  { %v10819_v5 = vpop.f32.mrf.mxu1 }
 0x9aa   :  { %v6134_v4 = vpack.c.bf16 %v6060_v54, %v6058_v26  ;;  %v5804_v13 = vadd.f32 %v5803_v57, %v5700_v38  ;;  %v12127_v57 = vld [vmem:[#allocation133_spill] sm:$0xff] }
 0x9ac   :  { %6411 = vmatmul.bf16.vlgmr.msra.gmra.mxu1 %v6134_v4  ;;  %v5904_v0 = vmul.f32 %v10802_v11, %v5804_v13 }
 0x9ae   :  { %v5805_v43 = vpop.f32.mrf.mxu3  ;;  %v5986_v9 = vadd.f32 %v10805_v63, %v5904_v0 }
 0x9af   :  { %v5701_v12 = vpop.f32.mrf.mxu2 }
 0x9b0   :  { %v5702_v50 = vadd.f32 %v5701_v12, %v10541_v41  ;;  %v5576_v58 = vpop.f32.mrf.mxu0  ;;  %v6062_v41 = vmax.f32 %v5986_v9, 0.0 }
 0x9b1   :  { %v5680_v56 = vpop.f32.mrf.mxu1 }
 0x9b2   :  { %v5806_v25 = vadd.f32 %v5805_v43, %v5702_v50  ;;  %v10823_v8 = vadd.f32 %v5680_v56, %v5576_v58  ;;  %v12128_v58 = vld [vmem:[#allocation50_spill] sm:$0xff] }
 0x9b3   :  { %5847 = vmatmul.bf16.gmra.mxu3 %v12126_v30  ;;  %6342 = vmatmul.bf16.gmra.mxu0 %v10607_v60 }
 0x9b4   :  { %v5906_v55 = vmul.f32 %v10802_v11, %v5806_v25  ;;  %5743 = vmatmul.bf16.gmra.mxu2 %v12127_v57 }
 0x9b6   :  { %v5988_v26 = vadd.f32 %v10805_v63, %v5906_v55  ;;  %v5808_v54 = vpop.f32.mrf.mxu3 }
 0x9b7   :  { %v5704_v38 = vpop.f32.mrf.mxu2 }
 0x9b8   :  { %v5705_v4 = vadd.f32 %v5704_v38, %v10547_v59  ;;  %v6064_v13 = vmax.f32 %v5988_v26, 0.0  ;;  %v12129_v59 = vld [vmem:[#allocation135_spill] sm:$0xff] }
 0x9ba   :  { %v6136_v56 = vpack.c.bf16 %v6064_v13, %v6062_v41  ;;  %v5809_v43 = vadd.f32 %v5808_v54, %v5705_v4 }
 0x9bc   :  { %6416 = vmatmul.bf16.gmra.mxu1 %v6136_v56  ;;  %v5908_v60 = vmul.f32 %v10802_v11, %v5809_v43  ;;  %v12130_v43 = vld [vmem:[#allocation79_spill] sm:$0xff] }
 0x9be   :  { %v5810_v12 = vpop.f32.mrf.mxu3  ;;  %v5990_v30 = vadd.f32 %v10805_v63, %v5908_v60  ;;  %v12131_v60 = vld [vmem:[#allocation48_spill] sm:$0xff] }
 0x9bf   :  { %v5706_v50 = vpop.f32.mrf.mxu2 }
 0x9c0   :  { %v5707_v0 = vadd.f32 %v5706_v50, %v10557_v51  ;;  %v6066_v54 = vmax.f32 %v5990_v30, 0.0 }
 0x9c2   :  { %v5811_v25 = vadd.f32 %v5810_v12, %v5707_v0 }
 0x9c3   :  { %5852 = vmatmul.bf16.gmra.mxu3 %v12128_v58  ;;  %6347 = vmatmul.bf16.gmra.mxu0 %v10623_v21  ;;  %v10848_v58 = vpop.f32.mrf.mxu0 }
 0x9c4   :  { %v5910_v9 = vmul.f32 %v10802_v11, %v5811_v25  ;;  %5748 = vmatmul.bf16.gmra.mxu2 %v12129_v59 }
 0x9c6   :  { %v5992_v55 = vadd.f32 %v10805_v63, %v5910_v9  ;;  %v5813_v57 = vpop.f32.mrf.mxu3 }
 0x9c7   :  { %v5709_v26 = vpop.f32.mrf.mxu2 }
 0x9c8   :  { %v5710_v38 = vadd.f32 %v5709_v26, %v10563_v18  ;;  %v6068_v41 = vmax.f32 %v5992_v55, 0.0  ;;  %v12132_v18 = vld [vmem:[#allocation138_spill] sm:$0xff] }
 0x9ca   :  { %v6138_v51 = vpack.c.bf16 %v6068_v41, %v6066_v54  ;;  %v5814_v4 = vadd.f32 %v5813_v57, %v5710_v38  ;;  %v12133_v57 = vld [vmem:[#allocation62_spill] sm:$0xff] }
 0x9cc   :  { %6421 = vmatmul.bf16.gmra.mxu1 %v6138_v51  ;;  %v5912_v21 = vmul.f32 %v10802_v11, %v5814_v4  ;;  %v10852_v51 = vpop.f32.mrf.mxu0 }
 0x9ce   :  { %v5815_v13 = vpop.f32.mrf.mxu3  ;;  %v5994_v0 = vadd.f32 %v10805_v63, %v5912_v21 }
 0x9cf   :  { %v5711_v56 = vpop.f32.mrf.mxu2 }
 0x9d0   :  { %v5712_v12 = vadd.f32 %v5711_v56, %v12130_v43  ;;  %v6070_v55 = vmax.f32 %v5994_v0, 0.0  ;;  %v12134_v43 = vld [vmem:[#allocation165_spill] sm:$0xff] }
 0x9d2   :  { %v5816_v50 = vadd.f32 %v5815_v13, %v5712_v12 }
 0x9d3   :  { %5857 = vmatmul.bf16.gmra.mxu3 %v12131_v60  ;;  %6352 = vmatmul.bf16.gmra.mxu0 %v10641_v17  ;;  %v12135_v60 = vld [vmem:[#allocation140_spill] sm:$0xff] }
 0x9d4   :  { %v5914_v25 = vmul.f32 %v10802_v11, %v5816_v50  ;;  %5753 = vmatmul.bf16.gmra.mxu2 %v12132_v18 }
 0x9d6   :  { %v5996_v30 = vadd.f32 %v10805_v63, %v5914_v25  ;;  %v5818_v9 = vpop.f32.mrf.mxu3 }
 0x9d7   :  { %v5714_v59 = vpop.f32.mrf.mxu2 }
 0x9d8   :  { %v5715_v26 = vadd.f32 %v5714_v59, %v12133_v57  ;;  %v6072_v54 = vmax.f32 %v5996_v30, 0.0 }
 0x9da   :  { %v6140_v38 = vpack.c.bf16 %v6072_v54, %v6070_v55  ;;  %v5819_v41 = vadd.f32 %v5818_v9, %v5715_v26 }
 0x9dc   :  { %6426 = vmatmul.bf16.gmra.mxu1 %v6140_v38  ;;  %v5916_v13 = vmul.f32 %v10802_v11, %v5819_v41 }
 0x9de   :  { %v5820_v17 = vpop.f32.mrf.mxu3  ;;  %v5998_v12 = vadd.f32 %v10805_v63, %v5916_v13 }
 0x9df   :  { %v5716_v4 = vpop.f32.mrf.mxu2 }
 0x9e0   :  { %v5717_v56 = vadd.f32 %v5716_v4, %v10589_v20  ;;  %v6074_v30 = vmax.f32 %v5998_v12, 0.0  ;;  %v10863_v20 = vpop.f32.mrf.mxu0  ;;  %v12136_v4 = vld [vmem:[#allocation166_spill] sm:$0xff] }
 0x9e2   :  { %v5821_v21 = vadd.f32 %v5820_v17, %v5717_v56  ;;  %v12137_v56 = vld [vmem:[#allocation143_spill] sm:$0xff] }
 0x9e3   :  { %5862 = vmatmul.bf16.gmra.mxu3 %v12134_v43  ;;  %6357 = vmatmul.bf16.gmra.mxu0 %v10659_v39 }
 0x9e4   :  { %v5918_v50 = vmul.f32 %v10802_v11, %v5821_v21  ;;  %5758 = vmatmul.bf16.gmra.mxu2 %v12135_v60 }
 0x9e6   :  { %v6000_v0 = vadd.f32 %v10805_v63, %v5918_v50  ;;  %v5823_v25 = vpop.f32.mrf.mxu3 }
 0x9e7   :  { %v5719_v18 = vpop.f32.mrf.mxu2 }
 0x9e8   :  { %v5720_v9 = vadd.f32 %v5719_v18, %v10595_v28  ;;  %v6076_v59 = vmax.f32 %v6000_v0, 0.0  ;;  %v10867_v17 = vpop.f32.mrf.mxu0 }
 0x9ea   :  { %v6142_v55 = vpack.c.bf16 %v6076_v59, %v6074_v30  ;;  %v5824_v57 = vadd.f32 %v5823_v25, %v5720_v9 }
 0x9ec   :  { %6431 = vmatmul.bf16.gmra.mxu1 %v6142_v55  ;;  %v5920_v54 = vmul.f32 %v10802_v11, %v5824_v57  ;;  %v12138_v57 = vld [vmem:[#allocation76_spill] sm:$0xff] }
 0x9ee   :  { %v5825_v39 = vpop.f32.mrf.mxu3  ;;  %v6002_v28 = vadd.f32 %v10805_v63, %v5920_v54 }
 0x9ef   :  { %v5721_v26 = vpop.f32.mrf.mxu2 }
 0x9f0   :  { %v5722_v38 = vadd.f32 %v5721_v26, %v10605_v47  ;;  %v6078_v50 = vmax.f32 %v6002_v28, 0.0  ;;  %v10876_v18 = vpop.f32.mrf.mxu0  ;;  %v12139_v26 = vld [vmem:[#allocation22_spill] sm:$0xff] }
 0x9f2   :  { %v5826_v41 = vadd.f32 %v5825_v39, %v5722_v38 }
 0x9f3   :  { %5867 = vmatmul.bf16.gmra.mxu3 %v12136_v4  ;;  %6362 = vmatmul.bf16.gmra.mxu0 %v10677_v45 }
 0x9f4   :  { %v5922_v13 = vmul.f32 %v10802_v11, %v5826_v41  ;;  %5763 = vmatmul.bf16.gmra.mxu2 %v12137_v56 }
 0x9f6   :  { %v6004_v21 = vadd.f32 %v10805_v63, %v5922_v13  ;;  %v5828_v43 = vpop.f32.mrf.mxu3 }
 0x9f7   :  { %v5724_v12 = vpop.f32.mrf.mxu2 }
 0x9f8   :  { %v5725_v47 = vadd.f32 %v5724_v12, %v10611_v24  ;;  %v6080_v60 = vmax.f32 %v6004_v21, 0.0  ;;  %v10886_v41 = vpop.f32.mrf.mxu0 }
 0x9fa   :  { %v6144_v0 = vpack.c.bf16 %v6080_v60, %v6078_v50  ;;  %v5829_v25 = vadd.f32 %v5828_v43, %v5725_v47 }
 0x9fc   :  { %6436 = vmatmul.bf16.gmra.mxu1 %v6144_v0  ;;  %v5924_v9 = vmul.f32 %v10802_v11, %v5829_v25 }
 0x9fe   :  { %v5830_v45 = vpop.f32.mrf.mxu3  ;;  %v6006_v39 = vadd.f32 %v10805_v63, %v5924_v9 }
 0x9ff   :  { %v5726_v30 = vpop.f32.mrf.mxu2 }
 0xa00   :  { %v5727_v59 = vadd.f32 %v5726_v30, %v10621_v46  ;;  %v6082_v28 = vmax.f32 %v6006_v39, 0.0  ;;  %v10892_v60 = vpop.f32.mrf.mxu0 }
 0xa02   :  { %v5831_v55 = vadd.f32 %v5830_v45, %v5727_v59  ;;  %v12140_v45 = vld [vmem:[#allocation144_spill] sm:$0xff] }
 0xa03   :  { %5872 = vmatmul.bf16.gmra.mxu3 %v12138_v57  ;;  %6367 = vmatmul.bf16.gmra.mxu0 %v10695_v34  ;;  %v5628_v34 = vadd.f32 %v10639_v3, %v10637_v16 }
 0xa04   :  { %v5926_v24 = vmul.f32 %v10802_v11, %v5831_v55  ;;  %5768 = vmatmul.bf16.gmra.mxu2 %v12139_v26 }
 0xa06   :  { %v6008_v54 = vadd.f32 %v10805_v63, %v5926_v24  ;;  %v5833_v38 = vpop.f32.mrf.mxu3 }
 0xa07   :  { %v5729_v4 = vpop.f32.mrf.mxu2 }
 0xa08   :  { %v5730_v46 = vadd.f32 %v5729_v4, %v10627_v31  ;;  %v6084_v13 = vmax.f32 %v6008_v54, 0.0  ;;  %v10901_v39 = vpop.f32.mrf.mxu0  ;;  %v10906_v4 = vpop.f32.mrf.mxu1 }
 0xa0a   :  { %v6146_v56 = vpack.c.bf16 %v6084_v13, %v6082_v28  ;;  %v5834_v21 = vadd.f32 %v5833_v38, %v5730_v46 }
 0xa0c   :  { %6441 = vmatmul.bf16.gmra.mxu1 %v6146_v56  ;;  %v5928_v50 = vmul.f32 %v10802_v11, %v5834_v21 }
 0xa0e   :  { %v5835_v43 = vpop.f32.mrf.mxu3  ;;  %v6010_v31 = vadd.f32 %v10805_v63, %v5928_v50 }
 0xa0f   :  { %v5731_v12 = vpop.f32.mrf.mxu2 }
 0xa10   :  { %v5732_v47 = vadd.f32 %v5731_v12, %v5628_v34  ;;  %v6086_v9 = vmax.f32 %v6010_v31, 0.0  ;;  %v10913_v13 = vpop.f32.mrf.mxu0 }
 0xa12   :  { %v5836_v0 = vadd.f32 %v5835_v43, %v5732_v47  ;;  %v10921_v47 = vld [vmem:[%s11175_s8] ss:$0 sm:$0xff] }
 0xa13   :  { %5877 = vmatmul.bf16.gmra.mxu3 %v10440_v23  ;;  %6372 = vmatmul.bf16.gmra.mxu0 %v10712_v7  ;;  %v5633_v7 = vadd.f32 %v10657_v29, %v10655_v14 }
 0xa14   :  { %v5930_v25 = vmul.f32 %v10802_v11, %v5836_v0  ;;  %5773 = vmatmul.bf16.gmra.mxu2 %v12140_v45 }
 0xa16   :  { %v6012_v16 = vadd.f32 %v10805_v63, %v5930_v25  ;;  %v5838_v3 = vpop.f32.mrf.mxu3 }
 0xa17   :  { %v5734_v30 = vpop.f32.mrf.mxu2 }
 0xa18   :  { %v5735_v59 = vadd.f32 %v5734_v30, %v10645_v62  ;;  %v6088_v55 = vmax.f32 %v6012_v16, 0.0  ;;  %v10925_v31 = vpop.f32.mrf.mxu0 }
 0xa1a   :  { %v6148_v57 = vpack.c.bf16 %v6088_v55, %v6086_v9  ;;  %v5839_v23 = vadd.f32 %v5838_v3, %v5735_v59 }
 0xa1c   :  { %6446 = vmatmul.bf16.gmra.mxu1 %v6148_v57  ;;  %v5932_v54 = vmul.f32 %v10802_v11, %v5839_v23  ;;  %v12141_v57 = vld [vmem:[#allocation146_spill] sm:$0xff] }
 0xa1e   :  { %v5840_v24 = vpop.f32.mrf.mxu3  ;;  %v6014_v62 = vadd.f32 %v10805_v63, %v5932_v54 }
 0xa1f   :  { %v5736_v26 = vpop.f32.mrf.mxu2 }
 0xa20   :  { %v5737_v38 = vadd.f32 %v5736_v26, %v5633_v7  ;;  %v6090_v21 = vmax.f32 %v6014_v62, 0.0  ;;  %v10945_v62 = vpop.f32.mrf.mxu0 }
 0xa22   :  { %v5841_v28 = vadd.f32 %v5840_v24, %v5737_v38 }
 0xa23   :  { %5882 = vmatmul.bf16.gmra.mxu3 %v10456_v10  ;;  %6377 = vmatmul.bf16.gmra.mxu0 %v10729_v44 }
 0xa24   :  { %v5934_v46 = vmul.f32 %v10802_v11, %v5841_v28  ;;  %5778 = vmatmul.bf16.gmra.mxu2 %v12080_v27  ;;  %v5638_v27 = vadd.f32 %v10675_v36, %v10673_v52 }
 0xa26   :  { %v6016_v14 = vadd.f32 %v10805_v63, %v5934_v46  ;;  %v5843_v29 = vpop.f32.mrf.mxu3 }
 0xa27   :  { %v5739_v56 = vpop.f32.mrf.mxu2 }
 0xa28   :  { %v6092_v34 = vmax.f32 %v6016_v14, 0.0  ;;  %v5740_v43 = vadd.f32 %v5739_v56, %v10663_v35 }
 0xa29   :  { %v6412_v12 = vpop.f32.mrf.mxu1 }
 0xa2a   :  { %v6150_v10 = vpack.c.bf16 %v6092_v34, %v6090_v21  ;;  %v5844_v50 = vadd.f32 %v5843_v29, %v5740_v43  ;;  %v6413_v44 = vadd.f32 %v6412_v12, %v10852_v51  ;;  %v10932_v51 = vld [vmem:[%s11176_s9] ss:$0 sm:$0xff]  ;;  %v12143_v34 = vld [vmem:[#allocation60_spill] sm:$0xff]  ;;  %v12144_v43 = vld [vmem:[#allocation85_spill] sm:$0xff] }
 0xa2b   :  { %v5643_v12 = vadd.f32 %v12144_v43, %v12143_v34 }
 0xa2c   :  { %6451 = vmatmul.bf16.gmra.mxu1 %v6150_v10  ;;  %v5936_v25 = vmul.f32 %v10802_v11, %v5844_v50  ;;  %v6511_v45 = vmul.f32 %v10921_v47, %v6413_v44 }
 0xa2e   :  { %v5845_v0 = vpop.f32.mrf.mxu3  ;;  %v6018_v52 = vadd.f32 %v10805_v63, %v5936_v25  ;;  %v6553_v36 = vadd.f32 %v10932_v51, %v6511_v45 }
 0xa2f   :  { %v5741_v35 = vpop.f32.mrf.mxu2 }
 0xa30   :  { %v5742_v16 = vadd.f32 %v5741_v35, %v5638_v27  ;;  %v6591_v54 = vmax.f32 %v6553_v36, 0.0 }
 0xa31   :  { %v6414_v3 = vpop.f32.mrf.mxu1 }
 0xa32   :  { %v5846_v30 = vadd.f32 %v5845_v0, %v5742_v16  ;;  %v6415_v9 = vadd.f32 %v6414_v3, %v10863_v20  ;;  %v6094_v20 = vmax.f32 %v6018_v52, 0.0  ;;  %v10955_v16 = vpop.f32.mrf.mxu0 }
 0xa33   :  { %5887 = vmatmul.bf16.gmra.mxu3 %v10475_v15  ;;  %6382 = vmatmul.bf16.gmra.mxu0 %v10746_v19  ;;  %v12142_v15 = vld [vmem:[#allocation88_spill] sm:$0xff] }
 0xa34   :  { %v5938_v59 = vmul.f32 %v10802_v11, %v5846_v30  ;;  %v6512_v55 = vmul.f32 %v10921_v47, %v6415_v9  ;;  %5783 = vmatmul.bf16.gmra.mxu2 %v12141_v57 }
 0xa36   :  { %v6020_v23 = vadd.f32 %v10805_v63, %v5938_v59  ;;  %v6554_v7 = vadd.f32 %v10932_v51, %v6512_v55  ;;  %v5848_v24 = vpop.f32.mrf.mxu3 }
 0xa37   :  { %v5744_v26 = vpop.f32.mrf.mxu2 }
 0xa38   :  { %v6096_v38 = vmax.f32 %v6020_v23, 0.0  ;;  %v5745_v28 = vadd.f32 %v5744_v26, %v12142_v15  ;;  %v6592_v19 = vmax.f32 %v6554_v7, 0.0  ;;  %v12145_v7 = vld [vmem:[#allocation23_spill] sm:$0xff] }
 0xa39   :  { %v6417_v46 = vpop.f32.mrf.mxu1 }
 0xa3a   :  { %v6152_v14 = vpack.c.bf16 %v6096_v38, %v6094_v20  ;;  %v10947_v29 = vpack.c.bf16 %v6592_v19, %v6591_v54  ;;  %v5849_v56 = vadd.f32 %v5848_v24, %v5745_v28  ;;  %v6418_v21 = vadd.f32 %v6417_v46, %v10867_v17  ;;  %v10968_v28 = vpop.f32.mrf.mxu0 }
 0xa3b   :  { %v5648_v19 = vadd.f32 %v10710_v40, %v10708_v61 }
 0xa3c   :  { %6456 = vmatmul.bf16.gmra.mxu1 %v6152_v14  ;;  %v5940_v50 = vmul.f32 %v10802_v11, %v5849_v56  ;;  %v6513_v27 = vmul.f32 %v10921_v47, %v6418_v21 }
 0xa3e   :  { %v5850_v10 = vpop.f32.mrf.mxu3  ;;  %v6022_v3 = vadd.f32 %v10805_v63, %v5940_v50  ;;  %v6555_v17 = vadd.f32 %v10932_v51, %v6513_v27 }
 0xa3f   :  { %v5746_v44 = vpop.f32.mrf.mxu2 }
 0xa40   :  { %v5747_v0 = vadd.f32 %v5746_v44, %v5643_v12  ;;  %v6098_v55 = vmax.f32 %v6022_v3, 0.0 }
 0xa41   :  { %v6419_v25 = vpop.f32.mrf.mxu1 }
 0xa42   :  { %v5851_v35 = vadd.f32 %v5850_v10, %v5747_v0  ;;  %v6420_v45 = vadd.f32 %v6419_v25, %v10876_v18  ;;  %v6593_v18 = vmax.f32 %v6555_v17, 0.0  ;;  %v10982_v25 = vpop.f32.mrf.mxu0 }
 0xa43   :  { %6387 = vmatmul.bf16.gmra.mxu0 %v10763_v1 }
 0xa44   :  { %v5942_v30 = vmul.f32 %v10802_v11, %v5851_v35  ;;  %v6514_v9 = vmul.f32 %v10921_v47, %v6420_v45 }
 0xa46   :  { %v6024_v52 = vadd.f32 %v10805_v63, %v5942_v30  ;;  %v6556_v36 = vadd.f32 %v10932_v51, %v6514_v9  ;;  %v5853_v59 = vpop.f32.mrf.mxu3 }
 0xa47   :  { %v5749_v57 = vpop.f32.mrf.mxu2 }
 0xa48   :  { %v6100_v23 = vmax.f32 %v6024_v52, 0.0  ;;  %v5750_v24 = vadd.f32 %v5749_v57, %v12145_v7  ;;  %v6594_v20 = vmax.f32 %v6556_v36, 0.0 }
 0xa49   :  { %v6422_v26 = vpop.f32.mrf.mxu1 }
 0xa4a   :  { %v6154_v1 = vpack.c.bf16 %v6100_v23, %v6098_v55  ;;  %v10965_v54 = vpack.c.bf16 %v6594_v20, %v6593_v18  ;;  %v5854_v38 = vadd.f32 %v5853_v59, %v5750_v24  ;;  %v6423_v15 = vadd.f32 %v6422_v26, %v10886_v41 }
 0xa4b   :  { %v5653_v55 = vadd.f32 %v10727_v6, %v10725_v32 }
 0xa4c   :  { %6461 = vmatmul.bf16.gmra.mxu1 %v6154_v1  ;;  %v5944_v14 = vmul.f32 %v10802_v11, %v5854_v38  ;;  %v6515_v21 = vmul.f32 %v10921_v47, %v6423_v15 }
 0xa4e   :  { %v5855_v46 = vpop.f32.mrf.mxu3  ;;  %v6026_v50 = vadd.f32 %v10805_v63, %v5944_v14  ;;  %v6557_v41 = vadd.f32 %v10932_v51, %v6515_v21 }
 0xa4f   :  { %v5751_v56 = vpop.f32.mrf.mxu2 }
 0xa50   :  { %v5752_v34 = vadd.f32 %v5751_v56, %v5648_v19  ;;  %v6102_v35 = vmax.f32 %v6026_v50, 0.0 }
 0xa51   :  { %v6424_v43 = vpop.f32.mrf.mxu1 }
 0xa52   :  { %v5856_v12 = vadd.f32 %v5855_v46, %v5752_v34  ;;  %v6425_v10 = vadd.f32 %v6424_v43, %v10892_v60  ;;  %v6595_v60 = vmax.f32 %v6557_v41, 0.0 }
 0xa53   :  { %6392 = vmatmul.bf16.gmra.mxu0 %v10780_v22 }
 0xa54   :  { %v5946_v44 = vmul.f32 %v10802_v11, %v5856_v12  ;;  %v6516_v61 = vmul.f32 %v10921_v47, %v6425_v10 }
 0xa56   :  { %v6028_v40 = vadd.f32 %v10805_v63, %v5946_v44  ;;  %v6558_v27 = vadd.f32 %v10932_v51, %v6516_v61  ;;  %v5858_v0 = vpop.f32.mrf.mxu3 }
 0xa57   :  { %v5754_v45 = vpop.f32.mrf.mxu2 }
 0xa58   :  { %v6104_v3 = vmax.f32 %v6028_v40, 0.0  ;;  %v5755_v17 = vadd.f32 %v5754_v45, %v10716_v37  ;;  %v6596_v22 = vmax.f32 %v6558_v27, 0.0  ;;  %v10992_v37 = vpop.f32.mrf.mxu0  ;;  %v5658_v40 = vadd.f32 %v10744_v42, %v10742_v53 }
 0xa59   :  { %v6427_v30 = vpop.f32.mrf.mxu1 }
 0xa5a   :  { %v6156_v9 = vpack.c.bf16 %v6104_v3, %v6102_v35  ;;  %v10985_v52 = vpack.c.bf16 %v6596_v22, %v6595_v60  ;;  %v5859_v36 = vadd.f32 %v5858_v0, %v5755_v17  ;;  %v6428_v59 = vadd.f32 %v6427_v30, %v10901_v39 }
 0xa5c   :  { %6466 = vmatmul.bf16.gmra.mxu1 %v6156_v9  ;;  %v5948_v18 = vmul.f32 %v10802_v11, %v5859_v36  ;;  %v6517_v7 = vmul.f32 %v10921_v47, %v6428_v59 }
 0xa5e   :  { %v5860_v57 = vpop.f32.mrf.mxu3  ;;  %v6030_v38 = vadd.f32 %v10805_v63, %v5948_v18  ;;  %v6559_v39 = vadd.f32 %v10932_v51, %v6517_v7 }
 0xa5f   :  { %v5756_v23 = vpop.f32.mrf.mxu2 }
 0xa60   :  { %v5757_v24 = vadd.f32 %v5756_v23, %v5653_v55  ;;  %v6106_v14 = vmax.f32 %v6030_v38, 0.0  ;;  %v6597_v21 = vmax.f32 %v6559_v39, 0.0  ;;  %v11005_v41 = vpop.f32.mrf.mxu0 }
 0xa61   :  { %v6429_v20 = vpop.f32.mrf.mxu1 }
 0xa62   :  { %v5861_v26 = vadd.f32 %v5860_v57, %v5757_v24  ;;  %v6430_v1 = vadd.f32 %v6429_v20, %v10913_v13  ;;  %v12146_v13 = vld [vmem:[#allocation94_spill] sm:$0xff] }
 0xa63   :  { %6397 = vmatmul.bf16.gmra.mxu0 %v10797_v2 }
 0xa64   :  { %v5950_v32 = vmul.f32 %v10802_v11, %v5861_v26  ;;  %v6518_v6 = vmul.f32 %v10921_v47, %v6430_v1 }
 0xa66   :  { %v6032_v15 = vadd.f32 %v10805_v63, %v5950_v32  ;;  %v6560_v19 = vadd.f32 %v10932_v51, %v6518_v6  ;;  %v5863_v46 = vpop.f32.mrf.mxu3  ;;  %v12148_v32 = vld [vmem:[#allocation91_spill] sm:$0xff] }
 0xa67   :  { %v5759_v56 = vpop.f32.mrf.mxu2  ;;  %v12149_v6 = vld [vmem:[#allocation27_spill] sm:$0xff] }
 0xa68   :  { %v6108_v34 = vmax.f32 %v6032_v15, 0.0  ;;  %v5760_v43 = vadd.f32 %v5759_v56, %v12146_v13  ;;  %v6598_v12 = vmax.f32 %v6560_v19, 0.0  ;;  %v11017_v53 = vpop.f32.mrf.mxu0  ;;  %v5663_v15 = vadd.f32 %v12149_v6, %v12148_v32 }
 0xa69   :  { %v6432_v10 = vpop.f32.mrf.mxu1 }
 0xa6a   :  { %v6158_v2 = vpack.c.bf16 %v6108_v34, %v6106_v14  ;;  %v11003_v50 = vpack.c.bf16 %v6598_v12, %v6597_v21  ;;  %v5864_v44 = vadd.f32 %v5863_v46, %v5760_v43  ;;  %v6433_v61 = vadd.f32 %v6432_v10, %v10925_v31 }
 0xa6c   :  { %6471 = vmatmul.bf16.gmra.mxu1 %v6158_v2  ;;  %v5952_v0 = vmul.f32 %v10802_v11, %v5864_v44  ;;  %v6519_v45 = vmul.f32 %v10921_v47, %v6433_v61 }
 0xa6e   :  { %v5865_v27 = vpop.f32.mrf.mxu3  ;;  %v6034_v30 = vadd.f32 %v10805_v63, %v5952_v0  ;;  %v6561_v9 = vadd.f32 %v10932_v51, %v6519_v45 }
 0xa6f   :  { %v5761_v35 = vpop.f32.mrf.mxu2 }
 0xa70   :  { %v5762_v60 = vadd.f32 %v5761_v35, %v5658_v40  ;;  %v6110_v57 = vmax.f32 %v6034_v30, 0.0  ;;  %v6599_v23 = vmax.f32 %v6561_v9, 0.0  ;;  %v11028_v46 = vpop.f32.mrf.mxu0 }
 0xa71   :  { %v6434_v3 = vpop.f32.mrf.mxu1 }
 0xa72   :  { %v5866_v17 = vadd.f32 %v5865_v27, %v5762_v60  ;;  %v6435_v22 = vadd.f32 %v6434_v3, %v10945_v62  ;;  %v12147_v62 = vld [vmem:[#allocation21_spill] sm:$0xff]  ;;  %v12150_v27 = vld [vmem:[#allocation98_spill] sm:$0xff] }
 0xa74   :  { %v5954_v31 = vmul.f32 %v10802_v11, %v5866_v17  ;;  %v6520_v36 = vmul.f32 %v10921_v47, %v6435_v22  ;;  %v5668_v17 = vadd.f32 %v10778_v48, %v10776_v33  ;;  %v12151_v33 = vld [vmem:[#allocation25_spill] sm:$0xff] }
 0xa76   :  { %v6036_v42 = vadd.f32 %v10805_v63, %v5954_v31  ;;  %v6562_v59 = vadd.f32 %v10932_v51, %v6520_v36  ;;  %v5868_v55 = vpop.f32.mrf.mxu3 }
 0xa77   :  { %v5764_v18 = vpop.f32.mrf.mxu2 }
 0xa78   :  { %v6112_v7 = vmax.f32 %v6036_v42, 0.0  ;;  %v5765_v24 = vadd.f32 %v5764_v18, %v12147_v62  ;;  %v6600_v20 = vmax.f32 %v6562_v59, 0.0  ;;  %v11037_v35 = vpop.f32.mrf.mxu0 }
 0xa79   :  { %v11022_v26 = vpop.f32.mrf.mxu1 }
 0xa7a   :  { %v6160_v1 = vpack.c.bf16 %v6112_v7, %v6110_v57  ;;  %v11024_v38 = vpack.c.bf16 %v6600_v20, %v6599_v23  ;;  %v5869_v39 = vadd.f32 %v5868_v55, %v5765_v24 }
 0xa7c   :  { %6476 = vmatmul.bf16.gmra.mxu1 %v6160_v1  ;;  %v5956_v56 = vmul.f32 %v10802_v11, %v5869_v39 }
 0xa7e   :  { %v5870_v19 = vpop.f32.mrf.mxu3  ;;  %v6038_v43 = vadd.f32 %v10805_v63, %v5956_v56 }
 0xa7f   :  { %v5766_v14 = vpop.f32.mrf.mxu2 }
 0xa80   :  { %v5767_v21 = vadd.f32 %v5766_v14, %v5663_v15  ;;  %v6114_v61 = vmax.f32 %v6038_v43, 0.0  ;;  %v11042_v59 = vpop.f32.mrf.mxu0  ;;  %v12152_v15 = vld [vmem:[#allocation96_spill] sm:$0xff] }
 0xa81   :  { %v11031_v34 = vpop.f32.mrf.mxu1 }
 0xa82   :  { %v5871_v13 = vadd.f32 %v5870_v19, %v5767_v21  ;;  %v12153_v19 = vld [vmem:[#allocation31_spill] sm:$0xff] }
 0xa83   :  { %v5673_v14 = vadd.f32 %v12153_v19, %v12152_v15 }
 0xa84   :  { %v5958_v12 = vmul.f32 %v10802_v11, %v5871_v13 }
 0xa86   :  { %v6040_v10 = vadd.f32 %v10805_v63, %v5958_v12  ;;  %v5873_v2 = vpop.f32.mrf.mxu3 }
 0xa87   :  { %v5769_v44 = vpop.f32.mrf.mxu2 }
 0xa88   :  { %v6116_v40 = vmax.f32 %v6040_v10, 0.0  ;;  %v5770_v0 = vadd.f32 %v5769_v44, %v12150_v27  ;;  %v11049_v6 = vpop.f32.mrf.mxu0 }
 0xa89   :  { %v6442_v45 = vpop.f32.mrf.mxu1 }
 0xa8a   :  { %v6162_v60 = vpack.c.bf16 %v6116_v40, %v6114_v61  ;;  %v5874_v3 = vadd.f32 %v5873_v2, %v5770_v0 }
 0xa8c   :  { %6481 = vmatmul.bf16.gmra.mxu1 %v6162_v60  ;;  %v5960_v9 = vmul.f32 %v10802_v11, %v5874_v3 }
 0xa8e   :  { %v5875_v22 = vpop.f32.mrf.mxu3  ;;  %v6042_v55 = vadd.f32 %v10805_v63, %v5960_v9 }
 0xa8f   :  { %v5771_v30 = vpop.f32.mrf.mxu2 }
 0xa90   :  { %v5772_v31 = vadd.f32 %v5771_v30, %v5668_v17  ;;  %v6118_v62 = vmax.f32 %v6042_v55, 0.0  ;;  %v11065_v30 = vpop.f32.mrf.mxu0 }
 0xa91   :  { %v6444_v36 = vpop.f32.mrf.mxu1 }
 0xa92   :  { %v5876_v42 = vadd.f32 %v5875_v22, %v5772_v31  ;;  %v6445_v2 = vadd.f32 %v6444_v36, %v10992_v37 }
 0xa94   :  { %v5962_v57 = vmul.f32 %v10802_v11, %v5876_v42  ;;  %v6524_v3 = vmul.f32 %v10921_v47, %v6445_v2  ;;  %v12154_v42 = vld [vmem:[#allocation102_spill] sm:$0xff] }
 0xa96   :  { %v6044_v18 = vadd.f32 %v10805_v63, %v5962_v57  ;;  %v5878_v23 = vpop.f32.mrf.mxu3 }
 0xa97   :  { %v5774_v7 = vpop.f32.mrf.mxu2 }
 0xa98   :  { %v6120_v24 = vmax.f32 %v6044_v18, 0.0  ;;  %v5775_v48 = vadd.f32 %v5774_v7, %v12151_v33  ;;  %v6440_v18 = vadd.f32 %v11031_v34, %v10968_v28 }
 0xa99   :  { %v6447_v20 = vpop.f32.mrf.mxu1 }
 0xa9a   :  { %v6164_v1 = vpack.c.bf16 %v6120_v24, %v6118_v62  ;;  %v5879_v39 = vadd.f32 %v5878_v23, %v5775_v48  ;;  %v6448_v32 = vadd.f32 %v6447_v20, %v11005_v41  ;;  %v6443_v41 = vadd.f32 %v6442_v45, %v10982_v25 }
 0xa9b   :  { %v6566_v23 = vadd.f32 %v10932_v51, %v6524_v3  ;;  %v6438_v24 = vadd.f32 %v11022_v26, %v10955_v16 }
 0xa9c   :  { %6486 = vmatmul.bf16.gmra.mxu1 %v6164_v1  ;;  %v5964_v21 = vmul.f32 %v10802_v11, %v5879_v39  ;;  %v6525_v43 = vmul.f32 %v10921_v47, %v6448_v32  ;;  %v5678_v1 = vadd.f32 %v10819_v5, %v10817_v49  ;;  %v6522_v39 = vmul.f32 %v10921_v47, %v6440_v18 }
 0xa9d   :  { %v6604_v34 = vmax.f32 %v6566_v23, 0.0  ;;  %v6521_v32 = vmul.f32 %v10921_v47, %v6438_v24 }
 0xa9e   :  { %v5880_v56 = vpop.f32.mrf.mxu3  ;;  %v6046_v40 = vadd.f32 %v10805_v63, %v5964_v21  ;;  %v6567_v27 = vadd.f32 %v10932_v51, %v6525_v43  ;;  %v6564_v21 = vadd.f32 %v10932_v51, %v6522_v39 }
 0xa9f   :  { %v5776_v13 = vpop.f32.mrf.mxu2  ;;  %v6563_v43 = vadd.f32 %v10932_v51, %v6521_v32 }
 0xaa0   :  { %v5777_v12 = vadd.f32 %v5776_v13, %v5673_v14  ;;  %v6122_v25 = vmax.f32 %v6046_v40, 0.0  ;;  %v6605_v9 = vmax.f32 %v6567_v27, 0.0  ;;  %v6602_v40 = vmax.f32 %v6564_v21, 0.0 }
 0xaa1   :  { %v6449_v10 = vpop.f32.mrf.mxu1  ;;  %v6601_v27 = vmax.f32 %v6563_v43, 0.0 }
 0xaa2   :  { %v5881_v44 = vadd.f32 %v5880_v56, %v5777_v12  ;;  %v6450_v61 = vadd.f32 %v6449_v10, %v11017_v53  ;;  %v6523_v53 = vmul.f32 %v10921_v47, %v6443_v41  ;;  %v6360_v56 = vpop.f32.mrf.mxu0 }
 0xaa4   :  { %v5966_v0 = vmul.f32 %v10802_v11, %v5881_v44  ;;  %v6526_v60 = vmul.f32 %v10921_v47, %v6450_v61  ;;  %v6565_v48 = vadd.f32 %v10932_v51, %v6523_v53 }
 0xaa6   :  { %v6048_v17 = vadd.f32 %v10805_v63, %v5966_v0  ;;  %v6568_v22 = vadd.f32 %v10932_v51, %v6526_v60  ;;  %v5883_v37 = vpop.f32.mrf.mxu3  ;;  %v6603_v16 = vmax.f32 %v6565_v48, 0.0 }
 0xaa7   :  { %v5779_v45 = vpop.f32.mrf.mxu2 }
 0xaa8   :  { %v6124_v31 = vmax.f32 %v6048_v17, 0.0  ;;  %v6606_v36 = vmax.f32 %v6568_v22, 0.0  ;;  %v5780_v55 = vadd.f32 %v5779_v45, %v12154_v42  ;;  %v6636_v5 = vpack.c.bf16 %v6604_v34, %v6603_v16 }
 0xaa9   :  { %v6452_v57 = vpop.f32.mrf.mxu1  ;;  %v6635_v45 = vpack.c.bf16 %v6602_v40, %v6601_v27 }
 0xaaa   :  { %v6637_v7 = vpack.c.bf16 %v6606_v36, %v6605_v9  ;;  %v6166_v62 = vpack.c.bf16 %v6124_v31, %v6122_v25  ;;  %v5884_v33 = vadd.f32 %v5883_v37, %v5780_v55  ;;  %v6453_v20 = vadd.f32 %v6452_v57, %v11028_v46  ;;  %v6363_v31 = vpop.f32.mrf.mxu0 }
 0xaab   :  { %v5683_v55 = vadd.f32 %v10906_v4, %v10848_v58 }
 0xaac   :  { %6491 = vmatmul.bf16.gmra.mxu1 %v6166_v62  ;;  %6656 = vmatpush.bf16.xpose.msrb.mxu2 %v6637_v7  ;;  %v5968_v15 = vmul.f32 %v10802_v11, %v5884_v33  ;;  %v6527_v26 = vmul.f32 %v10921_v47, %v6453_v20 }
 0xaae   :  { %v5885_v28 = vpop.f32.mrf.mxu3  ;;  %v6050_v12 = vadd.f32 %v10805_v63, %v5968_v15  ;;  %v6569_v10 = vadd.f32 %v10932_v51, %v6527_v26 }
 0xaaf   :  { %v5781_v19 = vpop.f32.mrf.mxu2 }
 0xab0   :  { %v5782_v14 = vadd.f32 %v5781_v19, %v5678_v1  ;;  %v6126_v0 = vmax.f32 %v6050_v12, 0.0  ;;  %v6607_v3 = vmax.f32 %v6569_v10, 0.0 }
 0xab1   :  { %v6454_v46 = vpop.f32.mrf.mxu1 }
 0xab2   :  { %v5886_v13 = vadd.f32 %v5885_v28, %v5782_v14  ;;  %v6455_v49 = vadd.f32 %v6454_v46, %v11037_v35  ;;  %v6365_v58 = vpop.f32.mrf.mxu0 }
 0xab4   :  { %v5970_v2 = vmul.f32 %v10802_v11, %v5886_v13  ;;  %v6528_v44 = vmul.f32 %v10921_v47, %v6455_v49  ;;  %6657 = vmatpush.bf16.xpose.msrb.mxu2 %v6636_v5 }
 0xab6   :  { %v6052_v61 = vadd.f32 %v10805_v63, %v5970_v2  ;;  %v6570_v41 = vadd.f32 %v10932_v51, %v6528_v44  ;;  %v5888_v60 = vpop.f32.mrf.mxu3 }
 0xab7   :  { %v5784_v35 = vpop.f32.mrf.mxu2 }
 0xab8   :  { %v6128_v17 = vmax.f32 %v6052_v61, 0.0  ;;  %v6608_v22 = vmax.f32 %v6570_v41, 0.0  ;;  %v5785_v37 = vadd.f32 %v5784_v35, %v10823_v8 }
 0xab9   :  { %v6457_v53 = vpop.f32.mrf.mxu1 }
 0xaba   :  { %v6168_v25 = vpack.c.bf16 %v6128_v17, %v6126_v0  ;;  %v11092_v9 = vpack.c.bf16 %v6608_v22, %v6607_v3  ;;  %v5889_v36 = vadd.f32 %v5888_v60, %v5785_v37  ;;  %v6458_v42 = vadd.f32 %v6457_v53, %v11042_v59 }
 0xabc   :  { %6496 = vmatmul.bf16.gmra.mxu1 %v6168_v25  ;;  %6658 = vmatpush.bf16.xpose.msrb.mxu2 %v6635_v45  ;;  %v5972_v18 = vmul.f32 %v10802_v11, %v5889_v36  ;;  %v6529_v23 = vmul.f32 %v10921_v47, %v6458_v42 }
 0xabe   :  { %v5890_v7 = vpop.f32.mrf.mxu3  ;;  %v6054_v48 = vadd.f32 %v10805_v63, %v5972_v18  ;;  %v6571_v59 = vadd.f32 %v10932_v51, %v6529_v23 }
 0xabf   :  { %v5786_v57 = vpop.f32.mrf.mxu2 }
 0xac0   :  { %v5787_v8 = vadd.f32 %v5786_v57, %v5683_v55  ;;  %v6130_v28 = vmax.f32 %v6054_v48, 0.0  ;;  %v6609_v34 = vmax.f32 %v6571_v59, 0.0 }
 0xac1   :  { %v6459_v62 = vpop.f32.mrf.mxu1 }
 0xac2   :  { %v5891_v24 = vadd.f32 %v5890_v7, %v5787_v8  ;;  %v6460_v33 = vadd.f32 %v6459_v62, %v11049_v6 }
 0xac4   :  { %v5974_v20 = vmul.f32 %v10802_v11, %v5891_v24  ;;  %v6530_v1 = vmul.f32 %v10921_v47, %v6460_v33  ;;  %6659 = vmatpush.bf16.xpose.msrb.mxu2 %v11024_v38  ;;  %v6368_v11 = vpop.f32.mrf.mxu0 }
 0xac6   :  { %v6056_v4 = vadd.f32 %v10805_v63, %v5974_v20  ;;  %v6572_v39 = vadd.f32 %v10932_v51, %v6530_v1 }
 0xac8   :  { %v6132_v32 = vmax.f32 %v6056_v4, 0.0  ;;  %v6610_v15 = vmax.f32 %v6572_v39, 0.0 }
 0xac9   :  { %v6462_v6 = vpop.f32.mrf.mxu1 }
 0xaca   :  { %v6170_v19 = vpack.c.bf16 %v6132_v32, %v6130_v28  ;;  %v11107_v16 = vpack.c.bf16 %v6610_v15, %v6609_v34  ;;  %v6463_v26 = vadd.f32 %v6462_v6, %v11065_v30 }
 0xacc   :  { %6501 = vmatmul.bf16.gmra.mxu1 %v6170_v19  ;;  %6660 = vmatpush.bf16.xpose.msrb.mxu2 %v11003_v50  ;;  %v6531_v38 = vmul.f32 %v10921_v47, %v6463_v26  ;;  %v6370_v43 = vpop.f32.mrf.mxu0 }
 0xace   :  { %v6573_v46 = vadd.f32 %v10932_v51, %v6531_v38 }
 0xad0   :  { %v6611_v49 = vmax.f32 %v6573_v46, 0.0 }
 0xad1   :  { %v6464_v14 = vpop.f32.mrf.mxu1 }
 0xad2   :  { %v6465_v63 = vadd.f32 %v6464_v14, %v6360_v56 }
 0xad4   :  { %v6532_v21 = vmul.f32 %v10921_v47, %v6465_v63  ;;  %6661 = vmatpush.bf16.xpose.msrb.mxu2 %v10985_v52  ;;  %v6373_v44 = vpop.f32.mrf.mxu0 }
 0xad6   :  { %v6574_v13 = vadd.f32 %v10932_v51, %v6532_v21 }
 0xad8   :  { %v6612_v5 = vmax.f32 %v6574_v13, 0.0 }
 0xad9   :  { %v6467_v30 = vpop.f32.mrf.mxu1 }
 0xada   :  { %v11116_v12 = vpack.c.bf16 %v6612_v5, %v6611_v49  ;;  %v6468_v50 = vadd.f32 %v6467_v30, %v6363_v31 }
 0xadc   :  { %6662 = vmatpush.bf16.xpose.msrb.mxu2 %v10965_v54  ;;  %v6533_v10 = vmul.f32 %v10921_v47, %v6468_v50  ;;  %v6375_v54 = vpop.f32.mrf.mxu0 }
 0xade   :  { %v6575_v61 = vadd.f32 %v10932_v51, %v6533_v10 }
 0xae0   :  { %v6613_v40 = vmax.f32 %v6575_v61, 0.0 }
 0xae1   :  { %v6469_v56 = vpop.f32.mrf.mxu1 }
 0xae2   :  { %v6470_v2 = vadd.f32 %v6469_v56, %v6365_v58 }
 0xae4   :  { %v6534_v52 = vmul.f32 %v10921_v47, %v6470_v2  ;;  %6663 = vmatpush.bf16.xpose.msrb.mxu2 %v10947_v29  ;;  %v6378_v29 = vpop.f32.mrf.mxu0 }
 0xae6   :  { %v6576_v41 = vadd.f32 %v10932_v51, %v6534_v52 }
 0xae8   :  { %v6614_v27 = vmax.f32 %v6576_v41, 0.0  ;;  %v6629_v41 = vld [vmem:[%s11177_s10] sm:$0x1]  ;;  %s8326_s10 = smov [#allocation14]  }
 0xae9   :  { %v6472_v0 = vpop.f32.mrf.mxu1  ;;  %s6715_s29 = sshll.u32 %s8326_s10, 4  ;;  %s6716_s29 = int_to_ptr.vmem [resolvable:$true] %s6715_s29 }
 0xaea   :  { %v11124_v35 = vpack.c.bf16 %v6614_v27, %v6613_v40  ;;  %v6473_v60 = vadd.f32 %v6472_v0, %v6368_v11 }
 0xaeb   :  { %6664 = vmatmul.bf16.vlgmr.msrb.gmra.mxu2 %v6629_v41 }
 0xaec   :  { %v6535_v3 = vmul.f32 %v10921_v47, %v6473_v60  ;;  %v6380_v55 = vpop.f32.mrf.mxu0 }
 0xaee   :  { %v6577_v37 = vadd.f32 %v10932_v51, %v6535_v3 }
 0xaf0   :  { %v6615_v45 = vmax.f32 %v6577_v37, 0.0  ;;  %v8325_v37 = vmov 0  }
 0xaf1   :  { %v6474_v17 = vpop.f32.mrf.mxu1  ;;  %8122 = vset.pattern.permute.xlu0 %v8325_v37 }
 0xaf2   :  { %v6475_v22 = vadd.f32 %v6474_v17, %v6370_v43 }
 0xaf4   :  { %v6536_v53 = vmul.f32 %v10921_v47, %v6475_v22  ;;  %v6383_v23 = vpop.f32.mrf.mxu0 }
 0xaf6   :  { %v6578_v25 = vadd.f32 %v10932_v51, %v6536_v53  ;;  %v6649_v53 = vld [vmem:[#allocation2] sm:$0x1] }
 0xaf7   :  { %6652 = vperm.xlu0 %8122, %v6649_v53  }
 0xaf8   :  { %v6616_v31 = vmax.f32 %v6578_v25, 0.0 }
 0xaf9   :  { %v6477_v36 = vpop.f32.mrf.mxu1 }
 0xafa   :  { %v6642_v42 = vpack.c.bf16 %v6616_v31, %v6615_v45  ;;  %v6478_v63 = vadd.f32 %v6477_v36, %v6373_v44 }
 0xafc   :  { %v6385_v7 = vpop.f32.mrf.mxu0  ;;  %v6537_v49 = vmul.f32 %v10921_v47, %v6478_v63 }
 0xafe   :  { %v6579_v56 = vadd.f32 %v10932_v51, %v6537_v49 }
 0xb00   :  { %v6617_v61 = vmax.f32 %v6579_v56, 0.0 }
 0xb01   :  { %v6479_v57 = vpop.f32.mrf.mxu1 }
 0xb02   :  { %v6480_v11 = vadd.f32 %v6479_v57, %v6375_v54 }
 0xb04   :  { %v11130_v33 = vpop.f32.mrf.mxu0  ;;  %v6538_v21 = vmul.f32 %v10921_v47, %v6480_v11 }
 0xb06   :  { %v6580_v30 = vadd.f32 %v10932_v51, %v6538_v21 }
 0xb08   :  { %v6618_v2 = vmax.f32 %v6580_v30, 0.0 }
 0xb09   :  { %v6482_v18 = vpop.f32.mrf.mxu1 }
 0xb0a   :  { %v6483_v58 = vadd.f32 %v6482_v18, %v6378_v29  ;;  %v6643_v52 = vpack.c.bf16 %v6618_v2, %v6617_v61 }
 0xb0c   :  { %v6539_v32 = vmul.f32 %v10921_v47, %v6483_v58  ;;  %v6390_v19 = vpop.f32.mrf.mxu0 }
 0xb0e   :  { %v6581_v46 = vadd.f32 %v10932_v51, %v6539_v32 }
 0xb10   :  { %v6619_v5 = vmax.f32 %v6581_v46, 0.0 }
 0xb11   :  { %v6484_v8 = vpop.f32.mrf.mxu1 }
 0xb12   :  { %v6485_v20 = vadd.f32 %v6484_v8, %v6380_v55 }
 0xb14   :  { %v6540_v28 = vmul.f32 %v10921_v47, %v6485_v20  ;;  %v6393_v10 = vpop.f32.mrf.mxu0 }
 0xb16   :  { %v6582_v38 = vadd.f32 %v10932_v51, %v6540_v28 }
 0xb18   :  { %v6620_v13 = vmax.f32 %v6582_v38, 0.0 }
 0xb19   :  { %v6487_v62 = vpop.f32.mrf.mxu1 }
 0xb1a   :  { %v6488_v24 = vadd.f32 %v6487_v62, %v6383_v23  ;;  %v6644_v50 = vpack.c.bf16 %v6620_v13, %v6619_v5 }
 0xb1c   :  { %v6541_v48 = vmul.f32 %v10921_v47, %v6488_v24  ;;  %v6395_v40 = vpop.f32.mrf.mxu0 }
 0xb1e   :  { %v6583_v4 = vadd.f32 %v10932_v51, %v6541_v48 }
 0xb20   :  { %v6621_v15 = vmax.f32 %v6583_v4, 0.0 }
 0xb21   :  { %v6489_v59 = vpop.f32.mrf.mxu1 }
 0xb22   :  { %v6490_v1 = vadd.f32 %v6489_v59, %v6385_v7 }
 0xb24   :  { %v6542_v39 = vmul.f32 %v10921_v47, %v6490_v1  ;;  %v6398_v0 = vpop.f32.mrf.mxu0 }
 0xb26   :  { %v6584_v34 = vadd.f32 %v10932_v51, %v6542_v39 }
 0xb28   :  { %v6622_v6 = vmax.f32 %v6584_v34, 0.0 }
 0xb29   :  { %v6492_v26 = vpop.f32.mrf.mxu1 }
 0xb2a   :  { %v6645_v14 = vpack.c.bf16 %v6622_v6, %v6621_v15  ;;  %v6493_v62 = vadd.f32 %v6492_v26, %v11130_v33 }
 0xb2c   :  { %6669 = vmatpush.bf16.xpose.msrb.mxu3 %v6645_v14  ;;  %v6400_v17 = vpop.f32.mrf.mxu0  ;;  %v6543_v59 = vmul.f32 %v10921_v47, %v6493_v62 }
 0xb2e   :  { %v6585_v4 = vadd.f32 %v10932_v51, %v6543_v59 }
 0xb30   :  { %v6623_v39 = vmax.f32 %v6585_v4, 0.0 }
 0xb31   :  { %v6494_v43 = vpop.f32.mrf.mxu1 }
 0xb32   :  { %v6495_v23 = vadd.f32 %v6494_v43, %v6390_v19  ;;  %v6705_v19 = vlaneseq }
 0xb34   :  { %6670 = vmatpush.bf16.xpose.msrb.mxu3 %v6644_v50  ;;  %vm6707_vm2 = vcmp.lt.s32.totalorder %v6705_v19, 300 }
 0xb39   :  { %v6497_v44 = vpop.f32.mrf.mxu1 }
 0xb3a   :  { %v6498_v45 = vadd.f32 %v6497_v44, %v6393_v10 }
 0xb3c   :  { %6671 = vmatpush.bf16.xpose.msrb.mxu3 %v6643_v52  ;;  %v6545_v55 = vmul.f32 %v10921_v47, %v6498_v45 }
 0xb3e   :  { %v6587_v24 = vadd.f32 %v10932_v51, %v6545_v55 }
 0xb40   :  { %v6625_v20 = vmax.f32 %v6587_v24, 0.0 }
 0xb41   :  { %v6499_v27 = vpop.f32.mrf.mxu1 }
 0xb42   :  { %v6500_v25 = vadd.f32 %v6499_v27, %v6395_v40 }
 0xb44   :  { %6672 = vmatpush.bf16.xpose.msrb.mxu3 %v6642_v42  ;;  %v6546_v42 = vmul.f32 %v10921_v47, %v6500_v25 }
 0xb46   :  { %v6588_v8 = vadd.f32 %v10932_v51, %v6546_v42 }
 0xb48   :  { %v6626_v48 = vmax.f32 %v6588_v8, 0.0 }
 0xb49   :  { %v6502_v60 = vpop.f32.mrf.mxu1 }
 0xb4a   :  { %v6503_v54 = vadd.f32 %v6502_v60, %v6398_v0  ;;  %v6647_v58 = vpack.c.bf16 %v6626_v48, %v6625_v20 }
 0xb4c   :  { %6673 = vmatpush.bf16.xpose.msrb.mxu3 %v11124_v35  ;;  %v6547_v3 = vmul.f32 %v10921_v47, %v6503_v54 }
 0xb4e   :  { %v6589_v31 = vadd.f32 %v10932_v51, %v6547_v3 }
 0xb50   :  { %v6627_v57 = vmax.f32 %v6589_v31, 0.0 }
 0xb51   :  { %v6504_v22 = vpop.f32.mrf.mxu1 }
 0xb52   :  { %v6505_v29 = vadd.f32 %v6504_v22, %v6400_v17 }
 0xb54   :  { %v6548_v36 = vmul.f32 %v10921_v47, %v6505_v29  ;;  %6674 = vmatpush.bf16.xpose.msrb.mxu3 %v11116_v12  ;;  %v6544_v12 = vmul.f32 %v10921_v47, %v6495_v23 }
 0xb56   :  { %v6590_v35 = vadd.f32 %v10932_v51, %v6548_v36  ;;  %v6586_v1 = vadd.f32 %v10932_v51, %v6544_v12 }
 0xb58   :  { %v6628_v18 = vmax.f32 %v6590_v35, 0.0  ;;  %v6624_v33 = vmax.f32 %v6586_v1, 0.0 }
 0xb5a   :  { %v6648_v7 = vpack.c.bf16 %v6628_v18, %v6627_v57  ;;  %v6646_v28 = vpack.c.bf16 %v6624_v33, %v6623_v39 }
 0xb5c   :  { %6675 = vmatpush.bf16.xpose.msrb.mxu3 %v11107_v16  ;;  %6687 = vmatpush.bf16.xpose.msra.mxu2 %v6648_v7 }
 0xb64   :  { %6676 = vmatpush.bf16.xpose.msrb.mxu3 %v11092_v9  ;;  %6688 = vmatpush.bf16.xpose.msra.mxu2 %v6647_v58 }
 0xb69   :  { %v6653_v32 = vpop.permute.xlu0 %6652 }
 0xb6a   :  { %v6655_v47 = vperm.slane %v6653_v32, 0 }
 0xb6b   :  { %6677 = vmatmul.bf16.vlgmr.msrb.gmra.mxu3 %v6629_v41 }
 0xb6c   :  { %6689 = vmatpush.bf16.xpose.msra.mxu2 %v6646_v28 }
 0xb6e   :  { %v6665_v16 = vpop.f32.mrf.mxu2 }
 0xb6f   :  { %v6666_v9 = vadd.f32 %v6665_v16, %v6655_v47 }
 0xb73   :  { %6690 = vmatmul.bf16.vlgmr.msra.gmra.mxu2 %v6629_v41 }
 0xb76   :  { %v6667_v34 = vpop.f32.mrf.mxu2 }
 0xbee   :  { %v6678_v15 = vpop.f32.mrf.mxu3 }
 0xbef   :  { %v6679_v6 = vadd.f32 %v6678_v15, %v6655_v47 }
 0xbf1   :  { %v6698_v26 = vrot.slane %v6679_v6, 7 }
 0xbf3   :  { %v6701_v63 = vsel %vm6700_vm0, %v6666_v9, %v6698_v26 }
 0xbf6   :  { %v6691_v11 = vpop.f32.mrf.mxu2  ;;  %v6680_v38 = vpop.f32.mrf.mxu3 }
 0xbf7   :  { %v6692_v51 = vadd.f32 %v6691_v11, %v6655_v47 }
 0xbf9   :  { %v6699_v14 = vrot.slane %v6692_v51, 6 }
 0xbfb   :  { %v6703_v46 = vsel %vm6702_vm1, %v6701_v63, %v6699_v14 }
 0xbfc   :  { %6709 = vst.msk [vmem:[#allocation14] sm:$0x7] %vm6707_vm2, %v6703_v46 }
 0xbfd   :  { %6720 = dma.vmem_to_hbm [thread:$0]  %s6716_s29, 48, %s6718_s13, [#allocation5]  }
 0xbfe   :  { %v6693_v21 = vpop.f32.mrf.mxu2 }
 0xbff   :  { %8309 = dma.done.wait [#allocation5], 48  }
 0xc00   :  { %8310 = vsyncadd [#allocation5], 4294967248 }
 0xc01   :  { %6725 = vsyncpa [#allocation4], 1 }
 0xc02   :  { %6726 = vsyncpa [#allocation7], 1 }
 0xc03   :  { %6727 = vsyncpa [#allocation10], 1 }
 0xc04   :  { %6728 = vsyncpa [#allocation13], 1 }
 0xc05   :  { %6729 = vsyncpa [#allocation5], 1 }

</bundles_post_ra>
